<compile_context>
chip_gen: v5e
topology: v5e:2x2
jax: 0.10.0
libtpu: 0.0.40
codegen_flags: <defaults>
</compile_context>

<pallas_src>
import math

import jax
import jax.numpy as jnp
from jax.experimental import pallas as pl
from jax.experimental.pallas import tpu as pltpu

WIDTH = 8          # self.width (channels C)
NUM_HIDDEN = 32    # d_hidden of the symbol nets
NUM_LAYER = 2      # hidden layers per Net  (kernel specialised to 4 dense layers/Net)
NUM_BLOCKS = 4     # conv0..conv3 / w0..w3
BATCH = 2
SEQ = 16           # spatial resolution S


# ----------------------------------------------------------------------------
# exact (erf-based) GELU matching torch.nn.functional.gelu default.
# erf via Abramowitz & Stegun 7.1.26 polynomial (|err| < 1.5e-7), plain VPU/EUP ops.
def _erf(x):
    a1, a2, a3, a4, a5 = 0.254829592, -0.284496736, 1.421413741, -1.453152027, 1.061405429
    p = 0.3275911
    sgn = jnp.where(x >= 0.0, 1.0, -1.0)
    ax = jnp.abs(x)
    t = 1.0 / (1.0 + p * ax)
    poly = ((((a5 * t + a4) * t + a3) * t + a2) * t + a1) * t
    return sgn * (1.0 - poly * jnp.exp(-ax * ax))


def _gelu(x):
    return 0.5 * x * (1.0 + _erf(x * (1.0 / math.sqrt(2.0))))


# ----------------------------------------------------------------------------
# single fused kernel: fc0 -> (12 hyper-nets) -> 4 spectral blocks -> fc1 -> fc2
def _burgers_fused_kernel(
    # activations / geometry
    x_col_ref, grid_col_ref, freq_col_ref,
    ftr_ref, fti_ref, gtr_ref, gti_ref, sel_ref,
    # fc0
    fc0_w_ref, fc0_b_ref,
    # packed frequency hyper-nets (8 nets, block-diagonal)
    fw0_ref, fb0_ref, fW1_ref, fb1_ref, fW2_ref, fb2_ref, fW3_ref, fb3_ref,
    # packed spatial hyper-nets (4 nets, block-diagonal)
    sw0_ref, sb0_ref, sW1_ref, sb1_ref, sW2_ref, sb2_ref, sW3_ref, sb3_ref,
    # 1x1 convs
    w1x1T_ref, b1x1_ref,
    # head
    fc1_w_ref, fc1_b_ref, fc2_w_ref, fc2_b_ref,
    # output
    o_ref,
):
    f32 = jnp.float32
    C = fc0_b_ref.shape[1]
    CC = C * C
    n_blocks = w1x1T_ref.shape[0]

    # ---------------- fc0 as two broadcast FMAs (d_in == 2) -----------------
    # h rows = (b, s), cols = channel:  h[b*S+s, c] = x[b,s]*W[0,c] + grid[s]*W[1,c] + b[c]
    fc0_w = fc0_w_ref[...]
    h = (x_col_ref[...] * fc0_w[0:1, :]
         + grid_col_ref[...] * fc0_w[1:2, :]
         + fc0_b_ref[...])                                       # (B*S, C)

    # ---------------- all 12 hyper-nets as 2 packed (block-diagonal) MLPs ----
    def packed_net(g, w0, b0, W1, b1, W2, b2, W3, b3):
        hh = _gelu(g * w0[...] + b0[...])                        # d_in == 1 -> broadcast FMA
        hh = _gelu(jnp.dot(hh, W1[...], preferred_element_type=f32) + b1[...])
        hh = _gelu(jnp.dot(hh, W2[...], preferred_element_type=f32) + b2[...])
        return jnp.dot(hh, W3[...], preferred_element_type=f32) + b3[...]

    # freq nets ordered [l0_real, l0_imag, l1_real, l1_imag, ...]; output cols = o*C + c.
    # freq_col / grid_col are already batch-replicated, so rows are ordered (b, k) / (b, s).
    wfreq = packed_net(freq_col_ref[...], fw0_ref, fb0_ref, fW1_ref, fb1_ref,
                       fW2_ref, fb2_ref, fW3_ref, fb3_ref)       # (B*K, 2*n_blocks*CC)
    # spatial nets ordered [l0_out, l1_out, l2_out, l3_out]
    wspat = packed_net(grid_col_ref[...], sw0_ref, sb0_ref, sW1_ref, sb1_ref,
                       sW2_ref, sb2_ref, sW3_ref, sb3_ref)       # (B*S, n_blocks*CC)

    ftr = ftr_ref[...]    # (B*K, B*S)  batch-block-diag Re(rfft) matrix
    fti = fti_ref[...]    # (B*K, B*S)  batch-block-diag Im(rfft) matrix
    gtr = gtr_ref[...]    # (B*S, B*K)  batch-block-diag halfcomplex irfft (real)
    gti = gti_ref[...]    # (B*S, B*K)  batch-block-diag halfcomplex irfft (imag)
    sel = sel_ref[...]    # (CC, C)     sums the irfft result over input channels

    # ---------------- 4 fused spectral-conv + 1x1-conv blocks ---------------
    for l in range(n_blocks):
        wr = wfreq[:, (2 * l) * CC:(2 * l + 1) * CC]             # (B*K, CC) col = o*C + c
        wi = wfreq[:, (2 * l + 1) * CC:(2 * l + 2) * CC]         # (B*K, CC)
        wo = wspat[:, l * CC:(l + 1) * CC]                       # (B*S, CC)

        # rfft over the spatial axis of every (batch, channel) column
        xr = jnp.dot(ftr, h, preferred_element_type=f32)         # (B*K, C)  Re(rfft)
        xi = jnp.dot(fti, h, preferred_element_type=f32)         # (B*K, C)  Im(rfft)
        # replicate per-input-channel spectrum across output channels: col = o*C + c
        xr = jnp.concatenate([xr] * C, axis=1)                   # (B*K, CC)
        xi = jnp.concatenate([xi] * C, axis=1)                   # (B*K, CC)

        ofr = xr * wr - xi * wi                                  # Re(x_ft * W)
        ofi = xr * wi + xi * wr                                  # Im(x_ft * W)
        inv = (jnp.dot(gtr, ofr, preferred_element_type=f32)
               + jnp.dot(gti, ofi, preferred_element_type=f32))  # (B*S, CC)  irfft

        # x1 = (inv * weights_out) summed over input channels; x2 = 1x1 conv on h
        y = (jnp.dot(inv * wo, sel, preferred_element_type=f32)
             + jnp.dot(h, w1x1T_ref[l], preferred_element_type=f32)
             + b1x1_ref[l])                                      # (B*S, C)
        if l < n_blocks - 1:                                     # no GELU after last block
            y = _gelu(y)
        h = y

    # ---------------- fc1 + GELU + fc2 (lane-dense (B*S, 128) intermediate) --
    z = _gelu(jnp.dot(h, fc1_w_ref[...], preferred_element_type=f32) + fc1_b_ref[...])
    o_ref[...] = jnp.dot(z, fc2_w_ref[...], preferred_element_type=f32) + fc2_b_ref[...]


# ----------------------------------------------------------------------------
# real DFT matrices for rfft / irfft along the last axis (length S, K = S//2+1).
# TODO(synk): no FFT primitive in Pallas; exact dense DFT matmuls are used instead.
def _dft_matrices(S):
    K = S // 2 + 1
    k = jnp.arange(K, dtype=jnp.float32)[:, None]
    t = jnp.arange(S, dtype=jnp.float32)[None, :]
    ang = 2.0 * jnp.pi * k * t / S                   # (K, S)
    ftrT = jnp.cos(ang)                              # Re(rfft(x))[k] = sum_t ftrT[k,t] x[t]
    ftiT = -jnp.sin(ang)                             # Im(rfft(x))[k]
    c = jnp.full((K,), 2.0, dtype=jnp.float32).at[0].set(1.0)
    if S % 2 == 0:
        c = c.at[K - 1].set(1.0)
    # halfcomplex c2r inverse (imag of DC / Nyquist bins contribute 0, as torch.fft.irfft)
    gtrT = (c[None, :] * jnp.cos(ang).T) / S         # (S, K)
    gtiT = (-c[None, :] * jnp.sin(ang).T) / S        # (S, K)
    return ftrT, ftiT, gtrT, gtiT


def _batch_block_diag(m, B):
    r, c = m.shape
    out = jnp.zeros((B * r, B * c), m.dtype)
    for b in range(B):
        out = out.at[b * r:(b + 1) * r, b * c:(b + 1) * c].set(m)
    return out


# ----------------------------------------------------------------------------
# deterministic synthetic parameter init (mirrors module shapes; weights stored in
# matmul-friendly (d_in, d_out) layout -- torch weights would be transposed on load).
def init_linear(key, d_in, d_out):
    kw, kb = jax.random.split(key)
    bound = 1.0 / math.sqrt(d_in)
    w = jax.random.uniform(kw, (d_in, d_out), jnp.float32, -bound, bound)
    b = jax.random.uniform(kb, (d_out,), jnp.float32, -bound, bound)
    return w, b


def _block_diag(blocks):
    n = len(blocks)
    r, c = blocks[0].shape
    out = jnp.zeros((n * r, n * c), jnp.float32)
    for i, blk in enumerate(blocks):
        out = out.at[i * r:(i + 1) * r, i * c:(i + 1) * c].set(blk)
    return out


def _pack_nets(nets):
    # nets: list of N nets, each 4 dense layers (1->H, H->H, H->H, H->CC)
    def cat_b(i):
        return jnp.concatenate([n[i][1].reshape(1, -1) for n in nets], axis=1)
    return {
        "w0": jnp.concatenate([n[0][0] for n in nets], axis=1), "b0": cat_b(0),
        "W1": _block_diag([n[1][0] for n in nets]), "b1": cat_b(1),
        "W2": _block_diag([n[2][0] for n in nets]), "b2": cat_b(2),
        "W3": _block_diag([n[3][0] for n in nets]), "b3": cat_b(3),
    }


def init_params(key, width=WIDTH, num_hidden=NUM_HIDDEN, num_layer=NUM_LAYER):
    assert num_layer == 2, "kernel specialised to num_layer=2 (4 dense layers per Net)"
    C, H, CC = width, num_hidden, width * width
    keys = jax.random.split(key, 256)
    key_it = iter(keys)

    def lin(d_in, d_out):
        return init_linear(next(key_it), d_in, d_out)

    def make_net():
        return [lin(1, H), lin(H, H), lin(H, H), lin(H, CC)]

    params = {}
    fc0_w, fc0_b = lin(2, C)
    params["fc0_w"], params["fc0_b"] = fc0_w, fc0_b.reshape(1, C)

    freq_nets, spat_nets, w1T_list, b1_list = [], [], [], []
    for _ in range(NUM_BLOCKS):
        freq_nets.append(make_net())       # net_real
        freq_nets.append(make_net())       # net_imag
        spat_nets.append(make_net())       # net_out
        w, b = lin(C, C)                   # 1x1 Conv1d; stored (in, out) = torch w[:, :, 0].T
        w1T_list.append(w)
        b1_list.append(b.reshape(1, C))

    params["freq_nets"] = _pack_nets(freq_nets)      # 8 nets, block-diagonal
    params["spat_nets"] = _pack_nets(spat_nets)      # 4 nets, block-diagonal
    params["w1x1T"] = jnp.stack(w1T_list, axis=0)    # (4, C, C)
    params["b1x1"] = jnp.stack(b1_list, axis=0)      # (4, 1, C)

    fc1_w, fc1_b = lin(C, 128)
    fc2_w, fc2_b = lin(128, 1)
    params["fc1_w"], params["fc1_b"] = fc1_w, fc1_b.reshape(1, 128)
    params["fc2_w"], params["fc2_b"] = fc2_w, fc2_b.reshape(1, 1)
    return params


# ----------------------------------------------------------------------------
def burgers_forward(x, params):
    B, S, _ = x.shape
    C = params["fc0_w"].shape[1]
    K = S // 2 + 1
    CC = C * C

    # geometry / DFT constants (tiny; produced once before the single kernel call)
    spat = jnp.linspace(0.0, 1.0, S, dtype=jnp.float32)                 # get_grid
    freq = jnp.arange(K, dtype=jnp.float32) / S                         # rfftfreq(S, d=1)
    x_col = x.reshape(B * S, 1).astype(jnp.float32)
    grid_col = jnp.tile(spat, (B,)).reshape(B * S, 1)                   # (B*S, 1) rows = (b, s)
    freq_col = jnp.tile(freq, (B,)).reshape(B * K, 1)                   # (B*K, 1) rows = (b, k)
    ftrT, ftiT, gtrT, gtiT = _dft_matrices(S)
    ftr_bd = _batch_block_diag(ftrT, B)                                  # (B*K, B*S)
    fti_bd = _batch_block_diag(ftiT, B)
    gtr_bd = _batch_block_diag(gtrT, B)                                  # (B*S, B*K)
    gti_bd = _batch_block_diag(gtiT, B)
    sel = ((jnp.arange(CC)[:, None] // C) == jnp.arange(C)[None, :]).astype(jnp.float32)

    fp = params["freq_nets"]
    sp = params["spat_nets"]

    out_flat = pl.pallas_call(
        _burgers_fused_kernel,
        out_shape=jax.ShapeDtypeStruct((B * S, 1), jnp.float32),
        compiler_params=pltpu.CompilerParams(vmem_limit_bytes=16 * 1024 * 1024),
    )(
        x_col, grid_col, freq_col,
        ftr_bd, fti_bd, gtr_bd, gti_bd, sel,
        params["fc0_w"], params["fc0_b"],
        fp["w0"], fp["b0"], fp["W1"], fp["b1"], fp["W2"], fp["b2"], fp["W3"], fp["b3"],
        sp["w0"], sp["b0"], sp["W1"], sp["b1"], sp["W2"], sp["b2"], sp["W3"], sp["b3"],
        params["w1x1T"], params["b1x1"],
        params["fc1_w"], params["fc1_b"], params["fc2_w"], params["fc2_b"],
    )
    return out_flat.reshape(B, S, 1)


if __name__ == "__main__":
    key = jax.random.PRNGKey(0)
    kx, kp = jax.random.split(key)
    x = jax.random.normal(kx, (BATCH, SEQ, 1), dtype=jnp.float32)
    params = init_params(kp)

    fwd = jax.jit(burgers_forward)
    out = jax.block_until_ready(fwd(x, params))
    assert out.shape == (BATCH, SEQ, 1)
    assert bool(jnp.all(jnp.isfinite(out)))
    print("KERNEL_OK")
</pallas_src>

<mosaic_0001>
module attributes {stable_mosaic.version = 11 : i64} {
  func.func @_burgers_fused_kernel(%arg0: memref<32x1xf32, #tpu.memory_space<vmem>>, %arg1: memref<32x1xf32, #tpu.memory_space<vmem>>, %arg2: memref<18x1xf32, #tpu.memory_space<vmem>>, %arg3: memref<18x32xf32, #tpu.memory_space<vmem>>, %arg4: memref<18x32xf32, #tpu.memory_space<vmem>>, %arg5: memref<32x18xf32, #tpu.memory_space<vmem>>, %arg6: memref<32x18xf32, #tpu.memory_space<vmem>>, %arg7: memref<64x8xf32, #tpu.memory_space<vmem>>, %arg8: memref<2x8xf32, #tpu.memory_space<vmem>>, %arg9: memref<1x8xf32, #tpu.memory_space<vmem>>, %arg10: memref<1x256xf32, #tpu.memory_space<vmem>>, %arg11: memref<1x256xf32, #tpu.memory_space<vmem>>, %arg12: memref<256x256xf32, #tpu.memory_space<vmem>>, %arg13: memref<1x256xf32, #tpu.memory_space<vmem>>, %arg14: memref<256x256xf32, #tpu.memory_space<vmem>>, %arg15: memref<1x256xf32, #tpu.memory_space<vmem>>, %arg16: memref<256x512xf32, #tpu.memory_space<vmem>>, %arg17: memref<1x512xf32, #tpu.memory_space<vmem>>, %arg18: memref<1x128xf32, #tpu.memory_space<vmem>>, %arg19: memref<1x128xf32, #tpu.memory_space<vmem>>, %arg20: memref<128x128xf32, #tpu.memory_space<vmem>>, %arg21: memref<1x128xf32, #tpu.memory_space<vmem>>, %arg22: memref<128x128xf32, #tpu.memory_space<vmem>>, %arg23: memref<1x128xf32, #tpu.memory_space<vmem>>, %arg24: memref<128x256xf32, #tpu.memory_space<vmem>>, %arg25: memref<1x256xf32, #tpu.memory_space<vmem>>, %arg26: memref<4x8x8xf32, #tpu.memory_space<vmem>>, %arg27: memref<4x1x8xf32, #tpu.memory_space<vmem>>, %arg28: memref<8x128xf32, #tpu.memory_space<vmem>>, %arg29: memref<1x128xf32, #tpu.memory_space<vmem>>, %arg30: memref<128x1xf32, #tpu.memory_space<vmem>>, %arg31: memref<1x1xf32, #tpu.memory_space<vmem>>, %arg32: memref<32x1xf32, #tpu.memory_space<vmem>>) attributes {dimension_semantics = [], scalar_prefetch = 0 : i64, scratch_operands = 0 : i64, tpu.core_type = #tpu.core_type<tc>} {
    %c0 = arith.constant 0 : index
    %c0_0 = arith.constant 0 : index
    %0 = vector.load %arg8[%c0, %c0_0] : memref<2x8xf32, #tpu.memory_space<vmem>>, vector<2x8xf32>
    %c0_1 = arith.constant 0 : index
    %c0_2 = arith.constant 0 : index
    %1 = vector.load %arg0[%c0_1, %c0_2] : memref<32x1xf32, #tpu.memory_space<vmem>>, vector<32x1xf32>
    %2 = vector.extract_strided_slice %0 {offsets = [0, 0], sizes = [1, 8], strides = [1, 1]} : vector<2x8xf32> to vector<1x8xf32>
    %3 = vector.broadcast %1 : vector<32x1xf32> to vector<32x8xf32>
    %4 = vector.broadcast %2 : vector<1x8xf32> to vector<32x8xf32>
    %5 = arith.mulf %3, %4 : vector<32x8xf32>
    %c0_3 = arith.constant 0 : index
    %c0_4 = arith.constant 0 : index
    %6 = vector.load %arg1[%c0_3, %c0_4] : memref<32x1xf32, #tpu.memory_space<vmem>>, vector<32x1xf32>
    %7 = vector.extract_strided_slice %0 {offsets = [1, 0], sizes = [1, 8], strides = [1, 1]} : vector<2x8xf32> to vector<1x8xf32>
    %8 = vector.broadcast %6 : vector<32x1xf32> to vector<32x8xf32>
    %9 = vector.broadcast %7 : vector<1x8xf32> to vector<32x8xf32>
    %10 = arith.mulf %8, %9 : vector<32x8xf32>
    %11 = arith.addf %5, %10 : vector<32x8xf32>
    %c0_5 = arith.constant 0 : index
    %c0_6 = arith.constant 0 : index
    %12 = vector.load %arg9[%c0_5, %c0_6] : memref<1x8xf32, #tpu.memory_space<vmem>>, vector<1x8xf32>
    %13 = vector.broadcast %12 : vector<1x8xf32> to vector<32x8xf32>
    %14 = arith.addf %11, %13 : vector<32x8xf32>
    %c0_7 = arith.constant 0 : index
    %c0_8 = arith.constant 0 : index
    %15 = vector.load %arg2[%c0_7, %c0_8] : memref<18x1xf32, #tpu.memory_space<vmem>>, vector<18x1xf32>
    %c0_9 = arith.constant 0 : index
    %c0_10 = arith.constant 0 : index
    %16 = vector.load %arg10[%c0_9, %c0_10] : memref<1x256xf32, #tpu.memory_space<vmem>>, vector<1x256xf32>
    %17 = vector.broadcast %15 : vector<18x1xf32> to vector<18x256xf32>
    %18 = vector.broadcast %16 : vector<1x256xf32> to vector<18x256xf32>
    %19 = arith.mulf %17, %18 : vector<18x256xf32>
    %c0_11 = arith.constant 0 : index
    %c0_12 = arith.constant 0 : index
    %20 = vector.load %arg11[%c0_11, %c0_12] : memref<1x256xf32, #tpu.memory_space<vmem>>, vector<1x256xf32>
    %21 = vector.broadcast %20 : vector<1x256xf32> to vector<18x256xf32>
    %22 = arith.addf %19, %21 : vector<18x256xf32>
    %cst = arith.constant 5.000000e-01 : f32
    %23 = vector.broadcast %cst : f32 to vector<18x256xf32>
    %24 = arith.mulf %23, %22 : vector<18x256xf32>
    %cst_13 = arith.constant 0.707106769 : f32
    %25 = vector.broadcast %cst_13 : f32 to vector<18x256xf32>
    %26 = arith.mulf %22, %25 : vector<18x256xf32>
    %cst_14 = arith.constant 0.000000e+00 : f32
    %27 = vector.broadcast %cst_14 : f32 to vector<18x256xf32>
    %28 = arith.cmpf oge, %26, %27 : vector<18x256xf32>
    %cst_15 = arith.constant 1.000000e+00 : f32
    %cst_16 = arith.constant -1.000000e+00 : f32
    %29 = vector.broadcast %cst_15 : f32 to vector<18x256xf32>
    %30 = vector.broadcast %cst_16 : f32 to vector<18x256xf32>
    %31 = arith.select %28, %29, %30 : vector<18x256xi1>, vector<18x256xf32>
    %32 = math.absf %26 : vector<18x256xf32>
    %cst_17 = arith.constant 0.327591091 : f32
    %33 = vector.broadcast %cst_17 : f32 to vector<18x256xf32>
    %34 = arith.mulf %33, %32 : vector<18x256xf32>
    %cst_18 = arith.constant 1.000000e+00 : f32
    %35 = vector.broadcast %cst_18 : f32 to vector<18x256xf32>
    %36 = arith.addf %35, %34 : vector<18x256xf32>
    %cst_19 = arith.constant 1.000000e+00 : f32
    %37 = vector.broadcast %cst_19 : f32 to vector<18x256xf32>
    %38 = arith.divf %37, %36 : vector<18x256xf32>
    %cst_20 = arith.constant 1.06140542 : f32
    %39 = vector.broadcast %cst_20 : f32 to vector<18x256xf32>
    %40 = arith.mulf %39, %38 : vector<18x256xf32>
    %cst_21 = arith.constant -1.45315206 : f32
    %41 = vector.broadcast %cst_21 : f32 to vector<18x256xf32>
    %42 = arith.addf %40, %41 : vector<18x256xf32>
    %43 = arith.mulf %42, %38 : vector<18x256xf32>
    %cst_22 = arith.constant 1.42141378 : f32
    %44 = vector.broadcast %cst_22 : f32 to vector<18x256xf32>
    %45 = arith.addf %43, %44 : vector<18x256xf32>
    %46 = arith.mulf %45, %38 : vector<18x256xf32>
    %cst_23 = arith.constant -0.284496725 : f32
    %47 = vector.broadcast %cst_23 : f32 to vector<18x256xf32>
    %48 = arith.addf %46, %47 : vector<18x256xf32>
    %49 = arith.mulf %48, %38 : vector<18x256xf32>
    %cst_24 = arith.constant 0.254829586 : f32
    %50 = vector.broadcast %cst_24 : f32 to vector<18x256xf32>
    %51 = arith.addf %49, %50 : vector<18x256xf32>
    %52 = arith.mulf %51, %38 : vector<18x256xf32>
    %cst_25 = arith.constant 0.000000e+00 : f32
    %53 = vector.broadcast %cst_25 : f32 to vector<18x256xf32>
    %54 = arith.subf %53, %32 : vector<18x256xf32>
    %55 = arith.mulf %54, %32 : vector<18x256xf32>
    %56 = math.exp %55 : vector<18x256xf32>
    %57 = arith.mulf %52, %56 : vector<18x256xf32>
    %cst_26 = arith.constant 1.000000e+00 : f32
    %58 = vector.broadcast %cst_26 : f32 to vector<18x256xf32>
    %59 = arith.subf %58, %57 : vector<18x256xf32>
    %60 = arith.mulf %31, %59 : vector<18x256xf32>
    %cst_27 = arith.constant 1.000000e+00 : f32
    %61 = vector.broadcast %cst_27 : f32 to vector<18x256xf32>
    %62 = arith.addf %61, %60 : vector<18x256xf32>
    %63 = arith.mulf %24, %62 : vector<18x256xf32>
    %c0_28 = arith.constant 0 : index
    %c0_29 = arith.constant 0 : index
    %64 = vector.load %arg12[%c0_28, %c0_29] : memref<256x256xf32, #tpu.memory_space<vmem>>, vector<256x256xf32>
    %cst_30 = arith.constant dense<0.000000e+00> : vector<18x256xf32>
    %65 = tpu.matmul %63, %64, %cst_30 {dimension_numbers = #tpu.dot_dimension_numbers<[1], [0], [0], [1], [0, 0, 1, 1], [], []>} : vector<18x256xf32>, vector<256x256xf32>, vector<18x256xf32> -> vector<18x256xf32>
    %c0_31 = arith.constant 0 : index
    %c0_32 = arith.constant 0 : index
    %66 = vector.load %arg13[%c0_31, %c0_32] : memref<1x256xf32, #tpu.memory_space<vmem>>, vector<1x256xf32>
    %67 = vector.broadcast %66 : vector<1x256xf32> to vector<18x256xf32>
    %68 = arith.addf %65, %67 : vector<18x256xf32>
    %cst_33 = arith.constant 5.000000e-01 : f32
    %69 = vector.broadcast %cst_33 : f32 to vector<18x256xf32>
    %70 = arith.mulf %69, %68 : vector<18x256xf32>
    %cst_34 = arith.constant 0.707106769 : f32
    %71 = vector.broadcast %cst_34 : f32 to vector<18x256xf32>
    %72 = arith.mulf %68, %71 : vector<18x256xf32>
    %cst_35 = arith.constant 0.000000e+00 : f32
    %73 = vector.broadcast %cst_35 : f32 to vector<18x256xf32>
    %74 = arith.cmpf oge, %72, %73 : vector<18x256xf32>
    %cst_36 = arith.constant 1.000000e+00 : f32
    %cst_37 = arith.constant -1.000000e+00 : f32
    %75 = vector.broadcast %cst_36 : f32 to vector<18x256xf32>
    %76 = vector.broadcast %cst_37 : f32 to vector<18x256xf32>
    %77 = arith.select %74, %75, %76 : vector<18x256xi1>, vector<18x256xf32>
    %78 = math.absf %72 : vector<18x256xf32>
    %cst_38 = arith.constant 0.327591091 : f32
    %79 = vector.broadcast %cst_38 : f32 to vector<18x256xf32>
    %80 = arith.mulf %79, %78 : vector<18x256xf32>
    %cst_39 = arith.constant 1.000000e+00 : f32
    %81 = vector.broadcast %cst_39 : f32 to vector<18x256xf32>
    %82 = arith.addf %81, %80 : vector<18x256xf32>
    %cst_40 = arith.constant 1.000000e+00 : f32
    %83 = vector.broadcast %cst_40 : f32 to vector<18x256xf32>
    %84 = arith.divf %83, %82 : vector<18x256xf32>
    %cst_41 = arith.constant 1.06140542 : f32
    %85 = vector.broadcast %cst_41 : f32 to vector<18x256xf32>
    %86 = arith.mulf %85, %84 : vector<18x256xf32>
    %cst_42 = arith.constant -1.45315206 : f32
    %87 = vector.broadcast %cst_42 : f32 to vector<18x256xf32>
    %88 = arith.addf %86, %87 : vector<18x256xf32>
    %89 = arith.mulf %88, %84 : vector<18x256xf32>
    %cst_43 = arith.constant 1.42141378 : f32
    %90 = vector.broadcast %cst_43 : f32 to vector<18x256xf32>
    %91 = arith.addf %89, %90 : vector<18x256xf32>
    %92 = arith.mulf %91, %84 : vector<18x256xf32>
    %cst_44 = arith.constant -0.284496725 : f32
    %93 = vector.broadcast %cst_44 : f32 to vector<18x256xf32>
    %94 = arith.addf %92, %93 : vector<18x256xf32>
    %95 = arith.mulf %94, %84 : vector<18x256xf32>
    %cst_45 = arith.constant 0.254829586 : f32
    %96 = vector.broadcast %cst_45 : f32 to vector<18x256xf32>
    %97 = arith.addf %95, %96 : vector<18x256xf32>
    %98 = arith.mulf %97, %84 : vector<18x256xf32>
    %cst_46 = arith.constant 0.000000e+00 : f32
    %99 = vector.broadcast %cst_46 : f32 to vector<18x256xf32>
    %100 = arith.subf %99, %78 : vector<18x256xf32>
    %101 = arith.mulf %100, %78 : vector<18x256xf32>
    %102 = math.exp %101 : vector<18x256xf32>
    %103 = arith.mulf %98, %102 : vector<18x256xf32>
    %cst_47 = arith.constant 1.000000e+00 : f32
    %104 = vector.broadcast %cst_47 : f32 to vector<18x256xf32>
    %105 = arith.subf %104, %103 : vector<18x256xf32>
    %106 = arith.mulf %77, %105 : vector<18x256xf32>
    %cst_48 = arith.constant 1.000000e+00 : f32
    %107 = vector.broadcast %cst_48 : f32 to vector<18x256xf32>
    %108 = arith.addf %107, %106 : vector<18x256xf32>
    %109 = arith.mulf %70, %108 : vector<18x256xf32>
    %c0_49 = arith.constant 0 : index
    %c0_50 = arith.constant 0 : index
    %110 = vector.load %arg14[%c0_49, %c0_50] : memref<256x256xf32, #tpu.memory_space<vmem>>, vector<256x256xf32>
    %cst_51 = arith.constant dense<0.000000e+00> : vector<18x256xf32>
    %111 = tpu.matmul %109, %110, %cst_51 {dimension_numbers = #tpu.dot_dimension_numbers<[1], [0], [0], [1], [0, 0, 1, 1], [], []>} : vector<18x256xf32>, vector<256x256xf32>, vector<18x256xf32> -> vector<18x256xf32>
    %c0_52 = arith.constant 0 : index
    %c0_53 = arith.constant 0 : index
    %112 = vector.load %arg15[%c0_52, %c0_53] : memref<1x256xf32, #tpu.memory_space<vmem>>, vector<1x256xf32>
    %113 = vector.broadcast %112 : vector<1x256xf32> to vector<18x256xf32>
    %114 = arith.addf %111, %113 : vector<18x256xf32>
    %cst_54 = arith.constant 5.000000e-01 : f32
    %115 = vector.broadcast %cst_54 : f32 to vector<18x256xf32>
    %116 = arith.mulf %115, %114 : vector<18x256xf32>
    %cst_55 = arith.constant 0.707106769 : f32
    %117 = vector.broadcast %cst_55 : f32 to vector<18x256xf32>
    %118 = arith.mulf %114, %117 : vector<18x256xf32>
    %cst_56 = arith.constant 0.000000e+00 : f32
    %119 = vector.broadcast %cst_56 : f32 to vector<18x256xf32>
    %120 = arith.cmpf oge, %118, %119 : vector<18x256xf32>
    %cst_57 = arith.constant 1.000000e+00 : f32
    %cst_58 = arith.constant -1.000000e+00 : f32
    %121 = vector.broadcast %cst_57 : f32 to vector<18x256xf32>
    %122 = vector.broadcast %cst_58 : f32 to vector<18x256xf32>
    %123 = arith.select %120, %121, %122 : vector<18x256xi1>, vector<18x256xf32>
    %124 = math.absf %118 : vector<18x256xf32>
    %cst_59 = arith.constant 0.327591091 : f32
    %125 = vector.broadcast %cst_59 : f32 to vector<18x256xf32>
    %126 = arith.mulf %125, %124 : vector<18x256xf32>
    %cst_60 = arith.constant 1.000000e+00 : f32
    %127 = vector.broadcast %cst_60 : f32 to vector<18x256xf32>
    %128 = arith.addf %127, %126 : vector<18x256xf32>
    %cst_61 = arith.constant 1.000000e+00 : f32
    %129 = vector.broadcast %cst_61 : f32 to vector<18x256xf32>
    %130 = arith.divf %129, %128 : vector<18x256xf32>
    %cst_62 = arith.constant 1.06140542 : f32
    %131 = vector.broadcast %cst_62 : f32 to vector<18x256xf32>
    %132 = arith.mulf %131, %130 : vector<18x256xf32>
    %cst_63 = arith.constant -1.45315206 : f32
    %133 = vector.broadcast %cst_63 : f32 to vector<18x256xf32>
    %134 = arith.addf %132, %133 : vector<18x256xf32>
    %135 = arith.mulf %134, %130 : vector<18x256xf32>
    %cst_64 = arith.constant 1.42141378 : f32
    %136 = vector.broadcast %cst_64 : f32 to vector<18x256xf32>
    %137 = arith.addf %135, %136 : vector<18x256xf32>
    %138 = arith.mulf %137, %130 : vector<18x256xf32>
    %cst_65 = arith.constant -0.284496725 : f32
    %139 = vector.broadcast %cst_65 : f32 to vector<18x256xf32>
    %140 = arith.addf %138, %139 : vector<18x256xf32>
    %141 = arith.mulf %140, %130 : vector<18x256xf32>
    %cst_66 = arith.constant 0.254829586 : f32
    %142 = vector.broadcast %cst_66 : f32 to vector<18x256xf32>
    %143 = arith.addf %141, %142 : vector<18x256xf32>
    %144 = arith.mulf %143, %130 : vector<18x256xf32>
    %cst_67 = arith.constant 0.000000e+00 : f32
    %145 = vector.broadcast %cst_67 : f32 to vector<18x256xf32>
    %146 = arith.subf %145, %124 : vector<18x256xf32>
    %147 = arith.mulf %146, %124 : vector<18x256xf32>
    %148 = math.exp %147 : vector<18x256xf32>
    %149 = arith.mulf %144, %148 : vector<18x256xf32>
    %cst_68 = arith.constant 1.000000e+00 : f32
    %150 = vector.broadcast %cst_68 : f32 to vector<18x256xf32>
    %151 = arith.subf %150, %149 : vector<18x256xf32>
    %152 = arith.mulf %123, %151 : vector<18x256xf32>
    %cst_69 = arith.constant 1.000000e+00 : f32
    %153 = vector.broadcast %cst_69 : f32 to vector<18x256xf32>
    %154 = arith.addf %153, %152 : vector<18x256xf32>
    %155 = arith.mulf %116, %154 : vector<18x256xf32>
    %c0_70 = arith.constant 0 : index
    %c0_71 = arith.constant 0 : index
    %156 = vector.load %arg16[%c0_70, %c0_71] : memref<256x512xf32, #tpu.memory_space<vmem>>, vector<256x512xf32>
    %cst_72 = arith.constant dense<0.000000e+00> : vector<18x512xf32>
    %157 = tpu.matmul %155, %156, %cst_72 {dimension_numbers = #tpu.dot_dimension_numbers<[1], [0], [0], [1], [0, 0, 1, 1], [], []>} : vector<18x256xf32>, vector<256x512xf32>, vector<18x512xf32> -> vector<18x512xf32>
    %c0_73 = arith.constant 0 : index
    %c0_74 = arith.constant 0 : index
    %158 = vector.load %arg17[%c0_73, %c0_74] : memref<1x512xf32, #tpu.memory_space<vmem>>, vector<1x512xf32>
    %159 = vector.broadcast %158 : vector<1x512xf32> to vector<18x512xf32>
    %160 = arith.addf %157, %159 : vector<18x512xf32>
    %c0_75 = arith.constant 0 : index
    %c0_76 = arith.constant 0 : index
    %161 = vector.load %arg1[%c0_75, %c0_76] : memref<32x1xf32, #tpu.memory_space<vmem>>, vector<32x1xf32>
    %c0_77 = arith.constant 0 : index
    %c0_78 = arith.constant 0 : index
    %162 = vector.load %arg18[%c0_77, %c0_78] : memref<1x128xf32, #tpu.memory_space<vmem>>, vector<1x128xf32>
    %163 = vector.broadcast %161 : vector<32x1xf32> to vector<32x128xf32>
    %164 = vector.broadcast %162 : vector<1x128xf32> to vector<32x128xf32>
    %165 = arith.mulf %163, %164 : vector<32x128xf32>
    %c0_79 = arith.constant 0 : index
    %c0_80 = arith.constant 0 : index
    %166 = vector.load %arg19[%c0_79, %c0_80] : memref<1x128xf32, #tpu.memory_space<vmem>>, vector<1x128xf32>
    %167 = vector.broadcast %166 : vector<1x128xf32> to vector<32x128xf32>
    %168 = arith.addf %165, %167 : vector<32x128xf32>
    %cst_81 = arith.constant 5.000000e-01 : f32
    %169 = vector.broadcast %cst_81 : f32 to vector<32x128xf32>
    %170 = arith.mulf %169, %168 : vector<32x128xf32>
    %cst_82 = arith.constant 0.707106769 : f32
    %171 = vector.broadcast %cst_82 : f32 to vector<32x128xf32>
    %172 = arith.mulf %168, %171 : vector<32x128xf32>
    %cst_83 = arith.constant 0.000000e+00 : f32
    %173 = vector.broadcast %cst_83 : f32 to vector<32x128xf32>
    %174 = arith.cmpf oge, %172, %173 : vector<32x128xf32>
    %cst_84 = arith.constant 1.000000e+00 : f32
    %cst_85 = arith.constant -1.000000e+00 : f32
    %175 = vector.broadcast %cst_84 : f32 to vector<32x128xf32>
    %176 = vector.broadcast %cst_85 : f32 to vector<32x128xf32>
    %177 = arith.select %174, %175, %176 : vector<32x128xi1>, vector<32x128xf32>
    %178 = math.absf %172 : vector<32x128xf32>
    %cst_86 = arith.constant 0.327591091 : f32
    %179 = vector.broadcast %cst_86 : f32 to vector<32x128xf32>
    %180 = arith.mulf %179, %178 : vector<32x128xf32>
    %cst_87 = arith.constant 1.000000e+00 : f32
    %181 = vector.broadcast %cst_87 : f32 to vector<32x128xf32>
    %182 = arith.addf %181, %180 : vector<32x128xf32>
    %cst_88 = arith.constant 1.000000e+00 : f32
    %183 = vector.broadcast %cst_88 : f32 to vector<32x128xf32>
    %184 = arith.divf %183, %182 : vector<32x128xf32>
    %cst_89 = arith.constant 1.06140542 : f32
    %185 = vector.broadcast %cst_89 : f32 to vector<32x128xf32>
    %186 = arith.mulf %185, %184 : vector<32x128xf32>
    %cst_90 = arith.constant -1.45315206 : f32
    %187 = vector.broadcast %cst_90 : f32 to vector<32x128xf32>
    %188 = arith.addf %186, %187 : vector<32x128xf32>
    %189 = arith.mulf %188, %184 : vector<32x128xf32>
    %cst_91 = arith.constant 1.42141378 : f32
    %190 = vector.broadcast %cst_91 : f32 to vector<32x128xf32>
    %191 = arith.addf %189, %190 : vector<32x128xf32>
    %192 = arith.mulf %191, %184 : vector<32x128xf32>
    %cst_92 = arith.constant -0.284496725 : f32
    %193 = vector.broadcast %cst_92 : f32 to vector<32x128xf32>
    %194 = arith.addf %192, %193 : vector<32x128xf32>
    %195 = arith.mulf %194, %184 : vector<32x128xf32>
    %cst_93 = arith.constant 0.254829586 : f32
    %196 = vector.broadcast %cst_93 : f32 to vector<32x128xf32>
    %197 = arith.addf %195, %196 : vector<32x128xf32>
    %198 = arith.mulf %197, %184 : vector<32x128xf32>
    %cst_94 = arith.constant 0.000000e+00 : f32
    %199 = vector.broadcast %cst_94 : f32 to vector<32x128xf32>
    %200 = arith.subf %199, %178 : vector<32x128xf32>
    %201 = arith.mulf %200, %178 : vector<32x128xf32>
    %202 = math.exp %201 : vector<32x128xf32>
    %203 = arith.mulf %198, %202 : vector<32x128xf32>
    %cst_95 = arith.constant 1.000000e+00 : f32
    %204 = vector.broadcast %cst_95 : f32 to vector<32x128xf32>
    %205 = arith.subf %204, %203 : vector<32x128xf32>
    %206 = arith.mulf %177, %205 : vector<32x128xf32>
    %cst_96 = arith.constant 1.000000e+00 : f32
    %207 = vector.broadcast %cst_96 : f32 to vector<32x128xf32>
    %208 = arith.addf %207, %206 : vector<32x128xf32>
    %209 = arith.mulf %170, %208 : vector<32x128xf32>
    %c0_97 = arith.constant 0 : index
    %c0_98 = arith.constant 0 : index
    %210 = vector.load %arg20[%c0_97, %c0_98] : memref<128x128xf32, #tpu.memory_space<vmem>>, vector<128x128xf32>
    %cst_99 = arith.constant dense<0.000000e+00> : vector<32x128xf32>
    %211 = tpu.matmul %209, %210, %cst_99 {dimension_numbers = #tpu.dot_dimension_numbers<[1], [0], [0], [1], [0, 0, 1, 1], [], []>} : vector<32x128xf32>, vector<128x128xf32>, vector<32x128xf32> -> vector<32x128xf32>
    %c0_100 = arith.constant 0 : index
    %c0_101 = arith.constant 0 : index
    %212 = vector.load %arg21[%c0_100, %c0_101] : memref<1x128xf32, #tpu.memory_space<vmem>>, vector<1x128xf32>
    %213 = vector.broadcast %212 : vector<1x128xf32> to vector<32x128xf32>
    %214 = arith.addf %211, %213 : vector<32x128xf32>
    %cst_102 = arith.constant 5.000000e-01 : f32
    %215 = vector.broadcast %cst_102 : f32 to vector<32x128xf32>
    %216 = arith.mulf %215, %214 : vector<32x128xf32>
    %cst_103 = arith.constant 0.707106769 : f32
    %217 = vector.broadcast %cst_103 : f32 to vector<32x128xf32>
    %218 = arith.mulf %214, %217 : vector<32x128xf32>
    %cst_104 = arith.constant 0.000000e+00 : f32
    %219 = vector.broadcast %cst_104 : f32 to vector<32x128xf32>
    %220 = arith.cmpf oge, %218, %219 : vector<32x128xf32>
    %cst_105 = arith.constant 1.000000e+00 : f32
    %cst_106 = arith.constant -1.000000e+00 : f32
    %221 = vector.broadcast %cst_105 : f32 to vector<32x128xf32>
    %222 = vector.broadcast %cst_106 : f32 to vector<32x128xf32>
    %223 = arith.select %220, %221, %222 : vector<32x128xi1>, vector<32x128xf32>
    %224 = math.absf %218 : vector<32x128xf32>
    %cst_107 = arith.constant 0.327591091 : f32
    %225 = vector.broadcast %cst_107 : f32 to vector<32x128xf32>
    %226 = arith.mulf %225, %224 : vector<32x128xf32>
    %cst_108 = arith.constant 1.000000e+00 : f32
    %227 = vector.broadcast %cst_108 : f32 to vector<32x128xf32>
    %228 = arith.addf %227, %226 : vector<32x128xf32>
    %cst_109 = arith.constant 1.000000e+00 : f32
    %229 = vector.broadcast %cst_109 : f32 to vector<32x128xf32>
    %230 = arith.divf %229, %228 : vector<32x128xf32>
    %cst_110 = arith.constant 1.06140542 : f32
    %231 = vector.broadcast %cst_110 : f32 to vector<32x128xf32>
    %232 = arith.mulf %231, %230 : vector<32x128xf32>
    %cst_111 = arith.constant -1.45315206 : f32
    %233 = vector.broadcast %cst_111 : f32 to vector<32x128xf32>
    %234 = arith.addf %232, %233 : vector<32x128xf32>
    %235 = arith.mulf %234, %230 : vector<32x128xf32>
    %cst_112 = arith.constant 1.42141378 : f32
    %236 = vector.broadcast %cst_112 : f32 to vector<32x128xf32>
    %237 = arith.addf %235, %236 : vector<32x128xf32>
    %238 = arith.mulf %237, %230 : vector<32x128xf32>
    %cst_113 = arith.constant -0.284496725 : f32
    %239 = vector.broadcast %cst_113 : f32 to vector<32x128xf32>
    %240 = arith.addf %238, %239 : vector<32x128xf32>
    %241 = arith.mulf %240, %230 : vector<32x128xf32>
    %cst_114 = arith.constant 0.254829586 : f32
    %242 = vector.broadcast %cst_114 : f32 to vector<32x128xf32>
    %243 = arith.addf %241, %242 : vector<32x128xf32>
    %244 = arith.mulf %243, %230 : vector<32x128xf32>
    %cst_115 = arith.constant 0.000000e+00 : f32
    %245 = vector.broadcast %cst_115 : f32 to vector<32x128xf32>
    %246 = arith.subf %245, %224 : vector<32x128xf32>
    %247 = arith.mulf %246, %224 : vector<32x128xf32>
    %248 = math.exp %247 : vector<32x128xf32>
    %249 = arith.mulf %244, %248 : vector<32x128xf32>
    %cst_116 = arith.constant 1.000000e+00 : f32
    %250 = vector.broadcast %cst_116 : f32 to vector<32x128xf32>
    %251 = arith.subf %250, %249 : vector<32x128xf32>
    %252 = arith.mulf %223, %251 : vector<32x128xf32>
    %cst_117 = arith.constant 1.000000e+00 : f32
    %253 = vector.broadcast %cst_117 : f32 to vector<32x128xf32>
    %254 = arith.addf %253, %252 : vector<32x128xf32>
    %255 = arith.mulf %216, %254 : vector<32x128xf32>
    %c0_118 = arith.constant 0 : index
    %c0_119 = arith.constant 0 : index
    %256 = vector.load %arg22[%c0_118, %c0_119] : memref<128x128xf32, #tpu.memory_space<vmem>>, vector<128x128xf32>
    %cst_120 = arith.constant dense<0.000000e+00> : vector<32x128xf32>
    %257 = tpu.matmul %255, %256, %cst_120 {dimension_numbers = #tpu.dot_dimension_numbers<[1], [0], [0], [1], [0, 0, 1, 1], [], []>} : vector<32x128xf32>, vector<128x128xf32>, vector<32x128xf32> -> vector<32x128xf32>
    %c0_121 = arith.constant 0 : index
    %c0_122 = arith.constant 0 : index
    %258 = vector.load %arg23[%c0_121, %c0_122] : memref<1x128xf32, #tpu.memory_space<vmem>>, vector<1x128xf32>
    %259 = vector.broadcast %258 : vector<1x128xf32> to vector<32x128xf32>
    %260 = arith.addf %257, %259 : vector<32x128xf32>
    %cst_123 = arith.constant 5.000000e-01 : f32
    %261 = vector.broadcast %cst_123 : f32 to vector<32x128xf32>
    %262 = arith.mulf %261, %260 : vector<32x128xf32>
    %cst_124 = arith.constant 0.707106769 : f32
    %263 = vector.broadcast %cst_124 : f32 to vector<32x128xf32>
    %264 = arith.mulf %260, %263 : vector<32x128xf32>
    %cst_125 = arith.constant 0.000000e+00 : f32
    %265 = vector.broadcast %cst_125 : f32 to vector<32x128xf32>
    %266 = arith.cmpf oge, %264, %265 : vector<32x128xf32>
    %cst_126 = arith.constant 1.000000e+00 : f32
    %cst_127 = arith.constant -1.000000e+00 : f32
    %267 = vector.broadcast %cst_126 : f32 to vector<32x128xf32>
    %268 = vector.broadcast %cst_127 : f32 to vector<32x128xf32>
    %269 = arith.select %266, %267, %268 : vector<32x128xi1>, vector<32x128xf32>
    %270 = math.absf %264 : vector<32x128xf32>
    %cst_128 = arith.constant 0.327591091 : f32
    %271 = vector.broadcast %cst_128 : f32 to vector<32x128xf32>
    %272 = arith.mulf %271, %270 : vector<32x128xf32>
    %cst_129 = arith.constant 1.000000e+00 : f32
    %273 = vector.broadcast %cst_129 : f32 to vector<32x128xf32>
    %274 = arith.addf %273, %272 : vector<32x128xf32>
    %cst_130 = arith.constant 1.000000e+00 : f32
    %275 = vector.broadcast %cst_130 : f32 to vector<32x128xf32>
    %276 = arith.divf %275, %274 : vector<32x128xf32>
    %cst_131 = arith.constant 1.06140542 : f32
    %277 = vector.broadcast %cst_131 : f32 to vector<32x128xf32>
    %278 = arith.mulf %277, %276 : vector<32x128xf32>
    %cst_132 = arith.constant -1.45315206 : f32
    %279 = vector.broadcast %cst_132 : f32 to vector<32x128xf32>
    %280 = arith.addf %278, %279 : vector<32x128xf32>
    %281 = arith.mulf %280, %276 : vector<32x128xf32>
    %cst_133 = arith.constant 1.42141378 : f32
    %282 = vector.broadcast %cst_133 : f32 to vector<32x128xf32>
    %283 = arith.addf %281, %282 : vector<32x128xf32>
    %284 = arith.mulf %283, %276 : vector<32x128xf32>
    %cst_134 = arith.constant -0.284496725 : f32
    %285 = vector.broadcast %cst_134 : f32 to vector<32x128xf32>
    %286 = arith.addf %284, %285 : vector<32x128xf32>
    %287 = arith.mulf %286, %276 : vector<32x128xf32>
    %cst_135 = arith.constant 0.254829586 : f32
    %288 = vector.broadcast %cst_135 : f32 to vector<32x128xf32>
    %289 = arith.addf %287, %288 : vector<32x128xf32>
    %290 = arith.mulf %289, %276 : vector<32x128xf32>
    %cst_136 = arith.constant 0.000000e+00 : f32
    %291 = vector.broadcast %cst_136 : f32 to vector<32x128xf32>
    %292 = arith.subf %291, %270 : vector<32x128xf32>
    %293 = arith.mulf %292, %270 : vector<32x128xf32>
    %294 = math.exp %293 : vector<32x128xf32>
    %295 = arith.mulf %290, %294 : vector<32x128xf32>
    %cst_137 = arith.constant 1.000000e+00 : f32
    %296 = vector.broadcast %cst_137 : f32 to vector<32x128xf32>
    %297 = arith.subf %296, %295 : vector<32x128xf32>
    %298 = arith.mulf %269, %297 : vector<32x128xf32>
    %cst_138 = arith.constant 1.000000e+00 : f32
    %299 = vector.broadcast %cst_138 : f32 to vector<32x128xf32>
    %300 = arith.addf %299, %298 : vector<32x128xf32>
    %301 = arith.mulf %262, %300 : vector<32x128xf32>
    %c0_139 = arith.constant 0 : index
    %c0_140 = arith.constant 0 : index
    %302 = vector.load %arg24[%c0_139, %c0_140] : memref<128x256xf32, #tpu.memory_space<vmem>>, vector<128x256xf32>
    %cst_141 = arith.constant dense<0.000000e+00> : vector<32x256xf32>
    %303 = tpu.matmul %301, %302, %cst_141 {dimension_numbers = #tpu.dot_dimension_numbers<[1], [0], [0], [1], [0, 0, 1, 1], [], []>} : vector<32x128xf32>, vector<128x256xf32>, vector<32x256xf32> -> vector<32x256xf32>
    %c0_142 = arith.constant 0 : index
    %c0_143 = arith.constant 0 : index
    %304 = vector.load %arg25[%c0_142, %c0_143] : memref<1x256xf32, #tpu.memory_space<vmem>>, vector<1x256xf32>
    %305 = vector.broadcast %304 : vector<1x256xf32> to vector<32x256xf32>
    %306 = arith.addf %303, %305 : vector<32x256xf32>
    %c0_144 = arith.constant 0 : index
    %c0_145 = arith.constant 0 : index
    %307 = vector.load %arg3[%c0_144, %c0_145] : memref<18x32xf32, #tpu.memory_space<vmem>>, vector<18x32xf32>
    %c0_146 = arith.constant 0 : index
    %c0_147 = arith.constant 0 : index
    %308 = vector.load %arg4[%c0_146, %c0_147] : memref<18x32xf32, #tpu.memory_space<vmem>>, vector<18x32xf32>
    %c0_148 = arith.constant 0 : index
    %c0_149 = arith.constant 0 : index
    %309 = vector.load %arg5[%c0_148, %c0_149] : memref<32x18xf32, #tpu.memory_space<vmem>>, vector<32x18xf32>
    %c0_150 = arith.constant 0 : index
    %c0_151 = arith.constant 0 : index
    %310 = vector.load %arg6[%c0_150, %c0_151] : memref<32x18xf32, #tpu.memory_space<vmem>>, vector<32x18xf32>
    %c0_152 = arith.constant 0 : index
    %c0_153 = arith.constant 0 : index
    %311 = vector.load %arg7[%c0_152, %c0_153] : memref<64x8xf32, #tpu.memory_space<vmem>>, vector<64x8xf32>
    %312 = vector.extract_strided_slice %160 {offsets = [0, 0], sizes = [18, 64], strides = [1, 1]} : vector<18x512xf32> to vector<18x64xf32>
    %313 = vector.extract_strided_slice %160 {offsets = [0, 64], sizes = [18, 64], strides = [1, 1]} : vector<18x512xf32> to vector<18x64xf32>
    %314 = vector.extract_strided_slice %306 {offsets = [0, 0], sizes = [32, 64], strides = [1, 1]} : vector<32x256xf32> to vector<32x64xf32>
    %cst_154 = arith.constant dense<0.000000e+00> : vector<18x8xf32>
    %315 = tpu.matmul %307, %14, %cst_154 {dimension_numbers = #tpu.dot_dimension_numbers<[1], [0], [0], [1], [0, 0, 1, 1], [], []>} : vector<18x32xf32>, vector<32x8xf32>, vector<18x8xf32> -> vector<18x8xf32>
    %cst_155 = arith.constant dense<0.000000e+00> : vector<18x8xf32>
    %316 = tpu.matmul %308, %14, %cst_155 {dimension_numbers = #tpu.dot_dimension_numbers<[1], [0], [0], [1], [0, 0, 1, 1], [], []>} : vector<18x32xf32>, vector<32x8xf32>, vector<18x8xf32> -> vector<18x8xf32>
    %317 = tpu.concatenate %315, %315, %315, %315, %315, %315, %315, %315 in 1 : vector<18x8xf32>, vector<18x8xf32>, vector<18x8xf32>, vector<18x8xf32>, vector<18x8xf32>, vector<18x8xf32>, vector<18x8xf32>, vector<18x8xf32> -> vector<18x64xf32>
    %318 = tpu.concatenate %316, %316, %316, %316, %316, %316, %316, %316 in 1 : vector<18x8xf32>, vector<18x8xf32>, vector<18x8xf32>, vector<18x8xf32>, vector<18x8xf32>, vector<18x8xf32>, vector<18x8xf32>, vector<18x8xf32> -> vector<18x64xf32>
    %319 = arith.mulf %317, %312 : vector<18x64xf32>
    %320 = arith.mulf %318, %313 : vector<18x64xf32>
    %321 = arith.subf %319, %320 : vector<18x64xf32>
    %322 = arith.mulf %317, %313 : vector<18x64xf32>
    %323 = arith.mulf %318, %312 : vector<18x64xf32>
    %324 = arith.addf %322, %323 : vector<18x64xf32>
    %cst_156 = arith.constant dense<0.000000e+00> : vector<32x64xf32>
    %325 = tpu.matmul %309, %321, %cst_156 {dimension_numbers = #tpu.dot_dimension_numbers<[1], [0], [0], [1], [0, 0, 1, 1], [], []>} : vector<32x18xf32>, vector<18x64xf32>, vector<32x64xf32> -> vector<32x64xf32>
    %cst_157 = arith.constant dense<0.000000e+00> : vector<32x64xf32>
    %326 = tpu.matmul %310, %324, %cst_157 {dimension_numbers = #tpu.dot_dimension_numbers<[1], [0], [0], [1], [0, 0, 1, 1], [], []>} : vector<32x18xf32>, vector<18x64xf32>, vector<32x64xf32> -> vector<32x64xf32>
    %327 = arith.addf %325, %326 : vector<32x64xf32>
    %328 = arith.mulf %327, %314 : vector<32x64xf32>
    %cst_158 = arith.constant dense<0.000000e+00> : vector<32x8xf32>
    %329 = tpu.matmul %328, %311, %cst_158 {dimension_numbers = #tpu.dot_dimension_numbers<[1], [0], [0], [1], [0, 0, 1, 1], [], []>} : vector<32x64xf32>, vector<64x8xf32>, vector<32x8xf32> -> vector<32x8xf32>
    %c0_159 = arith.constant 0 : index
    %c0_160 = arith.constant 0 : index
    %c0_161 = arith.constant 0 : index
    %330 = vector.load %arg26[%c0_159, %c0_160, %c0_161] : memref<4x8x8xf32, #tpu.memory_space<vmem>>, vector<1x8x8xf32>
    %331 = vector.shape_cast %330 : vector<1x8x8xf32> to vector<8x8xf32>
    %cst_162 = arith.constant dense<0.000000e+00> : vector<32x8xf32>
    %332 = tpu.matmul %14, %331, %cst_162 {dimension_numbers = #tpu.dot_dimension_numbers<[1], [0], [0], [1], [0, 0, 1, 1], [], []>} : vector<32x8xf32>, vector<8x8xf32>, vector<32x8xf32> -> vector<32x8xf32>
    %333 = arith.addf %329, %332 : vector<32x8xf32>
    %c0_163 = arith.constant 0 : index
    %c0_164 = arith.constant 0 : index
    %c0_165 = arith.constant 0 : index
    %334 = vector.load %arg27[%c0_163, %c0_164, %c0_165] : memref<4x1x8xf32, #tpu.memory_space<vmem>>, vector<1x1x8xf32>
    %335 = vector.shape_cast %334 : vector<1x1x8xf32> to vector<1x8xf32>
    %336 = vector.broadcast %335 : vector<1x8xf32> to vector<32x8xf32>
    %337 = arith.addf %333, %336 : vector<32x8xf32>
    %cst_166 = arith.constant 5.000000e-01 : f32
    %338 = vector.broadcast %cst_166 : f32 to vector<32x8xf32>
    %339 = arith.mulf %338, %337 : vector<32x8xf32>
    %cst_167 = arith.constant 0.707106769 : f32
    %340 = vector.broadcast %cst_167 : f32 to vector<32x8xf32>
    %341 = arith.mulf %337, %340 : vector<32x8xf32>
    %cst_168 = arith.constant 0.000000e+00 : f32
    %342 = vector.broadcast %cst_168 : f32 to vector<32x8xf32>
    %343 = arith.cmpf oge, %341, %342 : vector<32x8xf32>
    %cst_169 = arith.constant 1.000000e+00 : f32
    %cst_170 = arith.constant -1.000000e+00 : f32
    %344 = vector.broadcast %cst_169 : f32 to vector<32x8xf32>
    %345 = vector.broadcast %cst_170 : f32 to vector<32x8xf32>
    %346 = arith.select %343, %344, %345 : vector<32x8xi1>, vector<32x8xf32>
    %347 = math.absf %341 : vector<32x8xf32>
    %cst_171 = arith.constant 0.327591091 : f32
    %348 = vector.broadcast %cst_171 : f32 to vector<32x8xf32>
    %349 = arith.mulf %348, %347 : vector<32x8xf32>
    %cst_172 = arith.constant 1.000000e+00 : f32
    %350 = vector.broadcast %cst_172 : f32 to vector<32x8xf32>
    %351 = arith.addf %350, %349 : vector<32x8xf32>
    %cst_173 = arith.constant 1.000000e+00 : f32
    %352 = vector.broadcast %cst_173 : f32 to vector<32x8xf32>
    %353 = arith.divf %352, %351 : vector<32x8xf32>
    %cst_174 = arith.constant 1.06140542 : f32
    %354 = vector.broadcast %cst_174 : f32 to vector<32x8xf32>
    %355 = arith.mulf %354, %353 : vector<32x8xf32>
    %cst_175 = arith.constant -1.45315206 : f32
    %356 = vector.broadcast %cst_175 : f32 to vector<32x8xf32>
    %357 = arith.addf %355, %356 : vector<32x8xf32>
    %358 = arith.mulf %357, %353 : vector<32x8xf32>
    %cst_176 = arith.constant 1.42141378 : f32
    %359 = vector.broadcast %cst_176 : f32 to vector<32x8xf32>
    %360 = arith.addf %358, %359 : vector<32x8xf32>
    %361 = arith.mulf %360, %353 : vector<32x8xf32>
    %cst_177 = arith.constant -0.284496725 : f32
    %362 = vector.broadcast %cst_177 : f32 to vector<32x8xf32>
    %363 = arith.addf %361, %362 : vector<32x8xf32>
    %364 = arith.mulf %363, %353 : vector<32x8xf32>
    %cst_178 = arith.constant 0.254829586 : f32
    %365 = vector.broadcast %cst_178 : f32 to vector<32x8xf32>
    %366 = arith.addf %364, %365 : vector<32x8xf32>
    %367 = arith.mulf %366, %353 : vector<32x8xf32>
    %cst_179 = arith.constant 0.000000e+00 : f32
    %368 = vector.broadcast %cst_179 : f32 to vector<32x8xf32>
    %369 = arith.subf %368, %347 : vector<32x8xf32>
    %370 = arith.mulf %369, %347 : vector<32x8xf32>
    %371 = math.exp %370 : vector<32x8xf32>
    %372 = arith.mulf %367, %371 : vector<32x8xf32>
    %cst_180 = arith.constant 1.000000e+00 : f32
    %373 = vector.broadcast %cst_180 : f32 to vector<32x8xf32>
    %374 = arith.subf %373, %372 : vector<32x8xf32>
    %375 = arith.mulf %346, %374 : vector<32x8xf32>
    %cst_181 = arith.constant 1.000000e+00 : f32
    %376 = vector.broadcast %cst_181 : f32 to vector<32x8xf32>
    %377 = arith.addf %376, %375 : vector<32x8xf32>
    %378 = arith.mulf %339, %377 : vector<32x8xf32>
    %379 = vector.extract_strided_slice %160 {offsets = [0, 128], sizes = [18, 64], strides = [1, 1]} : vector<18x512xf32> to vector<18x64xf32>
    %380 = vector.extract_strided_slice %160 {offsets = [0, 192], sizes = [18, 64], strides = [1, 1]} : vector<18x512xf32> to vector<18x64xf32>
    %381 = vector.extract_strided_slice %306 {offsets = [0, 64], sizes = [32, 64], strides = [1, 1]} : vector<32x256xf32> to vector<32x64xf32>
    %cst_182 = arith.constant dense<0.000000e+00> : vector<18x8xf32>
    %382 = tpu.matmul %307, %378, %cst_182 {dimension_numbers = #tpu.dot_dimension_numbers<[1], [0], [0], [1], [0, 0, 1, 1], [], []>} : vector<18x32xf32>, vector<32x8xf32>, vector<18x8xf32> -> vector<18x8xf32>
    %cst_183 = arith.constant dense<0.000000e+00> : vector<18x8xf32>
    %383 = tpu.matmul %308, %378, %cst_183 {dimension_numbers = #tpu.dot_dimension_numbers<[1], [0], [0], [1], [0, 0, 1, 1], [], []>} : vector<18x32xf32>, vector<32x8xf32>, vector<18x8xf32> -> vector<18x8xf32>
    %384 = tpu.concatenate %382, %382, %382, %382, %382, %382, %382, %382 in 1 : vector<18x8xf32>, vector<18x8xf32>, vector<18x8xf32>, vector<18x8xf32>, vector<18x8xf32>, vector<18x8xf32>, vector<18x8xf32>, vector<18x8xf32> -> vector<18x64xf32>
    %385 = tpu.concatenate %383, %383, %383, %383, %383, %383, %383, %383 in 1 : vector<18x8xf32>, vector<18x8xf32>, vector<18x8xf32>, vector<18x8xf32>, vector<18x8xf32>, vector<18x8xf32>, vector<18x8xf32>, vector<18x8xf32> -> vector<18x64xf32>
    %386 = arith.mulf %384, %379 : vector<18x64xf32>
    %387 = arith.mulf %385, %380 : vector<18x64xf32>
    %388 = arith.subf %386, %387 : vector<18x64xf32>
    %389 = arith.mulf %384, %380 : vector<18x64xf32>
    %390 = arith.mulf %385, %379 : vector<18x64xf32>
    %391 = arith.addf %389, %390 : vector<18x64xf32>
    %cst_184 = arith.constant dense<0.000000e+00> : vector<32x64xf32>
    %392 = tpu.matmul %309, %388, %cst_184 {dimension_numbers = #tpu.dot_dimension_numbers<[1], [0], [0], [1], [0, 0, 1, 1], [], []>} : vector<32x18xf32>, vector<18x64xf32>, vector<32x64xf32> -> vector<32x64xf32>
    %cst_185 = arith.constant dense<0.000000e+00> : vector<32x64xf32>
    %393 = tpu.matmul %310, %391, %cst_185 {dimension_numbers = #tpu.dot_dimension_numbers<[1], [0], [0], [1], [0, 0, 1, 1], [], []>} : vector<32x18xf32>, vector<18x64xf32>, vector<32x64xf32> -> vector<32x64xf32>
    %394 = arith.addf %392, %393 : vector<32x64xf32>
    %395 = arith.mulf %394, %381 : vector<32x64xf32>
    %cst_186 = arith.constant dense<0.000000e+00> : vector<32x8xf32>
    %396 = tpu.matmul %395, %311, %cst_186 {dimension_numbers = #tpu.dot_dimension_numbers<[1], [0], [0], [1], [0, 0, 1, 1], [], []>} : vector<32x64xf32>, vector<64x8xf32>, vector<32x8xf32> -> vector<32x8xf32>
    %c1 = arith.constant 1 : index
    %c0_187 = arith.constant 0 : index
    %c0_188 = arith.constant 0 : index
    %397 = vector.load %arg26[%c1, %c0_187, %c0_188] : memref<4x8x8xf32, #tpu.memory_space<vmem>>, vector<1x8x8xf32>
    %398 = vector.shape_cast %397 : vector<1x8x8xf32> to vector<8x8xf32>
    %cst_189 = arith.constant dense<0.000000e+00> : vector<32x8xf32>
    %399 = tpu.matmul %378, %398, %cst_189 {dimension_numbers = #tpu.dot_dimension_numbers<[1], [0], [0], [1], [0, 0, 1, 1], [], []>} : vector<32x8xf32>, vector<8x8xf32>, vector<32x8xf32> -> vector<32x8xf32>
    %400 = arith.addf %396, %399 : vector<32x8xf32>
    %c1_190 = arith.constant 1 : index
    %c0_191 = arith.constant 0 : index
    %c0_192 = arith.constant 0 : index
    %401 = vector.load %arg27[%c1_190, %c0_191, %c0_192] : memref<4x1x8xf32, #tpu.memory_space<vmem>>, vector<1x1x8xf32>
    %402 = vector.shape_cast %401 : vector<1x1x8xf32> to vector<1x8xf32>
    %403 = vector.broadcast %402 : vector<1x8xf32> to vector<32x8xf32>
    %404 = arith.addf %400, %403 : vector<32x8xf32>
    %cst_193 = arith.constant 5.000000e-01 : f32
    %405 = vector.broadcast %cst_193 : f32 to vector<32x8xf32>
    %406 = arith.mulf %405, %404 : vector<32x8xf32>
    %cst_194 = arith.constant 0.707106769 : f32
    %407 = vector.broadcast %cst_194 : f32 to vector<32x8xf32>
    %408 = arith.mulf %404, %407 : vector<32x8xf32>
    %cst_195 = arith.constant 0.000000e+00 : f32
    %409 = vector.broadcast %cst_195 : f32 to vector<32x8xf32>
    %410 = arith.cmpf oge, %408, %409 : vector<32x8xf32>
    %cst_196 = arith.constant 1.000000e+00 : f32
    %cst_197 = arith.constant -1.000000e+00 : f32
    %411 = vector.broadcast %cst_196 : f32 to vector<32x8xf32>
    %412 = vector.broadcast %cst_197 : f32 to vector<32x8xf32>
    %413 = arith.select %410, %411, %412 : vector<32x8xi1>, vector<32x8xf32>
    %414 = math.absf %408 : vector<32x8xf32>
    %cst_198 = arith.constant 0.327591091 : f32
    %415 = vector.broadcast %cst_198 : f32 to vector<32x8xf32>
    %416 = arith.mulf %415, %414 : vector<32x8xf32>
    %cst_199 = arith.constant 1.000000e+00 : f32
    %417 = vector.broadcast %cst_199 : f32 to vector<32x8xf32>
    %418 = arith.addf %417, %416 : vector<32x8xf32>
    %cst_200 = arith.constant 1.000000e+00 : f32
    %419 = vector.broadcast %cst_200 : f32 to vector<32x8xf32>
    %420 = arith.divf %419, %418 : vector<32x8xf32>
    %cst_201 = arith.constant 1.06140542 : f32
    %421 = vector.broadcast %cst_201 : f32 to vector<32x8xf32>
    %422 = arith.mulf %421, %420 : vector<32x8xf32>
    %cst_202 = arith.constant -1.45315206 : f32
    %423 = vector.broadcast %cst_202 : f32 to vector<32x8xf32>
    %424 = arith.addf %422, %423 : vector<32x8xf32>
    %425 = arith.mulf %424, %420 : vector<32x8xf32>
    %cst_203 = arith.constant 1.42141378 : f32
    %426 = vector.broadcast %cst_203 : f32 to vector<32x8xf32>
    %427 = arith.addf %425, %426 : vector<32x8xf32>
    %428 = arith.mulf %427, %420 : vector<32x8xf32>
    %cst_204 = arith.constant -0.284496725 : f32
    %429 = vector.broadcast %cst_204 : f32 to vector<32x8xf32>
    %430 = arith.addf %428, %429 : vector<32x8xf32>
    %431 = arith.mulf %430, %420 : vector<32x8xf32>
    %cst_205 = arith.constant 0.254829586 : f32
    %432 = vector.broadcast %cst_205 : f32 to vector<32x8xf32>
    %433 = arith.addf %431, %432 : vector<32x8xf32>
    %434 = arith.mulf %433, %420 : vector<32x8xf32>
    %cst_206 = arith.constant 0.000000e+00 : f32
    %435 = vector.broadcast %cst_206 : f32 to vector<32x8xf32>
    %436 = arith.subf %435, %414 : vector<32x8xf32>
    %437 = arith.mulf %436, %414 : vector<32x8xf32>
    %438 = math.exp %437 : vector<32x8xf32>
    %439 = arith.mulf %434, %438 : vector<32x8xf32>
    %cst_207 = arith.constant 1.000000e+00 : f32
    %440 = vector.broadcast %cst_207 : f32 to vector<32x8xf32>
    %441 = arith.subf %440, %439 : vector<32x8xf32>
    %442 = arith.mulf %413, %441 : vector<32x8xf32>
    %cst_208 = arith.constant 1.000000e+00 : f32
    %443 = vector.broadcast %cst_208 : f32 to vector<32x8xf32>
    %444 = arith.addf %443, %442 : vector<32x8xf32>
    %445 = arith.mulf %406, %444 : vector<32x8xf32>
    %446 = vector.extract_strided_slice %160 {offsets = [0, 256], sizes = [18, 64], strides = [1, 1]} : vector<18x512xf32> to vector<18x64xf32>
    %447 = vector.extract_strided_slice %160 {offsets = [0, 320], sizes = [18, 64], strides = [1, 1]} : vector<18x512xf32> to vector<18x64xf32>
    %448 = vector.extract_strided_slice %306 {offsets = [0, 128], sizes = [32, 64], strides = [1, 1]} : vector<32x256xf32> to vector<32x64xf32>
    %cst_209 = arith.constant dense<0.000000e+00> : vector<18x8xf32>
    %449 = tpu.matmul %307, %445, %cst_209 {dimension_numbers = #tpu.dot_dimension_numbers<[1], [0], [0], [1], [0, 0, 1, 1], [], []>} : vector<18x32xf32>, vector<32x8xf32>, vector<18x8xf32> -> vector<18x8xf32>
    %cst_210 = arith.constant dense<0.000000e+00> : vector<18x8xf32>
    %450 = tpu.matmul %308, %445, %cst_210 {dimension_numbers = #tpu.dot_dimension_numbers<[1], [0], [0], [1], [0, 0, 1, 1], [], []>} : vector<18x32xf32>, vector<32x8xf32>, vector<18x8xf32> -> vector<18x8xf32>
    %451 = tpu.concatenate %449, %449, %449, %449, %449, %449, %449, %449 in 1 : vector<18x8xf32>, vector<18x8xf32>, vector<18x8xf32>, vector<18x8xf32>, vector<18x8xf32>, vector<18x8xf32>, vector<18x8xf32>, vector<18x8xf32> -> vector<18x64xf32>
    %452 = tpu.concatenate %450, %450, %450, %450, %450, %450, %450, %450 in 1 : vector<18x8xf32>, vector<18x8xf32>, vector<18x8xf32>, vector<18x8xf32>, vector<18x8xf32>, vector<18x8xf32>, vector<18x8xf32>, vector<18x8xf32> -> vector<18x64xf32>
    %453 = arith.mulf %451, %446 : vector<18x64xf32>
    %454 = arith.mulf %452, %447 : vector<18x64xf32>
    %455 = arith.subf %453, %454 : vector<18x64xf32>
    %456 = arith.mulf %451, %447 : vector<18x64xf32>
    %457 = arith.mulf %452, %446 : vector<18x64xf32>
    %458 = arith.addf %456, %457 : vector<18x64xf32>
    %cst_211 = arith.constant dense<0.000000e+00> : vector<32x64xf32>
    %459 = tpu.matmul %309, %455, %cst_211 {dimension_numbers = #tpu.dot_dimension_numbers<[1], [0], [0], [1], [0, 0, 1, 1], [], []>} : vector<32x18xf32>, vector<18x64xf32>, vector<32x64xf32> -> vector<32x64xf32>
    %cst_212 = arith.constant dense<0.000000e+00> : vector<32x64xf32>
    %460 = tpu.matmul %310, %458, %cst_212 {dimension_numbers = #tpu.dot_dimension_numbers<[1], [0], [0], [1], [0, 0, 1, 1], [], []>} : vector<32x18xf32>, vector<18x64xf32>, vector<32x64xf32> -> vector<32x64xf32>
    %461 = arith.addf %459, %460 : vector<32x64xf32>
    %462 = arith.mulf %461, %448 : vector<32x64xf32>
    %cst_213 = arith.constant dense<0.000000e+00> : vector<32x8xf32>
    %463 = tpu.matmul %462, %311, %cst_213 {dimension_numbers = #tpu.dot_dimension_numbers<[1], [0], [0], [1], [0, 0, 1, 1], [], []>} : vector<32x64xf32>, vector<64x8xf32>, vector<32x8xf32> -> vector<32x8xf32>
    %c2 = arith.constant 2 : index
    %c0_214 = arith.constant 0 : index
    %c0_215 = arith.constant 0 : index
    %464 = vector.load %arg26[%c2, %c0_214, %c0_215] : memref<4x8x8xf32, #tpu.memory_space<vmem>>, vector<1x8x8xf32>
    %465 = vector.shape_cast %464 : vector<1x8x8xf32> to vector<8x8xf32>
    %cst_216 = arith.constant dense<0.000000e+00> : vector<32x8xf32>
    %466 = tpu.matmul %445, %465, %cst_216 {dimension_numbers = #tpu.dot_dimension_numbers<[1], [0], [0], [1], [0, 0, 1, 1], [], []>} : vector<32x8xf32>, vector<8x8xf32>, vector<32x8xf32> -> vector<32x8xf32>
    %467 = arith.addf %463, %466 : vector<32x8xf32>
    %c2_217 = arith.constant 2 : index
    %c0_218 = arith.constant 0 : index
    %c0_219 = arith.constant 0 : index
    %468 = vector.load %arg27[%c2_217, %c0_218, %c0_219] : memref<4x1x8xf32, #tpu.memory_space<vmem>>, vector<1x1x8xf32>
    %469 = vector.shape_cast %468 : vector<1x1x8xf32> to vector<1x8xf32>
    %470 = vector.broadcast %469 : vector<1x8xf32> to vector<32x8xf32>
    %471 = arith.addf %467, %470 : vector<32x8xf32>
    %cst_220 = arith.constant 5.000000e-01 : f32
    %472 = vector.broadcast %cst_220 : f32 to vector<32x8xf32>
    %473 = arith.mulf %472, %471 : vector<32x8xf32>
    %cst_221 = arith.constant 0.707106769 : f32
    %474 = vector.broadcast %cst_221 : f32 to vector<32x8xf32>
    %475 = arith.mulf %471, %474 : vector<32x8xf32>
    %cst_222 = arith.constant 0.000000e+00 : f32
    %476 = vector.broadcast %cst_222 : f32 to vector<32x8xf32>
    %477 = arith.cmpf oge, %475, %476 : vector<32x8xf32>
    %cst_223 = arith.constant 1.000000e+00 : f32
    %cst_224 = arith.constant -1.000000e+00 : f32
    %478 = vector.broadcast %cst_223 : f32 to vector<32x8xf32>
    %479 = vector.broadcast %cst_224 : f32 to vector<32x8xf32>
    %480 = arith.select %477, %478, %479 : vector<32x8xi1>, vector<32x8xf32>
    %481 = math.absf %475 : vector<32x8xf32>
    %cst_225 = arith.constant 0.327591091 : f32
    %482 = vector.broadcast %cst_225 : f32 to vector<32x8xf32>
    %483 = arith.mulf %482, %481 : vector<32x8xf32>
    %cst_226 = arith.constant 1.000000e+00 : f32
    %484 = vector.broadcast %cst_226 : f32 to vector<32x8xf32>
    %485 = arith.addf %484, %483 : vector<32x8xf32>
    %cst_227 = arith.constant 1.000000e+00 : f32
    %486 = vector.broadcast %cst_227 : f32 to vector<32x8xf32>
    %487 = arith.divf %486, %485 : vector<32x8xf32>
    %cst_228 = arith.constant 1.06140542 : f32
    %488 = vector.broadcast %cst_228 : f32 to vector<32x8xf32>
    %489 = arith.mulf %488, %487 : vector<32x8xf32>
    %cst_229 = arith.constant -1.45315206 : f32
    %490 = vector.broadcast %cst_229 : f32 to vector<32x8xf32>
    %491 = arith.addf %489, %490 : vector<32x8xf32>
    %492 = arith.mulf %491, %487 : vector<32x8xf32>
    %cst_230 = arith.constant 1.42141378 : f32
    %493 = vector.broadcast %cst_230 : f32 to vector<32x8xf32>
    %494 = arith.addf %492, %493 : vector<32x8xf32>
    %495 = arith.mulf %494, %487 : vector<32x8xf32>
    %cst_231 = arith.constant -0.284496725 : f32
    %496 = vector.broadcast %cst_231 : f32 to vector<32x8xf32>
    %497 = arith.addf %495, %496 : vector<32x8xf32>
    %498 = arith.mulf %497, %487 : vector<32x8xf32>
    %cst_232 = arith.constant 0.254829586 : f32
    %499 = vector.broadcast %cst_232 : f32 to vector<32x8xf32>
    %500 = arith.addf %498, %499 : vector<32x8xf32>
    %501 = arith.mulf %500, %487 : vector<32x8xf32>
    %cst_233 = arith.constant 0.000000e+00 : f32
    %502 = vector.broadcast %cst_233 : f32 to vector<32x8xf32>
    %503 = arith.subf %502, %481 : vector<32x8xf32>
    %504 = arith.mulf %503, %481 : vector<32x8xf32>
    %505 = math.exp %504 : vector<32x8xf32>
    %506 = arith.mulf %501, %505 : vector<32x8xf32>
    %cst_234 = arith.constant 1.000000e+00 : f32
    %507 = vector.broadcast %cst_234 : f32 to vector<32x8xf32>
    %508 = arith.subf %507, %506 : vector<32x8xf32>
    %509 = arith.mulf %480, %508 : vector<32x8xf32>
    %cst_235 = arith.constant 1.000000e+00 : f32
    %510 = vector.broadcast %cst_235 : f32 to vector<32x8xf32>
    %511 = arith.addf %510, %509 : vector<32x8xf32>
    %512 = arith.mulf %473, %511 : vector<32x8xf32>
    %513 = vector.extract_strided_slice %160 {offsets = [0, 384], sizes = [18, 64], strides = [1, 1]} : vector<18x512xf32> to vector<18x64xf32>
    %514 = vector.extract_strided_slice %160 {offsets = [0, 448], sizes = [18, 64], strides = [1, 1]} : vector<18x512xf32> to vector<18x64xf32>
    %515 = vector.extract_strided_slice %306 {offsets = [0, 192], sizes = [32, 64], strides = [1, 1]} : vector<32x256xf32> to vector<32x64xf32>
    %cst_236 = arith.constant dense<0.000000e+00> : vector<18x8xf32>
    %516 = tpu.matmul %307, %512, %cst_236 {dimension_numbers = #tpu.dot_dimension_numbers<[1], [0], [0], [1], [0, 0, 1, 1], [], []>} : vector<18x32xf32>, vector<32x8xf32>, vector<18x8xf32> -> vector<18x8xf32>
    %cst_237 = arith.constant dense<0.000000e+00> : vector<18x8xf32>
    %517 = tpu.matmul %308, %512, %cst_237 {dimension_numbers = #tpu.dot_dimension_numbers<[1], [0], [0], [1], [0, 0, 1, 1], [], []>} : vector<18x32xf32>, vector<32x8xf32>, vector<18x8xf32> -> vector<18x8xf32>
    %518 = tpu.concatenate %516, %516, %516, %516, %516, %516, %516, %516 in 1 : vector<18x8xf32>, vector<18x8xf32>, vector<18x8xf32>, vector<18x8xf32>, vector<18x8xf32>, vector<18x8xf32>, vector<18x8xf32>, vector<18x8xf32> -> vector<18x64xf32>
    %519 = tpu.concatenate %517, %517, %517, %517, %517, %517, %517, %517 in 1 : vector<18x8xf32>, vector<18x8xf32>, vector<18x8xf32>, vector<18x8xf32>, vector<18x8xf32>, vector<18x8xf32>, vector<18x8xf32>, vector<18x8xf32> -> vector<18x64xf32>
    %520 = arith.mulf %518, %513 : vector<18x64xf32>
    %521 = arith.mulf %519, %514 : vector<18x64xf32>
    %522 = arith.subf %520, %521 : vector<18x64xf32>
    %523 = arith.mulf %518, %514 : vector<18x64xf32>
    %524 = arith.mulf %519, %513 : vector<18x64xf32>
    %525 = arith.addf %523, %524 : vector<18x64xf32>
    %cst_238 = arith.constant dense<0.000000e+00> : vector<32x64xf32>
    %526 = tpu.matmul %309, %522, %cst_238 {dimension_numbers = #tpu.dot_dimension_numbers<[1], [0], [0], [1], [0, 0, 1, 1], [], []>} : vector<32x18xf32>, vector<18x64xf32>, vector<32x64xf32> -> vector<32x64xf32>
    %cst_239 = arith.constant dense<0.000000e+00> : vector<32x64xf32>
    %527 = tpu.matmul %310, %525, %cst_239 {dimension_numbers = #tpu.dot_dimension_numbers<[1], [0], [0], [1], [0, 0, 1, 1], [], []>} : vector<32x18xf32>, vector<18x64xf32>, vector<32x64xf32> -> vector<32x64xf32>
    %528 = arith.addf %526, %527 : vector<32x64xf32>
    %529 = arith.mulf %528, %515 : vector<32x64xf32>
    %cst_240 = arith.constant dense<0.000000e+00> : vector<32x8xf32>
    %530 = tpu.matmul %529, %311, %cst_240 {dimension_numbers = #tpu.dot_dimension_numbers<[1], [0], [0], [1], [0, 0, 1, 1], [], []>} : vector<32x64xf32>, vector<64x8xf32>, vector<32x8xf32> -> vector<32x8xf32>
    %c3 = arith.constant 3 : index
    %c0_241 = arith.constant 0 : index
    %c0_242 = arith.constant 0 : index
    %531 = vector.load %arg26[%c3, %c0_241, %c0_242] : memref<4x8x8xf32, #tpu.memory_space<vmem>>, vector<1x8x8xf32>
    %532 = vector.shape_cast %531 : vector<1x8x8xf32> to vector<8x8xf32>
    %cst_243 = arith.constant dense<0.000000e+00> : vector<32x8xf32>
    %533 = tpu.matmul %512, %532, %cst_243 {dimension_numbers = #tpu.dot_dimension_numbers<[1], [0], [0], [1], [0, 0, 1, 1], [], []>} : vector<32x8xf32>, vector<8x8xf32>, vector<32x8xf32> -> vector<32x8xf32>
    %534 = arith.addf %530, %533 : vector<32x8xf32>
    %c3_244 = arith.constant 3 : index
    %c0_245 = arith.constant 0 : index
    %c0_246 = arith.constant 0 : index
    %535 = vector.load %arg27[%c3_244, %c0_245, %c0_246] : memref<4x1x8xf32, #tpu.memory_space<vmem>>, vector<1x1x8xf32>
    %536 = vector.shape_cast %535 : vector<1x1x8xf32> to vector<1x8xf32>
    %537 = vector.broadcast %536 : vector<1x8xf32> to vector<32x8xf32>
    %538 = arith.addf %534, %537 : vector<32x8xf32>
    %c0_247 = arith.constant 0 : index
    %c0_248 = arith.constant 0 : index
    %539 = vector.load %arg28[%c0_247, %c0_248] : memref<8x128xf32, #tpu.memory_space<vmem>>, vector<8x128xf32>
    %cst_249 = arith.constant dense<0.000000e+00> : vector<32x128xf32>
    %540 = tpu.matmul %538, %539, %cst_249 {dimension_numbers = #tpu.dot_dimension_numbers<[1], [0], [0], [1], [0, 0, 1, 1], [], []>} : vector<32x8xf32>, vector<8x128xf32>, vector<32x128xf32> -> vector<32x128xf32>
    %c0_250 = arith.constant 0 : index
    %c0_251 = arith.constant 0 : index
    %541 = vector.load %arg29[%c0_250, %c0_251] : memref<1x128xf32, #tpu.memory_space<vmem>>, vector<1x128xf32>
    %542 = vector.broadcast %541 : vector<1x128xf32> to vector<32x128xf32>
    %543 = arith.addf %540, %542 : vector<32x128xf32>
    %cst_252 = arith.constant 5.000000e-01 : f32
    %544 = vector.broadcast %cst_252 : f32 to vector<32x128xf32>
    %545 = arith.mulf %544, %543 : vector<32x128xf32>
    %cst_253 = arith.constant 0.707106769 : f32
    %546 = vector.broadcast %cst_253 : f32 to vector<32x128xf32>
    %547 = arith.mulf %543, %546 : vector<32x128xf32>
    %cst_254 = arith.constant 0.000000e+00 : f32
    %548 = vector.broadcast %cst_254 : f32 to vector<32x128xf32>
    %549 = arith.cmpf oge, %547, %548 : vector<32x128xf32>
    %cst_255 = arith.constant 1.000000e+00 : f32
    %cst_256 = arith.constant -1.000000e+00 : f32
    %550 = vector.broadcast %cst_255 : f32 to vector<32x128xf32>
    %551 = vector.broadcast %cst_256 : f32 to vector<32x128xf32>
    %552 = arith.select %549, %550, %551 : vector<32x128xi1>, vector<32x128xf32>
    %553 = math.absf %547 : vector<32x128xf32>
    %cst_257 = arith.constant 0.327591091 : f32
    %554 = vector.broadcast %cst_257 : f32 to vector<32x128xf32>
    %555 = arith.mulf %554, %553 : vector<32x128xf32>
    %cst_258 = arith.constant 1.000000e+00 : f32
    %556 = vector.broadcast %cst_258 : f32 to vector<32x128xf32>
    %557 = arith.addf %556, %555 : vector<32x128xf32>
    %cst_259 = arith.constant 1.000000e+00 : f32
    %558 = vector.broadcast %cst_259 : f32 to vector<32x128xf32>
    %559 = arith.divf %558, %557 : vector<32x128xf32>
    %cst_260 = arith.constant 1.06140542 : f32
    %560 = vector.broadcast %cst_260 : f32 to vector<32x128xf32>
    %561 = arith.mulf %560, %559 : vector<32x128xf32>
    %cst_261 = arith.constant -1.45315206 : f32
    %562 = vector.broadcast %cst_261 : f32 to vector<32x128xf32>
    %563 = arith.addf %561, %562 : vector<32x128xf32>
    %564 = arith.mulf %563, %559 : vector<32x128xf32>
    %cst_262 = arith.constant 1.42141378 : f32
    %565 = vector.broadcast %cst_262 : f32 to vector<32x128xf32>
    %566 = arith.addf %564, %565 : vector<32x128xf32>
    %567 = arith.mulf %566, %559 : vector<32x128xf32>
    %cst_263 = arith.constant -0.284496725 : f32
    %568 = vector.broadcast %cst_263 : f32 to vector<32x128xf32>
    %569 = arith.addf %567, %568 : vector<32x128xf32>
    %570 = arith.mulf %569, %559 : vector<32x128xf32>
    %cst_264 = arith.constant 0.254829586 : f32
    %571 = vector.broadcast %cst_264 : f32 to vector<32x128xf32>
    %572 = arith.addf %570, %571 : vector<32x128xf32>
    %573 = arith.mulf %572, %559 : vector<32x128xf32>
    %cst_265 = arith.constant 0.000000e+00 : f32
    %574 = vector.broadcast %cst_265 : f32 to vector<32x128xf32>
    %575 = arith.subf %574, %553 : vector<32x128xf32>
    %576 = arith.mulf %575, %553 : vector<32x128xf32>
    %577 = math.exp %576 : vector<32x128xf32>
    %578 = arith.mulf %573, %577 : vector<32x128xf32>
    %cst_266 = arith.constant 1.000000e+00 : f32
    %579 = vector.broadcast %cst_266 : f32 to vector<32x128xf32>
    %580 = arith.subf %579, %578 : vector<32x128xf32>
    %581 = arith.mulf %552, %580 : vector<32x128xf32>
    %cst_267 = arith.constant 1.000000e+00 : f32
    %582 = vector.broadcast %cst_267 : f32 to vector<32x128xf32>
    %583 = arith.addf %582, %581 : vector<32x128xf32>
    %584 = arith.mulf %545, %583 : vector<32x128xf32>
    %c0_268 = arith.constant 0 : index
    %c0_269 = arith.constant 0 : index
    %585 = vector.load %arg30[%c0_268, %c0_269] : memref<128x1xf32, #tpu.memory_space<vmem>>, vector<128x1xf32>
    %cst_270 = arith.constant dense<0.000000e+00> : vector<32x1xf32>
    %586 = tpu.matmul %584, %585, %cst_270 {dimension_numbers = #tpu.dot_dimension_numbers<[1], [0], [0], [1], [0, 0, 1, 1], [], []>} : vector<32x128xf32>, vector<128x1xf32>, vector<32x1xf32> -> vector<32x1xf32>
    %c0_271 = arith.constant 0 : index
    %c0_272 = arith.constant 0 : index
    %587 = vector.load %arg31[%c0_271, %c0_272] : memref<1x1xf32, #tpu.memory_space<vmem>>, vector<1x1xf32>
    %588 = vector.broadcast %587 : vector<1x1xf32> to vector<32x1xf32>
    %589 = arith.addf %586, %588 : vector<32x1xf32>
    %c0_273 = arith.constant 0 : index
    %c0_274 = arith.constant 0 : index
    %590 = vector.load %arg32[%c0_273, %c0_274] : memref<32x1xf32, #tpu.memory_space<vmem>>, vector<32x1xf32>
    tpu.vector_store %arg32[%c0_273, %c0_274], %589 {strides = array<i32>} : memref<32x1xf32, #tpu.memory_space<vmem>>, vector<32x1xf32>,
    return
  }
}

</mosaic_0001>

<bundles_post_ra>
// kernel: tile.13
= control target key start
LH: loop header
LB: loop body
LE: loop exit
PB: predicated region body
PF: predicated region fallthrough
CT: control target
= control target key end

     0   :  { %s22_s0 = inlined_call_operand.vmem [shape: f32[16], index: 0, kind: input, shape index: {}]   ;;  %s23_s1 = inlined_call_operand.vmem [shape: f32[2,16], index: 1, kind: output, shape index: {}]  }
   0x1   :  { %v4_v0 = vld [vmem:[%s22_s0] ss:$0 sm:$0xff] }
   0x2   :  { %5 = vst [vmem:[%s23_s1] sm:$0x3] %v4_v0 }

// kernel: tile.18
= control target key start
LH: loop header
LB: loop body
LE: loop exit
PB: predicated region body
PF: predicated region fallthrough
CT: control target
= control target key end

     0   :  { %s22_s0 = inlined_call_operand.vmem [shape: f32[9], index: 0, kind: input, shape index: {}]   ;;  %s23_s1 = inlined_call_operand.vmem [shape: f32[2,9], index: 1, kind: output, shape index: {}]  }
   0x1   :  { %v4_v0 = vld [vmem:[%s22_s0] ss:$0 sm:$0xff] }
   0x2   :  { %5 = vst [vmem:[%s23_s1] sm:$0x3] %v4_v0 }

// kernel: tile.1
= control target key start
LH: loop header
LB: loop body
LE: loop exit
PB: predicated region body
PF: predicated region fallthrough
CT: control target
= control target key end

     0   :  { %s74_s8 = smov 127   ;;  %s75_s9 = smov 123   ;;  %vm7_vm0 = vcmask 7168   ;;  %s130_s0 = inlined_call_operand.vmem [shape: f32[2,9], index: 0, kind: input, shape index: {}]   ;;  %s131_s1 = inlined_call_operand.vmem [shape: f32[18,1], index: 1, kind: output, shape index: {}]  }
   0x1   :  { %v4_v0 = vld [vmem:[%s130_s0] sm:$0x3]  ;;  %s73_s0 = smov 125   ;;  %s76_s10 = smov 124  }
   0x2   :  { %5 = vst [vmem:[#allocation0] sm:$0x3] %v4_v0  ;;  %s77_s11 = smov 126   ;;  %s78_s12 = smov 122  }
   0x3   :  { %s79_s13 = smov 120   ;;  %s80_s14 = smov 121  }
   0x9   :  { %v21_v1 = vld [vmem:[#allocation0] sm:$0x3]  }
   0xa   :  { %v9_v2 = vld [vmem:[#allocation0] sm:$0x3]   ;;  %22 = vrot.lane.b32.xlu1 %v21_v1, %s73_s0 }
   0xb   :  { %10 = vrot.lane.b32.xlu0 %v9_v2, %s74_s8  ;;  %v33_v3 = vld [vmem:[#allocation0] sm:$0x3]  }
   0xc   :  { %34 = vrot.lane.b32.xlu2 %v33_v3, %s75_s9  ;;  %v27_v4 = vld [vmem:[#allocation0] sm:$0x3]  }
   0xd   :  { %v15_v5 = vld [vmem:[#allocation0] sm:$0x3]  }
   0xe   :  { %v39_v6 = vld [vmem:[#allocation0] sm:$0x3]  }
   0xf   :  { %v51_v7 = vld [vmem:[#allocation0] sm:$0x3]  }
  0x10   :  { %v45_v8 = vld [vmem:[#allocation0] sm:$0x3]  }
  0x11   :  { %v6_v10 = vld [vmem:[#allocation0] sm:$0x3]  }
  0x12   :  { %28 = vrot.lane.b32.xlu1 %v27_v4, %s76_s10  ;;  %8 = vst.msk [vmem:[%s131_s1] ss:$9 sm:$0x3] %vm7_vm0, %v6_v10  }
  0x13   :  { %16 = vrot.lane.b32.xlu0 %v15_v5, %s77_s11 }
  0x14   :  { %40 = vrot.lane.b32.xlu2 %v39_v6, %s78_s12 }
  0x1a   :  { %52 = vrot.lane.b32.xlu1 %v51_v7, %s79_s13 }
  0x1b   :  { %46 = vrot.lane.b32.xlu0 %v45_v8, %s80_s14 }
  0x66   :  { %v35_v9 = vpop.permute.xlu2 %34  }
  0x67   :  { %61 = vst.msk [vmem:[%s131_s1 + $0x5] ss:$9 sm:$0x3] %vm7_vm0, %v35_v9  }
  0x6e   :  { %v41_v11 = vpop.permute.xlu2 %40  }
  0x6f   :  { %62 = vst.msk [vmem:[%s131_s1 + $0x6] ss:$9 sm:$0x3] %vm7_vm0, %v41_v11  }
  0x7c   :  { %v23_v12 = vpop.permute.xlu1 %22  }
  0x7d   :  { %v11_v13 = vpop.permute.xlu0 %10   ;;  %59 = vst.msk [vmem:[%s131_s1 + $0x3] ss:$9 sm:$0x3] %vm7_vm0, %v23_v12  }
  0x7e   :  { %57 = vst.msk [vmem:[%s131_s1 + $0x1] ss:$9 sm:$0x3] %vm7_vm0, %v11_v13  }
  0x84   :  { %v29_v14 = vpop.permute.xlu1 %28  }
  0x85   :  { %v17_v15 = vpop.permute.xlu0 %16   ;;  %60 = vst.msk [vmem:[%s131_s1 + $0x4] ss:$9 sm:$0x3] %vm7_vm0, %v29_v14  }
  0x86   :  { %58 = vst.msk [vmem:[%s131_s1 + $0x2] ss:$9 sm:$0x3] %vm7_vm0, %v17_v15  }
  0x8c   :  { %v53_v16 = vpop.permute.xlu1 %52  }
  0x8d   :  { %v47_v17 = vpop.permute.xlu0 %46   ;;  %64 = vst.msk [vmem:[%s131_s1 + $0x8] ss:$9 sm:$0x3] %vm7_vm0, %v53_v16  }
  0x8e   :  { %63 = vst.msk [vmem:[%s131_s1 + $0x7] ss:$9 sm:$0x3] %vm7_vm0, %v47_v17  }

// kernel: tile.0
= control target key start
LH: loop header
LB: loop body
LE: loop exit
PB: predicated region body
PF: predicated region fallthrough
CT: control target
= control target key end

     0   :  { %s130_s8 = smov 127   ;;  %s131_s9 = smov 123   ;;  %vm7_vm0 = vcmask 7168   ;;  %s221_s0 = inlined_call_operand.vmem [shape: f32[2,16], index: 0, kind: input, shape index: {}]   ;;  %s222_s1 = inlined_call_operand.vmem [shape: f32[32,1], index: 1, kind: output, shape index: {}]  }
   0x1   :  { %v4_v0 = vld [vmem:[%s221_s0] sm:$0x3]  ;;  %s129_s0 = smov 125   ;;  %s132_s10 = smov 124  }
   0x2   :  { %5 = vst [vmem:[#allocation0] sm:$0x3] %v4_v0  ;;  %s133_s11 = smov 126   ;;  %s134_s12 = smov 122  }
   0x3   :  { %s135_s13 = smov 120   ;;  %s136_s14 = smov 121  }
   0x4   :  { %s137_s15 = smov 119   ;;  %s138_s16 = smov 117  }
   0x5   :  { %s139_s17 = smov 118   ;;  %s140_s18 = smov 116  }
   0x6   :  { %s141_s19 = smov 114   ;;  %s142_s20 = smov 115  }
   0x7   :  { %s143_s21 = smov 113  }
   0x9   :  { %v21_v1 = vld [vmem:[#allocation0] sm:$0x3]  }
   0xa   :  { %v9_v2 = vld [vmem:[#allocation0] sm:$0x3]   ;;  %22 = vrot.lane.b32.xlu1 %v21_v1, %s129_s0 }
   0xb   :  { %10 = vrot.lane.b32.xlu0 %v9_v2, %s130_s8  ;;  %v33_v3 = vld [vmem:[#allocation0] sm:$0x3]  }
   0xc   :  { %34 = vrot.lane.b32.xlu2 %v33_v3, %s131_s9  ;;  %v27_v4 = vld [vmem:[#allocation0] sm:$0x3]  }
   0xd   :  { %v15_v5 = vld [vmem:[#allocation0] sm:$0x3]  }
   0xe   :  { %v39_v6 = vld [vmem:[#allocation0] sm:$0x3]  }
   0xf   :  { %v51_v7 = vld [vmem:[#allocation0] sm:$0x3]  }
  0x10   :  { %v45_v8 = vld [vmem:[#allocation0] sm:$0x3]  }
  0x11   :  { %v57_v9 = vld [vmem:[#allocation0] sm:$0x3]  }
  0x12   :  { %28 = vrot.lane.b32.xlu1 %v27_v4, %s132_s10  ;;  %v69_v10 = vld [vmem:[#allocation0] sm:$0x3]  }
  0x13   :  { %16 = vrot.lane.b32.xlu0 %v15_v5, %s133_s11  ;;  %v63_v11 = vld [vmem:[#allocation0] sm:$0x3]  }
  0x14   :  { %40 = vrot.lane.b32.xlu2 %v39_v6, %s134_s12  ;;  %v75_v12 = vld [vmem:[#allocation0] sm:$0x3]  }
  0x15   :  { %v87_v13 = vld [vmem:[#allocation0] sm:$0x3]  }
  0x16   :  { %v81_v14 = vld [vmem:[#allocation0] sm:$0x3]  }
  0x17   :  { %v93_v15 = vld [vmem:[#allocation0] sm:$0x3]  }
  0x18   :  { %v6_v21 = vld [vmem:[#allocation0] sm:$0x3]  }
  0x19   :  { %8 = vst.msk [vmem:[%s222_s1] ss:$16 sm:$0x3] %vm7_vm0, %v6_v21  }
  0x1a   :  { %52 = vrot.lane.b32.xlu1 %v51_v7, %s135_s13 }
  0x1b   :  { %46 = vrot.lane.b32.xlu0 %v45_v8, %s136_s14 }
  0x1c   :  { %58 = vrot.lane.b32.xlu2 %v57_v9, %s137_s15 }
  0x22   :  { %70 = vrot.lane.b32.xlu1 %v69_v10, %s138_s16 }
  0x23   :  { %64 = vrot.lane.b32.xlu0 %v63_v11, %s139_s17 }
  0x24   :  { %76 = vrot.lane.b32.xlu2 %v75_v12, %s140_s18 }
  0x2a   :  { %88 = vrot.lane.b32.xlu1 %v87_v13, %s141_s19 }
  0x2b   :  { %82 = vrot.lane.b32.xlu0 %v81_v14, %s142_s20 }
  0x2c   :  { %94 = vrot.lane.b32.xlu2 %v93_v15, %s143_s21 }
  0x66   :  { %v35_v16 = vpop.permute.xlu2 %34  }
  0x67   :  { %103 = vst.msk [vmem:[%s222_s1 + $0x5] ss:$16 sm:$0x3] %vm7_vm0, %v35_v16  }
  0x6e   :  { %v41_v17 = vpop.permute.xlu2 %40  }
  0x6f   :  { %104 = vst.msk [vmem:[%s222_s1 + $0x6] ss:$16 sm:$0x3] %vm7_vm0, %v41_v17  }
  0x76   :  { %v59_v18 = vpop.permute.xlu2 %58  }
  0x77   :  { %107 = vst.msk [vmem:[%s222_s1 + $0x9] ss:$16 sm:$0x3] %vm7_vm0, %v59_v18  }
  0x7c   :  { %v23_v19 = vpop.permute.xlu1 %22  }
  0x7d   :  { %v11_v20 = vpop.permute.xlu0 %10   ;;  %101 = vst.msk [vmem:[%s222_s1 + $0x3] ss:$16 sm:$0x3] %vm7_vm0, %v23_v19  }
  0x7e   :  { %99 = vst.msk [vmem:[%s222_s1 + $0x1] ss:$16 sm:$0x3] %vm7_vm0, %v11_v20   ;;  %v77_v22 = vpop.permute.xlu2 %76  }
  0x7f   :  { %110 = vst.msk [vmem:[%s222_s1 + $0xc] ss:$16 sm:$0x3] %vm7_vm0, %v77_v22  }
  0x84   :  { %v29_v23 = vpop.permute.xlu1 %28  }
  0x85   :  { %v17_v24 = vpop.permute.xlu0 %16   ;;  %102 = vst.msk [vmem:[%s222_s1 + $0x4] ss:$16 sm:$0x3] %vm7_vm0, %v29_v23  }
  0x86   :  { %100 = vst.msk [vmem:[%s222_s1 + $0x2] ss:$16 sm:$0x3] %vm7_vm0, %v17_v24   ;;  %v95_v25 = vpop.permute.xlu2 %94  }
  0x87   :  { %113 = vst.msk [vmem:[%s222_s1 + $0xf] ss:$16 sm:$0x3] %vm7_vm0, %v95_v25  }
  0x8c   :  { %v53_v26 = vpop.permute.xlu1 %52  }
  0x8d   :  { %v47_v27 = vpop.permute.xlu0 %46   ;;  %106 = vst.msk [vmem:[%s222_s1 + $0x8] ss:$16 sm:$0x3] %vm7_vm0, %v53_v26  }
  0x8e   :  { %105 = vst.msk [vmem:[%s222_s1 + $0x7] ss:$16 sm:$0x3] %vm7_vm0, %v47_v27  }
  0x94   :  { %v71_v28 = vpop.permute.xlu1 %70  }
  0x95   :  { %v65_v29 = vpop.permute.xlu0 %64   ;;  %109 = vst.msk [vmem:[%s222_s1 + $0xb] ss:$16 sm:$0x3] %vm7_vm0, %v71_v28  }
  0x96   :  { %108 = vst.msk [vmem:[%s222_s1 + $0xa] ss:$16 sm:$0x3] %vm7_vm0, %v65_v29  }
  0x9c   :  { %v89_v30 = vpop.permute.xlu1 %88  }
  0x9d   :  { %v83_v31 = vpop.permute.xlu0 %82   ;;  %112 = vst.msk [vmem:[%s222_s1 + $0xe] ss:$16 sm:$0x3] %vm7_vm0, %v89_v30  }
  0x9e   :  { %111 = vst.msk [vmem:[%s222_s1 + $0xd] ss:$16 sm:$0x3] %vm7_vm0, %v83_v31  }

// kernel: burgers_forward.1
= control target key start
LH: loop header
LB: loop body
LE: loop exit
PB: predicated region body
PF: predicated region fallthrough
CT: control target
= control target key end

     0   :  { %s5417_s6 = smov 1   ;;  %s5418_s10 = smov 2   ;;  %s8427_s0 = inlined_call_operand.smem [shape: u32[33], index: -1, kind: input, shape index: {}] }
   0x1   :  { %s5472_s5 = sld [smem:[%s8427_s0]]   ;;  %s5419_s14 = smov 3  }
   0x2   :  { %s5477_s9 = sld [smem:[%s8427_s0 + %s5417_s6]]   ;;  %s5420_s18 = smov 4  }
   0x3   :  { %s5482_s13 = sld [smem:[%s8427_s0 + %s5418_s10]]   ;;  %s5421_s22 = smov 5  }
   0x4   :  { %s5487_s17 = sld [smem:[%s8427_s0 + %s5419_s14]]   ;;  %s5422_s26 = smov 6  }
   0x5   :  { %s5492_s21 = sld [smem:[%s8427_s0 + %s5420_s18]]   ;;  %s5423_s30 = smov 7  }
   0x6   :  { %s5497_s25 = sld [smem:[%s8427_s0 + %s5421_s22]]   ;;  %s5424_s4 = smov 8  }
   0x7   :  { %s5502_s29 = sld [smem:[%s8427_s0 + %s5422_s26]]   ;;  %s5425_s10 = smov 9  }
   0x8   :  { %s5507_s3 = sld [smem:[%s8427_s0 + %s5423_s30]]   ;;  %s5426_s15 = smov 10  }
   0x9   :  { %s5512_s8 = sld [smem:[%s8427_s0 + %s5424_s4]]   ;;  %s5427_s20 = smov 11  }
   0xa   :  { %8453 = sst [smem:[#allocation10_spill]] %s5487_s17  ;;  %s5428_s26 = smov 12  }
   0xb   :  { %8454 = sst [smem:[#allocation11_spill]] %s5492_s21  ;;  %s5429_s1 = smov 13  }
   0xc   :  { %8455 = sst [smem:[#allocation12_spill]] %s5497_s25  ;;  %s5430_s7 = smov 14  }
   0xd   :  { %8456 = sst [smem:[#allocation13_spill]] %s5502_s29  ;;  %s5432_s22 = smov 16  }
   0xe   :  { %8457 = sst [smem:[#allocation14_spill]] %s5507_s3  ;;  %s5433_s28 = smov 17  }
   0xf   :  { %8458 = sst [smem:[#allocation15_spill]] %s5512_s8  ;;  %s5448_s23 = smov 32  }
  0x10   :  { %s5517_s14 = sld [smem:[%s8427_s0 + %s5425_s10]]  }
  0x11   :  { %s5522_s19 = sld [smem:[%s8427_s0 + %s5426_s15]]   ;;  %s5431_s15 = smov 15  }
  0x12   :  { %s5527_s24 = sld [smem:[%s8427_s0 + %s5427_s20]]  }
  0x13   :  { %s5532_s30 = sld [smem:[%s8427_s0 + %s5428_s26]]  }
  0x14   :  { %s5537_s6 = sld [smem:[%s8427_s0 + %s5429_s1]]  }
  0x15   :  { %s5542_s12 = sld [smem:[%s8427_s0 + %s5430_s7]]   ;;  %s5434_s7 = smov 18  }
  0x16   :  { %8459 = sst [smem:[#allocation16_spill]] %s5517_s14 }
  0x17   :  { %s5547_s20 = sld [smem:[%s8427_s0 + %s5431_s15]]   ;;  %s5435_s15 = smov 19  }
  0x18   :  { %s5552_s27 = sld [smem:[%s8427_s0 + %s5432_s22]]   ;;  %s5436_s22 = smov 20  }
  0x19   :  { %s5557_s4 = sld [smem:[%s8427_s0 + %s5433_s28]]   ;;  %s5437_s28 = smov 21  }
  0x1a   :  { %s5562_s25 = sld [smem:[%s8427_s0 + %s5434_s7]]   ;;  %s5438_s7 = smov 22  }
  0x1b   :  { %s5567_s29 = sld [smem:[%s8427_s0 + %s5435_s15]]   ;;  %s5439_s15 = smov 23  }
  0x1c   :  { %s5572_s3 = sld [smem:[%s8427_s0 + %s5436_s22]]   ;;  %s5440_s22 = smov 24  }
  0x1d   :  { %s5577_s21 = sld [smem:[%s8427_s0 + %s5437_s28]]   ;;  %s5441_s28 = smov 25  }
  0x1e   :  { %s5587_s17 = sld [smem:[%s8427_s0 + %s5439_s15]]   ;;  %s5443_s15 = smov 27  }
  0x1f   :  { %8460 = sst [smem:[#allocation17_spill]] %s5557_s4 }
  0x20   :  { %s5582_s4 = sld [smem:[%s8427_s0 + %s5438_s7]]   ;;  %s5442_s7 = smov 26  }
  0x21   :  { %s5592_s14 = sld [smem:[%s8427_s0 + %s5440_s22]]   ;;  %s5444_s22 = smov 28  }
  0x22   :  { %s5602_s8 = sld [smem:[%s8427_s0 + %s5442_s7]]   ;;  %s5446_s7 = smov 30  }
  0x23   :  { %8461 = sst [smem:[#allocation18_spill]] %s5577_s21 }
  0x24   :  { %8463 = sst [smem:[#allocation20_spill]] %s5587_s17 }
  0x25   :  { %s5597_s21 = sld [smem:[%s8427_s0 + %s5441_s28]]   ;;  %s5445_s28 = smov 29  }
  0x26   :  { %8462 = sst [smem:[#allocation19_spill]] %s5582_s4 }
  0x27   :  { %s5607_s17 = sld [smem:[%s8427_s0 + %s5443_s15]]   ;;  %s5447_s15 = smov 31  }
  0x28   :  { %8465 = sst [smem:[#allocation22_spill]] %s5602_s8 }
  0x29   :  { %s5612_s4 = sld [smem:[%s8427_s0 + %s5444_s22]]  }
  0x2a   :  { %s5622_s8 = sld [smem:[%s8427_s0 + %s5446_s7]]  }
  0x2b   :  { %8464 = sst [smem:[#allocation21_spill]] %s5597_s21 }
  0x2c   :  { %s5617_s21 = sld [smem:[%s8427_s0 + %s5445_s28]]  }
  0x2d   :  { %8466 = sst [smem:[#allocation23_spill]] %s5607_s17 }
  0x2e   :  { %s4948_s17 = sld [smem:[%s8427_s0 + %s5447_s15]]  }
  0x2f   :  { %8467 = sst [smem:[#allocation24_spill]] %s5612_s4 }
  0x30   :  { %s5630_s4 = sld [smem:[%s8427_s0 + %s5448_s23]]  }
  0x34   :  { %v70_v0 = vstv %s4948_s17 }
  0x35   :  { %71 = vst [vmem:[#allocation2] sm:$0x1] %v70_v0 }
  0x36   :  { %72 = vsyncpa [#allocation4], 0 }
  0x37   :  { %73 = vsyncpa [#allocation6], 0  ;;  %s117_s28 = sshll.u32 %s5542_s12, 4  ;;  %s5449_s1 = smov [#allocation5]   ;;  %s118_s28 = int_to_ptr.hbm [resolvable:$true] %s117_s28 }
  0x38   :  { %s119_s2 = sshll.u32 %s5449_s1, 4  ;;  %s102_s7 = sshll.u32 %s5532_s30, 4  ;;  %s120_s2 = int_to_ptr.vmem [resolvable:$true] %s119_s2  ;;  %s103_s7 = int_to_ptr.hbm [resolvable:$true] %s102_s7 }
  0x39   :  { %s5341_s10 = sshra.s32 %s118_s28, 4  ;;  %s5345_s0 = scalar_lea.hbm %s5542_s12, 512  ;;  %s5342_s10 = int_to_ptr.hbm [resolvable:$true] %s5341_s10 }
  0x3a   :  { %s5343_s11 = scalar_lea.hbm %s5342_s10, 512  ;;  %p5346_p1 = scmp.lt.s32.totalorder %s5342_s10, %s5542_s12 }
  0x3b   :  { %p5344_p0 = scmp.ne.s32.totalorder %s5342_s10, %s5343_s11  ;;  %p5347_p2 = scmp.lt.s32.totalorder %s5345_s0, %s5343_s11 }
  0x3d   :  { %p5348_p3 = por %p5347_p2, %p5346_p1 }
  0x3f   :  { %p5349_p4 = pnand %p5348_p3, %p5344_p0 }
  0x41   :  { %5352 = shalt.err (!%p5349_p4)
}
  0x42   :  { %s5450_s17 = smov 256   ;;  %s5451_s15 = smov 16  }
  0x43   :  { %125 = dma.hbm_to_vmem [thread:$0]  %s118_s28, 8192, %s120_s2, [#allocation6], %s5450_s17, %s5450_s17, %s5451_s15  }
  0x44   :  { %s5452_s16 = smov [#allocation3]   ;;  %s132_s23 = sshll.u32 %s5552_s27, 4  ;;  %s5638_s23 = int_to_ptr.hbm [resolvable:$true] %s132_s23 }
  0x45   :  { %s104_s18 = sshll.u32 %s5452_s16, 4  ;;  %s5365_s22 = sshra.s32 %s103_s7, 4  ;;  %s105_s18 = int_to_ptr.vmem [resolvable:$true] %s104_s18  ;;  %s5366_s22 = int_to_ptr.hbm [resolvable:$true] %s5365_s22 }
  0x46   :  { %s5367_s12 = scalar_lea.hbm %s5366_s22, 512  ;;  %s5369_s26 = scalar_lea.hbm %s5532_s30, 512 }
  0x47   :  { %p5368_p5 = scmp.ne.s32.totalorder %s5366_s22, %s5367_s12  ;;  %p5370_p6 = scmp.lt.s32.totalorder %s5366_s22, %s5532_s30 }
  0x48   :  { %p5371_p7 = scmp.lt.s32.totalorder %s5369_s26, %s5367_s12 }
  0x4a   :  { %p5372_p8 = por %p5371_p7, %p5370_p6 }
  0x4c   :  { %p5373_p9 = pnand %p5372_p8, %p5368_p5 }
  0x4e   :  { %5376 = shalt.err (!%p5373_p9)
}
  0x4f   :  { %110 = dma.hbm_to_vmem [thread:$0]  %s103_s7, 8192, %s105_s18, [#allocation4], %s5450_s17, %s5450_s17, %s5451_s15  }
  0x50   :  { %s5453_s28 = smov [#allocation7]   ;;  %s5389_s2 = sshra.s32 %s5638_s23, 4  ;;  %s5390_s2 = int_to_ptr.hbm [resolvable:$true] %s5389_s2 }
  0x51   :  { %s134_s1 = sshll.u32 %s5453_s28, 4  ;;  %s5391_s10 = scalar_lea.hbm %s5390_s2, 1024  ;;  %s135_s1 = int_to_ptr.vmem [resolvable:$true] %s134_s1 }
  0x52   :  { %p5392_p10 = scmp.ne.s32.totalorder %s5390_s2, %s5391_s10  ;;  %s5393_s11 = scalar_lea.hbm %s5552_s27, 1024 }
  0x53   :  { %p5394_p11 = scmp.lt.s32.totalorder %s5390_s2, %s5552_s27  ;;  %p5395_p12 = scmp.lt.s32.totalorder %s5393_s11, %s5391_s10 }
  0x55   :  { %p5396_p13 = por %p5395_p12, %p5394_p11 }
  0x57   :  { %p5397_p0 = pnand %p5396_p13, %p5392_p10 }
  0x59   :  { %5400 = shalt.err (!%p5397_p0)
}
  0x5a   :  { %s5454_s30 = smov 512   ;;  %s5455_s0 = smov 32  }
  0x5b   :  { %140 = dma.hbm_to_vmem [thread:$0]  %s5638_s23, 16384, %s135_s1, [#allocation6], %s5454_s30, %s5454_s30, %s5455_s0  }
  0x5c   :  { %5413 = dma.done.wait [#allocation4], 8192  }
  0x5d   :  { %5414 = vsyncadd [#allocation4], 4294959104 }
  0x5e   :  { %5415 = dma.done.wait [#allocation6], 24576  }
  0x5f   :  { %5416 = vsyncadd [#allocation6], 4294942720  ;;  %v5456_v1 = vmov 0   ;;  %v256_v2 = vld [vmem:[%s5482_s13 + $0x10] sm:$0x3]  ;;  %v254_v3 = vld [vmem:[%s5482_s13] sm:$0xff] }
  0x60   :  { %5116 = vset.pattern.permute.xlu1 %v5456_v1  ;;  %5115 = vset.pattern.permute.xlu0 %v5456_v1  ;;  %v214_v4 = vld [vmem:[%s5477_s9 + $0x8] sm:$0xff]  ;;  %v213_v6 = vld [vmem:[%s5477_s9] sm:$0xff]  ;;  %v216_v7 = vld [vmem:[%s5477_s9 + $0x18] sm:$0xff]  ;;  %s8537_s27 = sld [smem:[#allocation20_spill]]  ;;  %s5460_s7 = smov 40  }
  0x61   :  { %5117 = vset.pattern.permute.xlu2 %v5456_v1  ;;  %270 = vperm.xlu1 %5116, %v256_v2   ;;  %v255_v5 = vld [vmem:[%s5482_s13 + $0x8] sm:$0xff]  ;;  %v187_v8 = vld [vmem:[%s5472_s5 + $0x18] sm:$0xff]  ;;  %v184_v10 = vld [vmem:[%s5472_s5] sm:$0xff]  ;;  %s8520_s13 = sld [smem:[#allocation16_spill]]  ;;  %s5461_s17 = smov 24  }
  0x62   :  { %260 = vperm.xlu0 %5115, %v254_v3   ;;  %224 = vperm.xlu2 %5117, %v214_v4   ;;  %v185_v9 = vld [vmem:[%s5472_s5 + $0x8] sm:$0xff]  ;;  %v257_v11 = vld [vmem:[%s5522_s19] sm:$0x3]  ;;  %v566_v12 = vld [vmem:[#allocation3 + $0xf0] sm:$0xff]  ;;  %s8532_s19 = sld [smem:[#allocation18_spill]]  ;;  %s5462_s16 = smov 48  }
  0x63   :  { %v598_v13 = vld [vmem:[#allocation3 + $0x1f0] sm:$0xff]  ;;  %v567_v14 = vld [vmem:[#allocation3 + $0xf8] sm:$0xff]  ;;  %606 = vmatpush.msra.mxu0 %v566_v12  ;;  %v5659_v17 = vperm.slane %v257_v11, 0  ;;  %v564_v18 = vld [vmem:[#allocation3 + $0xe0] sm:$0xff]  ;;  %v5661_v21 = vperm.slane %v257_v11, 1  ;;  %s5463_s18 = smov 56  }
  0x64   :  { %632 = vmatpush.msra.mxu1 %v598_v13  ;;  %v599_v15 = vld [vmem:[#allocation3 + $0x1f8] sm:$0xff]  ;;  %658 = vmatpush.msra.mxu2 %v567_v14  ;;  %v596_v19 = vld [vmem:[#allocation3 + $0x1e0] sm:$0xff]  ;;  %v565_v20 = vld [vmem:[#allocation3 + $0xe8] sm:$0xff]  ;;  %s8547_s23 = sld [smem:[#allocation13_spill]] }
  0x65   :  { %v284_v16 = vld [vmem:[%s5527_s24] sm:$0x3]  ;;  %684 = vmatpush.msra.mxu3 %v599_v15  ;;  %607 = vmatpush.msra.mxu0 %v564_v18  ;;  %v597_v22 = vld [vmem:[#allocation3 + $0x1e8] sm:$0xff]  ;;  %v562_v23 = vld [vmem:[#allocation3 + $0xd0] sm:$0xff]  ;;  %s5458_s24 = smov 64   ;;  %s8548_s22 = sld [smem:[#allocation12_spill]] }
  0x66   :  { %633 = vmatpush.msra.mxu1 %v596_v19  ;;  %v594_v24 = vld [vmem:[#allocation3 + $0x1d0] sm:$0xff]  ;;  %659 = vmatpush.msra.mxu2 %v565_v20  ;;  %v563_v25 = vld [vmem:[#allocation3 + $0xd8] sm:$0xff]  ;;  %v560_v27 = vld [vmem:[#allocation3 + $0xc0] sm:$0xff]  ;;  %v5663_v28 = vperm.slane %v284_v16, 0  ;;  %v5667_v38 = vperm.slane %v284_v16, 1  ;;  %s8552_s12 = sld [smem:[#allocation21_spill]] }
  0x67   :  { %685 = vmatpush.msra.mxu3 %v597_v22  ;;  %v595_v26 = vld [vmem:[#allocation3 + $0x1d8] sm:$0xff]  ;;  %608 = vmatpush.msra.mxu0 %v562_v23  ;;  %v592_v30 = vld [vmem:[#allocation3 + $0x1c0] sm:$0xff]  ;;  %v561_v31 = vld [vmem:[#allocation3 + $0xc8] sm:$0xff]  ;;  %s8559_s26 = sld [smem:[#allocation23_spill]] }
  0x68   :  { %634 = vmatpush.msra.mxu1 %v594_v24  ;;  %660 = vmatpush.msra.mxu2 %v563_v25  ;;  %v593_v33 = vld [vmem:[#allocation3 + $0x1c8] sm:$0xff]  ;;  %v558_v34 = vld [vmem:[#allocation3 + $0xb0] sm:$0xff]  ;;  %v559_v37 = vld [vmem:[#allocation3 + $0xb8] sm:$0xff] }
  0x69   :  { %219 = vperm.xlu1 %5116, %v213_v6   ;;  %686 = vmatpush.msra.mxu3 %v595_v26  ;;  %v590_v36 = vld [vmem:[#allocation3 + $0x1b0] sm:$0xff]  ;;  %v591_v39 = vld [vmem:[#allocation3 + $0x1b8] sm:$0xff]  ;;  %v556_v40 = vld [vmem:[#allocation3 + $0xa0] sm:$0xff] }
  0x6a   :  { %265 = vperm.xlu0 %5115, %v255_v5   ;;  %609 = vmatpush.msra.mxu0 %v560_v27  ;;  %v588_v42 = vld [vmem:[#allocation3 + $0x1a0] sm:$0xff]  ;;  %v557_v43 = vld [vmem:[#allocation3 + $0xa8] sm:$0xff]  ;;  %v554_v45 = vld [vmem:[#allocation3 + $0x90] sm:$0xff] }
  0x6b   :  { %635 = vmatpush.msra.mxu1 %v592_v30  ;;  %661 = vmatpush.msra.mxu2 %v561_v31  ;;  %v589_v44 = vld [vmem:[#allocation3 + $0x1a8] sm:$0xff]  ;;  %v586_v47 = vld [vmem:[#allocation3 + $0x190] sm:$0xff]  ;;  %v555_v49 = vld [vmem:[#allocation3 + $0x98] sm:$0xff] }
  0x6c   :  { %687 = vmatpush.msra.mxu3 %v593_v33  ;;  %610 = vmatpush.msra.mxu0 %v558_v34  ;;  %v587_v50 = vld [vmem:[#allocation3 + $0x198] sm:$0xff]  ;;  %v552_v52 = vld [vmem:[#allocation3 + $0x80] sm:$0xff]  ;;  %v553_v55 = vld [vmem:[#allocation3 + $0x88] sm:$0xff] }
  0x6d   :  { %636 = vmatpush.msra.mxu1 %v590_v36  ;;  %662 = vmatpush.msra.mxu2 %v559_v37  ;;  %v584_v53 = vld [vmem:[#allocation3 + $0x180] sm:$0xff]  ;;  %v585_v56 = vld [vmem:[#allocation3 + $0x188] sm:$0xff]  ;;  %v550_v57 = vld [vmem:[#allocation3 + $0x70] sm:$0xff] }
  0x6e   :  { %688 = vmatpush.msra.mxu3 %v591_v39  ;;  %611 = vmatpush.msra.mxu0 %v556_v40  ;;  %v582_v58 = vld [vmem:[#allocation3 + $0x170] sm:$0xff]  ;;  %v551_v61 = vld [vmem:[#allocation3 + $0x78] sm:$0xff]  ;;  %v548_v0 = vld [vmem:[#allocation3 + $0x60] sm:$0xff] }
  0x6f   :  { %637 = vmatpush.msra.mxu1 %v588_v42  ;;  %663 = vmatpush.msra.mxu2 %v557_v43  ;;  %v583_v62 = vld [vmem:[#allocation3 + $0x178] sm:$0xff]  ;;  %v580_v1 = vld [vmem:[#allocation3 + $0x160] sm:$0xff]  ;;  %v549_v3 = vld [vmem:[#allocation3 + $0x68] sm:$0xff] }
  0x70   :  { %689 = vmatpush.msra.mxu3 %v589_v44  ;;  %612 = vmatpush.msra.mxu0 %v554_v45  ;;  %v581_v4 = vld [vmem:[#allocation3 + $0x168] sm:$0xff]  ;;  %v546_v5 = vld [vmem:[#allocation3 + $0x50] sm:$0xff]  ;;  %v576_v11 = vld [vmem:[#allocation3 + $0x140] sm:$0xff] }
  0x71   :  { %205 = vperm.xlu1 %5116, %v187_v8   ;;  %638 = vmatpush.msra.mxu1 %v586_v47  ;;  %v578_v6 = vld [vmem:[#allocation3 + $0x150] sm:$0xff]  ;;  %v547_v8 = vld [vmem:[#allocation3 + $0x58] sm:$0xff]  ;;  %v545_v13 = vld [vmem:[#allocation3 + $0x48] sm:$0xff] }
  0x72   :  { %234 = vperm.xlu0 %5115, %v216_v7   ;;  %664 = vmatpush.msra.mxu2 %v555_v49  ;;  %v577_v14 = vld [vmem:[#allocation3 + $0x148] sm:$0xff]  ;;  %v542_v15 = vld [vmem:[#allocation3 + $0x30] sm:$0xff]  ;;  %v543_v19 = vld [vmem:[#allocation3 + $0x38] sm:$0xff] }
  0x73   :  { %690 = vmatpush.msra.mxu3 %v587_v50  ;;  %613 = vmatpush.msra.mxu0 %v552_v52  ;;  %v574_v16 = vld [vmem:[#allocation3 + $0x130] sm:$0xff]  ;;  %v575_v20 = vld [vmem:[#allocation3 + $0x138] sm:$0xff]  ;;  %v540_v25 = vld [vmem:[#allocation3 + $0x20] sm:$0xff] }
  0x74   :  { %639 = vmatpush.msra.mxu1 %v584_v53  ;;  %665 = vmatpush.msra.mxu2 %v553_v55  ;;  %v572_v26 = vld [vmem:[#allocation3 + $0x120] sm:$0xff]  ;;  %v541_v30 = vld [vmem:[#allocation3 + $0x28] sm:$0xff]  ;;  %v538_v33 = vld [vmem:[#allocation3 + $0x10] sm:$0xff] }
  0x75   :  { %691 = vmatpush.msra.mxu3 %v585_v56  ;;  %614 = vmatpush.msra.mxu0 %v550_v57  ;;  %v573_v31 = vld [vmem:[#allocation3 + $0x128] sm:$0xff]  ;;  %v570_v34 = vld [vmem:[#allocation3 + $0x110] sm:$0xff]  ;;  %v539_v36 = vld [vmem:[#allocation3 + $0x18] sm:$0xff] }
  0x76   :  { %640 = vmatpush.msra.mxu1 %v582_v58  ;;  %666 = vmatpush.msra.mxu2 %v551_v61  ;;  %v571_v37 = vld [vmem:[#allocation3 + $0x118] sm:$0xff]  ;;  %v536_v40 = vld [vmem:[#allocation3] sm:$0xff]  ;;  %v569_v47 = vld [vmem:[#allocation3 + $0x108] sm:$0xff] }
  0x77   :  { %692 = vmatpush.msra.mxu3 %v583_v62  ;;  %615 = vmatpush.msra.mxu0 %v548_v0  ;;  %v568_v42 = vld [vmem:[#allocation3 + $0x100] sm:$0xff] }
  0x78   :  { %641 = vmatpush.msra.mxu1 %v580_v1  ;;  %667 = vmatpush.msra.mxu2 %v549_v3 }
  0x79   :  { %190 = vperm.xlu1 %5116, %v184_v10   ;;  %693 = vmatpush.msra.mxu3 %v581_v4  ;;  %v544_v10 = vld [vmem:[#allocation3 + $0x40] sm:$0xff] }
  0x7a   :  { %195 = vperm.xlu0 %5115, %v185_v9   ;;  %v579_v9 = vld [vmem:[#allocation3 + $0x158] sm:$0xff]  ;;  %616 = vmatpush.msra.mxu0 %v546_v5 }
  0x7b   :  { %642 = vmatpush.msra.mxu1 %v578_v6  ;;  %668 = vmatpush.msra.mxu2 %v547_v8 }
  0x7c   :  { %694 = vmatpush.msra.mxu3 %v579_v9  ;;  %617 = vmatpush.msra.mxu0 %v544_v10 }
  0x7d   :  { %643 = vmatpush.msra.mxu1 %v576_v11  ;;  %669 = vmatpush.msra.mxu2 %v545_v13 }
  0x7e   :  { %695 = vmatpush.msra.mxu3 %v577_v14  ;;  %618 = vmatpush.msra.mxu0 %v542_v15 }
  0x7f   :  { %644 = vmatpush.msra.mxu1 %v574_v16  ;;  %670 = vmatpush.msra.mxu2 %v543_v19 }
  0x80   :  { %696 = vmatpush.msra.mxu3 %v575_v20  ;;  %619 = vmatpush.msra.mxu0 %v540_v25 }
  0x81   :  { %645 = vmatpush.msra.mxu1 %v572_v26  ;;  %671 = vmatpush.msra.mxu2 %v541_v30 }
  0x82   :  { %697 = vmatpush.msra.mxu3 %v573_v31  ;;  %620 = vmatpush.msra.mxu0 %v538_v33 }
  0x83   :  { %646 = vmatpush.msra.mxu1 %v570_v34  ;;  %672 = vmatpush.msra.mxu2 %v539_v36 }
  0x84   :  { %698 = vmatpush.msra.mxu3 %v571_v37  ;;  %621 = vmatpush.msra.mxu0 %v536_v40  ;;  %v8441_v37 = vmov -1.0  }
  0x85   :  { %647 = vmatpush.msra.mxu1 %v568_v42 }
  0x86   :  { %699 = vmatpush.msra.mxu3 %v569_v47 }
  0xd3   :  { %v271_v23 = vpop.permute.xlu1 %270 }
  0xd4   :  { %v261_v29 = vpop.permute.xlu0 %260 }
  0xd5   :  { %v278_v32 = vmul.f32 %v5659_v17, %v261_v29  ;;  %v279_v35 = vmul.f32 %v5661_v21, %v261_v29 }
  0xd7   :  { %v5670_v41 = vadd.f32 %v5663_v28, %v278_v32  ;;  %v5676_v48 = vadd.f32 %v5667_v38, %v279_v35  ;;  %v282_v35 = vmul.f32 %v5659_v17, %v271_v23 }
  0xd9   :  { %v5673_v46 = vmul.f32 0.70710677, %v5670_v41  ;;  %v5683_v60 = vmul.f32 0.70710677, %v5676_v48 }
  0xdb   :  { %v5679_v51 = vand.u32 2147483647, %v5673_v46  ;;  %v5690_v7 = vand.u32 2147483647, %v5683_v60  ;;  %vm308_vm8 = vcmp.ge.f32.partialorder %v5673_v46, 0.0 }
  0xdc   :  { %v266_v54 = vpop.permute.xlu0 %265 }
  0xdd   :  { %v326_v59 = vmul.f32 0.3275911, %v5679_v51  ;;  %v280_v63 = vmul.f32 %v5659_v17, %v266_v54  ;;  %v327_v18 = vmul.f32 0.3275911, %v5690_v7  ;;  %v281_v24 = vmul.f32 %v5661_v21, %v266_v54  ;;  %v537_v17 = vld [vmem:[#allocation3 + $0x8] sm:$0xff] }
  0xde   :  { %v5716_v54 = vadd.f32 %v5663_v28, %v282_v35  ;;  %673 = vmatpush.msra.mxu2 %v537_v17  ;;  %v482_v57 = vsub.f32 0.0, %v5679_v51  ;;  %v483_v0 = vsub.f32 0.0, %v5690_v7 }
  0xdf   :  { %v5686_v2 = vadd.f32 1.0, %v326_v59  ;;  %v5693_v12 = vadd.f32 %v5663_v28, %v280_v63  ;;  %v5697_v27 = vadd.f32 1.0, %v327_v18  ;;  %v5710_v45 = vadd.f32 %v5667_v38, %v281_v24 }
  0xe0   :  { %v283_v63 = vmul.f32 %v5661_v21, %v271_v23  ;;  %v488_v3 = vmul.f32 %v482_v57, %v5679_v51  ;;  %v5737_v6 = vmul.f32 0.70710677, %v5716_v54  ;;  %v489_v10 = vmul.f32 %v483_v0, %v5690_v7 }
  0xe1   :  { %5129 = vrcp.f32 %v5686_v2  ;;  %v5700_v29 = vmul.f32 0.70710677, %v5693_v12  ;;  %v349_v43 = vand.u32 2147483648, %v5686_v2  ;;  %v347_v50 = vand.u32 2147483647, %v5686_v2 }
  0xe2   :  { %5131 = vrcp.f32 %v5697_v27  ;;  %vm343_vm1 = vweird.f32 %v5686_v2  ;;  %v5722_v59 = vmul.f32 0.70710677, %v5710_v45  ;;  %v364_v4 = vand.u32 2147483648, %v5697_v27 }
  0xe3   :  { %v5707_v44 = vand.u32 2147483647, %v5700_v29  ;;  %v350_v56 = vor.u32 1.1754944e-38, %v349_v43  ;;  %vm348_vm3 = vcmp.eq.f32.partialorder %v347_v50, 8.507059e+37  ;;  %v362_v9 = vand.u32 2147483647, %v5697_v27 }
  0xe4   :  { %v5734_v5 = vand.u32 2147483647, %v5722_v59  ;;  %v5743_v13 = vadd.f32 %v5667_v38, %v283_v63  ;;  %v5746_v51 = vmul.f32 0.5, %v5670_v41  ;;  %vm358_vm5 = vweird.f32 %v5697_v27 }
  0xe5   :  { %v328_v52 = vmul.f32 0.3275911, %v5707_v44  ;;  %v494_v18 = vmul.f32 1.442695, %v488_v3  ;;  %v365_v19 = vor.u32 1.1754944e-38, %v364_v4  ;;  %vm363_vm7 = vcmp.eq.f32.partialorder %v362_v9, 8.507059e+37 }
  0xe6   :  { %v329_v11 = vmul.f32 0.3275911, %v5734_v5  ;;  %v5753_v7 = vand.u32 2147483647, %v5737_v6  ;;  %v496_v24 = vmul.f32 1.442695, %v489_v10 }
  0xe7   :  { %v5130_v22 = vpop.eup %5129  ;;  %v5719_v58 = vadd.f32 1.0, %v328_v52  ;;  %v484_v25 = vsub.f32 0.0, %v5707_v44  ;;  %v5775_v50 = vmul.f32 0.70710677, %v5743_v13  ;;  %v485_v4 = vsub.f32 0.0, %v5734_v5 }
  0xe8   :  { %v339_v32 = vmul.f32 %v5130_v22, %v5686_v2  ;;  %vm344_vm0 = vweird.f32 %v5130_v22  ;;  %v5132_v55 = vpop.eup %5131  ;;  %v5750_v20 = vadd.f32 1.0, %v329_v11  ;;  %v330_v33 = vmul.f32 0.3275911, %v5753_v7 }
  0xe9   :  { %vm345_vm2 = vmor %vm343_vm1, %vm344_vm0  ;;  %v354_v62 = vmul.f32 %v5132_v55, %v5697_v27  ;;  %5133 = vrcp.f32 %v5719_v58  ;;  %vm359_vm4 = vweird.f32 %v5132_v55  ;;  %v377_v31 = vand.u32 2147483647, %v5719_v58 }
  0xea   :  { %v340_v39 = vsub.f32 1.0, %v339_v32  ;;  %vm360_vm6 = vmor %vm358_vm5, %vm359_vm4  ;;  %5135 = vrcp.f32 %v5750_v20  ;;  %v379_v32 = vand.u32 2147483648, %v5719_v58  ;;  %v490_v46 = vmul.f32 %v484_v25, %v5707_v44 }
  0xeb   :  { %v355_v2 = vsub.f32 1.0, %v354_v62  ;;  %5137 = vpow2.f32 %v494_v18  ;;  %v5768_v40 = vadd.f32 1.0, %v330_v33  ;;  %vm373_vm10 = vweird.f32 %v5719_v58 }
  0xec   :  { %v341_v49 = vmul.f32 %v5130_v22, %v340_v39  ;;  %v314_v39 = vsel %vm308_vm8, 1.0, %v8441_v37  ;;  %5139 = vpow2.f32 %v496_v24  ;;  %vm378_vm12 = vcmp.eq.f32.partialorder %v377_v31, 8.507059e+37 }
  0xed   :  { %v356_v8 = vmul.f32 %v5132_v55, %v355_v2  ;;  %5141 = vrcp.f32 %v5768_v40  ;;  %v394_v62 = vand.u32 2147483648, %v5750_v20  ;;  %vm388_vm13 = vweird.f32 %v5750_v20 }
  0xee   :  { %v342_v53 = vadd.f32 %v5130_v22, %v341_v49  ;;  %v380_v49 = vor.u32 1.1754944e-38, %v379_v32  ;;  %vm403_vm0 = vweird.f32 %v5768_v40  ;;  %v407_v24 = vand.u32 2147483647, %v5768_v40 }
  0xef   :  { %v357_v15 = vadd.f32 %v5132_v55, %v356_v8  ;;  %v5134_v16 = vpop.eup %5133  ;;  %v409_v25 = vand.u32 2147483648, %v5768_v40 }
  0xf0   :  { %v346_v61 = vsel %vm345_vm2, %v5130_v22, %v342_v53  ;;  %v369_v41 = vmul.f32 %v5134_v16, %v5719_v58  ;;  %vm374_vm9 = vweird.f32 %v5134_v16  ;;  %v5136_v47 = vpop.eup %5135  ;;  %v392_v58 = vand.u32 2147483647, %v5750_v20 }
  0xf1   :  { %v5726_v28 = vsel %vm348_vm3, %v350_v56, %v346_v61  ;;  %v361_v38 = vsel %vm360_vm6, %v5132_v55, %v357_v15  ;;  %vm375_vm11 = vmor %vm373_vm10, %vm374_vm9  ;;  %v384_v55 = vmul.f32 %v5136_v47, %v5750_v20  ;;  %v5138_v56 = vpop.eup %5137  ;;  %v498_v61 = vmul.f32 1.442695, %v490_v46 }
  0xf2   :  { %v428_v1 = vmul.f32 1.0614054, %v5726_v28  ;;  %v5756_v23 = vsel %vm363_vm7, %v365_v19, %v361_v38  ;;  %v370_v30 = vsub.f32 1.0, %v369_v41  ;;  %v5140_v3 = vpop.eup %5139  ;;  %vm389_vm14 = vweird.f32 %v5136_v47 }
  0xf3   :  { %v429_v27 = vmul.f32 1.0614054, %v5756_v23  ;;  %v385_v2 = vsub.f32 1.0, %v384_v55  ;;  %vm5790_vm15 = vcmp.eq.f32.partialorder %v392_v58, 8.507059e+37  ;;  %v395_v15 = vor.u32 1.1754944e-38, %v394_v62  ;;  %vm390_vm1 = vmor %vm388_vm13, %vm389_vm14 }
  0xf4   :  { %v434_v21 = vadd.f32 -1.4531521, %v428_v1  ;;  %v371_v36 = vmul.f32 %v5134_v16, %v370_v30  ;;  %vm309_vm3 = vcmp.ge.f32.partialorder %v5683_v60, 0.0  ;;  %vm408_vm5 = vcmp.eq.f32.partialorder %v407_v24, 8.507059e+37 }
  0xf5   :  { %v435_v35 = vadd.f32 -1.4531521, %v429_v27  ;;  %v386_v11 = vmul.f32 %v5136_v47, %v385_v2  ;;  %vm310_vm6 = vcmp.ge.f32.partialorder %v5700_v29, 0.0  ;;  %vm313_vm13 = vcmp.ge.f32.partialorder %v5775_v50, 0.0 }
  0xf6   :  { %v440_v14 = vmul.f32 %v434_v21, %v5726_v28  ;;  %v372_v17 = vadd.f32 %v5134_v16, %v371_v36  ;;  %v5788_v21 = vand.u32 2147483647, %v5775_v50 }
  0xf7   :  { %v441_v43 = vmul.f32 %v435_v35, %v5756_v23  ;;  %v387_v38 = vadd.f32 %v5136_v47, %v386_v11 }
  0xf8   :  { %v446_v22 = vadd.f32 1.4214138, %v440_v14  ;;  %v376_v53 = vsel %vm375_vm11, %v5134_v16, %v372_v17  ;;  %v5142_v14 = vpop.eup %5141  ;;  %v331_v16 = vmul.f32 0.3275911, %v5788_v21  ;;  %vm311_vm11 = vcmp.ge.f32.partialorder %v5722_v59, 0.0 }
  0xf9   :  { %v447_v44 = vadd.f32 1.4214138, %v441_v43  ;;  %v5778_v57 = vsel %vm378_vm12, %v380_v49, %v376_v53  ;;  %v399_v41 = vmul.f32 %v5142_v14, %v5768_v40  ;;  %v391_v32 = vsel %vm390_vm1, %v5136_v47, %v387_v38 }
  0xfa   :  { %v452_v26 = vmul.f32 %v446_v22, %v5726_v28  ;;  %v430_v1 = vmul.f32 1.0614054, %v5778_v57  ;;  %v5808_v33 = vsel %vm5790_vm15, %v395_v15, %v391_v32  ;;  %vm404_vm2 = vweird.f32 %v5142_v14 }
  0xfb   :  { %v453_v0 = vmul.f32 %v447_v44, %v5756_v23  ;;  %v431_v46 = vmul.f32 1.0614054, %v5808_v33  ;;  %vm5818_vm4 = vmor %vm403_vm0, %vm404_vm2  ;;  %v297_v53 = vmul.f32 0.5, %v5676_v48  ;;  %v315_v40 = vsel %vm309_vm3, 1.0, %v8441_v37 }
  0xfc   :  { %v458_v34 = vadd.f32 -0.28449672, %v452_v26  ;;  %v436_v10 = vadd.f32 -1.4531521, %v430_v1  ;;  %v5804_v26 = vadd.f32 1.0, %v331_v16  ;;  %vm312_vm12 = vcmp.ge.f32.partialorder %v5737_v6, 0.0 }
  0xfd   :  { %v459_v9 = vadd.f32 -0.28449672, %v453_v0  ;;  %v437_v49 = vadd.f32 -1.4531521, %v431_v46 }
  0xfe   :  { %v464_v42 = vmul.f32 %v458_v34, %v5726_v28  ;;  %v442_v22 = vmul.f32 %v436_v10, %v5778_v57  ;;  %v400_v34 = vsub.f32 1.0, %v399_v41  ;;  %5143 = vrcp.f32 %v5804_v26 }
  0xff   :  { %v465_v19 = vmul.f32 %v459_v9, %v5756_v23  ;;  %5145 = vpow2.f32 %v498_v61  ;;  %v486_v61 = vsub.f32 0.0, %v5753_v7  ;;  %vm418_vm7 = vweird.f32 %v5804_v26 }
 0x100   :  { %v470_v52 = vadd.f32 0.2548296, %v464_v42  ;;  %v448_v31 = vadd.f32 1.4214138, %v442_v22  ;;  %v410_v42 = vor.u32 1.1754944e-38, %v409_v25  ;;  %v424_v9 = vand.u32 2147483648, %v5804_v26 }
 0x101   :  { %v471_v30 = vadd.f32 0.2548296, %v465_v19  ;;  %v492_v19 = vmul.f32 %v486_v61, %v5753_v7  ;;  %v316_v25 = vsel %vm310_vm6, 1.0, %v8441_v37 }
 0x102   :  { %v476_v63 = vmul.f32 %v470_v52, %v5726_v28  ;;  %v454_v36 = vmul.f32 %v448_v31, %v5778_v57  ;;  %v422_v28 = vand.u32 2147483647, %v5804_v26  ;;  %v425_v24 = vor.u32 1.1754944e-38, %v424_v9 }
 0x103   :  { %v477_v35 = vmul.f32 %v471_v30, %v5756_v23  ;;  %v491_v23 = vmul.f32 %v485_v4, %v5734_v5  ;;  %v502_v32 = vmul.f32 1.442695, %v492_v19 }
 0x104   :  { %v506_v8 = vmul.f32 %v5138_v56, %v476_v63  ;;  %v460_v47 = vadd.f32 -0.28449672, %v454_v36  ;;  %v443_v56 = vmul.f32 %v437_v49, %v5808_v33  ;;  %v5144_v58 = vpop.eup %5143  ;;  %vm423_vm10 = vcmp.eq.f32.partialorder %v422_v28, 8.507059e+37 }
 0x105   :  { %v507_v17 = vmul.f32 %v5140_v3, %v477_v35  ;;  %v500_v1 = vmul.f32 1.442695, %v491_v23  ;;  %v414_v3 = vmul.f32 %v5144_v58, %v5804_v26  ;;  %v5146_v10 = vpop.eup %5145  ;;  %vm419_vm8 = vweird.f32 %v5144_v58 }
 0x106   :  { %v512_v18 = vsub.f32 1.0, %v506_v8  ;;  %v449_v63 = vadd.f32 1.4214138, %v443_v56  ;;  %vm420_vm9 = vmor %vm418_vm7, %vm419_vm8  ;;  %v301_v28 = vmul.f32 0.5, %v5743_v13 }
 0x107   :  { %v513_v55 = vsub.f32 1.0, %v507_v17  ;;  %5147 = vpow2.f32 %v500_v1 }
 0x108   :  { %v518_v27 = vmul.f32 %v512_v18, %v314_v39  ;;  %v401_v39 = vmul.f32 %v5142_v14, %v400_v34  ;;  %v455_v8 = vmul.f32 %v449_v63, %v5808_v33  ;;  %v298_v34 = vmul.f32 0.5, %v5693_v12 }
 0x109   :  { %v519_v62 = vmul.f32 %v513_v55, %v315_v40  ;;  %5149 = vpow2.f32 %v502_v32  ;;  %v299_v40 = vmul.f32 0.5, %v5710_v45 }
 0x10a   :  { %v524_v20 = vadd.f32 1.0, %v518_v27  ;;  %v402_v44 = vadd.f32 %v5142_v14, %v401_v39  ;;  %v461_v18 = vadd.f32 -0.28449672, %v455_v8  ;;  %v487_v39 = vsub.f32 0.0, %v5788_v21 }
 0x10b   :  { %v525_v4 = vadd.f32 1.0, %v519_v62 }
 0x10c   :  { %v530_v43 = vmul.f32 %v524_v20, %v5746_v51  ;;  %v466_v51 = vmul.f32 %v460_v47, %v5778_v57  ;;  %v406_v5 = vsel %vm5818_vm4, %v5142_v14, %v402_v44  ;;  %v415_v14 = vsub.f32 1.0, %v414_v3 }
 0x10d   :  { %v411_v0 = vsel %vm408_vm5, %v410_v42, %v406_v5  ;;  %v531_v15 = vmul.f32 %v525_v4, %v297_v53  ;;  %v467_v41 = vmul.f32 %v461_v18, %v5808_v33  ;;  %v5148_v42 = vpop.eup %5147  ;;  %v493_v23 = vmul.f32 %v487_v39, %v5788_v21 }
 0x10e   :  { %622 = vmatmul.f32.vlgmr.msra.gmra.mxu0 %v530_v43  ;;  %674 = vmatmul.f32.vlgmr.msra.gmra.mxu2 %v530_v43  ;;  %v472_v48 = vadd.f32 0.2548296, %v466_v51  ;;  %v432_v2 = vmul.f32 1.0614054, %v411_v0  ;;  %v416_v38 = vmul.f32 %v5144_v58, %v415_v14  ;;  %v318_v21 = vsel %vm312_vm12, 1.0, %v8441_v37 }
 0x10f   :  { %648 = vmatmul.f32.vlgmr.msra.gmra.mxu1 %v531_v15  ;;  %700 = vmatmul.f32.vlgmr.msra.gmra.mxu3 %v531_v15  ;;  %v473_v31 = vadd.f32 0.2548296, %v467_v41  ;;  %v504_v5 = vmul.f32 1.442695, %v493_v23  ;;  %v300_v3 = vmul.f32 0.5, %v5716_v54 }
 0x110   :  { %v478_v60 = vmul.f32 %v472_v48, %v5778_v57  ;;  %v438_v11 = vadd.f32 -1.4531521, %v432_v2  ;;  %v417_v30 = vadd.f32 %v5144_v58, %v416_v38  ;;  %v600_v54 = vld [vmem:[%s5537_s6] sm:$0x3]  ;;  %s8536_s6 = sld [smem:[#allocation11_spill]] }
 0x111   :  { %v479_v46 = vmul.f32 %v473_v31, %v5808_v33  ;;  %v317_v33 = vsel %vm311_vm11, 1.0, %v8441_v37  ;;  %5151 = vpow2.f32 %v504_v5  ;;  %v602_v18 = vperm.slane %v600_v54, 0 }
 0x112   :  { %v508_v16 = vmul.f32 %v5146_v10, %v478_v60  ;;  %v444_v22 = vmul.f32 %v438_v11, %v411_v0  ;;  %v421_v35 = vsel %vm420_vm9, %v5144_v58, %v417_v30  ;;  %v5150_v58 = vpop.eup %5149  ;;  %v319_v11 = vsel %vm313_vm13, 1.0, %v8441_v37 }
 0x113   :  { %v426_v26 = vsel %vm423_vm10, %v425_v24, %v421_v35  ;;  %v509_v47 = vmul.f32 %v5148_v42, %v479_v46  ;;  %v5860_v38 = vperm.slane %v600_v54, 1 }
 0x114   :  { %v514_v57 = vsub.f32 1.0, %v508_v16  ;;  %v450_v27 = vadd.f32 1.4214138, %v444_v22  ;;  %v433_v29 = vmul.f32 1.0614054, %v426_v26 }
 0x115   :  { %v515_v12 = vsub.f32 1.0, %v509_v47 }
 0x116   :  { %v520_v7 = vmul.f32 %v514_v57, %v316_v25  ;;  %v456_v20 = vmul.f32 %v450_v27, %v411_v0  ;;  %v439_v52 = vadd.f32 -1.4531521, %v433_v29 }
 0x117   :  { %v521_v55 = vmul.f32 %v515_v12, %v317_v33  ;;  %v5152_v6 = vpop.eup %5151 }
 0x118   :  { %v526_v36 = vadd.f32 1.0, %v520_v7  ;;  %v462_v43 = vadd.f32 -0.28449672, %v456_v20  ;;  %v445_v53 = vmul.f32 %v439_v52, %v426_v26 }
 0x119   :  { %v527_v59 = vadd.f32 1.0, %v521_v55 }
 0x11a   :  { %v532_v17 = vmul.f32 %v526_v36, %v298_v34  ;;  %v468_v49 = vmul.f32 %v462_v43, %v411_v0  ;;  %v451_v56 = vadd.f32 1.4214138, %v445_v53 }
 0x11b   :  { %v533_v48 = vmul.f32 %v527_v59, %v299_v40 }
 0x11c   :  { %625 = vmatmul.f32.gmra.mxu0 %v532_v17  ;;  %677 = vmatmul.f32.gmra.mxu2 %v532_v17  ;;  %v474_v44 = vadd.f32 0.2548296, %v468_v49  ;;  %v457_v62 = vmul.f32 %v451_v56, %v426_v26 }
 0x11d   :  { %651 = vmatmul.f32.gmra.mxu1 %v533_v48  ;;  %703 = vmatmul.f32.gmra.mxu3 %v533_v48  ;;  %v981_v48 = vld [vmem:[#allocation5 + $0xf8] sm:$0xff] }
 0x11e   :  { %v480_v51 = vmul.f32 %v474_v44, %v411_v0  ;;  %v463_v1 = vadd.f32 -0.28449672, %v457_v62  ;;  %v980_v62 = vld [vmem:[#allocation5 + $0xf0] sm:$0xff]  ;;  %1072 = vmatpush.msrb.mxu2 %v981_v48 }
 0x11f   :  { %1020 = vmatpush.msrb.mxu0 %v980_v62  ;;  %v1005_v62 = vld [vmem:[#allocation5 + $0x1b8] sm:$0xff] }
 0x120   :  { %v510_v61 = vmul.f32 %v5150_v58, %v480_v51  ;;  %v469_v0 = vmul.f32 %v463_v1, %v426_v26  ;;  %v979_v1 = vld [vmem:[#allocation5 + $0xe8] sm:$0xff] }
 0x121   :  { %1073 = vmatpush.msrb.mxu2 %v979_v1  ;;  %v969_v1 = vld [vmem:[#allocation5 + $0x98] sm:$0xff] }
 0x122   :  { %v516_v63 = vsub.f32 1.0, %v510_v61  ;;  %v475_v45 = vadd.f32 0.2548296, %v469_v0 }
 0x124   :  { %v522_v2 = vmul.f32 %v516_v63, %v318_v21  ;;  %v481_v8 = vmul.f32 %v475_v45, %v426_v26  ;;  %v978_v63 = vld [vmem:[#allocation5 + $0xe0] sm:$0xff] }
 0x125   :  { %1021 = vmatpush.msrb.mxu0 %v978_v63  ;;  %v966_v45 = vld [vmem:[#allocation5 + $0x80] sm:$0xff] }
 0x126   :  { %v528_v4 = vadd.f32 1.0, %v522_v2  ;;  %v511_v9 = vmul.f32 %v5152_v6, %v481_v8  ;;  %v977_v6 = vld [vmem:[#allocation5 + $0xd8] sm:$0xff] }
 0x127   :  { %1074 = vmatpush.msrb.mxu2 %v977_v6 }
 0x128   :  { %v534_v60 = vmul.f32 %v528_v4, %v300_v3  ;;  %v517_v10 = vsub.f32 1.0, %v511_v9  ;;  %v976_v4 = vld [vmem:[#allocation5 + $0xd0] sm:$0xff] }
 0x129   :  { %v1012_v9 = vld [vmem:[#allocation5 + $0x1f0] sm:$0xff]  ;;  %1022 = vmatpush.msrb.mxu0 %v976_v4 }
 0x12a   :  { %628 = vmatmul.f32.gmra.mxu0 %v534_v60  ;;  %680 = vmatmul.f32.gmra.mxu2 %v534_v60  ;;  %v523_v14 = vmul.f32 %v517_v10, %v319_v11  ;;  %v1013_v10 = vld [vmem:[#allocation5 + $0x1f8] sm:$0xff] }
 0x12b   :  { %1046 = vmatpush.msrb.mxu1 %v1012_v9  ;;  %1098 = vmatpush.msrb.mxu3 %v1013_v10 }
 0x12c   :  { %v529_v15 = vadd.f32 1.0, %v523_v14 }
 0x12e   :  { %v535_v16 = vmul.f32 %v529_v15, %v301_v28  ;;  %v974_v15 = vld [vmem:[#allocation5 + $0xc0] sm:$0xff] }
 0x12f   :  { %1023 = vmatpush.msrb.mxu0 %v974_v15  ;;  %v967_v15 = vld [vmem:[#allocation5 + $0x88] sm:$0xff] }
 0x130   :  { %654 = vmatmul.f32.gmra.mxu1 %v535_v16  ;;  %706 = vmatmul.f32.gmra.mxu3 %v535_v16  ;;  %v1010_v16 = vld [vmem:[#allocation5 + $0x1e0] sm:$0xff] }
 0x131   :  { %1047 = vmatpush.msrb.mxu1 %v1010_v16  ;;  %v1000_v16 = vld [vmem:[#allocation5 + $0x190] sm:$0xff] }
 0x18b   :  { %v623_v19 = vpop.f32.mrf.mxu0 }
 0x18c   :  { %v624_v22 = vadd.f32 %v623_v19, %v602_v18  ;;  %v649_v57 = vpop.f32.mrf.mxu1  ;;  %v975_v19 = vld [vmem:[#allocation5 + $0xc8] sm:$0xff] }
 0x18d   :  { %1075 = vmatpush.msrb.mxu2 %v975_v19 }
 0x18e   :  { %v5862_v41 = vadd.f32 %v649_v57, %v624_v22  ;;  %v1008_v22 = vld [vmem:[#allocation5 + $0x1d0] sm:$0xff] }
 0x18f   :  { %1048 = vmatpush.msrb.mxu1 %v1008_v22  ;;  %v1001_v22 = vld [vmem:[#allocation5 + $0x198] sm:$0xff] }
 0x190   :  { %v5865_v24 = vmul.f32 0.70710677, %v5862_v41 }
 0x191   :  { %v675_v50 = vpop.f32.mrf.mxu2 }
 0x192   :  { %v676_v25 = vadd.f32 %v675_v50, %v5860_v38  ;;  %v734_v13 = vand.u32 2147483647, %v5865_v24  ;;  %v701_v27 = vpop.f32.mrf.mxu3  ;;  %vm722_vm11 = vcmp.ge.f32.partialorder %v5865_v24, 0.0 }
 0x194   :  { %v740_v30 = vmul.f32 0.3275911, %v734_v13  ;;  %v5869_v7 = vadd.f32 %v701_v27, %v676_v25  ;;  %v896_v55 = vsub.f32 0.0, %v734_v13 }
 0x196   :  { %v746_v31 = vadd.f32 1.0, %v740_v30  ;;  %v5872_v32 = vmul.f32 0.70710677, %v5869_v7  ;;  %v902_v2 = vmul.f32 %v896_v55, %v734_v13  ;;  %v971_v55 = vld [vmem:[#allocation5 + $0xa8] sm:$0xff] }
 0x198   :  { %5153 = vrcp.f32 %v746_v31  ;;  %v5875_v20 = vand.u32 2147483647, %v5872_v32  ;;  %v763_v58 = vand.u32 2147483648, %v746_v31  ;;  %v761_v40 = vand.u32 2147483647, %v746_v31 }
 0x199   :  { %v626_v34 = vpop.f32.mrf.mxu0  ;;  %vm757_vm15 = vweird.f32 %v746_v31  ;;  %v908_v25 = vmul.f32 1.442695, %v902_v2 }
 0x19a   :  { %v741_v35 = vmul.f32 0.3275911, %v5875_v20  ;;  %v627_v36 = vadd.f32 %v626_v34, %v602_v18  ;;  %v652_v26 = vpop.f32.mrf.mxu1  ;;  %v897_v0 = vsub.f32 0.0, %v5875_v20  ;;  %v764_v60 = vor.u32 1.1754944e-38, %v763_v58  ;;  %v1009_v34 = vld [vmem:[#allocation5 + $0x1d8] sm:$0xff]  ;;  %v1004_v58 = vld [vmem:[#allocation5 + $0x1b0] sm:$0xff] }
 0x19b   :  { %vm762_vm1 = vcmp.eq.f32.partialorder %v761_v40, 8.507059e+37 }
 0x19c   :  { %v5878_v46 = vadd.f32 1.0, %v741_v35  ;;  %v5880_v43 = vadd.f32 %v652_v26, %v627_v36  ;;  %v903_v13 = vmul.f32 %v897_v0, %v5875_v20  ;;  %v973_v26 = vld [vmem:[#allocation5 + $0xb8] sm:$0xff] }
 0x19d   :  { %1076 = vmatpush.msrb.mxu2 %v973_v26 }
 0x19e   :  { %v5154_v42 = vpop.eup %5153  ;;  %5155 = vrcp.f32 %v5878_v46  ;;  %v5884_v17 = vmul.f32 0.70710677, %v5880_v43  ;;  %v776_v20 = vand.u32 2147483647, %v5878_v46  ;;  %vm772_vm2 = vweird.f32 %v5878_v46 }
 0x19f   :  { %v678_v39 = vpop.f32.mrf.mxu2  ;;  %v753_v29 = vmul.f32 %v5154_v42, %v746_v31  ;;  %vm758_vm14 = vweird.f32 %v5154_v42  ;;  %v972_v31 = vld [vmem:[#allocation5 + $0xb0] sm:$0xff]  ;;  %v778_v48 = vand.u32 2147483648, %v5878_v46  ;;  %1077 = vmatpush.msrb.mxu2 %v971_v55 }
 0x1a0   :  { %v679_v47 = vadd.f32 %v678_v39, %v5860_v38  ;;  %v5888_v52 = vand.u32 2147483647, %v5884_v17  ;;  %v704_v12 = vpop.f32.mrf.mxu3  ;;  %vm5909_vm0 = vmor %vm757_vm15, %vm758_vm14  ;;  %v1006_v39 = vld [vmem:[#allocation5 + $0x1c0] sm:$0xff]  ;;  %1024 = vmatpush.msrb.mxu0 %v972_v31  ;;  %vm5943_vm3 = vcmp.eq.f32.partialorder %v776_v20, 8.507059e+37 }
 0x1a1   :  { %v754_v49 = vsub.f32 1.0, %v753_v29  ;;  %1049 = vmatpush.msrb.mxu1 %v1006_v39  ;;  %1078 = vmatpush.msrb.mxu2 %v969_v1  ;;  %v962_v20 = vld [vmem:[#allocation5 + $0x60] sm:$0xff]  ;;  %v6012_v1 = vmul.f32 0.5, %v5862_v41 }
 0x1a2   :  { %v742_v23 = vmul.f32 0.3275911, %v5888_v52  ;;  %v5891_v33 = vadd.f32 %v704_v12, %v679_v47  ;;  %v970_v47 = vld [vmem:[#allocation5 + $0xa0] sm:$0xff]  ;;  %v898_v63 = vsub.f32 0.0, %v5888_v52 }
 0x1a3   :  { %v755_v53 = vmul.f32 %v5154_v42, %v754_v49  ;;  %v1007_v49 = vld [vmem:[#allocation5 + $0x1c8] sm:$0xff]  ;;  %1025 = vmatpush.msrb.mxu0 %v970_v47  ;;  %1050 = vmatpush.msrb.mxu1 %v1004_v58 }
 0x1a4   :  { %v5893_v44 = vpop.eup %5155  ;;  %v5895_v51 = vadd.f32 1.0, %v742_v23  ;;  %v5898_v56 = vmul.f32 0.70710677, %v5891_v33  ;;  %1079 = vmatpush.msrb.mxu2 %v967_v15  ;;  %v992_v15 = vld [vmem:[#allocation5 + $0x150] sm:$0xff] }
 0x1a5   :  { %v768_v59 = vmul.f32 %v5893_v44, %v5878_v46  ;;  %v756_v21 = vadd.f32 %v5154_v42, %v755_v53  ;;  %vm773_vm4 = vweird.f32 %v5893_v44 }
 0x1a6   :  { %5157 = vrcp.f32 %v5895_v51  ;;  %v5904_v5 = vand.u32 2147483647, %v5898_v56  ;;  %v791_v9 = vand.u32 2147483647, %v5895_v51  ;;  %v793_v19 = vand.u32 2147483648, %v5895_v51  ;;  %vm5974_vm6 = vmor %vm772_vm2, %vm773_vm4 }
 0x1a7   :  { %v629_v61 = vpop.f32.mrf.mxu0  ;;  %v760_v11 = vsel %vm5909_vm0, %v5154_v42, %v756_v21  ;;  %v769_v14 = vsub.f32 1.0, %v768_v59  ;;  %v5935_v59 = vmul.f32 1.442695, %v903_v13  ;;  %v1002_v21 = vld [vmem:[#allocation5 + $0x1a0] sm:$0xff]  ;;  %vm787_vm7 = vweird.f32 %v5895_v51 }
 0x1a8   :  { %v743_v3 = vmul.f32 0.3275911, %v5904_v5  ;;  %v630_v8 = vadd.f32 %v629_v61, %v602_v18  ;;  %v5917_v54 = vsel %vm762_vm1, %v764_v60, %v760_v11  ;;  %v1011_v18 = vld [vmem:[#allocation5 + $0x1e8] sm:$0xff]  ;;  %v968_v61 = vld [vmem:[#allocation5 + $0x90] sm:$0xff]  ;;  %1051 = vmatpush.msrb.mxu1 %v1002_v21  ;;  %vm5998_vm9 = vcmp.eq.f32.partialorder %v791_v9, 8.507059e+37 }
 0x1a9   :  { %v842_v57 = vmul.f32 1.0614054, %v5917_v54  ;;  %1099 = vmatpush.msrb.mxu3 %v1011_v18  ;;  %v770_v29 = vmul.f32 %v5893_v44, %v769_v14  ;;  %v1003_v60 = vld [vmem:[#allocation5 + $0x1a8] sm:$0xff]  ;;  %1026 = vmatpush.msrb.mxu0 %v968_v61  ;;  %v964_v18 = vld [vmem:[#allocation5 + $0x70] sm:$0xff]  ;;  %v997_v61 = vld [vmem:[#allocation5 + $0x178] sm:$0xff]  ;;  %vm723_vm0 = vcmp.ge.f32.partialorder %v5872_v32, 0.0 }
 0x1aa   :  { %v5915_v28 = vadd.f32 1.0, %v743_v3  ;;  %1052 = vmatpush.msrb.mxu1 %v1000_v16 }
 0x1ab   :  { %v848_v42 = vadd.f32 -1.4531521, %v842_v57  ;;  %1100 = vmatpush.msrb.mxu3 %v1009_v34  ;;  %v771_v6 = vadd.f32 %v5893_v44, %v770_v29  ;;  %1027 = vmatpush.msrb.mxu0 %v966_v45  ;;  %v965_v34 = vld [vmem:[#allocation5 + $0x78] sm:$0xff]  ;;  %v999_v29 = vld [vmem:[#allocation5 + $0x188] sm:$0xff] }
 0x1ac   :  { %v5920_v50 = vpop.eup %5157  ;;  %5159 = vrcp.f32 %v5915_v28  ;;  %1080 = vmatpush.msrb.mxu2 %v965_v34  ;;  %v808_v45 = vand.u32 2147483648, %v5915_v28  ;;  %vm802_vm12 = vweird.f32 %v5915_v28 }
 0x1ad   :  { %v655_v27 = vpop.f32.mrf.mxu1  ;;  %v681_v30 = vpop.f32.mrf.mxu2  ;;  %v783_v35 = vmul.f32 %v5920_v50, %v5895_v51  ;;  %v854_v40 = vmul.f32 %v848_v42, %v5917_v54  ;;  %5161 = vpow2.f32 %v908_v25  ;;  %1101 = vmatpush.msrb.mxu3 %v1007_v49  ;;  %v779_v25 = vor.u32 1.1754944e-38, %v778_v48  ;;  %1028 = vmatpush.msrb.mxu0 %v964_v18  ;;  %v993_v18 = vld [vmem:[#allocation5 + $0x158] sm:$0xff] }
 0x1ae   :  { %v5926_v36 = vadd.f32 %v655_v27, %v630_v8  ;;  %v682_v53 = vadd.f32 %v681_v30, %v5860_v38  ;;  %vm788_vm5 = vweird.f32 %v5920_v50  ;;  %v904_v27 = vmul.f32 %v898_v63, %v5888_v52 }
 0x1af   :  { %v784_v12 = vsub.f32 1.0, %v783_v35  ;;  %v860_v8 = vadd.f32 1.4214138, %v854_v40  ;;  %1102 = vmatpush.msrb.mxu3 %v1005_v62  ;;  %v998_v35 = vld [vmem:[#allocation5 + $0x180] sm:$0xff]  ;;  %v899_v42 = vsub.f32 0.0, %v5904_v5  ;;  %v775_v46 = vsel %vm5974_vm6, %v5893_v44, %v771_v6  ;;  %vm5994_vm8 = vmor %vm787_vm7, %vm788_vm5  ;;  %v960_v40 = vld [vmem:[#allocation5 + $0x50] sm:$0xff]  ;;  %1029 = vmatpush.msrb.mxu0 %v962_v20 }
 0x1b0   :  { %v5931_v23 = vmul.f32 0.70710677, %v5926_v36  ;;  %v794_v44 = vor.u32 1.1754944e-38, %v793_v19  ;;  %1053 = vmatpush.msrb.mxu1 %v998_v35  ;;  %v6005_v48 = vsel %vm5943_vm3, %v779_v25, %v775_v46  ;;  %v806_v63 = vand.u32 2147483647, %v5915_v28  ;;  %v956_v19 = vld [vmem:[#allocation5 + $0x30] sm:$0xff] }
 0x1b1   :  { %v785_v0 = vmul.f32 %v5920_v50, %v784_v12  ;;  %v866_v57 = vmul.f32 %v860_v8, %v5917_v54  ;;  %1103 = vmatpush.msrb.mxu3 %v1003_v60  ;;  %v963_v12 = vld [vmem:[#allocation5 + $0x68] sm:$0xff]  ;;  %v912_v60 = vmul.f32 1.442695, %v904_v27  ;;  %v905_v9 = vmul.f32 %v899_v42, %v5904_v5  ;;  %1030 = vmatpush.msrb.mxu0 %v960_v40  ;;  %v990_v27 = vld [vmem:[#allocation5 + $0x140] sm:$0xff]  ;;  %v989_v40 = vld [vmem:[#allocation5 + $0x138] sm:$0xff] }
 0x1b2   :  { %v5941_v38 = vand.u32 2147483647, %v5931_v23  ;;  %v5948_v3 = vpop.eup %5159  ;;  %1081 = vmatpush.msrb.mxu2 %v963_v12  ;;  %v995_v8 = vld [vmem:[#allocation5 + $0x168] sm:$0xff]  ;;  %v843_v16 = vmul.f32 1.0614054, %v6005_v48  ;;  %vm6040_vm14 = vcmp.eq.f32.partialorder %v806_v63, 8.507059e+37 }
 0x1b3   :  { %v707_v4 = vpop.f32.mrf.mxu3  ;;  %v5955_v10 = vmul.f32 %v5948_v3, %v5915_v28  ;;  %v786_v13 = vadd.f32 %v5920_v50, %v785_v0  ;;  %v5979_v52 = vpop.eup %5161  ;;  %v872_v47 = vadd.f32 -0.28449672, %v866_v57  ;;  %1104 = vmatpush.msrb.mxu3 %v1001_v22  ;;  %v961_v0 = vld [vmem:[#allocation5 + $0x58] sm:$0xff]  ;;  %vm803_vm10 = vweird.f32 %v5948_v3  ;;  %v991_v42 = vld [vmem:[#allocation5 + $0x148] sm:$0xff]  ;;  %v986_v63 = vld [vmem:[#allocation5 + $0x120] sm:$0xff] }
 0x1b4   :  { %v744_v11 = vmul.f32 0.3275911, %v5941_v38  ;;  %v5958_v14 = vadd.f32 %v707_v4, %v682_v53  ;;  %v996_v53 = vld [vmem:[#allocation5 + $0x170] sm:$0xff]  ;;  %v994_v4 = vld [vmem:[#allocation5 + $0x160] sm:$0xff]  ;;  %1082 = vmatpush.msrb.mxu2 %v961_v0  ;;  %v849_v34 = vadd.f32 -1.4531521, %v843_v16  ;;  %vm6036_vm13 = vmor %vm802_vm12, %vm803_vm10 }
 0x1b5   :  { %v799_v39 = vsub.f32 1.0, %v5955_v10  ;;  %v878_v62 = vmul.f32 %v872_v47, %v5917_v54  ;;  %v790_v51 = vsel %vm5994_vm8, %v5920_v50, %v786_v13  ;;  %1105 = vmatpush.msrb.mxu3 %v999_v29  ;;  %v958_v50 = vld [vmem:[#allocation5 + $0x40] sm:$0xff]  ;;  %1054 = vmatpush.msrb.mxu1 %v996_v53  ;;  %v957_v13 = vld [vmem:[#allocation5 + $0x38] sm:$0xff]  ;;  %v809_v28 = vor.u32 1.1754944e-38, %v808_v45  ;;  %v955_v12 = vld [vmem:[#allocation5 + $0x28] sm:$0xff] }
 0x1b6   :  { %v5965_v30 = vadd.f32 1.0, %v744_v11  ;;  %v5968_v31 = vmul.f32 0.70710677, %v5958_v14  ;;  %v6017_v2 = vsel %vm5998_vm9, %v794_v44, %v790_v51  ;;  %v959_v11 = vld [vmem:[#allocation5 + $0x48] sm:$0xff]  ;;  %1031 = vmatpush.msrb.mxu0 %v958_v50  ;;  %v6051_v46 = vmul.f32 1.442695, %v905_v9 }
 0x1b7   :  { %v884_v6 = vadd.f32 0.2548296, %v878_v62  ;;  %v800_v41 = vmul.f32 %v5948_v3, %v799_v39  ;;  %1106 = vmatpush.msrb.mxu3 %v997_v61  ;;  %1055 = vmatpush.msrb.mxu1 %v994_v4  ;;  %v844_v57 = vmul.f32 1.0614054, %v6017_v2  ;;  %v954_v39 = vld [vmem:[#allocation5 + $0x20] sm:$0xff]  ;;  %v988_v53 = vld [vmem:[#allocation5 + $0x130] sm:$0xff]  ;;  %v855_v55 = vmul.f32 %v849_v34, %v6005_v48 }
 0x1b8   :  { %5163 = vrcp.f32 %v5965_v30  ;;  %v5988_v49 = vand.u32 2147483647, %v5968_v31  ;;  %1083 = vmatpush.msrb.mxu2 %v959_v11  ;;  %1032 = vmatpush.msrb.mxu0 %v956_v19  ;;  %v952_v44 = vld [vmem:[#allocation5 + $0x10] sm:$0xff]  ;;  %v728_v62 = vsel %vm722_vm11, 1.0, %v8441_v37  ;;  %v953_v51 = vld [vmem:[#allocation5 + $0x18] sm:$0xff]  ;;  %v823_v0 = vand.u32 2147483648, %v5965_v30 }
 0x1b9   :  { %v890_v22 = vmul.f32 %v884_v6, %v5917_v54  ;;  %v801_v25 = vadd.f32 %v5948_v3, %v800_v41  ;;  %1107 = vmatpush.msrb.mxu3 %v995_v8  ;;  %1056 = vmatpush.msrb.mxu1 %v992_v15  ;;  %v850_v29 = vadd.f32 -1.4531521, %v844_v57  ;;  %v950_v4 = vld [vmem:[#allocation5] sm:$0xff]  ;;  %v987_v50 = vld [vmem:[#allocation5 + $0x128] sm:$0xff]  ;;  %v900_v24 = vsub.f32 0.0, %v5941_v38  ;;  %v984_v11 = vld [vmem:[#allocation5 + $0x110] sm:$0xff] }
 0x1ba   :  { %v745_v21 = vmul.f32 0.3275911, %v5988_v49  ;;  %1084 = vmatpush.msrb.mxu2 %v957_v13  ;;  %1033 = vmatpush.msrb.mxu0 %v954_v39  ;;  %v821_v16 = vand.u32 2147483647, %v5965_v30  ;;  %vm817_vm1 = vweird.f32 %v5965_v30  ;;  %v824_v54 = vor.u32 1.1754944e-38, %v823_v0  ;;  %v983_v39 = vld [vmem:[#allocation5 + $0x108] sm:$0xff] }
 0x1bb   :  { %v920_v20 = vmul.f32 %v5979_v52, %v890_v22  ;;  %v805_v47 = vsel %vm6036_vm13, %v5948_v3, %v801_v25  ;;  %1108 = vmatpush.msrb.mxu3 %v993_v18  ;;  %1057 = vmatpush.msrb.mxu1 %v990_v27  ;;  %v985_v22 = vld [vmem:[#allocation5 + $0x118] sm:$0xff]  ;;  %v982_v27 = vld [vmem:[#allocation5 + $0x100] sm:$0xff]  ;;  %vm724_vm5 = vcmp.ge.f32.partialorder %v5884_v17, 0.0  ;;  %vm725_vm9 = vcmp.ge.f32.partialorder %v5898_v56, 0.0 }
 0x1bc   :  { %v6024_v10 = vadd.f32 1.0, %v745_v21  ;;  %v6056_v58 = vsel %vm6040_vm14, %v809_v28, %v805_v47  ;;  %v861_v21 = vadd.f32 1.4214138, %v855_v55  ;;  %1085 = vmatpush.msrb.mxu2 %v955_v12  ;;  %1034 = vmatpush.msrb.mxu0 %v952_v44  ;;  %vm822_vm3 = vcmp.eq.f32.partialorder %v821_v16, 8.507059e+37 }
 0x1bd   :  { %v926_v3 = vsub.f32 1.0, %v920_v20  ;;  %v845_v61 = vmul.f32 1.0614054, %v6056_v58  ;;  %1109 = vmatpush.msrb.mxu3 %v991_v42  ;;  %1058 = vmatpush.msrb.mxu1 %v988_v53  ;;  %vm726_vm10 = vcmp.ge.f32.partialorder %v5931_v23, 0.0  ;;  %vm727_vm11 = vcmp.ge.f32.partialorder %v5968_v31, 0.0  ;;  %v6130_v31 = vpop.permute.xlu1 %219 }
 0x1be   :  { %v6031_v5 = vpop.eup %5163  ;;  %5165 = vrcp.f32 %v6024_v10  ;;  %v867_v15 = vmul.f32 %v861_v21, %v6005_v48  ;;  %1086 = vmatpush.msrb.mxu2 %v953_v51  ;;  %1035 = vmatpush.msrb.mxu0 %v950_v4  ;;  %vm832_vm6 = vweird.f32 %v6024_v10  ;;  %v906_v21 = vmul.f32 %v900_v24, %v5941_v38 }
 0x1bf   :  { %v813_v26 = vmul.f32 %v6031_v5, %v5965_v30  ;;  %5167 = vpow2.f32 %v5935_v59  ;;  %v856_v59 = vmul.f32 %v850_v29, %v6017_v2  ;;  %v932_v45 = vmul.f32 %v926_v3, %v728_v62  ;;  %1110 = vmatpush.msrb.mxu3 %v989_v40  ;;  %1059 = vmatpush.msrb.mxu1 %v986_v63  ;;  %v215_v63 = vld [vmem:[%s5477_s9 + $0x10] sm:$0xff]  ;;  %s8516_s9 = sld [smem:[#allocation15_spill]] }
 0x1c0   :  { %5169 = vpow2.f32 %v912_v60  ;;  %v851_v6 = vadd.f32 -1.4531521, %v845_v61  ;;  %v951_v60 = vld [vmem:[#allocation5 + $0x8] sm:$0xff]  ;;  %vm818_vm15 = vweird.f32 %v6031_v5  ;;  %v873_v34 = vadd.f32 -0.28449672, %v867_v15  ;;  %229 = vperm.xlu2 %5117, %v215_v63  }
 0x1c1   :  { %v814_v52 = vsub.f32 1.0, %v813_v26  ;;  %v862_v8 = vadd.f32 1.4214138, %v856_v59  ;;  %v938_v18 = vadd.f32 1.0, %v932_v45  ;;  %1111 = vmatpush.msrb.mxu3 %v987_v50  ;;  %1087 = vmatpush.msrb.mxu2 %v951_v60  ;;  %vm819_vm2 = vmor %vm817_vm1, %vm818_vm15  ;;  %v836_v30 = vand.u32 2147483647, %v6024_v10 }
 0x1c2   :  { %v857_v25 = vmul.f32 %v851_v6, %v6056_v58  ;;  %1060 = vmatpush.msrb.mxu1 %v984_v11  ;;  %v879_v47 = vmul.f32 %v873_v34, %v6005_v48  ;;  %5171 = vpow2.f32 %v6051_v46  ;;  %v729_v11 = vsel %vm723_vm0, 1.0, %v8441_v37 }
 0x1c3   :  { %v815_v41 = vmul.f32 %v6031_v5, %v814_v52  ;;  %v868_v57 = vmul.f32 %v862_v8, %v6017_v2  ;;  %v944_v26 = vmul.f32 %v938_v18, %v6012_v1  ;;  %1112 = vmatpush.msrb.mxu3 %v985_v22  ;;  %v838_v52 = vand.u32 2147483648, %v6024_v10 }
 0x1c4   :  { %v6065_v9 = vpop.eup %5165  ;;  %v863_v20 = vadd.f32 1.4214138, %v857_v25  ;;  %1061 = vmatpush.msrb.mxu1 %v982_v27  ;;  %v885_v44 = vadd.f32 0.2548296, %v879_v47  ;;  %vm837_vm8 = vcmp.eq.f32.partialorder %v836_v30, 8.507059e+37  ;;  %v901_v8 = vsub.f32 0.0, %v5988_v49 }
 0x1c5   :  { %v828_v19 = vmul.f32 %v6065_v9, %v6024_v10  ;;  %v5168_v13 = vpop.eup %5167  ;;  %v816_v35 = vadd.f32 %v6031_v5, %v815_v41  ;;  %v874_v42 = vadd.f32 -0.28449672, %v868_v57  ;;  %1036 = vmatmul.f32.vlgmr.msrb.gmra.mxu0 %v944_v26  ;;  %1088 = vmatmul.f32.vlgmr.msrb.gmra.mxu2 %v944_v26  ;;  %vm833_vm4 = vweird.f32 %v6065_v9  ;;  %v186_v25 = vld [vmem:[%s5472_s5 + $0x10] sm:$0xff]  ;;  %s8508_s5 = sld [smem:[#allocation19_spill]] }
 0x1c6   :  { %v5170_v29 = vpop.eup %5169  ;;  %v869_v53 = vmul.f32 %v863_v20, %v6056_v58  ;;  %1113 = vmatpush.msrb.mxu3 %v983_v39  ;;  %v891_v61 = vmul.f32 %v885_v44, %v6005_v48  ;;  %vm834_vm7 = vmor %vm832_vm6, %vm833_vm4  ;;  %v839_v45 = vor.u32 1.1754944e-38, %v838_v52  ;;  %v916_v15 = vmul.f32 1.442695, %v906_v21 }
 0x1c7   :  { %v829_v28 = vsub.f32 1.0, %v828_v19  ;;  %v820_v12 = vsel %vm819_vm2, %v6031_v5, %v816_v35  ;;  %v880_v1 = vmul.f32 %v874_v42, %v6017_v2  ;;  %v730_v18 = vsel %vm724_vm5, 1.0, %v8441_v37 }
 0x1c8   :  { %v6086_v55 = vsel %vm822_vm3, %v824_v54, %v820_v12  ;;  %v875_v59 = vadd.f32 -0.28449672, %v869_v53  ;;  %v921_v46 = vmul.f32 %v5168_v13, %v891_v61  ;;  %v5172_v60 = vpop.eup %5171  ;;  %v907_v13 = vmul.f32 %v901_v8, %v5988_v49  ;;  %200 = vperm.xlu2 %5117, %v186_v25   ;;  %v6128_v8 = vld [vmem:[%s5562_s25] ss:$0 sm:$0xff]  ;;  %s8525_s25 = sld [smem:[#allocation22_spill]] }
 0x1c9   :  { %v846_v40 = vmul.f32 1.0614054, %v6086_v55  ;;  %v830_v5 = vmul.f32 %v6065_v9, %v829_v28  ;;  %v886_v3 = vadd.f32 0.2548296, %v880_v1  ;;  %v711_v34 = vmul.f32 0.5, %v5869_v7 }
 0x1ca   :  { %v881_v4 = vmul.f32 %v875_v59, %v6056_v58  ;;  %v927_v38 = vsub.f32 1.0, %v921_v46  ;;  %5173 = vpow2.f32 %v916_v15  ;;  %v712_v28 = vmul.f32 0.5, %v5880_v43 }
 0x1cb   :  { %v852_v62 = vadd.f32 -1.4531521, %v846_v40  ;;  %v831_v51 = vadd.f32 %v6065_v9, %v830_v5  ;;  %v892_v0 = vmul.f32 %v886_v3, %v6017_v2  ;;  %v731_v42 = vsel %vm725_vm9, 1.0, %v8441_v37 }
 0x1cc   :  { %v887_v6 = vadd.f32 0.2548296, %v881_v4  ;;  %v918_v49 = vmul.f32 1.442695, %v907_v13  ;;  %v713_v43 = vmul.f32 0.5, %v5891_v33  ;;  %v732_v61 = vsel %vm726_vm10, 1.0, %v8441_v37 }
 0x1cd   :  { %v858_v50 = vmul.f32 %v852_v62, %v6086_v55  ;;  %v835_v48 = vsel %vm834_vm7, %v6065_v9, %v831_v51  ;;  %v922_v10 = vmul.f32 %v5170_v29, %v892_v0  ;;  %v933_v9 = vmul.f32 %v927_v38, %v729_v11  ;;  %v1425_v38 = vld [vmem:[#allocation7 + $0x1e8] sm:$0xff] }
 0x1ce   :  { %v840_v41 = vsel %vm837_vm8, %v839_v45, %v835_v48  ;;  %v893_v19 = vmul.f32 %v887_v6, %v6056_v58  ;;  %5175 = vpow2.f32 %v918_v49  ;;  %v714_v33 = vmul.f32 0.5, %v5926_v36  ;;  %v6133_v36 = vld [vmem:[%s5567_s29] ss:$0 sm:$0xff]  ;;  %1554 = vmatpush.msra.mxu2 %v1425_v38  ;;  %v1417_v11 = vld [vmem:[#allocation7 + $0x1a8] sm:$0xff]  ;;  %s8528_s29 = sld [smem:[#allocation10_spill]] }
 0x1cf   :  { %v864_v24 = vadd.f32 1.4214138, %v858_v50  ;;  %v847_v2 = vmul.f32 1.0614054, %v840_v41  ;;  %v928_v16 = vsub.f32 1.0, %v922_v10  ;;  %v939_v35 = vadd.f32 1.0, %v933_v9 }
 0x1d0   :  { %v923_v32 = vmul.f32 %v5172_v60, %v893_v19  ;;  %v5174_v52 = vpop.eup %5173  ;;  %v733_v4 = vsel %vm727_vm11, 1.0, %v8441_v37  ;;  %v715_v46 = vmul.f32 0.5, %v5958_v14  ;;  %v1714_v10 = vmul.f32 %v6128_v8, %v6130_v31  ;;  %v1424_v14 = vld [vmem:[#allocation7 + $0x1e0] sm:$0xff] }
 0x1d1   :  { %v870_v22 = vmul.f32 %v864_v24, %v6086_v55  ;;  %v853_v57 = vadd.f32 -1.4531521, %v847_v2  ;;  %v934_v27 = vmul.f32 %v928_v16, %v730_v18  ;;  %v945_v39 = vmul.f32 %v939_v35, %v711_v34  ;;  %v1420_v24 = vld [vmem:[#allocation7 + $0x1c0] sm:$0xff]  ;;  %1502 = vmatpush.msra.mxu0 %v1424_v14  ;;  %v1421_v2 = vld [vmem:[#allocation7 + $0x1c8] sm:$0xff]  ;;  %v6147_v18 = vpop.permute.xlu0 %234 }
 0x1d2   :  { %v929_v26 = vsub.f32 1.0, %v923_v32  ;;  %v6138_v6 = vadd.f32 %v6133_v36, %v1714_v10  ;;  %v1416_v60 = vld [vmem:[#allocation7 + $0x1a0] sm:$0xff]  ;;  %1555 = vmatpush.msra.mxu2 %v1421_v2  ;;  %v1413_v35 = vld [vmem:[#allocation7 + $0x188] sm:$0xff] }
 0x1d3   :  { %v876_v54 = vadd.f32 -0.28449672, %v870_v22  ;;  %v859_v58 = vmul.f32 %v853_v57, %v840_v41  ;;  %v940_v17 = vadd.f32 1.0, %v934_v27  ;;  %1062 = vmatmul.f32.vlgmr.msrb.gmra.mxu1 %v945_v39  ;;  %1114 = vmatmul.f32.vlgmr.msrb.gmra.mxu3 %v945_v39  ;;  %v1717_v57 = vmul.f32 %v6128_v8, %v6147_v18  ;;  %v1412_v32 = vld [vmem:[#allocation7 + $0x180] sm:$0xff] }
 0x1d4   :  { %v935_v47 = vmul.f32 %v929_v26, %v731_v42  ;;  %v5176_v63 = vpop.eup %5175  ;;  %8486 = vst [vmem:[#allocation25_spill] sm:$0xff] %v6138_v6  ;;  %1503 = vmatpush.msra.mxu0 %v1420_v24  ;;  %1556 = vmatpush.msra.mxu2 %v1417_v11  ;;  %v1488_v34 = vld [vmem:[#allocation7 + $0x3e0] sm:$0xff] }
 0x1d5   :  { %v882_v56 = vmul.f32 %v876_v54, %v6086_v55  ;;  %v865_v20 = vadd.f32 1.4214138, %v859_v58  ;;  %v946_v29 = vmul.f32 %v940_v17, %v712_v28  ;;  %v6152_v13 = vadd.f32 %v6133_v36, %v1717_v57  ;;  %1528 = vmatpush.msra.mxu1 %v1488_v34  ;;  %v1408_v58 = vld [vmem:[#allocation7 + $0x160] sm:$0xff]  ;;  %v1409_v17 = vld [vmem:[#allocation7 + $0x168] sm:$0xff] }
 0x1d6   :  { %v941_v30 = vadd.f32 1.0, %v935_v47  ;;  %1504 = vmatpush.msra.mxu0 %v1416_v60  ;;  %1557 = vmatpush.msra.mxu2 %v1413_v35  ;;  %v1484_v28 = vld [vmem:[#allocation7 + $0x3c0] sm:$0xff]  ;;  %v1385_v60 = vld [vmem:[#allocation7 + $0xa8] sm:$0xff] }
 0x1d7   :  { %v888_v7 = vadd.f32 0.2548296, %v882_v56  ;;  %v871_v12 = vmul.f32 %v865_v20, %v840_v41  ;;  %1039 = vmatmul.f32.gmra.mxu0 %v946_v29  ;;  %1091 = vmatmul.f32.gmra.mxu2 %v946_v29  ;;  %8487 = vst [vmem:[#allocation26_spill] sm:$0xff] %v6152_v13  ;;  %v6155_v54 = vmul.f32 0.70710677, %v6152_v13  ;;  %v1404_v42 = vld [vmem:[#allocation7 + $0x140] sm:$0xff] }
 0x1d8   :  { %v947_v44 = vmul.f32 %v941_v30, %v713_v43  ;;  %1505 = vmatpush.msra.mxu0 %v1412_v32  ;;  %v1014_v26 = vld [vmem:[%s5547_s20] sm:$0x3]  ;;  %1529 = vmatpush.msra.mxu1 %v1484_v28  ;;  %v1405_v20 = vld [vmem:[#allocation7 + $0x148] sm:$0xff]  ;;  %s5459_s20 = smov 8  }
 0x1d9   :  { %v894_v1 = vmul.f32 %v888_v7, %v6086_v55  ;;  %v877_v53 = vadd.f32 -0.28449672, %v871_v12  ;;  %8488 = vst [vmem:[#allocation27_spill] sm:$0xff] %v6155_v54  ;;  %1558 = vmatpush.msra.mxu2 %v1409_v17  ;;  %v1480_v56 = vld [vmem:[#allocation7 + $0x3a0] sm:$0xff]  ;;  %v6159_v29 = vand.u32 2147483647, %v6155_v54 }
 0x1da   :  { %1506 = vmatpush.msra.mxu0 %v1408_v58  ;;  %1530 = vmatpush.msra.mxu1 %v1480_v56  ;;  %v1400_v12 = vld [vmem:[#allocation7 + $0x120] sm:$0xff]  ;;  %v1401_v43 = vld [vmem:[#allocation7 + $0x128] sm:$0xff]  ;;  %v6184_v14 = vperm.slane %v1014_v26, 1  ;;  %v1395_v54 = vld [vmem:[#allocation7 + $0xf8] sm:$0xff] }
 0x1db   :  { %v924_v40 = vmul.f32 %v5174_v52, %v894_v1  ;;  %v883_v5 = vmul.f32 %v877_v53, %v840_v41  ;;  %1065 = vmatmul.f32.gmra.mxu1 %v947_v44  ;;  %1117 = vmatmul.f32.gmra.mxu3 %v947_v44  ;;  %v1476_v30 = vld [vmem:[#allocation7 + $0x380] sm:$0xff]  ;;  %v6165_v1 = vpop.permute.xlu2 %224  ;;  %v6167_v53 = vperm.slane %v1014_v26, 0  ;;  %v1377_v28 = vld [vmem:[#allocation7 + $0x68] sm:$0xff] }
 0x1dc   :  { %1507 = vmatpush.msra.mxu0 %v1404_v42  ;;  %1559 = vmatpush.msra.mxu2 %v1405_v20  ;;  %v1384_v24 = vld [vmem:[#allocation7 + $0xa0] sm:$0xff] }
 0x1dd   :  { %v930_v3 = vsub.f32 1.0, %v924_v40  ;;  %v889_v59 = vadd.f32 0.2548296, %v883_v5  ;;  %1531 = vmatpush.msra.mxu1 %v1476_v30  ;;  %v1715_v40 = vmul.f32 %v6128_v8, %v6165_v1  ;;  %v1396_v5 = vld [vmem:[#allocation7 + $0x100] sm:$0xff] }
 0x1de   :  { %1508 = vmatpush.msra.mxu0 %v1400_v12  ;;  %1560 = vmatpush.msra.mxu2 %v1401_v43  ;;  %v1460_v2 = vld [vmem:[#allocation7 + $0x300] sm:$0xff] }
 0x1df   :  { %v936_v62 = vmul.f32 %v930_v3, %v732_v61  ;;  %v895_v51 = vmul.f32 %v889_v59, %v840_v41  ;;  %v6141_v41 = vmul.f32 0.70710677, %v6138_v6  ;;  %v1472_v3 = vld [vmem:[#allocation7 + $0x360] sm:$0xff]  ;;  %v1397_v59 = vld [vmem:[#allocation7 + $0x108] sm:$0xff] }
 0x1e0   :  { %1509 = vmatpush.msra.mxu0 %v1396_v5  ;;  %1532 = vmatpush.msra.mxu1 %v1472_v3  ;;  %v1376_v35 = vld [vmem:[#allocation7 + $0x60] sm:$0xff]  ;;  %v1369_v3 = vld [vmem:[#allocation7 + $0x28] sm:$0xff] }
 0x1e1   :  { %v942_v55 = vadd.f32 1.0, %v936_v62  ;;  %v925_v23 = vmul.f32 %v5176_v63, %v895_v51  ;;  %v6144_v15 = vand.u32 2147483647, %v6141_v41  ;;  %v1749_v62 = vmul.f32 0.3275911, %v6159_v29  ;;  %1561 = vmatpush.msra.mxu2 %v1397_v59  ;;  %v1392_v51 = vld [vmem:[#allocation7 + $0xe0] sm:$0xff] }
 0x1e2   :  { %v1468_v63 = vld [vmem:[#allocation7 + $0x340] sm:$0xff]  ;;  %1510 = vmatpush.msra.mxu0 %v1392_v51 }
 0x1e3   :  { %v948_v21 = vmul.f32 %v942_v55, %v714_v33  ;;  %v931_v0 = vsub.f32 1.0, %v925_v23  ;;  %v1746_v16 = vmul.f32 0.3275911, %v6144_v15  ;;  %v1393_v33 = vld [vmem:[#allocation7 + $0xe8] sm:$0xff]  ;;  %1533 = vmatpush.msra.mxu1 %v1468_v63  ;;  %v1452_v58 = vld [vmem:[#allocation7 + $0x2c0] sm:$0xff] }
 0x1e4   :  { %1562 = vmatpush.msra.mxu2 %v1393_v33  ;;  %v1372_v56 = vld [vmem:[#allocation7 + $0x40] sm:$0xff] }
 0x1e5   :  { %1042 = vmatmul.f32.gmra.mxu0 %v948_v21  ;;  %1094 = vmatmul.f32.gmra.mxu2 %v948_v21  ;;  %v937_v45 = vmul.f32 %v931_v0, %v733_v4  ;;  %v1750_v19 = vadd.f32 1.0, %v1746_v16  ;;  %v1388_v4 = vld [vmem:[#allocation7 + $0xc0] sm:$0xff] }
 0x1e6   :  { %1511 = vmatpush.msra.mxu0 %v1388_v4  ;;  %v1380_v16 = vld [vmem:[#allocation7 + $0x80] sm:$0xff] }
 0x1e7   :  { %v943_v50 = vadd.f32 1.0, %v937_v45  ;;  %5177 = vrcp.f32 %v1750_v19  ;;  %vm1759_vm12 = vweird.f32 %v1750_v19  ;;  %v1765_v49 = vand.u32 2147483648, %v1750_v19  ;;  %v1464_v45 = vld [vmem:[#allocation7 + $0x320] sm:$0xff] }
 0x1e8   :  { %v1763_v7 = vand.u32 2147483647, %v1750_v19  ;;  %1534 = vmatpush.msra.mxu1 %v1464_v45  ;;  %1512 = vmatpush.msra.mxu0 %v1384_v24  ;;  %v1448_v20 = vld [vmem:[#allocation7 + $0x2a0] sm:$0xff] }
 0x1e9   :  { %v949_v48 = vmul.f32 %v943_v50, %v715_v46  ;;  %v1766_v61 = vor.u32 1.1754944e-38, %v1765_v49  ;;  %v1389_v46 = vld [vmem:[#allocation7 + $0xc8] sm:$0xff]  ;;  %v6178_v50 = vadd.f32 %v6133_v36, %v1715_v40  ;;  %v1368_v40 = vld [vmem:[#allocation7 + $0x20] sm:$0xff] }
 0x1ea   :  { %vm1764_vm15 = vcmp.eq.f32.partialorder %v1763_v7, 8.507059e+37  ;;  %1563 = vmatpush.msra.mxu2 %v1389_v46  ;;  %1535 = vmatpush.msra.mxu1 %v1460_v2  ;;  %v1373_v49 = vld [vmem:[#allocation7 + $0x48] sm:$0xff]  ;;  %v1444_v5 = vld [vmem:[#allocation7 + $0x280] sm:$0xff] }
 0x1eb   :  { %1068 = vmatmul.f32.gmra.mxu1 %v949_v48  ;;  %1120 = vmatmul.f32.gmra.mxu3 %v949_v48  ;;  %8491 = vst [vmem:[#allocation28_spill] sm:$0xff] %v6178_v50  ;;  %v6180_v48 = vadd.f32 1.0, %v1749_v62  ;;  %v1364_v33 = vld [vmem:[#allocation7] sm:$0xff]  ;;  %v1365_v46 = vld [vmem:[#allocation7 + $0x8] sm:$0xff] }
 0x1ec   :  { %1564 = vmatpush.msra.mxu2 %v1385_v60  ;;  %1513 = vmatpush.msra.mxu0 %v1380_v16  ;;  %v1440_v45 = vld [vmem:[#allocation7 + $0x260] sm:$0xff]  ;;  %v1426_v16 = vld [vmem:[#allocation7 + $0x1f0] sm:$0xff] }
 0x1ed   :  { %v5178_v9 = vpop.eup %5177  ;;  %5179 = vrcp.f32 %v6180_v48 }
 0x1ee   :  { %v1755_v22 = vmul.f32 %v5178_v9, %v1750_v19  ;;  %vm1760_vm13 = vweird.f32 %v5178_v9  ;;  %v1456_v19 = vld [vmem:[#allocation7 + $0x2e0] sm:$0xff]  ;;  %1514 = vmatpush.msra.mxu0 %v1376_v35 }
 0x1ef   :  { %vm6161_vm14 = vmor %vm1759_vm12, %vm1760_vm13  ;;  %1536 = vmatpush.msra.mxu1 %v1456_v19  ;;  %v1427_v19 = vld [vmem:[#allocation7 + $0x1f8] sm:$0xff] }
 0x1f0   :  { %v1756_v25 = vsub.f32 1.0, %v1755_v22  ;;  %v6191_v22 = vmul.f32 0.70710677, %v6178_v50  ;;  %1515 = vmatpush.msra.mxu0 %v1372_v56 }
 0x1f1   :  { %1537 = vmatpush.msra.mxu1 %v1452_v58 }
 0x1f2   :  { %v1757_v27 = vmul.f32 %v5178_v9, %v1756_v25  ;;  %v6200_v47 = vand.u32 2147483647, %v6191_v22  ;;  %1516 = vmatpush.msra.mxu0 %v1368_v40 }
 0x1f3   :  { %1538 = vmatpush.msra.mxu1 %v1448_v20  ;;  %v6208_v43 = vpop.eup %5179  ;;  %v1432_v20 = vld [vmem:[#allocation7 + $0x220] sm:$0xff] }
 0x1f4   :  { %v1758_v39 = vadd.f32 %v5178_v9, %v1757_v27  ;;  %v1747_v62 = vmul.f32 0.3275911, %v6200_v47  ;;  %1517 = vmatpush.msra.mxu0 %v1364_v33  ;;  %v1428_v33 = vld [vmem:[#allocation7 + $0x200] sm:$0xff] }
 0x1f5   :  { %1539 = vmatpush.msra.mxu1 %v1444_v5 }
 0x1f6   :  { %v1762_v44 = vsel %vm6161_vm14, %v5178_v9, %v1758_v39  ;;  %v1381_v9 = vld [vmem:[#allocation7 + $0x88] sm:$0xff]  ;;  %1606 = vmatpush.msrb.mxu0 %v1426_v16  ;;  %v6235_v35 = vadd.f32 1.0, %v1747_v62  ;;  %v1490_v16 = vld [vmem:[#allocation7 + $0x3f0] sm:$0xff] }
 0x1f7   :  { %v6174_v55 = vsel %vm1764_vm15, %v1766_v61, %v1762_v44  ;;  %1565 = vmatpush.msra.mxu2 %v1381_v9  ;;  %1540 = vmatpush.msra.mxu1 %v1440_v45  ;;  %v1436_v9 = vld [vmem:[#allocation7 + $0x240] sm:$0xff] }
 0x1f8   :  { %v1814_v38 = vmul.f32 1.0614054, %v6174_v55 }
 0x1f9   :  { %1566 = vmatpush.msra.mxu2 %v1377_v28  ;;  %1541 = vmatpush.msra.mxu1 %v1436_v9  ;;  %v1473_v9 = vld [vmem:[#allocation7 + $0x368] sm:$0xff] }
 0x1fa   :  { %v1818_v32 = vadd.f32 -1.4531521, %v1814_v38  ;;  %v1489_v38 = vld [vmem:[#allocation7 + $0x3e8] sm:$0xff] }
 0x1fb   :  { %1567 = vmatpush.msra.mxu2 %v1373_v49  ;;  %1580 = vmatpush.msra.mxu3 %v1489_v38  ;;  %v1481_v49 = vld [vmem:[#allocation7 + $0x3a8] sm:$0xff] }
 0x1fc   :  { %v1822_v30 = vmul.f32 %v1818_v32, %v6174_v55  ;;  %v1422_v32 = vld [vmem:[#allocation7 + $0x1d0] sm:$0xff]  ;;  %1542 = vmatpush.msra.mxu1 %v1432_v20  ;;  %v1477_v38 = vld [vmem:[#allocation7 + $0x388] sm:$0xff] }
 0x1fd   :  { %1568 = vmatpush.msra.mxu2 %v1369_v3  ;;  %1607 = vmatpush.msrb.mxu0 %v1422_v32  ;;  %v1461_v32 = vld [vmem:[#allocation7 + $0x308] sm:$0xff] }
 0x1fe   :  { %1543 = vmatpush.msra.mxu1 %v1428_v33  ;;  %v1407_v33 = vld [vmem:[#allocation7 + $0x158] sm:$0xff] }
 0x1ff   :  { %1569 = vmatpush.msra.mxu2 %v1365_v46 }
 0x200   :  { %1632 = vmatpush.msrb.mxu1 %v1490_v16 }
 0x201   :  { %1658 = vmatpush.msrb.mxu2 %v1427_v19 }
 0x21a   :  { %v6250_v56 = vpop.permute.xlu2 %229 }
 0x242   :  { %v1037_v52 = vpop.f32.mrf.mxu0 }
 0x243   :  { %v1038_v23 = vadd.f32 %v1037_v52, %v6167_v53 }
 0x248   :  { %v1089_v0 = vpop.f32.mrf.mxu2 }
 0x249   :  { %v1090_v25 = vadd.f32 %v1089_v0, %v6184_v14 }
 0x250   :  { %v1063_v21 = vpop.f32.mrf.mxu1 }
 0x251   :  { %v6182_v10 = vadd.f32 %v1063_v21, %v1038_v23  ;;  %v6221_v23 = vadd.f32 1.4214138, %v1822_v30  ;;  %v6225_v21 = vmul.f32 %v6208_v43, %v6180_v48  ;;  %v1418_v30 = vld [vmem:[#allocation7 + $0x1b0] sm:$0xff] }
 0x252   :  { %1608 = vmatpush.msrb.mxu0 %v1418_v30 }
 0x253   :  { %v6188_v11 = vmul.f32 0.70710677, %v6182_v10 }
 0x254   :  { %v1040_v27 = vpop.f32.mrf.mxu0 }
 0x255   :  { %v1148_v57 = vand.u32 2147483647, %v6188_v11  ;;  %v1041_v39 = vadd.f32 %v1040_v27, %v6167_v53  ;;  %v1485_v27 = vld [vmem:[#allocation7 + $0x3c8] sm:$0xff]  ;;  %vm1136_vm0 = vcmp.ge.f32.partialorder %v6188_v11, 0.0 }
 0x256   :  { %v1115_v34 = vpop.f32.mrf.mxu3  ;;  %1581 = vmatpush.msra.mxu3 %v1485_v27  ;;  %v1410_v27 = vld [vmem:[#allocation7 + $0x170] sm:$0xff] }
 0x257   :  { %v1154_v17 = vmul.f32 0.3275911, %v1148_v57  ;;  %v6196_v26 = vadd.f32 %v1115_v34, %v1090_v25  ;;  %v1310_v59 = vsub.f32 0.0, %v1148_v57  ;;  %v1423_v34 = vld [vmem:[#allocation7 + $0x1d8] sm:$0xff] }
 0x258   :  { %v1066_v42 = vpop.f32.mrf.mxu1  ;;  %1659 = vmatpush.msrb.mxu2 %v1423_v34  ;;  %1582 = vmatpush.msra.mxu3 %v1481_v49 }
 0x259   :  { %v6202_v7 = vadd.f32 1.0, %v1154_v17  ;;  %v6205_v12 = vmul.f32 0.70710677, %v6196_v26  ;;  %v6210_v52 = vadd.f32 %v1066_v42, %v1041_v39  ;;  %v1316_v24 = vmul.f32 %v1310_v59, %v1148_v57 }
 0x25a   :  { %v1092_v44 = vpop.f32.mrf.mxu2  ;;  %v6245_v39 = vmul.f32 0.5, %v6182_v10  ;;  %1583 = vmatpush.msra.mxu3 %v1477_v38 }
 0x25b   :  { %5181 = vrcp.f32 %v6202_v7  ;;  %v6214_v61 = vand.u32 2147483647, %v6205_v12  ;;  %v6218_v51 = vmul.f32 0.70710677, %v6210_v52  ;;  %v1093_v63 = vadd.f32 %v1092_v44, %v6184_v14 }
 0x25c   :  { %v1175_v44 = vand.u32 2147483647, %v6202_v7  ;;  %v1177_v40 = vand.u32 2147483648, %v6202_v7  ;;  %v1322_v10 = vmul.f32 1.442695, %v1316_v24  ;;  %vm1137_vm2 = vcmp.ge.f32.partialorder %v6205_v12, 0.0  ;;  %1584 = vmatpush.msra.mxu3 %v1473_v9 }
 0x25d   :  { %v1155_v0 = vmul.f32 0.3275911, %v6214_v61  ;;  %v6229_v2 = vand.u32 2147483647, %v6218_v51  ;;  %v1311_v45 = vsub.f32 0.0, %v6214_v61  ;;  %v1414_v24 = vld [vmem:[#allocation7 + $0x190] sm:$0xff]  ;;  %vm1171_vm3 = vweird.f32 %v6202_v7 }
 0x25e   :  { %v1118_v4 = vpop.f32.mrf.mxu3  ;;  %1609 = vmatpush.msrb.mxu0 %v1414_v24  ;;  %vm6283_vm5 = vcmp.eq.f32.partialorder %v1175_v44, 8.507059e+37  ;;  %v6297_v49 = vsel %vm1137_vm2, 1.0, %v8441_v37  ;;  %v1411_v44 = vld [vmem:[#allocation7 + $0x178] sm:$0xff]  ;;  %vm1138_vm6 = vcmp.ge.f32.partialorder %v6218_v51, 0.0  ;;  %v1406_v12 = vld [vmem:[#allocation7 + $0x150] sm:$0xff]  ;;  %v1437_v51 = vld [vmem:[#allocation7 + $0x248] sm:$0xff] }
 0x25f   :  { %v6231_v60 = vadd.f32 %v1118_v4, %v1093_v63  ;;  %v6233_v25 = vadd.f32 1.0, %v1155_v0  ;;  %v1156_v58 = vmul.f32 0.3275911, %v6229_v2  ;;  %v1419_v63 = vld [vmem:[#allocation7 + $0x1b8] sm:$0xff]  ;;  %v6265_v0 = vsel %vm1136_vm0, 1.0, %v8441_v37 }
 0x260   :  { %v6269_v4 = vmul.f32 %v6128_v8, %v6250_v56  ;;  %1660 = vmatpush.msrb.mxu2 %v1419_v63  ;;  %v1415_v8 = vld [vmem:[#allocation7 + $0x198] sm:$0xff]  ;;  %1610 = vmatpush.msrb.mxu0 %v1410_v27  ;;  %v1482_v63 = vld [vmem:[#allocation7 + $0x3b0] sm:$0xff] }
 0x261   :  { %v6237_v57 = vpop.eup %5181  ;;  %v6241_v28 = vmul.f32 0.70710677, %v6231_v60  ;;  %5183 = vrcp.f32 %v6233_v25  ;;  %v6255_v5 = vadd.f32 1.0, %v1156_v58  ;;  %v6288_v58 = vmul.f32 0.5, %v6196_v26  ;;  %v1486_v26 = vld [vmem:[#allocation7 + $0x3d0] sm:$0xff]  ;;  %v1403_v27 = vld [vmem:[#allocation7 + $0x138] sm:$0xff] }
 0x262   :  { %v1167_v42 = vmul.f32 %v6237_v57, %v6202_v7  ;;  %v1043_v3 = vpop.f32.mrf.mxu0  ;;  %vm1172_vm1 = vweird.f32 %v6237_v57  ;;  %5185 = vrcp.f32 %v6235_v35  ;;  %v1178_v7 = vor.u32 1.1754944e-38, %v1177_v40  ;;  %1661 = vmatpush.msrb.mxu2 %v1415_v8  ;;  %v1469_v40 = vld [vmem:[#allocation7 + $0x348] sm:$0xff]  ;;  %1633 = vmatpush.msrb.mxu1 %v1486_v26  ;;  %v1474_v26 = vld [vmem:[#allocation7 + $0x370] sm:$0xff] }
 0x263   :  { %v6259_v62 = vand.u32 2147483647, %v6241_v28  ;;  %5187 = vrcp.f32 %v6255_v5  ;;  %v1044_v11 = vadd.f32 %v1043_v3, %v6167_v53  ;;  %vm6279_vm4 = vmor %vm1171_vm3, %vm1172_vm1  ;;  %v1190_v24 = vand.u32 2147483647, %v6233_v25  ;;  %1585 = vmatpush.msra.mxu3 %v1469_v40  ;;  %1611 = vmatpush.msrb.mxu0 %v1406_v12  ;;  %v1399_v12 = vld [vmem:[#allocation7 + $0x118] sm:$0xff] }
 0x264   :  { %v1168_v59 = vsub.f32 1.0, %v1167_v42  ;;  %5189 = vpow2.f32 %v1322_v10  ;;  %v1312_v10 = vsub.f32 0.0, %v6229_v2  ;;  %1662 = vmatpush.msrb.mxu2 %v1411_v44  ;;  %v1192_v16 = vand.u32 2147483648, %v6233_v25  ;;  %1634 = vmatpush.msrb.mxu1 %v1482_v63  ;;  %v1457_v63 = vld [vmem:[#allocation7 + $0x2e8] sm:$0xff] }
 0x265   :  { %v1157_v53 = vmul.f32 0.3275911, %v6259_v62  ;;  %v1205_v9 = vand.u32 2147483647, %v6255_v5  ;;  %v6330_v44 = vadd.f32 %v6133_v36, %v6269_v4  ;;  %vm1186_vm8 = vweird.f32 %v6233_v25  ;;  %v1387_v4 = vld [vmem:[#allocation7 + $0xb8] sm:$0xff] }
 0x266   :  { %v1169_v19 = vmul.f32 %v6237_v57, %v1168_v59  ;;  %v1317_v59 = vmul.f32 %v1311_v45, %v6214_v61  ;;  %v1465_v45 = vld [vmem:[#allocation7 + $0x328] sm:$0xff]  ;;  %1663 = vmatpush.msrb.mxu2 %v1407_v33  ;;  %v1394_v33 = vld [vmem:[#allocation7 + $0xf0] sm:$0xff]  ;;  %vm6348_vm10 = vcmp.eq.f32.partialorder %v1190_v24, 8.507059e+37  ;;  %v1207_v13 = vand.u32 2147483648, %v6255_v5 }
 0x267   :  { %v6291_v42 = vpop.eup %5183  ;;  %v6313_v61 = vadd.f32 1.0, %v1157_v53  ;;  %1586 = vmatpush.msra.mxu3 %v1465_v45  ;;  %v1470_v24 = vld [vmem:[#allocation7 + $0x350] sm:$0xff]  ;;  %vm6362_vm11 = vcmp.eq.f32.partialorder %v1205_v9, 8.507059e+37  ;;  %vm1201_vm13 = vweird.f32 %v6255_v5 }
 0x268   :  { %v1069_v46 = vpop.f32.mrf.mxu1  ;;  %v1170_v20 = vadd.f32 %v6237_v57, %v1169_v19  ;;  %v1182_v3 = vmul.f32 %v6291_v42, %v6233_v25  ;;  %v1402_v19 = vld [vmem:[#allocation7 + $0x130] sm:$0xff]  ;;  %vm1187_vm7 = vweird.f32 %v6291_v42  ;;  %1664 = vmatpush.msrb.mxu2 %v1403_v27  ;;  %v1445_v25 = vld [vmem:[#allocation7 + $0x288] sm:$0xff] }
 0x269   :  { %v6299_v30 = vadd.f32 %v1069_v46, %v1044_v11  ;;  %v6306_v46 = vpop.eup %5185  ;;  %5191 = vrcp.f32 %v6313_v61  ;;  %1612 = vmatpush.msrb.mxu0 %v1402_v19  ;;  %vm6344_vm9 = vmor %vm1186_vm8, %vm1187_vm7  ;;  %v6352_v19 = vmul.f32 1.442695, %v1317_v59  ;;  %1587 = vmatpush.msra.mxu3 %v1461_v32  ;;  %v1453_v59 = vld [vmem:[#allocation7 + $0x2c8] sm:$0xff]  ;;  %v6367_v32 = vmul.f32 %v1312_v10, %v6229_v2 }
 0x26a   :  { %v1174_v38 = vsel %vm6279_vm4, %v6237_v57, %v1170_v20  ;;  %v1183_v8 = vsub.f32 1.0, %v1182_v3  ;;  %v1478_v57 = vld [vmem:[#allocation7 + $0x390] sm:$0xff]  ;;  %v6321_v53 = vpop.eup %5187  ;;  %1665 = vmatpush.msrb.mxu2 %v1399_v12  ;;  %v1449_v10 = vld [vmem:[#allocation7 + $0x2a8] sm:$0xff]  ;;  %vm1216_vm0 = vweird.f32 %v6313_v61  ;;  %vm1139_vm7 = vcmp.ge.f32.partialorder %v6241_v28, 0.0 }
 0x26b   :  { %v6317_v11 = vsel %vm6283_vm5, %v1178_v7, %v1174_v38  ;;  %v6326_v34 = vmul.f32 0.70710677, %v6299_v30  ;;  %v1398_v7 = vld [vmem:[#allocation7 + $0x110] sm:$0xff]  ;;  %v1197_v3 = vmul.f32 %v6321_v53, %v6255_v5  ;;  %1635 = vmatpush.msrb.mxu1 %v1478_v57  ;;  %v6338_v38 = vmul.f32 %v6306_v46, %v6235_v35  ;;  %v6340_v45 = vpop.eup %5189  ;;  %v1095_v57 = vpop.f32.mrf.mxu2  ;;  %1588 = vmatpush.msra.mxu3 %v1457_v63 }
 0x26c   :  { %v1256_v20 = vmul.f32 1.0614054, %v6317_v11  ;;  %v1184_v40 = vmul.f32 %v6291_v42, %v1183_v8  ;;  %v6357_v8 = vsel %vm1138_vm6, 1.0, %v8441_v37  ;;  %1613 = vmatpush.msrb.mxu0 %v1398_v7  ;;  %vm1202_vm12 = vweird.f32 %v6321_v53  ;;  %1666 = vmatpush.msrb.mxu2 %v1395_v54  ;;  %v2326_v28 = vld [vmem:[%s5592_s14 + $0xb0] sm:$0xff] }
 0x26d   :  { %v1198_v17 = vsub.f32 1.0, %v1197_v3  ;;  %1636 = vmatpush.msrb.mxu1 %v1474_v26  ;;  %v6370_v7 = vand.u32 2147483647, %v6326_v34  ;;  %v1390_v26 = vld [vmem:[#allocation7 + $0xd0] sm:$0xff]  ;;  %v1391_v3 = vld [vmem:[#allocation7 + $0xd8] sm:$0xff]  ;;  %v1096_v2 = vadd.f32 %v1095_v57, %v6184_v14  ;;  %1589 = vmatpush.msra.mxu3 %v1453_v59  ;;  %vm6397_vm14 = vmor %vm1201_vm13, %vm1202_vm12  ;;  %v1208_v59 = vor.u32 1.1754944e-38, %v1207_v13 }
 0x26e   :  { %v1262_v36 = vadd.f32 -1.4531521, %v1256_v20  ;;  %v1185_v27 = vadd.f32 %v6291_v42, %v1184_v40  ;;  %v1193_v20 = vor.u32 1.1754944e-38, %v1192_v16  ;;  %v1121_v16 = vpop.f32.mrf.mxu3  ;;  %1614 = vmatpush.msrb.mxu0 %v1394_v33  ;;  %v1466_v40 = vld [vmem:[#allocation7 + $0x330] sm:$0xff]  ;;  %1667 = vmatpush.msrb.mxu2 %v1391_v3  ;;  %v1222_v5 = vand.u32 2147483648, %v6313_v61 }
 0x26f   :  { %v1199_v9 = vmul.f32 %v6321_v53, %v1198_v17  ;;  %1637 = vmatpush.msrb.mxu1 %v1470_v24  ;;  %v6378_v37 = vpop.eup %5191  ;;  %v1462_v17 = vld [vmem:[#allocation7 + $0x310] sm:$0xff]  ;;  %1590 = vmatpush.msra.mxu3 %v1449_v10  ;;  %v1375_v24 = vld [vmem:[#allocation7 + $0x58] sm:$0xff]  ;;  %vm1774_vm8 = vweird.f32 %v6235_v35 }
 0x270   :  { %v1268_v50 = vmul.f32 %v1262_v36, %v6317_v11  ;;  %v1189_v12 = vsel %vm6344_vm9, %v6291_v42, %v1185_v27  ;;  %v1386_v36 = vld [vmem:[#allocation7 + $0xb0] sm:$0xff]  ;;  %v1158_v42 = vmul.f32 0.3275911, %v6370_v7  ;;  %1615 = vmatpush.msrb.mxu0 %v1390_v26  ;;  %v1212_v57 = vmul.f32 %v6378_v37, %v6313_v61  ;;  %1668 = vmatpush.msrb.mxu2 %v1387_v4 }
 0x271   :  { %v6382_v33 = vsel %vm6348_vm10, %v1193_v20, %v1189_v12  ;;  %v1200_v54 = vadd.f32 %v6321_v53, %v1199_v9  ;;  %1638 = vmatpush.msrb.mxu1 %v1466_v40  ;;  %v1382_v27 = vld [vmem:[#allocation7 + $0x90] sm:$0xff]  ;;  %v1220_v26 = vand.u32 2147483647, %v6313_v61  ;;  %v1383_v40 = vld [vmem:[#allocation7 + $0x98] sm:$0xff]  ;;  %vm1217_vm15 = vweird.f32 %v6378_v37  ;;  %1591 = vmatpush.msra.mxu3 %v1445_v25 }
 0x272   :  { %v1274_v63 = vadd.f32 1.4214138, %v1268_v50  ;;  %v1257_v14 = vmul.f32 1.0614054, %v6382_v33  ;;  %v6390_v50 = vadd.f32 %v1121_v16, %v1096_v2  ;;  %v6402_v12 = vadd.f32 1.0, %v1158_v42  ;;  %1616 = vmatpush.msrb.mxu0 %v1386_v36  ;;  %v1458_v16 = vld [vmem:[#allocation7 + $0x2f0] sm:$0xff]  ;;  %1669 = vmatpush.msrb.mxu2 %v1383_v40  ;;  %vm6429_vm1 = vmor %vm1216_vm0, %vm1217_vm15 }
 0x273   :  { %v1204_v9 = vsel %vm6397_vm14, %v6321_v53, %v1200_v54  ;;  %v1213_v2 = vsub.f32 1.0, %v1212_v57  ;;  %1639 = vmatpush.msrb.mxu1 %v1462_v17  ;;  %v1378_v13 = vld [vmem:[#allocation7 + $0x70] sm:$0xff]  ;;  %v1379_v53 = vld [vmem:[#allocation7 + $0x78] sm:$0xff]  ;;  %v1326_v25 = vmul.f32 1.442695, %v6367_v32  ;;  %vm6433_vm2 = vcmp.eq.f32.partialorder %v1220_v26, 8.507059e+37 }
 0x274   :  { %v1280_v20 = vmul.f32 %v1274_v63, %v6317_v11  ;;  %v1263_v3 = vadd.f32 -1.4531521, %v1257_v14  ;;  %v1441_v63 = vld [vmem:[#allocation7 + $0x268] sm:$0xff]  ;;  %v6410_v42 = vsel %vm6362_vm11, %v1208_v59, %v1204_v9  ;;  %5193 = vrcp.f32 %v6402_v12  ;;  %1617 = vmatpush.msrb.mxu0 %v1382_v27  ;;  %v1454_v10 = vld [vmem:[#allocation7 + $0x2d0] sm:$0xff]  ;;  %1670 = vmatpush.msrb.mxu2 %v1379_v53 }
 0x275   :  { %v1258_v17 = vmul.f32 1.0614054, %v6410_v42  ;;  %v1214_v4 = vmul.f32 %v6378_v37, %v1213_v2  ;;  %v6418_v14 = vmul.f32 0.70710677, %v6390_v50  ;;  %1640 = vmatpush.msrb.mxu1 %v1458_v16  ;;  %v1374_v54 = vld [vmem:[#allocation7 + $0x50] sm:$0xff]  ;;  %v1313_v27 = vsub.f32 0.0, %v6259_v62  ;;  %1592 = vmatpush.msra.mxu3 %v1441_v63 }
 0x276   :  { %v1286_v6 = vadd.f32 -0.28449672, %v1280_v20  ;;  %v1269_v36 = vmul.f32 %v1263_v3, %v6382_v33  ;;  %1618 = vmatpush.msrb.mxu0 %v1378_v13  ;;  %v1450_v20 = vld [vmem:[#allocation7 + $0x2b0] sm:$0xff]  ;;  %v1771_v59 = vsub.f32 1.0, %v6338_v38  ;;  %v1433_v16 = vld [vmem:[#allocation7 + $0x228] sm:$0xff]  ;;  %5195 = vpow2.f32 %v6352_v19  ;;  %1671 = vmatpush.msrb.mxu2 %v1375_v24 }
 0x277   :  { %v1264_v9 = vadd.f32 -1.4531521, %v1258_v17  ;;  %v1215_v2 = vadd.f32 %v6378_v37, %v1214_v4  ;;  %1641 = vmatpush.msrb.mxu1 %v1454_v10  ;;  %v1223_v13 = vor.u32 1.1754944e-38, %v1222_v5  ;;  %1593 = vmatpush.msra.mxu3 %v1437_v51  ;;  %v1446_v61 = vld [vmem:[#allocation7 + $0x290] sm:$0xff]  ;;  %v1371_v10 = vld [vmem:[#allocation7 + $0x38] sm:$0xff]  ;;  %v1429_v26 = vld [vmem:[#allocation7 + $0x208] sm:$0xff]  ;;  %5197 = vpow2.f32 %v1326_v25 }
 0x278   :  { %v1292_v57 = vmul.f32 %v1286_v6, %v6317_v11  ;;  %v1275_v3 = vadd.f32 1.4214138, %v1269_v36  ;;  %v1370_v6 = vld [vmem:[#allocation7 + $0x30] sm:$0xff]  ;;  %1619 = vmatpush.msrb.mxu0 %v1374_v54  ;;  %v6443_v17 = vand.u32 2147483647, %v6418_v14  ;;  %1672 = vmatpush.msrb.mxu2 %v1371_v10  ;;  %vm1231_vm4 = vweird.f32 %v6402_v12 }
 0x279   :  { %v1270_v36 = vmul.f32 %v1264_v9, %v6410_v42  ;;  %v1219_v19 = vsel %vm6429_vm1, %v6378_v37, %v1215_v2  ;;  %1642 = vmatpush.msrb.mxu1 %v1450_v20  ;;  %v1366_v4 = vld [vmem:[#allocation7 + $0x10] sm:$0xff]  ;;  %1594 = vmatpush.msra.mxu3 %v1433_v16  ;;  %v1491_v9 = vld [vmem:[#allocation7 + $0x3f8] sm:$0xff]  ;;  %v1235_v25 = vand.u32 2147483647, %v6402_v12  ;;  %vm1775_vm9 = vweird.f32 %v6306_v46 }
 0x27a   :  { %v1298_v40 = vadd.f32 0.2548296, %v1292_v57  ;;  %v1281_v53 = vmul.f32 %v1275_v3, %v6382_v33  ;;  %v6445_v5 = vpop.eup %5193  ;;  %v6450_v54 = vsel %vm6433_vm2, %v1223_v13, %v1219_v19  ;;  %v1319_v57 = vmul.f32 %v1313_v27, %v6259_v62  ;;  %1620 = vmatpush.msrb.mxu0 %v1370_v6  ;;  %v1442_v37 = vld [vmem:[#allocation7 + $0x270] sm:$0xff]  ;;  %v1367_v3 = vld [vmem:[#allocation7 + $0x18] sm:$0xff]  ;;  %vm6526_vm11 = vmor %vm1774_vm8, %vm1775_vm9 }
 0x27b   :  { %v1276_v24 = vadd.f32 1.4214138, %v1270_v36  ;;  %v1259_v2 = vmul.f32 1.0614054, %v6450_v54  ;;  %v1227_v32 = vmul.f32 %v6445_v5, %v6402_v12  ;;  %1643 = vmatpush.msrb.mxu1 %v1446_v61  ;;  %v1314_v62 = vsub.f32 0.0, %v6370_v7  ;;  %1595 = vmatpush.msra.mxu3 %v1429_v26  ;;  %v1438_v16 = vld [vmem:[#allocation7 + $0x250] sm:$0xff] }
 0x27c   :  { %v1304_v51 = vmul.f32 %v1298_v40, %v6317_v11  ;;  %v1287_v20 = vadd.f32 -0.28449672, %v1281_v53  ;;  %v1159_v27 = vmul.f32 0.3275911, %v6443_v17  ;;  %1621 = vmatpush.msrb.mxu0 %v1366_v4  ;;  %1673 = vmatpush.msrb.mxu2 %v1367_v3  ;;  %v1487_v61 = vld [vmem:[#allocation7 + $0x3d8] sm:$0xff]  ;;  %v5196_v10 = vpop.eup %5195  ;;  %vm1232_vm3 = vweird.f32 %v6445_v5  ;;  %v1434_v19 = vld [vmem:[#allocation7 + $0x230] sm:$0xff] }
 0x27d   :  { %v1282_v40 = vmul.f32 %v1276_v24, %v6410_v42  ;;  %v1265_v63 = vadd.f32 -1.4531521, %v1259_v2  ;;  %v1228_v13 = vsub.f32 1.0, %v1227_v32  ;;  %1644 = vmatpush.msrb.mxu1 %v1442_v37  ;;  %v1237_v53 = vand.u32 2147483648, %v6402_v12  ;;  %1684 = vmatpush.msrb.mxu3 %v1491_v9  ;;  %v1483_v37 = vld [vmem:[#allocation7 + $0x3b8] sm:$0xff]  ;;  %v5198_v3 = vpop.eup %5197  ;;  %v1430_v32 = vld [vmem:[#allocation7 + $0x210] sm:$0xff]  ;;  %vm1233_vm5 = vmor %vm1231_vm4, %vm1232_vm3 }
 0x27e   :  { %v1334_v11 = vmul.f32 %v6340_v45, %v1304_v51  ;;  %v1293_v6 = vmul.f32 %v1287_v20, %v6382_v33  ;;  %v6464_v36 = vadd.f32 1.0, %v1159_v27  ;;  %v1328_v2 = vmul.f32 1.442695, %v1319_v57  ;;  %v1900_v38 = vld [vmem:[%s5572_s3 + $0x70] sm:$0xff] }
 0x27f   :  { %v1288_v4 = vadd.f32 -0.28449672, %v1282_v40  ;;  %v1271_v51 = vmul.f32 %v1265_v63, %v6450_v54  ;;  %v1229_v20 = vmul.f32 %v6445_v5, %v1228_v13  ;;  %1645 = vmatpush.msrb.mxu1 %v1438_v16  ;;  %1685 = vmatpush.msrb.mxu3 %v1487_v61  ;;  %v1479_v16 = vld [vmem:[#allocation7 + $0x398] sm:$0xff]  ;;  %vm1236_vm6 = vcmp.eq.f32.partialorder %v1235_v25, 8.507059e+37 }
 0x280   :  { %v1340_v45 = vsub.f32 1.0, %v1334_v11  ;;  %v1299_v26 = vadd.f32 0.2548296, %v1293_v6  ;;  %5199 = vrcp.f32 %v6464_v36  ;;  %v1320_v12 = vmul.f32 %v1314_v62, %v6370_v7  ;;  %v1901_v25 = vld [vmem:[%s5572_s3 + $0x78] sm:$0xff] }
 0x281   :  { %v1294_v11 = vmul.f32 %v1288_v4, %v6410_v42  ;;  %v1277_v27 = vadd.f32 1.4214138, %v1271_v51  ;;  %v1230_v6 = vadd.f32 %v6445_v5, %v1229_v20  ;;  %1646 = vmatpush.msrb.mxu1 %v1434_v19  ;;  %1686 = vmatpush.msrb.mxu3 %v1483_v37  ;;  %v1772_v7 = vmul.f32 %v6306_v46, %v1771_v59  ;;  %v1475_v19 = vld [vmem:[#allocation7 + $0x378] sm:$0xff] }
 0x282   :  { %v1346_v24 = vmul.f32 %v1340_v45, %v6265_v0  ;;  %v1305_v9 = vmul.f32 %v1299_v26, %v6382_v33  ;;  %v1238_v0 = vor.u32 1.1754944e-38, %v1237_v53  ;;  %v2334_v53 = vld [vmem:[%s5592_s14 + $0xf0] sm:$0xff]  ;;  %5201 = vpow2.f32 %v1328_v2  ;;  %v2332_v59 = vld [vmem:[%s5592_s14 + $0xe0] sm:$0xff] }
 0x283   :  { %v1300_v33 = vadd.f32 0.2548296, %v1294_v11  ;;  %v1283_v63 = vmul.f32 %v1277_v27, %v6450_v54  ;;  %v1234_v13 = vsel %vm1233_vm5, %v6445_v5, %v1230_v6  ;;  %1647 = vmatpush.msrb.mxu1 %v1430_v32  ;;  %1687 = vmatpush.msrb.mxu3 %v1479_v16  ;;  %v6494_v4 = vmul.f32 1.442695, %v1320_v12  ;;  %v1471_v2 = vld [vmem:[#allocation7 + $0x358] sm:$0xff]  ;;  %v2330_v11 = vld [vmem:[%s5592_s14 + $0xd0] sm:$0xff] }
 0x284   :  { %v1352_v40 = vadd.f32 1.0, %v1346_v24  ;;  %v1335_v57 = vmul.f32 %v5196_v10, %v1305_v9  ;;  %v6483_v45 = vsel %vm1236_vm6, %v1238_v0, %v1234_v13  ;;  %v1250_v51 = vand.u32 2147483647, %v6464_v36  ;;  %v1899_v9 = vld [vmem:[%s5572_s3 + $0x68] sm:$0xff]  ;;  %v1467_v0 = vld [vmem:[#allocation7 + $0x338] sm:$0xff] }
 0x285   :  { %v1306_v5 = vmul.f32 %v1300_v33, %v6410_v42  ;;  %v1289_v10 = vadd.f32 -0.28449672, %v1283_v63  ;;  %1688 = vmatpush.msrb.mxu3 %v1475_v19  ;;  %v1773_v27 = vadd.f32 %v6306_v46, %v1772_v7  ;;  %v1778_v6 = vand.u32 2147483647, %v6235_v35  ;;  %v1898_v7 = vld [vmem:[%s5572_s3 + $0x60] sm:$0xff] }
 0x286   :  { %v6480_v61 = vmul.f32 %v1352_v40, %v6245_v39  ;;  %v1341_v62 = vsub.f32 1.0, %v1335_v57  ;;  %v1260_v39 = vmul.f32 1.0614054, %v6483_v45  ;;  %v6492_v26 = vpop.eup %5199  ;;  %v1252_v57 = vand.u32 2147483648, %v6464_v36 }
 0x287   :  { %v1336_v20 = vmul.f32 %v5198_v3, %v1306_v5  ;;  %v1295_v37 = vmul.f32 %v1289_v10, %v6450_v54  ;;  %v1242_v32 = vmul.f32 %v6492_v26, %v6464_v36  ;;  %vm1247_vm10 = vweird.f32 %v6492_v26  ;;  %1689 = vmatpush.msrb.mxu3 %v1471_v2  ;;  %v2328_v10 = vld [vmem:[%s5592_s14 + $0xc0] sm:$0xff] }
 0x288   :  { %1518 = vmatmul.f32.vlgmr.msra.gmra.mxu0 %v6480_v61  ;;  %1570 = vmatmul.f32.vlgmr.msra.gmra.mxu2 %v6480_v61  ;;  %v1347_v42 = vmul.f32 %v1341_v62, %v6297_v49  ;;  %v1266_v24 = vadd.f32 -1.4531521, %v1260_v39  ;;  %v1780_v33 = vand.u32 2147483648, %v6235_v35  ;;  %v2110_v62 = vld [vmem:[%s8508_s5 + $0x78] sm:$0xff]  ;;  %v1777_v39 = vsel %vm6526_vm11, %v6306_v46, %v1773_v27 }
 0x289   :  { %1906 = vmatpush.msra.mxu0 %v1901_v25  ;;  %2342 = vmatpush.msra.mxu2 %v2334_v53  ;;  %v1342_v3 = vsub.f32 1.0, %v1336_v20  ;;  %v1301_v16 = vadd.f32 0.2548296, %v1295_v37  ;;  %v1243_v12 = vsub.f32 1.0, %v1242_v32  ;;  %vm6535_vm12 = vcmp.eq.f32.partialorder %v1778_v6, 8.507059e+37  ;;  %v1897_v37 = vld [vmem:[%s5572_s3 + $0x58] sm:$0xff] }
 0x28a   :  { %v1353_v49 = vadd.f32 1.0, %v1347_v42  ;;  %v1272_v40 = vmul.f32 %v1266_v24, %v6483_v45  ;;  %1690 = vmatpush.msrb.mxu3 %v1467_v0  ;;  %v1781_v35 = vor.u32 1.1754944e-38, %v1780_v33  ;;  %v2109_v24 = vld [vmem:[%s8508_s5 + $0x70] sm:$0xff]  ;;  %v8513_v46 = vmov -1.0   ;;  %v1459_v0 = vld [vmem:[#allocation7 + $0x2f8] sm:$0xff] }
 0x28b   :  { %1907 = vmatpush.msra.mxu0 %v1900_v38  ;;  %2343 = vmatpush.msra.mxu2 %v2332_v59  ;;  %v1348_v13 = vmul.f32 %v1342_v3, %v6357_v8  ;;  %v1307_v25 = vmul.f32 %v1301_v16, %v6450_v54  ;;  %v1244_v8 = vmul.f32 %v6492_v26, %v1243_v12  ;;  %v1463_v54 = vld [vmem:[#allocation7 + $0x318] sm:$0xff]  ;;  %v1126_v38 = vmul.f32 0.5, %v6210_v52  ;;  %v2105_v6 = vld [vmem:[%s8508_s5 + $0x50] sm:$0xff] }
 0x28c   :  { %v6516_v63 = vmul.f32 %v1353_v49, %v6288_v58  ;;  %v1278_v53 = vadd.f32 1.4214138, %v1272_v40  ;;  %v5202_v58 = vpop.eup %5201  ;;  %v1145_v2 = vsel %vm1139_vm7, 1.0, %v8513_v46  ;;  %vm1246_vm13 = vweird.f32 %v6464_v36  ;;  %v1896_v49 = vld [vmem:[%s5572_s3 + $0x50] sm:$0xff]  ;;  %1691 = vmatpush.msrb.mxu3 %v1463_v54  ;;  %v2108_v40 = vld [vmem:[%s8508_s5 + $0x68] sm:$0xff]  ;;  %v2324_v36 = vld [vmem:[%s5592_s14 + $0xa0] sm:$0xff] }
 0x28d   :  { %1908 = vmatpush.msra.mxu0 %v1899_v9  ;;  %2344 = vmatpush.msra.mxu2 %v2330_v11  ;;  %v1354_v59 = vadd.f32 1.0, %v1348_v13  ;;  %v1337_v42 = vmul.f32 %v5202_v58, %v1307_v25  ;;  %v1245_v32 = vadd.f32 %v6492_v26, %v1244_v8  ;;  %v1253_v52 = vor.u32 1.1754944e-38, %v1252_v57  ;;  %vm6554_vm14 = vmor %vm1246_vm13, %vm1247_vm10  ;;  %v2107_v25 = vld [vmem:[%s8508_s5 + $0x60] sm:$0xff]  ;;  %v2322_v8 = vld [vmem:[%s5592_s14 + $0x90] sm:$0xff] }
 0x28e   :  { %v1284_v20 = vmul.f32 %v1278_v53, %v6483_v45  ;;  %1544 = vmatmul.f32.vlgmr.msra.gmra.mxu1 %v6516_v63  ;;  %1596 = vmatmul.f32.vlgmr.msra.gmra.mxu3 %v6516_v63  ;;  %v6562_v3 = vsel %vm6535_vm12, %v1781_v35, %v1777_v39  ;;  %5203 = vpow2.f32 %v6494_v4  ;;  %vm1251_vm15 = vcmp.eq.f32.partialorder %v1250_v51, 8.507059e+37  ;;  %v1455_v53 = vld [vmem:[#allocation7 + $0x2d8] sm:$0xff] }
 0x28f   :  { %1909 = vmatpush.msra.mxu0 %v1898_v7  ;;  %2115 = vmatpush.msra.mxu1 %v2110_v62  ;;  %v6550_v9 = vmul.f32 %v1354_v59, %v1126_v38  ;;  %v1343_v11 = vsub.f32 1.0, %v1337_v42  ;;  %v1249_v16 = vsel %vm6554_vm14, %v6492_v26, %v1245_v32  ;;  %v6572_v12 = vmul.f32 0.70710677, %v6330_v44  ;;  %v1895_v26 = vld [vmem:[%s5572_s3 + $0x48] sm:$0xff]  ;;  %v1893_v32 = vld [vmem:[%s5572_s3 + $0x38] sm:$0xff] }
 0x290   :  { %v1290_v27 = vadd.f32 -0.28449672, %v1284_v20  ;;  %2345 = vmatpush.msra.mxu2 %v2328_v10  ;;  %v6575_v13 = vsel %vm1251_vm15, %v1253_v52, %v1249_v16  ;;  %v1315_v4 = vsub.f32 0.0, %v6443_v17  ;;  %v1815_v7 = vmul.f32 1.0614054, %v6562_v3  ;;  %v1894_v10 = vld [vmem:[%s5572_s3 + $0x40] sm:$0xff]  ;;  %1692 = vmatpush.msrb.mxu3 %v1459_v0 }
 0x291   :  { %1910 = vmatpush.msra.mxu0 %v1897_v37  ;;  %2116 = vmatpush.msra.mxu1 %v2109_v24  ;;  %v1349_v57 = vmul.f32 %v1343_v11, %v1145_v2  ;;  %v1261_v51 = vmul.f32 1.0614054, %v6575_v13  ;;  %v1127_v62 = vmul.f32 0.5, %v6231_v60  ;;  %v8517_v54 = vsub.f32 1.0, %v6225_v21  ;;  %v183_v60 = vld [vmem:[%s8516_s9] sm:$0x3] }
 0x292   :  { %v1296_v33 = vmul.f32 %v1290_v27, %v6483_v45  ;;  %1521 = vmatmul.f32.gmra.mxu0 %v6550_v9  ;;  %1573 = vmatmul.f32.gmra.mxu2 %v6550_v9  ;;  %v6592_v35 = vand.u32 2147483647, %v6572_v12  ;;  %v1321_v42 = vmul.f32 %v1315_v4, %v6443_v17  ;;  %v2106_v20 = vld [vmem:[%s8508_s5 + $0x58] sm:$0xff]  ;;  %v2320_v37 = vld [vmem:[%s5592_s14 + $0x80] sm:$0xff]  ;;  %v1808_v21 = vand.u32 2147483647, %v6180_v48 }
 0x293   :  { %2346 = vmatpush.msra.mxu2 %v2326_v28  ;;  %1911 = vmatpush.msra.mxu0 %v1896_v49  ;;  %v1355_v5 = vadd.f32 1.0, %v1349_v57  ;;  %v1802_v39 = vmul.f32 %v6208_v43, %v8517_v54  ;;  %v1267_v19 = vadd.f32 -1.4531521, %v1261_v51  ;;  %v1451_v52 = vld [vmem:[#allocation7 + $0x2b8] sm:$0xff]  ;;  %v1819_v17 = vadd.f32 -1.4531521, %v1815_v7 }
 0x294   :  { %v1302_v58 = vadd.f32 0.2548296, %v1296_v33  ;;  %2117 = vmatpush.msra.mxu1 %v2108_v40  ;;  %1693 = vmatpush.msrb.mxu3 %v1455_v53  ;;  %v5204_v24 = vpop.eup %5203  ;;  %v1748_v11 = vmul.f32 0.3275911, %v6592_v35  ;;  %vm1140_vm0 = vcmp.ge.f32.partialorder %v6326_v34, 0.0  ;;  %v2318_v28 = vld [vmem:[%s5592_s14 + $0x70] sm:$0xff]  ;;  %vm1805_vm1 = vweird.f32 %v6208_v43 }
 0x295   :  { %2347 = vmatpush.msra.mxu2 %v2324_v36  ;;  %1912 = vmatpush.msra.mxu0 %v1895_v26  ;;  %v6595_v38 = vmul.f32 %v1355_v5, %v1127_v62  ;;  %v1273_v2 = vmul.f32 %v1267_v19, %v6575_v13  ;;  %v1803_v49 = vadd.f32 %v6208_v43, %v1802_v39  ;;  %v1447_v40 = vld [vmem:[#allocation7 + $0x298] sm:$0xff]  ;;  %v1810_v57 = vand.u32 2147483648, %v6180_v48  ;;  %v2104_v26 = vld [vmem:[%s8508_s5 + $0x48] sm:$0xff]  ;;  %v2314_v39 = vld [vmem:[%s5592_s14 + $0x50] sm:$0xff] }
 0x296   :  { %v1308_v59 = vmul.f32 %v1302_v58, %v6483_v45  ;;  %2118 = vmatpush.msra.mxu1 %v2107_v25  ;;  %v1830_v45 = vmul.f32 %v6221_v23, %v6174_v55  ;;  %v1892_v23 = vld [vmem:[%s5572_s3 + $0x30] sm:$0xff]  ;;  %v6615_v0 = vadd.f32 1.0, %v1748_v11  ;;  %v6618_v33 = vperm.slane %v183_v60, 1  ;;  %v2316_v51 = vld [vmem:[%s5592_s14 + $0x60] sm:$0xff]  ;;  %1694 = vmatpush.msrb.mxu3 %v1451_v52  ;;  %v1891_v7 = vld [vmem:[%s5572_s3 + $0x28] sm:$0xff]  ;;  %v201_v11 = vpop.permute.xlu2 %200 }
 0x297   :  { %2348 = vmatpush.msra.mxu2 %v2322_v8  ;;  %1913 = vmatpush.msra.mxu0 %v1894_v10  ;;  %v1279_v16 = vadd.f32 1.4214138, %v1273_v2  ;;  %v1332_v36 = vmul.f32 1.442695, %v1321_v42  ;;  %vm1804_vm2 = vweird.f32 %v6180_v48  ;;  %v1146_v25 = vsel %vm1140_vm0, 1.0, %v8513_v46  ;;  %v1443_v62 = vld [vmem:[#allocation7 + $0x278] sm:$0xff]  ;;  %v206_v8 = vpop.permute.xlu1 %205 }
 0x298   :  { %v1338_v27 = vmul.f32 %v5204_v24, %v1308_v59  ;;  %1547 = vmatmul.f32.gmra.mxu1 %v6595_v38  ;;  %1599 = vmatmul.f32.gmra.mxu3 %v6595_v38  ;;  %v1823_v5 = vmul.f32 %v1819_v17, %v6562_v3  ;;  %5205 = vrcp.f32 %v6615_v0  ;;  %vm6632_vm3 = vmor %vm1804_vm2, %vm1805_vm1  ;;  %v6636_v34 = vperm.slane %v183_v60, 0  ;;  %v2103_v54 = vld [vmem:[%s8508_s5 + $0x40] sm:$0xff]  ;;  %v2102_v52 = vld [vmem:[%s8508_s5 + $0x38] sm:$0xff] }
 0x299   :  { %2119 = vmatpush.msra.mxu1 %v2106_v20  ;;  %2349 = vmatpush.msra.mxu2 %v2320_v37  ;;  %v1285_v53 = vmul.f32 %v1279_v16, %v6575_v13  ;;  %v1834_v19 = vadd.f32 -0.28449672, %v1830_v45  ;;  %v1807_v59 = vsel %vm6632_vm3, %v6208_v43, %v1803_v49  ;;  %v1850_v42 = vsub.f32 0.0, %v6144_v15  ;;  %v1890_v37 = vld [vmem:[%s5572_s3 + $0x20] sm:$0xff] }
 0x29a   :  { %v1344_v4 = vsub.f32 1.0, %v1338_v27  ;;  %1914 = vmatpush.msra.mxu0 %v1893_v32  ;;  %1695 = vmatpush.msrb.mxu3 %v1447_v40  ;;  %v1439_v60 = vld [vmem:[#allocation7 + $0x258] sm:$0xff]  ;;  %v1811_v24 = vor.u32 1.1754944e-38, %v1810_v57  ;;  %v1128_v2 = vmul.f32 0.5, %v6299_v30  ;;  %5207 = vpow2.f32 %v1332_v36 }
 0x29b   :  { %2120 = vmatpush.msra.mxu1 %v2105_v6  ;;  %2350 = vmatpush.msra.mxu2 %v2318_v28  ;;  %v1291_v20 = vadd.f32 -0.28449672, %v1285_v53  ;;  %v2312_v45 = vld [vmem:[%s5592_s14 + $0x40] sm:$0xff]  ;;  %vm1809_vm4 = vcmp.eq.f32.partialorder %v1808_v21, 8.507059e+37  ;;  %v6652_v43 = vmul.f32 %v6618_v33, %v6165_v1  ;;  %v1827_v30 = vadd.f32 1.4214138, %v1823_v5  ;;  %v196_v53 = vpop.permute.xlu0 %195 }
 0x29c   :  { %v1350_v10 = vmul.f32 %v1344_v4, %v1146_v25  ;;  %1915 = vmatpush.msra.mxu0 %v1892_v23  ;;  %1696 = vmatpush.msrb.mxu3 %v1443_v62  ;;  %v6655_v27 = vsel %vm1809_vm4, %v1811_v24, %v1807_v59  ;;  %v6659_v6 = vmul.f32 %v6618_v33, %v6130_v31  ;;  %v1889_v1 = vld [vmem:[%s5572_s3 + $0x18] sm:$0xff]  ;;  %v2101_v28 = vld [vmem:[%s8508_s5 + $0x30] sm:$0xff]  ;;  %v1851_v5 = vsub.f32 0.0, %v6200_v47  ;;  %v6694_v59 = vld [vmem:[%s8520_s13] ss:$0 sm:$0xff] }
 0x29d   :  { %2121 = vmatpush.msra.mxu1 %v2104_v26  ;;  %2351 = vmatpush.msra.mxu2 %v2316_v51  ;;  %v1297_v17 = vmul.f32 %v1291_v20, %v6575_v13  ;;  %v241_v48 = vmul.f32 %v6618_v33, %v6147_v18  ;;  %v1854_v16 = vmul.f32 %v1850_v42, %v6144_v15  ;;  %v2310_v31 = vld [vmem:[%s5592_s14 + $0x30] sm:$0xff]  ;;  %v1435_v18 = vld [vmem:[#allocation7 + $0x238] sm:$0xff]  ;;  %v2100_v26 = vld [vmem:[%s8508_s5 + $0x28] sm:$0xff]  ;;  %v1817_v25 = vmul.f32 1.0614054, %v6655_v27 }
 0x29e   :  { %v1356_v32 = vadd.f32 1.0, %v1350_v10  ;;  %1916 = vmatpush.msra.mxu0 %v1891_v7  ;;  %1697 = vmatpush.msrb.mxu3 %v1439_v60  ;;  %v6667_v49 = vpop.eup %5205  ;;  %v212_v23 = vmul.f32 %v6636_v34, %v206_v8  ;;  %v1838_v57 = vmul.f32 %v1834_v19, %v6174_v55  ;;  %v240_v4 = vmul.f32 %v6618_v33, %v6250_v56  ;;  %v1888_v15 = vld [vmem:[%s5572_s3 + $0x10] sm:$0xff]  ;;  %v2308_v56 = vld [vmem:[%s5592_s14 + $0x20] sm:$0xff]  ;;  %v1887_v10 = vld [vmem:[%s5572_s3 + $0x8] sm:$0xff] }
 0x29f   :  { %2122 = vmatpush.msra.mxu1 %v2103_v54  ;;  %2352 = vmatpush.msra.mxu2 %v2314_v39  ;;  %v1303_v40 = vadd.f32 0.2548296, %v1297_v17  ;;  %v211_v36 = vmul.f32 %v6636_v34, %v201_v11  ;;  %v1785_v51 = vmul.f32 %v6667_v49, %v6615_v0  ;;  %v1431_v33 = vld [vmem:[#allocation7 + $0x218] sm:$0xff]  ;;  %v1831_v62 = vmul.f32 %v1827_v30, %v6562_v3  ;;  %v191_v24 = vpop.permute.xlu1 %190 }
 0x2a0   :  { %v6663_v21 = vmul.f32 %v1356_v32, %v1128_v2  ;;  %1917 = vmatpush.msra.mxu0 %v1890_v37  ;;  %v1795_v58 = vand.u32 2147483648, %v6615_v0  ;;  %v5208_v8 = vpop.eup %5207  ;;  %1698 = vmatpush.msrb.mxu3 %v1435_v18  ;;  %v2099_v54 = vld [vmem:[%s8508_s5 + $0x20] sm:$0xff]  ;;  %vm1789_vm5 = vweird.f32 %v6615_v0  ;;  %vm1790_vm6 = vweird.f32 %v6667_v49  ;;  %v2306_v37 = vld [vmem:[%s5592_s14 + $0x10] sm:$0xff] }
 0x2a1   :  { %2123 = vmatpush.msra.mxu1 %v2102_v52  ;;  %2353 = vmatpush.msra.mxu2 %v2312_v45  ;;  %v1309_v7 = vmul.f32 %v1303_v40, %v6575_v13  ;;  %v1786_v39 = vsub.f32 1.0, %v1785_v51  ;;  %v1793_v13 = vand.u32 2147483647, %v6615_v0  ;;  %v1858_v19 = vmul.f32 1.442695, %v1854_v16  ;;  %v1886_v32 = vld [vmem:[%s5572_s3] sm:$0xff]  ;;  %vm6707_vm8 = vmor %vm1789_vm5, %vm1790_vm6 }
 0x2a2   :  { %1524 = vmatmul.f32.gmra.mxu0 %v6663_v21  ;;  %1576 = vmatmul.f32.gmra.mxu2 %v6663_v21  ;;  %v245_v42 = vadd.f32 %v241_v48, %v212_v23  ;;  %vm1141_vm7 = vcmp.ge.f32.partialorder %v6418_v14, 0.0  ;;  %v210_v60 = vmul.f32 %v6636_v34, %v196_v53  ;;  %v244_v2 = vadd.f32 %v240_v4, %v211_v36  ;;  %v2098_v52 = vld [vmem:[%s8508_s5 + $0x18] sm:$0xff]  ;;  %v2304_v23 = vld [vmem:[%s5592_s14] sm:$0xff]  ;;  %v2097_v14 = vld [vmem:[%s8508_s5 + $0x10] sm:$0xff]  ;;  %s8530_s3 = sld [smem:[#allocation17_spill]] }
 0x2a3   :  { %1918 = vmatpush.msra.mxu0 %v1889_v1  ;;  %2124 = vmatpush.msra.mxu1 %v2101_v28  ;;  %v1339_v20 = vmul.f32 %v5208_v8, %v1309_v7  ;;  %v1842_v45 = vadd.f32 0.2548296, %v1838_v57  ;;  %v1787_v17 = vmul.f32 %v6667_v49, %v1786_v39  ;;  %v1855_v30 = vmul.f32 %v1851_v5, %v6200_v47  ;;  %v2096_v51 = vld [vmem:[%s8508_s5 + $0x8] sm:$0xff]  ;;  %v2095_v5 = vld [vmem:[%s8508_s5] sm:$0xff] }
 0x2a4   :  { %2354 = vmatpush.msra.mxu2 %v2310_v31  ;;  %1699 = vmatpush.msrb.mxu3 %v1431_v33  ;;  %v1796_v1 = vor.u32 1.1754944e-38, %v1795_v58  ;;  %v1821_v28 = vadd.f32 -1.4531521, %v1817_v25  ;;  %v1147_v16 = vsel %vm1141_vm7, 1.0, %v8513_v46  ;;  %v1835_v40 = vadd.f32 -0.28449672, %v1831_v62 }
 0x2a5   :  { %1919 = vmatpush.msra.mxu0 %v1888_v15  ;;  %2125 = vmatpush.msra.mxu1 %v2100_v26  ;;  %v1345_v11 = vsub.f32 1.0, %v1339_v20  ;;  %v1788_v47 = vadd.f32 %v6667_v49, %v1787_v17  ;;  %vm6716_vm9 = vcmp.eq.f32.partialorder %v1793_v13, 8.507059e+37  ;;  %5209 = vpow2.f32 %v1858_v19  ;;  %v2797_v31 = vld [vmem:[%s8525_s25] sm:$0xff] }
 0x2a6   :  { %2355 = vmatpush.msra.mxu2 %v2308_v56  ;;  %v6721_v0 = vadd.f32 %v6694_v59, %v245_v42  ;;  %v209_v18 = vmul.f32 %v6636_v34, %v191_v24  ;;  %v243_v4 = vadd.f32 %v6652_v43, %v210_v60  ;;  %v1129_v36 = vmul.f32 0.5, %v6390_v50 }
 0x2a7   :  { %1920 = vmatpush.msra.mxu0 %v1887_v10  ;;  %2126 = vmatpush.msra.mxu1 %v2099_v54  ;;  %v1351_v57 = vmul.f32 %v1345_v11, %v1147_v16  ;;  %v6728_v15 = vadd.f32 %v6694_v59, %v244_v2  ;;  %v1792_v26 = vsel %vm6707_vm8, %v6667_v49, %v1788_v47  ;;  %v1860_v43 = vmul.f32 1.442695, %v1855_v30  ;;  %v8526_v16 = vld [vmem:[#allocation25_spill] sm:$0xff] }
 0x2a8   :  { %2356 = vmatpush.msra.mxu2 %v2306_v37  ;;  %v1797_v50 = vsel %vm6716_vm9, %v1796_v1, %v1792_v26  ;;  %v1852_v25 = vsub.f32 0.0, %v6592_v35  ;;  %v1839_v53 = vmul.f32 %v1835_v40, %v6562_v3  ;;  %v1825_v7 = vmul.f32 %v1821_v28, %v6655_v27 }
 0x2a9   :  { %1921 = vmatpush.msra.mxu0 %v1886_v32  ;;  %2127 = vmatpush.msra.mxu1 %v2098_v52  ;;  %v1357_v34 = vadd.f32 1.0, %v1351_v57  ;;  %v1816_v49 = vmul.f32 1.0614054, %v1797_v50  ;;  %v242_v56 = vadd.f32 %v6659_v6, %v209_v18  ;;  %v6749_v62 = vadd.f32 %v6694_v59, %v243_v4  ;;  %v8527_v18 = vld [vmem:[#allocation28_spill] sm:$0xff] }
 0x2aa   :  { %1622 = vmatmul.f32.vlgmr.msrb.gmra.mxu0 %v6480_v61  ;;  %1674 = vmatmul.f32.vlgmr.msrb.gmra.mxu2 %v6480_v61  ;;  %v1846_v61 = vmul.f32 %v1842_v45, %v6174_v55  ;;  %5211 = vpow2.f32 %v1860_v43  ;;  %v1856_v6 = vmul.f32 %v1852_v25, %v6592_v35  ;;  %v1843_v10 = vadd.f32 0.2548296, %v1839_v53  ;;  %v8529_v25 = vld [vmem:[#allocation27_spill] sm:$0xff] }
 0x2ab   :  { %2357 = vmatpush.msra.mxu2 %v2304_v23  ;;  %2444 = vmatpush.msrb.mxu0 %v6721_v0  ;;  %v6745_v33 = vmul.f32 %v1357_v34, %v1129_v36  ;;  %v1820_v58 = vadd.f32 -1.4531521, %v1816_v49  ;;  %v5210_v55 = vpop.eup %5209  ;;  %v1829_v39 = vadd.f32 1.4214138, %v1825_v7  ;;  %v6759_v13 = vadd.f32 %v6694_v59, %v242_v56  ;;  %v8531_v56 = vld [vmem:[#allocation26_spill] sm:$0xff] }
 0x2ac   :  { %2128 = vmatpush.msra.mxu1 %v2097_v14  ;;  %v1866_v8 = vmul.f32 %v5210_v55, %v1846_v61  ;;  %vm1734_vm10 = vcmp.ge.f32.partialorder %v6141_v41, 0.0  ;;  %v1862_v35 = vmul.f32 1.442695, %v1856_v6  ;;  %v1847_v20 = vmul.f32 %v1843_v10, %v6562_v3  ;;  %v6811_v6 = vld [vmem:[%s8530_s3] sm:$0xf] }
 0x2ad   :  { %5056 = vmatpush.msrb.mxu2 %v6721_v0  ;;  %2445 = vmatpush.msrb.mxu0 %v6728_v15  ;;  %v1824_v54 = vmul.f32 %v1820_v58, %v1797_v50  ;;  %v1833_v59 = vmul.f32 %v1829_v39, %v6655_v27  ;;  %v1853_v24 = vsub.f32 0.0, %v6159_v29  ;;  %vm1735_vm11 = vcmp.ge.f32.partialorder %v6191_v22, 0.0  ;;  %v2400_v58 = vld [vmem:[%s8528_s29] sm:$0xff] }
 0x2ae   :  { %2129 = vmatpush.msra.mxu1 %v2096_v51  ;;  %1602 = vmatmul.f32.gmra.mxu3 %v6745_v33  ;;  %v1870_v42 = vsub.f32 1.0, %v1866_v8  ;;  %5213 = vpow2.f32 %v1862_v35  ;;  %v1726_v23 = vmul.f32 0.5, %v8526_v16  ;;  %vm1736_vm12 = vcmp.ge.f32.partialorder %v6572_v12, 0.0 }
 0x2af   :  { %5057 = vmatpush.msrb.mxu2 %v6728_v15  ;;  %1550 = vmatmul.f32.gmra.mxu1 %v6745_v33  ;;  %v1828_v19 = vadd.f32 1.4214138, %v1824_v54  ;;  %v1837_v3 = vadd.f32 -0.28449672, %v1833_v59  ;;  %v1857_v45 = vmul.f32 %v1853_v24, %v6159_v29  ;;  %v1739_v29 = vsel %vm1735_vm11, 1.0, %v8513_v46 }
 0x2b0   :  { %2446 = vmatpush.msrb.mxu0 %v6749_v62  ;;  %2130 = vmatpush.msra.mxu1 %v2095_v5  ;;  %v5212_v60 = vpop.eup %5211  ;;  %v1727_v57 = vmul.f32 0.5, %v8527_v18  ;;  %v1740_v26 = vsel %vm1736_vm12, 1.0, %v8513_v46  ;;  %v1728_v12 = vmul.f32 0.5, %v6330_v44  ;;  %vm1737_vm13 = vcmp.ge.f32.partialorder %v8529_v25, 0.0 }
 0x2b1   :  { %5058 = vmatpush.msrb.mxu2 %v6749_v62  ;;  %v1832_v37 = vmul.f32 %v1828_v19, %v1797_v50  ;;  %v1867_v32 = vmul.f32 %v5212_v60, %v1847_v20  ;;  %v1841_v48 = vmul.f32 %v1837_v3, %v6655_v27  ;;  %v1864_v28 = vmul.f32 1.442695, %v1857_v45 }
 0x2b2   :  { %1625 = vmatmul.f32.gmra.mxu0 %v6550_v9  ;;  %1677 = vmatmul.f32.gmra.mxu2 %v6550_v9  ;;  %v1738_v9 = vsel %vm1734_vm10, 1.0, %v8513_v46  ;;  %vm2422_vm14 = vcmask 261120   ;;  %vm2559_vm15 = vcmask 64512   ;;  %v6814_v10 = vperm.slane %v6811_v6, 0 }
 0x2b3   :  { %2447 = vmatpush.msrb.mxu0 %v6759_v13  ;;  %5059 = vmatpush.msrb.mxu2 %v6759_v13  ;;  %v1836_v2 = vadd.f32 -0.28449672, %v1832_v37  ;;  %v1874_v41 = vmul.f32 %v1870_v42, %v1738_v9  ;;  %v1871_v11 = vsub.f32 1.0, %v1867_v32  ;;  %v1845_v47 = vadd.f32 0.2548296, %v1841_v48 }
 0x2b4   :  { %v5214_v1 = vpop.eup %5213  ;;  %5215 = vpow2.f32 %v1864_v28  ;;  %v5121_v37 = vld [vmem:[%s8532_s19] ss:$0 sm:$0xff] }
 0x2b5   :  { %v1840_v52 = vmul.f32 %v1836_v2, %v1797_v50  ;;  %v1849_v36 = vmul.f32 %v1845_v47, %v6655_v27  ;;  %v1741_v27 = vsel %vm1737_vm13, 1.0, %v8513_v46 }
 0x2b6   :  { %1700 = vmatmul.f32.vlgmr.msrb.gmra.mxu3 %v6516_v63 }
 0x2b7   :  { %1648 = vmatmul.f32.vlgmr.msrb.gmra.mxu1 %v6516_v63  ;;  %v1844_v17 = vadd.f32 0.2548296, %v1840_v52  ;;  %v1878_v63 = vadd.f32 1.0, %v1874_v41 }
 0x2b8   :  { %2479 = vmatpush.msrb.mxu1 %v6721_v0 }
 0x2b9   :  { %v1848_v30 = vmul.f32 %v1844_v17, %v1797_v50  ;;  %v1882_v22 = vmul.f32 %v1878_v63, %v1726_v23 }
 0x2ba   :  { %2480 = vmatpush.msrb.mxu1 %v6728_v15  ;;  %1628 = vmatmul.f32.gmra.mxu0 %v6663_v21  ;;  %v5216_v34 = vpop.eup %5215 }
 0x2bb   :  { %1680 = vmatmul.f32.gmra.mxu2 %v6663_v21  ;;  %v1875_v21 = vmul.f32 %v1871_v11, %v1739_v29  ;;  %v1868_v40 = vmul.f32 %v5214_v1, %v1848_v30  ;;  %v1869_v43 = vmul.f32 %v5216_v34, %v1849_v36 }
 0x2bc   :  { %2481 = vmatpush.msrb.mxu1 %v6749_v62 }
 0x2bd   :  { %v1879_v14 = vadd.f32 1.0, %v1875_v21  ;;  %v1872_v4 = vsub.f32 1.0, %v1868_v40  ;;  %v1873_v61 = vsub.f32 1.0, %v1869_v43 }
 0x2be   :  { %2482 = vmatpush.msrb.mxu1 %v6759_v13  ;;  %1703 = vmatmul.f32.gmra.mxu3 %v6595_v38 }
 0x2bf   :  { %1651 = vmatmul.f32.gmra.mxu1 %v6595_v38  ;;  %v1883_v38 = vmul.f32 %v1879_v14, %v1727_v57  ;;  %v1876_v51 = vmul.f32 %v1872_v4, %v1740_v26  ;;  %v1877_v49 = vmul.f32 %v1873_v61, %v1741_v27 }
 0x2c1   :  { %v1880_v50 = vadd.f32 1.0, %v1876_v51  ;;  %v1881_v7 = vadd.f32 1.0, %v1877_v49 }
 0x2c2   :  { %1922 = vmatmul.f32.vlgmr.msra.gmra.mxu0 %v1882_v22 }
 0x2c3   :  { %2825 = vmatpush.msra.mxu0 %v2797_v31  ;;  %v1884_v53 = vmul.f32 %v1880_v50, %v1728_v12 }
 0x2c6   :  { %1706 = vmatmul.f32.gmra.mxu3 %v6745_v33 }
 0x2c7   :  { %1654 = vmatmul.f32.gmra.mxu1 %v6745_v33  ;;  %v1729_v33 = vmul.f32 0.5, %v8531_v56 }
 0x2c9   :  { %v1885_v5 = vmul.f32 %v1881_v7, %v1729_v33 }
 0x2ca   :  { %1925 = vmatmul.f32.gmra.mxu0 %v1883_v38 }
 0x2d2   :  { %1928 = vmatmul.f32.gmra.mxu0 %v1884_v53 }
 0x2da   :  { %1931 = vmatmul.f32.gmra.mxu0 %v1885_v5 }
 0x2e2   :  { %4950 = vmatmul.msk.f32.vlgmr.msrb.gmra.mxu0 %vm2422_vm14, %v2400_v58 }
 0x2ea   :  { %4966 = vmatmul.msk.f32.vlgmr.msra.gmra.mxu0 %vm2559_vm15, %v6759_v13 }
 0x2f2   :  { %4967 = vmatmul.msk.f32.gmra.mxu0 %vm2559_vm15, %v6749_v62 }
 0x2fa   :  { %4968 = vmatmul.msk.f32.gmra.mxu0 %vm2559_vm15, %v6728_v15 }
 0x302   :  { %4969 = vmatmul.msk.f32.gmra.mxu0 %vm2559_vm15, %v6721_v0 }
 0x305   :  { %v6806_v44 = vpop.f32.mrf.mxu0 }
 0x30b   :  { %v6808_v55 = vpop.f32.mrf.mxu1 }
 0x30f   :  { %v1522_v8 = vpop.f32.mrf.mxu0 }
 0x310   :  { %v1523_v54 = vadd.f32 %v1522_v8, %v6814_v10 }
 0x315   :  { %v1548_v62 = vpop.f32.mrf.mxu1 }
 0x316   :  { %v6817_v39 = vadd.f32 %v1548_v62, %v1523_v54 }
 0x318   :  { %2681 = vrot.lane.b32.xlu1 %v6817_v39, %s5458_s24 }
 0x31f   :  { %v1525_v0 = vpop.f32.mrf.mxu0 }
 0x320   :  { %v1526_v13 = vadd.f32 %v1525_v0, %v6814_v10 }
 0x327   :  { %v6821_v15 = vpop.f32.mrf.mxu0 }
 0x328   :  { %8533 = vst [vmem:[#allocation25_spill] sm:$0xff] %v6821_v15 }
 0x32c   :  { %v1551_v19 = vpop.f32.mrf.mxu1 }
 0x32d   :  { %v6824_v35 = vadd.f32 %v1551_v19, %v1526_v13 }
 0x32f   :  { %2683 = vrot.lane.b32.xlu0 %v6824_v35, %s5458_s24  ;;  %v6828_v42 = vpop.f32.mrf.mxu0 }
 0x330   :  { %8534 = vst [vmem:[#allocation28_spill] sm:$0xff] %v6828_v42 }
 0x337   :  { %v6830_v20 = vpop.f32.mrf.mxu0 }
 0x338   :  { %8535 = vst [vmem:[#allocation27_spill] sm:$0xff] %v6830_v20 }
 0x33f   :  { %v1923_v59 = vpop.f32.mrf.mxu0 }
 0x340   :  { %v6833_v60 = vadd.f32 %v5121_v37, %v1923_v59 }
 0x342   :  { %v6836_v24 = vmul.f32 0.70710677, %v6833_v60 }
 0x344   :  { %v1951_v2 = vand.u32 2147483647, %v6836_v24  ;;  %vm1943_vm5 = vcmp.ge.f32.partialorder %v6836_v24, 0.0  ;;  %v1935_v24 = vmul.f32 0.5, %v6833_v60 }
 0x346   :  { %v1955_v9 = vmul.f32 0.3275911, %v1951_v2  ;;  %v2059_v23 = vsub.f32 0.0, %v1951_v2 }
 0x347   :  { %v1926_v11 = vpop.f32.mrf.mxu0 }
 0x348   :  { %v1959_v41 = vadd.f32 1.0, %v1955_v9  ;;  %v6839_v30 = vadd.f32 %v5121_v37, %v1926_v11  ;;  %v2063_v18 = vmul.f32 %v2059_v23, %v1951_v2 }
 0x34a   :  { %5217 = vrcp.f32 %v1959_v41  ;;  %v1974_v45 = vand.u32 2147483648, %v1959_v41  ;;  %v1972_v63 = vand.u32 2147483647, %v1959_v41  ;;  %vm1968_vm1 = vweird.f32 %v1959_v41 }
 0x34b   :  { %v6842_v29 = vmul.f32 0.70710677, %v6839_v30  ;;  %v2067_v34 = vmul.f32 1.442695, %v2063_v18 }
 0x34c   :  { %v1975_v1 = vor.u32 1.1754944e-38, %v1974_v45  ;;  %vm1973_vm3 = vcmp.eq.f32.partialorder %v1972_v63, 8.507059e+37 }
 0x34d   :  { %v1952_v22 = vand.u32 2147483647, %v6842_v29 }
 0x34f   :  { %v1956_v40 = vmul.f32 0.3275911, %v1952_v22  ;;  %v1929_v31 = vpop.f32.mrf.mxu0  ;;  %v2060_v45 = vsub.f32 0.0, %v1952_v22 }
 0x350   :  { %v5218_v32 = vpop.eup %5217  ;;  %v6845_v14 = vadd.f32 %v5121_v37, %v1929_v31 }
 0x351   :  { %v1964_v52 = vmul.f32 %v5218_v32, %v1959_v41  ;;  %vm1969_vm0 = vweird.f32 %v5218_v32  ;;  %v1960_v57 = vadd.f32 1.0, %v1956_v40  ;;  %v2064_v40 = vmul.f32 %v2060_v45, %v1952_v22 }
 0x352   :  { %vm1970_vm2 = vmor %vm1968_vm1, %vm1969_vm0  ;;  %v6848_v36 = vmul.f32 0.70710677, %v6845_v14 }
 0x353   :  { %v1965_v3 = vsub.f32 1.0, %v1964_v52  ;;  %5219 = vrcp.f32 %v1960_v57  ;;  %v1989_v58 = vand.u32 2147483648, %v1960_v57  ;;  %v1987_v62 = vand.u32 2147483647, %v1960_v57 }
 0x354   :  { %v6851_v38 = vand.u32 2147483647, %v6848_v36  ;;  %5221 = vpow2.f32 %v2067_v34  ;;  %vm1983_vm6 = vweird.f32 %v1960_v57  ;;  %v2069_v60 = vmul.f32 1.442695, %v2064_v40 }
 0x355   :  { %v1966_v17 = vmul.f32 %v5218_v32, %v1965_v3  ;;  %v1990_v9 = vor.u32 1.1754944e-38, %v1989_v58  ;;  %vm1988_vm8 = vcmp.eq.f32.partialorder %v1987_v62, 8.507059e+37  ;;  %v1947_v3 = vsel %vm1943_vm5, 1.0, %v8513_v46 }
 0x356   :  { %v1957_v43 = vmul.f32 0.3275911, %v6851_v38  ;;  %v1936_v40 = vmul.f32 0.5, %v6839_v30  ;;  %v1937_v30 = vmul.f32 0.5, %v6845_v14  ;;  %v2403_v14 = vld [vmem:[%s8536_s6] sm:$0xff] }
 0x357   :  { %v1967_v48 = vadd.f32 %v5218_v32, %v1966_v17  ;;  %v1932_v50 = vpop.f32.mrf.mxu0 }
 0x358   :  { %v1961_v61 = vadd.f32 1.0, %v1957_v43  ;;  %v6854_v27 = vadd.f32 %v5121_v37, %v1932_v50  ;;  %v2061_v43 = vsub.f32 0.0, %v6851_v38 }
 0x359   :  { %v1971_v28 = vsel %vm1970_vm2, %v5218_v32, %v1967_v48  ;;  %v5220_v25 = vpop.eup %5219 }
 0x35a   :  { %v1976_v16 = vsel %vm1973_vm3, %v1975_v1, %v1971_v28  ;;  %v1979_v49 = vmul.f32 %v5220_v25, %v1960_v57  ;;  %5223 = vrcp.f32 %v1961_v61  ;;  %v6857_v7 = vmul.f32 0.70710677, %v6854_v27  ;;  %v5222_v0 = vpop.eup %5221 }
 0x35b   :  { %v2023_v21 = vmul.f32 1.0614054, %v1976_v16  ;;  %vm1984_vm4 = vweird.f32 %v5220_v25  ;;  %v2002_v1 = vand.u32 2147483647, %v1961_v61  ;;  %v2004_v28 = vand.u32 2147483648, %v1961_v61 }
 0x35c   :  { %v1980_v33 = vsub.f32 1.0, %v1979_v49  ;;  %v6860_v5 = vand.u32 2147483647, %v6857_v7  ;;  %vm1985_vm7 = vmor %vm1983_vm6, %vm1984_vm4  ;;  %vm1998_vm10 = vweird.f32 %v1961_v61  ;;  %v2065_v58 = vmul.f32 %v2061_v43, %v6851_v38 }
 0x35d   :  { %v2027_v47 = vadd.f32 -1.4531521, %v2023_v21  ;;  %vm2003_vm12 = vcmp.eq.f32.partialorder %v2002_v1, 8.507059e+37  ;;  %vm1944_vm3 = vcmp.ge.f32.partialorder %v6842_v29, 0.0  ;;  %vm1945_vm4 = vcmp.ge.f32.partialorder %v6848_v36, 0.0 }
 0x35e   :  { %v1981_v54 = vmul.f32 %v5220_v25, %v1980_v33  ;;  %v1958_v13 = vmul.f32 0.3275911, %v6860_v5  ;;  %vm1946_vm5 = vcmp.ge.f32.partialorder %v6857_v7, 0.0  ;;  %v6899_v7 = vpop.f32.mrf.mxu1 }
 0x35f   :  { %v2031_v4 = vmul.f32 %v2027_v47, %v1976_v16  ;;  %8538 = vst [vmem:[#allocation26_spill] sm:$0xff] %v6899_v7 }
 0x360   :  { %v1982_v37 = vadd.f32 %v5220_v25, %v1981_v54  ;;  %v5224_v59 = vpop.eup %5223  ;;  %v1962_v2 = vadd.f32 1.0, %v1958_v13 }
 0x361   :  { %v2035_v26 = vadd.f32 1.4214138, %v2031_v4  ;;  %v1994_v32 = vmul.f32 %v5224_v59, %v1961_v61  ;;  %vm1999_vm9 = vweird.f32 %v5224_v59  ;;  %v2005_v4 = vor.u32 1.1754944e-38, %v2004_v28 }
 0x362   :  { %v1986_v52 = vsel %vm1985_vm7, %v5220_v25, %v1982_v37  ;;  %5225 = vrcp.f32 %v1962_v2  ;;  %vm2000_vm11 = vmor %vm1998_vm10, %vm1999_vm9  ;;  %v2017_v22 = vand.u32 2147483647, %v1962_v2  ;;  %v2019_v49 = vand.u32 2147483648, %v1962_v2 }
 0x363   :  { %v2039_v51 = vmul.f32 %v2035_v26, %v1976_v16  ;;  %v1991_v17 = vsel %vm1988_vm8, %v1990_v9, %v1986_v52  ;;  %v1995_v11 = vsub.f32 1.0, %v1994_v32  ;;  %5227 = vpow2.f32 %v2069_v60 }
 0x364   :  { %v2024_v48 = vmul.f32 1.0614054, %v1991_v17  ;;  %vm2013_vm0 = vweird.f32 %v1962_v2  ;;  %vm2018_vm2 = vcmp.eq.f32.partialorder %v2017_v22, 8.507059e+37  ;;  %v2062_v9 = vsub.f32 0.0, %v6860_v5 }
 0x365   :  { %v2043_v12 = vadd.f32 -0.28449672, %v2039_v51  ;;  %v1996_v21 = vmul.f32 %v5224_v59, %v1995_v11  ;;  %v1948_v28 = vsel %vm1944_vm3, 1.0, %v8513_v46 }
 0x366   :  { %v2028_v23 = vadd.f32 -1.4531521, %v2024_v48 }
 0x367   :  { %v2047_v53 = vmul.f32 %v2043_v12, %v1976_v16  ;;  %v1997_v18 = vadd.f32 %v5224_v59, %v1996_v21 }
 0x368   :  { %v2032_v31 = vmul.f32 %v2028_v23, %v1991_v17  ;;  %v5226_v57 = vpop.eup %5225 }
 0x369   :  { %v2051_v56 = vadd.f32 0.2548296, %v2047_v53  ;;  %v2009_v26 = vmul.f32 %v5226_v57, %v1962_v2  ;;  %v2001_v51 = vsel %vm2000_vm11, %v5224_v59, %v1997_v18  ;;  %vm2014_vm13 = vweird.f32 %v5226_v57  ;;  %v5228_v45 = vpop.eup %5227 }
 0x36a   :  { %v2036_v34 = vadd.f32 1.4214138, %v2032_v31  ;;  %v2006_v12 = vsel %vm2003_vm12, %v2005_v4, %v2001_v51  ;;  %vm2015_vm1 = vmor %vm2013_vm0, %vm2014_vm13  ;;  %v2071_v59 = vmul.f32 1.442695, %v2065_v58  ;;  %v2066_v2 = vmul.f32 %v2062_v9, %v6860_v5 }
 0x36b   :  { %v2055_v8 = vmul.f32 %v2051_v56, %v1976_v16  ;;  %v2010_v50 = vsub.f32 1.0, %v2009_v26  ;;  %v2025_v53 = vmul.f32 1.0614054, %v2006_v12  ;;  %v1949_v51 = vsel %vm1945_vm4, 1.0, %v8513_v46 }
 0x36c   :  { %v2040_v25 = vmul.f32 %v2036_v34, %v1991_v17  ;;  %5229 = vpow2.f32 %v2071_v59 }
 0x36d   :  { %v2075_v19 = vmul.f32 %v5222_v0, %v2055_v8  ;;  %v2029_v33 = vadd.f32 -1.4531521, %v2025_v53  ;;  %v2011_v61 = vmul.f32 %v5226_v57, %v2010_v50  ;;  %v2020_v0 = vor.u32 1.1754944e-38, %v2019_v49 }
 0x36e   :  { %v2044_v56 = vadd.f32 -0.28449672, %v2040_v25  ;;  %v1950_v49 = vsel %vm1946_vm5, 1.0, %v8513_v46 }
 0x36f   :  { %v2079_v41 = vsub.f32 1.0, %v2075_v19  ;;  %v2033_v54 = vmul.f32 %v2029_v33, %v2006_v12  ;;  %v2012_v62 = vadd.f32 %v5226_v57, %v2011_v61  ;;  %v1938_v33 = vmul.f32 0.5, %v6854_v27  ;;  %v2405_v27 = vld [vmem:[%s8536_s6 + $0x10] sm:$0x3] }
 0x370   :  { %v2048_v8 = vmul.f32 %v2044_v56, %v1991_v17 }
 0x371   :  { %v2083_v63 = vmul.f32 %v2079_v41, %v1947_v3  ;;  %v2037_v19 = vadd.f32 1.4214138, %v2033_v54  ;;  %v2016_v37 = vsel %vm2015_vm1, %v5226_v57, %v2012_v62  ;;  %v2404_v54 = vld [vmem:[%s8536_s6 + $0x8] sm:$0xff]  ;;  %v6901_v62 = vpop.f32.mrf.mxu1 }
 0x372   :  { %v2052_v13 = vadd.f32 0.2548296, %v2048_v8  ;;  %v2021_v41 = vsel %vm2018_vm2, %v2020_v0, %v2016_v37  ;;  %v5230_v18 = vpop.eup %5229  ;;  %v6881_v8 = vpop.f32.mrf.mxu0  ;;  %8539 = vst [vmem:[#allocation29_spill] sm:$0xff] %v6901_v62 }
 0x373   :  { %v2087_v16 = vadd.f32 1.0, %v2083_v63  ;;  %v2041_v52 = vmul.f32 %v2037_v19, %v2006_v12  ;;  %v2026_v3 = vmul.f32 1.0614054, %v2021_v41  ;;  %2496 = vrot.lane.b32.xlu2 %v6881_v8, %s5459_s20  ;;  %2532 = vrot.lane.b32.xlu1 %v6881_v8, %s5460_s7 }
 0x374   :  { %v2056_v32 = vmul.f32 %v2052_v13, %v1991_v17  ;;  %v2073_v17 = vmul.f32 1.442695, %v2066_v2  ;;  %v5122_v13 = vld [vmem:[%s8537_s27] ss:$0 sm:$0xff] }
 0x375   :  { %v2091_v47 = vmul.f32 %v2087_v16, %v1935_v24  ;;  %v2045_v63 = vadd.f32 -0.28449672, %v2041_v52  ;;  %v2030_v11 = vadd.f32 -1.4531521, %v2026_v3 }
 0x376   :  { %v2076_v38 = vmul.f32 %v5228_v45, %v2056_v32  ;;  %5231 = vpow2.f32 %v2073_v17 }
 0x377   :  { %2131 = vmatmul.f32.vlgmr.msra.gmra.mxu1 %v2091_v47  ;;  %v2049_v24 = vmul.f32 %v2045_v63, %v2006_v12  ;;  %v2034_v1 = vmul.f32 %v2030_v11, %v2021_v41 }
 0x378   :  { %v2080_v48 = vsub.f32 1.0, %v2076_v38 }
 0x379   :  { %v2053_v23 = vadd.f32 0.2548296, %v2049_v24  ;;  %v2038_v21 = vadd.f32 1.4214138, %v2034_v1  ;;  %v6903_v0 = vpop.f32.mrf.mxu1 }
 0x37a   :  { %v2084_v16 = vmul.f32 %v2080_v48, %v1948_v28  ;;  %8540 = vst [vmem:[#allocation30_spill] sm:$0xff] %v6903_v0 }
 0x37b   :  { %v2057_v31 = vmul.f32 %v2053_v23, %v2006_v12  ;;  %v2042_v29 = vmul.f32 %v2038_v21, %v2021_v41  ;;  %2505 = vrot.lane.b32.xlu2 %v6881_v8, %s5451_s15  ;;  %v2335_v23 = vld [vmem:[%s5592_s14 + $0xf8] sm:$0xff]  ;;  %v2333_v21 = vld [vmem:[%s5592_s14 + $0xe8] sm:$0xff] }
 0x37c   :  { %v2088_v47 = vadd.f32 1.0, %v2084_v16  ;;  %v5232_v25 = vpop.eup %5231  ;;  %2371 = vmatpush.msra.mxu3 %v2335_v23 }
 0x37d   :  { %v2077_v4 = vmul.f32 %v5230_v18, %v2057_v31  ;;  %v2046_v5 = vadd.f32 -0.28449672, %v2042_v29  ;;  %v2331_v29 = vld [vmem:[%s5592_s14 + $0xd8] sm:$0xff] }
 0x37e   :  { %v2092_v57 = vmul.f32 %v2088_v47, %v1936_v40  ;;  %2372 = vmatpush.msra.mxu3 %v2333_v21  ;;  %v2313_v21 = vld [vmem:[%s5592_s14 + $0x48] sm:$0xff] }
 0x37f   :  { %v2081_v26 = vsub.f32 1.0, %v2077_v4  ;;  %v2050_v34 = vmul.f32 %v2046_v5, %v2021_v41  ;;  %v2329_v5 = vld [vmem:[%s5592_s14 + $0xc8] sm:$0xff] }
 0x380   :  { %2134 = vmatmul.f32.gmra.mxu1 %v2092_v57  ;;  %2373 = vmatpush.msra.mxu3 %v2331_v29 }
 0x381   :  { %v2085_v60 = vmul.f32 %v2081_v26, %v1949_v51  ;;  %v2054_v43 = vadd.f32 0.2548296, %v2050_v34 }
 0x382   :  { %2374 = vmatpush.msra.mxu3 %v2329_v5 }
 0x383   :  { %v2089_v50 = vadd.f32 1.0, %v2085_v60  ;;  %v2058_v12 = vmul.f32 %v2054_v43, %v2021_v41  ;;  %2514 = vrot.lane.b32.xlu2 %v6881_v8, %s5461_s17  ;;  %v2327_v43 = vld [vmem:[%s5592_s14 + $0xb8] sm:$0xff] }
 0x384   :  { %2375 = vmatpush.msra.mxu3 %v2327_v43 }
 0x385   :  { %v2093_v36 = vmul.f32 %v2089_v50, %v1937_v30  ;;  %v2078_v53 = vmul.f32 %v5232_v25, %v2058_v12  ;;  %v2325_v12 = vld [vmem:[%s5592_s14 + $0xa8] sm:$0xff] }
 0x386   :  { %2376 = vmatpush.msra.mxu3 %v2325_v12  ;;  %v2309_v12 = vld [vmem:[%s5592_s14 + $0x28] sm:$0xff] }
 0x387   :  { %v2082_v22 = vsub.f32 1.0, %v2078_v53 }
 0x388   :  { %2137 = vmatmul.f32.gmra.mxu1 %v2093_v36 }
 0x389   :  { %v2086_v56 = vmul.f32 %v2082_v22, %v1950_v49  ;;  %v2323_v22 = vld [vmem:[%s5592_s14 + $0x98] sm:$0xff] }
 0x38a   :  { %2377 = vmatpush.msra.mxu3 %v2323_v22 }
 0x38b   :  { %v2090_v61 = vadd.f32 1.0, %v2086_v56  ;;  %2523 = vrot.lane.b32.xlu2 %v6881_v8, %s5455_s0 }
 0x38d   :  { %v2094_v58 = vmul.f32 %v2090_v61, %v1938_v33  ;;  %v2321_v61 = vld [vmem:[%s5592_s14 + $0x88] sm:$0xff] }
 0x38e   :  { %2378 = vmatpush.msra.mxu3 %v2321_v61 }
 0x390   :  { %2140 = vmatmul.f32.gmra.mxu1 %v2094_v58 }
 0x393   :  { %2541 = vrot.lane.b32.xlu2 %v6881_v8, %s5462_s16 }
 0x398   :  { %4953 = vmatmul.msk.f32.vlgmr.msrb.gmra.mxu1 %vm2422_vm14, %v2403_v14 }
 0x3a0   :  { %4954 = vmatmul.msk.f32.gmra.mxu1 %vm2422_vm14, %v2404_v54 }
 0x3a8   :  { %4955 = vmatmul.msk.f32.gmra.mxu1 %vm2422_vm14, %v2405_v27 }
 0x3f4   :  { %v2132_v19 = vpop.f32.mrf.mxu1 }
 0x3f5   :  { %v6906_v37 = vadd.f32 %v5122_v13, %v2132_v19 }
 0x3f7   :  { %v6909_v59 = vmul.f32 0.70710677, %v6906_v37 }
 0x3f9   :  { %v2160_v9 = vand.u32 2147483647, %v6909_v59  ;;  %vm2152_vm11 = vcmp.ge.f32.partialorder %v6909_v59, 0.0 }
 0x3fb   :  { %v2164_v41 = vmul.f32 0.3275911, %v2160_v9  ;;  %v2268_v40 = vsub.f32 0.0, %v2160_v9 }
 0x3fd   :  { %v2168_v32 = vadd.f32 1.0, %v2164_v41  ;;  %v2135_v2 = vpop.f32.mrf.mxu1  ;;  %v2272_v26 = vmul.f32 %v2268_v40, %v2160_v9  ;;  %v2319_v9 = vld [vmem:[%s5592_s14 + $0x78] sm:$0xff] }
 0x3fe   :  { %v6912_v48 = vadd.f32 %v5122_v13, %v2135_v2  ;;  %2379 = vmatpush.msra.mxu3 %v2319_v9  ;;  %v2305_v9 = vld [vmem:[%s5592_s14 + $0x8] sm:$0xff] }
 0x3ff   :  { %5233 = vrcp.f32 %v2168_v32  ;;  %v2183_v38 = vand.u32 2147483648, %v2168_v32  ;;  %v2181_v11 = vand.u32 2147483647, %v2168_v32  ;;  %vm2177_vm7 = vweird.f32 %v2168_v32 }
 0x400   :  { %v6915_v28 = vmul.f32 0.70710677, %v6912_v48  ;;  %v2276_v25 = vmul.f32 1.442695, %v2272_v26  ;;  %v2156_v26 = vsel %vm2152_vm11, 1.0, %v8513_v46 }
 0x401   :  { %v2184_v1 = vor.u32 1.1754944e-38, %v2183_v38  ;;  %vm2182_vm9 = vcmp.eq.f32.partialorder %v2181_v11, 8.507059e+37 }
 0x402   :  { %v6920_v47 = vand.u32 2147483647, %v6915_v28 }
 0x404   :  { %v2165_v18 = vmul.f32 0.3275911, %v6920_v47 }
 0x405   :  { %v5234_v52 = vpop.eup %5233  ;;  %v2138_v4 = vpop.f32.mrf.mxu1 }
 0x406   :  { %v2173_v3 = vmul.f32 %v5234_v52, %v2168_v32  ;;  %vm2178_vm6 = vweird.f32 %v5234_v52  ;;  %v6925_v34 = vadd.f32 1.0, %v2165_v18  ;;  %v6927_v51 = vadd.f32 %v5122_v13, %v2138_v4  ;;  %v2311_v4 = vld [vmem:[%s5592_s14 + $0x38] sm:$0xff] }
 0x407   :  { %vm2179_vm8 = vmor %vm2177_vm7, %vm2178_vm6 }
 0x408   :  { %v2174_v45 = vsub.f32 1.0, %v2173_v3  ;;  %5235 = vrcp.f32 %v6925_v34  ;;  %v6932_v30 = vmul.f32 0.70710677, %v6927_v51  ;;  %v2317_v3 = vld [vmem:[%s5592_s14 + $0x68] sm:$0xff]  ;;  %v2196_v2 = vand.u32 2147483647, %v6925_v34 }
 0x409   :  { %5237 = vpow2.f32 %v2276_v25  ;;  %2380 = vmatpush.msra.mxu3 %v2317_v3  ;;  %vm2192_vm12 = vweird.f32 %v6925_v34 }
 0x40a   :  { %v2175_v63 = vmul.f32 %v5234_v52, %v2174_v45  ;;  %v6936_v36 = vand.u32 2147483647, %v6932_v30  ;;  %vm2197_vm0 = vcmp.eq.f32.partialorder %v2196_v2, 8.507059e+37 }
 0x40c   :  { %v2176_v24 = vadd.f32 %v5234_v52, %v2175_v63  ;;  %v2166_v49 = vmul.f32 0.3275911, %v6936_v36  ;;  %v2315_v63 = vld [vmem:[%s5592_s14 + $0x58] sm:$0xff] }
 0x40d   :  { %v2141_v33 = vpop.f32.mrf.mxu1  ;;  %2381 = vmatpush.msra.mxu3 %v2315_v63 }
 0x40e   :  { %v2180_v16 = vsel %vm2179_vm8, %v5234_v52, %v2176_v24  ;;  %v5236_v58 = vpop.eup %5235  ;;  %v6941_v14 = vadd.f32 1.0, %v2166_v49  ;;  %v6943_v54 = vadd.f32 %v5122_v13, %v2141_v33  ;;  %v2198_v13 = vand.u32 2147483648, %v6925_v34 }
 0x40f   :  { %v2185_v17 = vsel %vm2182_vm9, %v2184_v1, %v2180_v16  ;;  %v2188_v19 = vmul.f32 %v5236_v58, %v6925_v34  ;;  %vm2193_vm10 = vweird.f32 %v5236_v58  ;;  %v5238_v24 = vpop.eup %5237  ;;  %v2269_v34 = vsub.f32 0.0, %v6920_v47  ;;  %2382 = vmatpush.msra.mxu3 %v2313_v21 }
 0x410   :  { %v2232_v31 = vmul.f32 1.0614054, %v2185_v17  ;;  %5239 = vrcp.f32 %v6941_v14  ;;  %v6949_v41 = vmul.f32 0.70710677, %v6943_v54  ;;  %vm2194_vm13 = vmor %vm2192_vm12, %vm2193_vm10  ;;  %v2199_v29 = vor.u32 1.1754944e-38, %v2198_v13 }
 0x411   :  { %v2189_v52 = vsub.f32 1.0, %v2188_v19  ;;  %2383 = vmatpush.msra.mxu3 %v2311_v4  ;;  %v2211_v22 = vand.u32 2147483647, %v6941_v14  ;;  %v2213_v59 = vand.u32 2147483648, %v6941_v14  ;;  %vm2207_vm2 = vweird.f32 %v6941_v14 }
 0x412   :  { %v2236_v57 = vadd.f32 -1.4531521, %v2232_v31  ;;  %v6953_v45 = vand.u32 2147483647, %v6949_v41  ;;  %vm2153_vm9 = vcmp.ge.f32.partialorder %v6915_v28, 0.0  ;;  %vm2154_vm10 = vcmp.ge.f32.partialorder %v6932_v30, 0.0 }
 0x413   :  { %v2190_v11 = vmul.f32 %v5236_v58, %v2189_v52  ;;  %2384 = vmatpush.msra.mxu3 %v2309_v12  ;;  %v2214_v3 = vor.u32 1.1754944e-38, %v2213_v59  ;;  %vm2212_vm4 = vcmp.eq.f32.partialorder %v2211_v22, 8.507059e+37  ;;  %v2146_v30 = vmul.f32 0.5, %v6927_v51 }
 0x414   :  { %v2240_v60 = vmul.f32 %v2236_v57, %v2185_v17  ;;  %v2167_v1 = vmul.f32 0.3275911, %v6953_v45  ;;  %vm2155_vm11 = vcmp.ge.f32.partialorder %v6949_v41, 0.0  ;;  %v2147_v51 = vmul.f32 0.5, %v6943_v54  ;;  %v7060_v54 = vpop.f32.mrf.mxu2 }
 0x415   :  { %v6960_v23 = vpop.f32.mrf.mxu1  ;;  %v2191_v40 = vadd.f32 %v5236_v58, %v2190_v11  ;;  %vm2563_vm12 = vcmask 130048  }
 0x416   :  { %v2244_v50 = vadd.f32 1.4214138, %v2240_v60  ;;  %v6964_v31 = vadd.f32 1.0, %v2167_v1  ;;  %2625 = vrot.lane.b32.xlu0 %v6960_v23, %s5460_s7  ;;  %2616 = vrot.lane.b32.xlu1 %v6960_v23, %s5455_s0 }
 0x417   :  { %2589 = vrot.lane.b32.xlu2 %v6960_v23, %s5459_s20  ;;  %v2195_v5 = vsel %vm2194_vm13, %v5236_v58, %v2191_v40  ;;  %v2273_v58 = vmul.f32 %v2269_v34, %v6920_v47  ;;  %vm2567_vm13 = vcmask 195584  }
 0x418   :  { %v2248_v53 = vmul.f32 %v2244_v50, %v2185_v17  ;;  %5241 = vrcp.f32 %v6964_v31  ;;  %v6980_v60 = vsel %vm2197_vm0, %v2199_v29, %v2195_v5  ;;  %v2228_v21 = vand.u32 2147483648, %v6964_v31 }
 0x419   :  { %v2233_v25 = vmul.f32 1.0614054, %v6980_v60  ;;  %v2278_v63 = vmul.f32 1.442695, %v2273_v58  ;;  %vm2222_vm6 = vweird.f32 %v6964_v31  ;;  %vm2574_vm0 = vcmask 326656  }
 0x41a   :  { %v2252_v56 = vadd.f32 -0.28449672, %v2248_v53  ;;  %v2144_v53 = vmul.f32 0.5, %v6906_v37  ;;  %v2229_v34 = vor.u32 1.1754944e-38, %v2228_v21  ;;  %v2158_v21 = vsel %vm2154_vm10, 1.0, %v8513_v46 }
 0x41b   :  { %v2237_v33 = vadd.f32 -1.4531521, %v2233_v25  ;;  %5243 = vpow2.f32 %v2278_v63  ;;  %v2271_v25 = vsub.f32 0.0, %v6953_v45 }
 0x41c   :  { %v2256_v27 = vmul.f32 %v2252_v56, %v2185_v17  ;;  %v2307_v56 = vld [vmem:[%s5592_s14 + $0x18] sm:$0xff]  ;;  %s8546_s14 = sld [smem:[#allocation14_spill]] }
 0x41d   :  { %v6989_v19 = vpop.f32.mrf.mxu1  ;;  %2385 = vmatpush.msra.mxu3 %v2307_v56  ;;  %v2275_v58 = vmul.f32 %v2271_v25, %v6953_v45  ;;  %v2145_v45 = vmul.f32 0.5, %v6912_v48 }
 0x41e   :  { %v2260_v32 = vadd.f32 0.2548296, %v2256_v27  ;;  %2634 = vrot.lane.b32.xlu0 %v6960_v23, %s5462_s16  ;;  %2645 = vrot.lane.b32.xlu1 %v6989_v19, %s5463_s18 }
 0x41f   :  { %2386 = vmatpush.msra.mxu3 %v2305_v9  ;;  %2598 = vrot.lane.b32.xlu2 %v6960_v23, %s5451_s15 }
 0x420   :  { %v2264_v38 = vmul.f32 %v2260_v32, %v2185_v17  ;;  %v5240_v17 = vpop.eup %5239  ;;  %v2241_v32 = vmul.f32 %v2237_v33, %v6980_v60 }
 0x421   :  { %v2203_v57 = vmul.f32 %v5240_v17, %v6941_v14  ;;  %vm2208_vm1 = vweird.f32 %v5240_v17  ;;  %v5242_v52 = vpop.eup %5241  ;;  %v2270_v14 = vsub.f32 0.0, %v6936_v36 }
 0x422   :  { %v2284_v16 = vmul.f32 %v5238_v24, %v2264_v38  ;;  %vm2209_vm3 = vmor %vm2207_vm2, %vm2208_vm1  ;;  %v2218_v13 = vmul.f32 %v5242_v52, %v6964_v31  ;;  %v2245_v47 = vadd.f32 1.4214138, %v2241_v32  ;;  %vm2223_vm5 = vweird.f32 %v5242_v52 }
 0x423   :  { %v2204_v50 = vsub.f32 1.0, %v2203_v57  ;;  %vm2224_vm7 = vmor %vm2222_vm6, %vm2223_vm5  ;;  %vm2578_vm1 = vcmask 392192   ;;  %vm2582_vm2 = vcmask 457728   ;;  %vm8448_vm5 = vcmask 523264  }
 0x424   :  { %v2288_v18 = vsub.f32 1.0, %v2284_v16  ;;  %v2219_v2 = vsub.f32 1.0, %v2218_v13  ;;  %v2249_v24 = vmul.f32 %v2245_v47, %v6980_v60  ;;  %v2226_v16 = vand.u32 2147483647, %v6964_v31 }
 0x425   :  { %v2205_v61 = vmul.f32 %v5240_v17, %v2204_v50  ;;  %v7007_v4 = vpop.f32.mrf.mxu1 }
 0x426   :  { %v2292_v43 = vmul.f32 %v2288_v18, %v2156_v26  ;;  %v2253_v40 = vadd.f32 -0.28449672, %v2249_v24  ;;  %v2220_v29 = vmul.f32 %v5242_v52, %v2219_v2  ;;  %v2274_v18 = vmul.f32 %v2270_v14, %v6936_v36  ;;  %2600 = vrot.lane.b32.xlu0 %v6989_v19, %s5451_s15  ;;  %2620 = vrot.lane.b32.xlu1 %v7007_v4, %s5455_s0 }
 0x427   :  { %v2206_v37 = vadd.f32 %v5240_v17, %v2205_v61  ;;  %vm2227_vm8 = vcmp.eq.f32.partialorder %v2226_v16, 8.507059e+37  ;;  %2607 = vrot.lane.b32.xlu2 %v6960_v23, %s5461_s17 }
 0x428   :  { %v2296_v49 = vadd.f32 1.0, %v2292_v43  ;;  %v2257_v57 = vmul.f32 %v2253_v40, %v6980_v60  ;;  %v2221_v26 = vadd.f32 %v5242_v52, %v2220_v29  ;;  %v2280_v36 = vmul.f32 1.442695, %v2274_v18 }
 0x429   :  { %v2210_v38 = vsel %vm2209_vm3, %v5240_v17, %v2206_v37  ;;  %v2157_v37 = vsel %vm2153_vm9, 1.0, %v8513_v46  ;;  %vm2716_vm3 = vcmask 1041408  }
 0x42a   :  { %v2300_v27 = vmul.f32 %v2296_v49, %v2144_v53  ;;  %v2215_v11 = vsel %vm2212_vm4, %v2214_v3, %v2210_v38  ;;  %v2261_v43 = vadd.f32 0.2548296, %v2257_v57  ;;  %v2225_v12 = vsel %vm2224_vm7, %v5242_v52, %v2221_v26  ;;  %v5244_v49 = vpop.eup %5243 }
 0x42b   :  { %v2234_v1 = vmul.f32 1.0614054, %v2215_v11  ;;  %v2230_v53 = vsel %vm2227_vm8, %v2229_v34, %v2225_v12  ;;  %5245 = vpow2.f32 %v2280_v36  ;;  %v2282_v3 = vmul.f32 1.442695, %v2275_v58  ;;  %v7056_v12 = vld [vmem:[%s8528_s29 + $0x10] sm:$0x3]  ;;  %v1574_v36 = vpop.f32.mrf.mxu2 }
 0x42c   :  { %2358 = vmatmul.f32.vlgmr.msra.gmra.mxu2 %v2300_v27  ;;  %2387 = vmatmul.f32.vlgmr.msra.gmra.mxu3 %v2300_v27  ;;  %v2265_v31 = vmul.f32 %v2261_v43, %v6980_v60  ;;  %v2235_v59 = vmul.f32 1.0614054, %v2230_v53  ;;  %v2159_v26 = vsel %vm2155_vm11, 1.0, %v8513_v46  ;;  %vm2703_vm4 = vcmask 146432  }
 0x42d   :  { %v2238_v17 = vadd.f32 -1.4531521, %v2234_v1  ;;  %5247 = vpow2.f32 %v2282_v3  ;;  %v7125_v3 = vperm.slane %v6811_v6, 1 }
 0x42e   :  { %v2285_v56 = vmul.f32 %v5244_v49, %v2265_v31  ;;  %v2239_v61 = vadd.f32 -1.4531521, %v2235_v59  ;;  %2609 = vrot.lane.b32.xlu0 %v6989_v19, %s5461_s17  ;;  %2629 = vrot.lane.b32.xlu1 %v7007_v4, %s5460_s7 }
 0x42f   :  { %v2242_v5 = vmul.f32 %v2238_v17, %v2215_v11  ;;  %2591 = vrot.lane.b32.xlu2 %v6989_v19, %s5459_s20  ;;  %v1575_v6 = vadd.f32 %v1574_v36, %v7125_v3 }
 0x430   :  { %v2289_v27 = vsub.f32 1.0, %v2285_v56  ;;  %v2243_v32 = vmul.f32 %v2239_v61, %v2230_v53 }
 0x431   :  { %v2246_v50 = vadd.f32 1.4214138, %v2242_v5  ;;  %v5246_v63 = vpop.eup %5245 }
 0x432   :  { %v2293_v60 = vmul.f32 %v2289_v27, %v2157_v37  ;;  %v2247_v28 = vadd.f32 1.4214138, %v2243_v32  ;;  %v7098_v27 = vpop.permute.xlu2 %2496  ;;  %v7108_v32 = vpop.permute.xlu0 %2683 }
 0x433   :  { %v2250_v22 = vmul.f32 %v2246_v50, %v2215_v11  ;;  %v5248_v29 = vpop.eup %5247  ;;  %v7049_v50 = vld [vmem:[%s8528_s29 + $0x8] sm:$0xff]  ;;  %v1577_v25 = vpop.f32.mrf.mxu2  ;;  %v2560_v42 = vsel %vm2559_vm15, %v6881_v8, %v7098_v27 }
 0x434   :  { %v2297_v13 = vadd.f32 1.0, %v2293_v60  ;;  %v2251_v38 = vmul.f32 %v2247_v28, %v2230_v53  ;;  %v7118_v28 = vpop.permute.xlu1 %2681 }
 0x435   :  { %v2254_v33 = vadd.f32 -0.28449672, %v2250_v22 }
 0x436   :  { %v2301_v14 = vmul.f32 %v2297_v13, %v2145_v45  ;;  %v2255_v24 = vadd.f32 -0.28449672, %v2251_v38  ;;  %2618 = vrot.lane.b32.xlu0 %v6989_v19, %s5455_s0  ;;  %2638 = vrot.lane.b32.xlu1 %v7007_v4, %s5462_s16  ;;  %v1578_v38 = vadd.f32 %v1577_v25, %v7125_v3 }
 0x437   :  { %v2258_v9 = vmul.f32 %v2254_v33, %v2215_v11  ;;  %2636 = vrot.lane.b32.xlu2 %v6989_v19, %s5462_s16 }
 0x438   :  { %2361 = vmatmul.f32.gmra.mxu2 %v2301_v14  ;;  %2390 = vmatmul.f32.gmra.mxu3 %v2301_v14  ;;  %v2259_v16 = vmul.f32 %v2255_v24, %v2230_v53 }
 0x439   :  { %v2262_v52 = vadd.f32 0.2548296, %v2258_v9  ;;  %v7100_v9 = vpop.f32.mrf.mxu3 }
 0x43a   :  { %v2263_v40 = vadd.f32 0.2548296, %v2259_v16  ;;  %v7110_v37 = vpop.permute.xlu2 %2505 }
 0x43b   :  { %v2266_v47 = vmul.f32 %v2262_v52, %v2215_v11 }
 0x43c   :  { %v2267_v17 = vmul.f32 %v2263_v40, %v2230_v53  ;;  %v7062_v53 = vpop.f32.mrf.mxu2  ;;  %v7139_v24 = vpop.permute.xlu1 %2532 }
 0x43d   :  { %v2286_v2 = vmul.f32 %v5246_v63, %v2266_v47  ;;  %8541 = vst [vmem:[#allocation31_spill] sm:$0xff] %v7062_v53  ;;  %v1520_v47 = vadd.f32 %v6806_v44, %v6814_v10 }
 0x43e   :  { %v2287_v57 = vmul.f32 %v5248_v29, %v2267_v17  ;;  %2627 = vrot.lane.b32.xlu0 %v6989_v19, %s5460_s7  ;;  %2647 = vrot.lane.b32.xlu1 %v7007_v4, %s5463_s18 }
 0x43f   :  { %v2290_v1 = vsub.f32 1.0, %v2286_v2  ;;  %2602 = vrot.lane.b32.xlu2 %v7007_v4, %s5451_s15  ;;  %v7133_v63 = vadd.f32 %v6808_v55, %v1520_v47 }
 0x440   :  { %v2291_v5 = vsub.f32 1.0, %v2287_v57 }
 0x441   :  { %v2294_v48 = vmul.f32 %v2290_v1, %v2158_v21  ;;  %v1600_v60 = vpop.f32.mrf.mxu3 }
 0x442   :  { %v2295_v34 = vmul.f32 %v2291_v5, %v2159_v26  ;;  %v7127_v45 = vpop.permute.xlu2 %2514  ;;  %v7148_v10 = vadd.f32 %v1600_v60, %v1575_v6 }
 0x443   :  { %v2298_v11 = vadd.f32 1.0, %v2294_v48 }
 0x444   :  { %v2299_v41 = vadd.f32 1.0, %v2295_v34  ;;  %v7064_v31 = vpop.f32.mrf.mxu2  ;;  %8545 = vst [vmem:[#allocation35_spill] sm:$0xff] %v7148_v10 }
 0x445   :  { %v2302_v18 = vmul.f32 %v2298_v11, %v2146_v30  ;;  %8542 = vst [vmem:[#allocation32_spill] sm:$0xff] %v7064_v31 }
 0x446   :  { %v2303_v43 = vmul.f32 %v2299_v41, %v2147_v51  ;;  %2593 = vrot.lane.b32.xlu0 %v7007_v4, %s5459_s20 }
 0x447   :  { %2364 = vmatmul.f32.gmra.mxu2 %v2302_v18  ;;  %2393 = vmatmul.f32.gmra.mxu3 %v2302_v18 }
 0x449   :  { %v1603_v13 = vpop.f32.mrf.mxu3 }
 0x44a   :  { %v7135_v14 = vadd.f32 %v1603_v13, %v1578_v38  ;;  %v7146_v44 = vpop.permute.xlu2 %2523 }
 0x44c   :  { %v7066_v22 = vpop.f32.mrf.mxu2  ;;  %8544 = vst [vmem:[#allocation34_spill] sm:$0xff] %v7135_v14 }
 0x44d   :  { %8543 = vst [vmem:[#allocation33_spill] sm:$0xff] %v7066_v22 }
 0x44e   :  { %2611 = vrot.lane.b32.xlu0 %v7007_v4, %s5461_s17 }
 0x44f   :  { %2367 = vmatmul.f32.gmra.mxu2 %v2303_v43  ;;  %2396 = vmatmul.f32.gmra.mxu3 %v2303_v43 }
 0x452   :  { %v7154_v16 = vpop.permute.xlu2 %2541 }
 0x457   :  { %4951 = vmatmul.msk.f32.vlgmr.msrb.gmra.mxu2 %vm2422_vm14, %v7049_v50 }
 0x45f   :  { %4952 = vmatmul.msk.f32.gmra.mxu2 %vm2422_vm14, %v7056_v12 }
 0x471   :  { %v2590_v40 = vpop.permute.xlu2 %2589 }
 0x472   :  { %v2652_v0 = vsel %vm2559_vm15, %v6960_v23, %v2590_v40 }
 0x479   :  { %v2599_v17 = vpop.permute.xlu2 %2598 }
 0x481   :  { %v2608_v57 = vpop.permute.xlu2 %2607 }
 0x488   :  { %v7116_v52 = vpop.permute.xlu0 %2625  ;;  %v7152_v1 = vpop.permute.xlu1 %2616 }
 0x489   :  { %v2592_v34 = vpop.permute.xlu2 %2591 }
 0x490   :  { %v7137_v2 = vpop.permute.xlu0 %2634  ;;  %v7156_v48 = vpop.permute.xlu1 %2645 }
 0x491   :  { %v2637_v43 = vpop.permute.xlu2 %2636 }
 0x498   :  { %v2601_v55 = vpop.permute.xlu0 %2600  ;;  %v2621_v11 = vpop.permute.xlu1 %2620 }
 0x499   :  { %v2603_v60 = vpop.permute.xlu2 %2602 }
 0x4a0   :  { %v2610_v21 = vpop.permute.xlu0 %2609  ;;  %v2630_v18 = vpop.permute.xlu1 %2629 }
 0x4a8   :  { %v2619_v30 = vpop.permute.xlu0 %2618  ;;  %v2639_v26 = vpop.permute.xlu1 %2638 }
 0x4af   :  { %v7068_v59 = vpop.f32.mrf.mxu2 }
 0x4b0   :  { %v2628_v29 = vpop.permute.xlu0 %2627  ;;  %v2648_v41 = vpop.permute.xlu1 %2647 }
 0x4b8   :  { %v2594_v5 = vpop.permute.xlu0 %2593 }
 0x4b9   :  { %v2654_v22 = vsel %vm2559_vm15, %v7007_v4, %v2594_v5 }
 0x4bb   :  { %v7070_v49 = vpop.f32.mrf.mxu2 }
 0x4c0   :  { %v2612_v51 = vpop.permute.xlu0 %2611 }
 0x4ca   :  { %v7072_v56 = vpop.f32.mrf.mxu2 }
 0x4d2   :  { %v7074_v33 = vpop.f32.mrf.mxu2 }
 0x4da   :  { %v7076_v61 = vpop.f32.mrf.mxu2 }
 0x4db   :  { %2498 = vrot.lane.b32.xlu0 %v7076_v61, %s5459_s20  ;;  %2507 = vrot.lane.b32.xlu1 %v7076_v61, %s5451_s15 }
 0x4dc   :  { %2552 = vrot.lane.b32.xlu2 %v7076_v61, %s5463_s18 }
 0x4e2   :  { %v7084_v58 = vpop.f32.mrf.mxu2 }
 0x4e3   :  { %2516 = vrot.lane.b32.xlu0 %v7076_v61, %s5461_s17  ;;  %2509 = vrot.lane.b32.xlu1 %v7084_v58, %s5451_s15 }
 0x4e4   :  { %2500 = vrot.lane.b32.xlu2 %v7084_v58, %s5459_s20 }
 0x4eb   :  { %2525 = vrot.lane.b32.xlu0 %v7076_v61, %s5455_s0  ;;  %2518 = vrot.lane.b32.xlu1 %v7084_v58, %s5461_s17 }
 0x4ec   :  { %2527 = vrot.lane.b32.xlu2 %v7084_v58, %s5455_s0 }
 0x4f3   :  { %2534 = vrot.lane.b32.xlu0 %v7076_v61, %s5460_s7  ;;  %2536 = vrot.lane.b32.xlu1 %v7084_v58, %s5460_s7 }
 0x4f4   :  { %2550 = vrot.lane.b32.xlu2 %v6881_v8, %s5463_s18 }
 0x4fb   :  { %2543 = vrot.lane.b32.xlu0 %v7076_v61, %s5462_s16  ;;  %2545 = vrot.lane.b32.xlu1 %v7084_v58, %s5462_s16 }
 0x503   :  { %2643 = vrot.lane.b32.xlu0 %v6960_v23, %s5463_s18  ;;  %2554 = vrot.lane.b32.xlu1 %v7084_v58, %s5463_s18 }
 0x50b   :  { %3285 = vrot.lane.b32.xlu0 %v7135_v14, %s5458_s24  ;;  %2679 = vrot.lane.b32.xlu1 %v7133_v63, %s5458_s24  ;;  %v2653_v14 = vsel %vm2559_vm15, %v6989_v19, %v2592_v34  ;;  %v2564_v19 = vsel %vm2563_vm12, %v2560_v42, %v7110_v37 }
 0x50c   :  { %v2656_v4 = vsel %vm2563_vm12, %v2653_v14, %v2601_v55 }
 0x513   :  { %3283 = vrot.lane.b32.xlu1 %v7148_v10, %s5458_s24  ;;  %v2657_v10 = vsel %vm2563_vm12, %v2654_v22, %v2603_v60  ;;  %v2655_v22 = vsel %vm2563_vm12, %v2652_v0, %v2599_v17 }
 0x514   :  { %v2660_v62 = vsel %vm2567_vm13, %v2657_v10, %v2612_v51  ;;  %v2659_v10 = vsel %vm2567_vm13, %v2656_v4, %v2610_v21  ;;  %v2658_v14 = vsel %vm2567_vm13, %v2655_v22, %v2608_v57 }
 0x515   :  { %v2663_v5 = vsel %vm2422_vm14, %v2660_v62, %v2621_v11  ;;  %v2568_v62 = vsel %vm2567_vm13, %v2564_v19, %v7127_v45  ;;  %v2662_v37 = vsel %vm2422_vm14, %v2659_v10, %v2619_v30  ;;  %v2661_v30 = vsel %vm2422_vm14, %v2658_v14, %v7152_v1  ;;  %v7240_v14 = vld [vmem:[%s8547_s23] sm:$0xff] }
 0x516   :  { %v2666_v8 = vsel %vm2574_vm0, %v2663_v5, %v2630_v18 }
 0x517   :  { %v2669_v11 = vsel %vm2578_vm1, %v2666_v8, %v2639_v26 }
 0x518   :  { %v2672_v57 = vsel %vm2582_vm2, %v2669_v11, %v2648_v41  ;;  %v7287_v11 = vld [vmem:[%s8548_s22 + $0x18] sm:$0xff] }
 0x519   :  { %v2690_v41 = vmul.f32 %v7108_v32, %v2672_v57  ;;  %8550 = vst [vmem:[#allocation37_spill] sm:$0xff] %v7287_v11 }
 0x536   :  { %v2553_v38 = vpop.permute.xlu2 %2552 }
 0x53e   :  { %v2501_v31 = vpop.permute.xlu2 %2500 }
 0x546   :  { %v2528_v27 = vpop.permute.xlu2 %2527 }
 0x54d   :  { %v2499_v36 = vpop.permute.xlu0 %2498  ;;  %v2508_v25 = vpop.permute.xlu1 %2507 }
 0x54e   :  { %v2561_v20 = vsel %vm2559_vm15, %v7076_v61, %v2499_v36  ;;  %v2562_v61 = vsel %vm2559_vm15, %v7084_v58, %v2501_v31  ;;  %v2571_v58 = vsel %vm2422_vm14, %v2568_v62, %v7146_v44  ;;  %v2664_v44 = vsel %vm2574_vm0, %v2661_v30, %v7116_v52  ;;  %v2551_v36 = vpop.permute.xlu2 %2550  ;;  %v7302_v30 = vld [vmem:[%s8546_s14 + $0x10] sm:$0xff] }
 0x54f   :  { %v2565_v23 = vsel %vm2563_vm12, %v2561_v20, %v2508_v25  ;;  %v2665_v20 = vsel %vm2574_vm0, %v2662_v37, %v2628_v29  ;;  %v7264_v37 = vld [vmem:[%s8548_s22 + $0x8] sm:$0xff] }
 0x550   :  { %v2668_v18 = vsel %vm2578_vm1, %v2665_v20, %v2637_v43  ;;  %v2699_v43 = vmul.f32 %v2672_v57, %v6824_v35  ;;  %v7284_v20 = vld [vmem:[%s8547_s23 + $0x18] sm:$0xff] }
 0x551   :  { %v2671_v51 = vsel %vm2582_vm2, %v2668_v18, %v7156_v48  ;;  %8549 = vst [vmem:[#allocation36_spill] sm:$0xff] %v7284_v20  ;;  %v7305_v18 = vld [vmem:[%s8546_s14 + $0x8] sm:$0xff] }
 0x555   :  { %v2517_v13 = vpop.permute.xlu0 %2516  ;;  %v2510_v47 = vpop.permute.xlu1 %2509 }
 0x556   :  { %v2569_v42 = vsel %vm2567_vm13, %v2565_v23, %v2517_v13  ;;  %v2566_v55 = vsel %vm2563_vm12, %v2562_v61, %v2510_v47  ;;  %v2689_v47 = vmul.f32 %v7118_v28, %v2671_v51  ;;  %v7243_v61 = vld [vmem:[%s8548_s22] sm:$0xff] }
 0x55d   :  { %v2526_v6 = vpop.permute.xlu0 %2525  ;;  %v2519_v53 = vpop.permute.xlu1 %2518 }
 0x55e   :  { %v2572_v21 = vsel %vm2422_vm14, %v2569_v42, %v2526_v6  ;;  %v2570_v45 = vsel %vm2567_vm13, %v2566_v55, %v2519_v53  ;;  %v7247_v42 = vld [vmem:[%s8546_s14 + $0x20] sm:$0xff]  ;;  %v7274_v55 = vld [vmem:[%s8547_s23 + $0x10] sm:$0xff] }
 0x55f   :  { %v2573_v29 = vsel %vm2422_vm14, %v2570_v45, %v2528_v27  ;;  %v7293_v45 = vpop.f32.mrf.mxu3 }
 0x560   :  { %8551 = vst [vmem:[#allocation38_spill] sm:$0xff] %v7293_v45 }
 0x565   :  { %v2535_v7 = vpop.permute.xlu0 %2534  ;;  %v2537_v15 = vpop.permute.xlu1 %2536 }
 0x566   :  { %v2576_v17 = vsel %vm2574_vm0, %v2572_v21, %v2535_v7  ;;  %v2577_v26 = vsel %vm2574_vm0, %v2573_v29, %v2537_v15  ;;  %v2575_v7 = vsel %vm2574_vm0, %v2571_v58, %v7139_v24  ;;  %v7277_v21 = vld [vmem:[%s8548_s22 + $0x10] sm:$0xff]  ;;  %v7312_v29 = vld [vmem:[%s8546_s14] sm:$0xff] }
 0x567   :  { %v2579_v48 = vsel %vm2578_vm1, %v2575_v7, %v7154_v16  ;;  %v2336_v7 = vld [vmem:[%s8552_s12] sm:$0x3] }
 0x568   :  { %v2583_v5 = vsel %vm2582_vm2, %v2579_v48, %v2551_v36 }
 0x569   :  { %v2673_v10 = vmul.f32 %v2583_v5, %v7133_v63 }
 0x56d   :  { %v2546_v40 = vpop.permute.xlu1 %2545  ;;  %v2544_v0 = vpop.permute.xlu0 %2543 }
 0x56e   :  { %v2580_v31 = vsel %vm2578_vm1, %v2576_v17, %v2544_v0  ;;  %v2581_v34 = vsel %vm2578_vm1, %v2577_v26, %v2546_v40  ;;  %v7261_v0 = vld [vmem:[%s8547_s23 + $0x8] sm:$0xff]  ;;  %v7295_v17 = vpop.f32.mrf.mxu3 }
 0x56f   :  { %v2584_v53 = vsel %vm2582_vm2, %v2580_v31, %v2553_v38  ;;  %v2698_v38 = vmul.f32 %v2671_v51, %v6817_v39  ;;  %8553 = vst [vmem:[#allocation39_spill] sm:$0xff] %v7295_v17 }
 0x570   :  { %v2674_v25 = vmul.f32 %v2584_v53, %v6817_v39  ;;  %v2695_v24 = vmul.f32 %v7118_v28, %v2584_v53  ;;  %v7227_v28 = vld [vmem:[%s8546_s14 + $0x38] sm:$0xff]  ;;  %v7230_v39 = vld [vmem:[%s8546_s14 + $0x30] sm:$0xff] }
 0x571   :  { %2860 = vmatpush.msra.mxu1 %v7227_v28 }
 0x572   :  { %v2701_v16 = vadd.f32 %v2698_v38, %v2695_v24  ;;  %v2692_v19 = vsub.f32 %v2674_v25, %v2689_v47 }
 0x573   :  { %2861 = vmatpush.msra.mxu1 %v7230_v39 }
 0x575   :  { %v2555_v1 = vpop.permute.xlu1 %2554  ;;  %v2644_v13 = vpop.permute.xlu0 %2643 }
 0x576   :  { %v2585_v15 = vsel %vm2582_vm2, %v2581_v34, %v2555_v1  ;;  %v7297_v31 = vpop.f32.mrf.mxu3 }
 0x577   :  { %v2675_v60 = vmul.f32 %v2585_v15, %v6824_v35  ;;  %v2696_v52 = vmul.f32 %v7108_v32, %v2585_v15  ;;  %v2667_v35 = vsel %vm2578_vm1, %v2664_v44, %v7137_v2  ;;  %v7234_v2 = vld [vmem:[%s8546_s14 + $0x28] sm:$0xff]  ;;  %8554 = vst [vmem:[#allocation40_spill] sm:$0xff] %v7297_v31  ;;  %v2338_v44 = vperm.slane %v2336_v7, 0 }
 0x578   :  { %v2670_v32 = vsel %vm2582_vm2, %v2667_v35, %v2644_v13  ;;  %2862 = vmatpush.msra.mxu1 %v7234_v2  ;;  %v2827_v35 = vpop.f32.mrf.mxu0 }
 0x579   :  { %v2693_v6 = vsub.f32 %v2675_v60, %v2690_v41  ;;  %v2702_v4 = vadd.f32 %v2699_v43, %v2696_v52  ;;  %v2697_v8 = vmul.f32 %v2670_v32, %v7133_v63  ;;  %v7254_v63 = vld [vmem:[%s8546_s14 + $0x18] sm:$0xff]  ;;  %v7324_v51 = vadd.f32 %v7068_v59, %v2338_v44 }
 0x57a   :  { %2863 = vmatpush.msra.mxu1 %v7247_v42  ;;  %v7329_v25 = vadd.f32 %v7070_v49, %v2338_v44  ;;  %v7334_v48 = vadd.f32 %v7072_v56, %v2338_v44  ;;  %v7339_v49 = vadd.f32 %v7074_v33, %v2338_v44 }
 0x57b   :  { %4956 = vmatpush.msk.msra.mxu2 %vm2716_vm3, %v2702_v4  ;;  %4961 = vmatpush.msk.msrb.mxu3 %vm2716_vm3, %v2693_v6 }
 0x57c   :  { %2864 = vmatpush.msra.mxu1 %v7254_v63 }
 0x57d   :  { %v2680_v22 = vpop.permute.xlu1 %2679  ;;  %2734 = vmatpush.msra.mxu2 %v2701_v16  ;;  %2778 = vmatpush.msrb.mxu3 %v2692_v19 }
 0x57e   :  { %v2688_v27 = vmul.f32 %v2680_v22, %v2670_v32  ;;  %v2694_v23 = vmul.f32 %v2680_v22, %v2583_v5  ;;  %v7299_v58 = vpop.f32.mrf.mxu3  ;;  %2865 = vmatpush.msra.mxu1 %v7302_v30  ;;  %v5123_v32 = vld [vmem:[%s8559_s26] ss:$0 sm:$0xff] }
 0x57f   :  { %8555 = vst [vmem:[#allocation41_spill] sm:$0xff] %v7299_v58 }
 0x580   :  { %v2691_v40 = vsub.f32 %v2673_v10, %v2688_v27  ;;  %v2700_v62 = vadd.f32 %v2697_v8, %v2694_v23  ;;  %2866 = vmatpush.msra.mxu1 %v7305_v18  ;;  %v2830_v8 = vpop.f32.mrf.mxu0 }
 0x582   :  { %2735 = vmatpush.msra.mxu2 %v2700_v62  ;;  %2779 = vmatpush.msrb.mxu3 %v2691_v40 }
 0x583   :  { %4957 = vmatmul.msk.f32.vlgmr.msra.gmra.mxu2 %vm2703_vm4, %v7240_v14  ;;  %4962 = vmatmul.msk.f32.vlgmr.msrb.gmra.mxu3 %vm2703_vm4, %v7243_v61 }
 0x584   :  { %5060 = vmatpush.msra.mxu3 %v7227_v28  ;;  %2867 = vmatpush.msra.mxu1 %v7312_v29 }
 0x586   :  { %5061 = vmatpush.msra.mxu3 %v7230_v39  ;;  %v7307_v57 = vpop.f32.mrf.mxu3 }
 0x587   :  { %8556 = vst [vmem:[#allocation42_spill] sm:$0xff] %v7307_v57 }
 0x588   :  { %5062 = vmatpush.msra.mxu3 %v7234_v2 }
 0x58a   :  { %5063 = vmatpush.msra.mxu3 %v7247_v42 }
 0x58b   :  { %4958 = vmatmul.msk.f32.gmra.mxu2 %vm2703_vm4, %v7261_v0  ;;  %4963 = vmatmul.msk.f32.gmra.mxu3 %vm2703_vm4, %v7264_v37 }
 0x58c   :  { %5064 = vmatpush.msra.mxu3 %v7254_v63 }
 0x58e   :  { %5065 = vmatpush.msra.mxu3 %v7302_v30  ;;  %v7318_v26 = vpop.f32.mrf.mxu3 }
 0x58f   :  { %8557 = vst [vmem:[#allocation43_spill] sm:$0xff] %v7318_v26 }
 0x590   :  { %5066 = vmatpush.msra.mxu3 %v7305_v18 }
 0x592   :  { %5067 = vmatpush.msra.mxu3 %v7312_v29 }
 0x593   :  { %4959 = vmatmul.msk.f32.gmra.mxu2 %vm2703_vm4, %v7274_v55  ;;  %4964 = vmatmul.msk.f32.gmra.mxu3 %vm2703_vm4, %v7277_v21 }
 0x596   :  { %v7320_v53 = vpop.f32.mrf.mxu3 }
 0x597   :  { %8558 = vst [vmem:[#allocation44_spill] sm:$0xff] %v7320_v53 }
 0x59b   :  { %4960 = vmatmul.msk.f32.gmra.mxu2 %vm2703_vm4, %v7284_v20  ;;  %4965 = vmatmul.msk.f32.gmra.mxu3 %vm2703_vm4, %v7287_v11 }
 0x606   :  { %v2737_v34 = vpop.f32.mrf.mxu2  ;;  %v2781_v1 = vpop.f32.mrf.mxu3 }
 0x607   :  { %v2782_v41 = vadd.f32 %v2781_v1, %v2737_v34 }
 0x609   :  { %v2793_v43 = vmul.f32 %v2782_v41, %v7324_v51 }
 0x60b   :  { %4970 = vmatmul.msk.f32.vlgmr.msra.gmra.mxu1 %vm8448_vm5, %v2793_v43  ;;  %v2833_v43 = vpop.f32.mrf.mxu0 }
 0x60e   :  { %v2740_v15 = vpop.f32.mrf.mxu2  ;;  %v2784_v36 = vpop.f32.mrf.mxu3 }
 0x60f   :  { %v2785_v24 = vadd.f32 %v2784_v36, %v2740_v15 }
 0x611   :  { %v2794_v60 = vmul.f32 %v2785_v24, %v7329_v25 }
 0x613   :  { %4971 = vmatmul.msk.f32.gmra.mxu1 %vm8448_vm5, %v2794_v60 }
 0x616   :  { %v2743_v52 = vpop.f32.mrf.mxu2  ;;  %v2787_v59 = vpop.f32.mrf.mxu3 }
 0x617   :  { %v2788_v13 = vadd.f32 %v2787_v59, %v2743_v52 }
 0x619   :  { %v2795_v47 = vmul.f32 %v2788_v13, %v7334_v48 }
 0x61b   :  { %4972 = vmatmul.msk.f32.vlgmr.msra.gmra.mxu3 %vm8448_vm5, %v2795_v47 }
 0x61e   :  { %v2746_v38 = vpop.f32.mrf.mxu2  ;;  %v2790_v6 = vpop.f32.mrf.mxu3 }
 0x61f   :  { %v2791_v4 = vadd.f32 %v2790_v6, %v2746_v38 }
 0x621   :  { %v2796_v5 = vmul.f32 %v2791_v4, %v7339_v49  ;;  %v2836_v4 = vpop.f32.mrf.mxu0 }
 0x623   :  { %4973 = vmatmul.msk.f32.gmra.mxu3 %vm8448_vm5, %v2796_v5 }
 0x688   :  { %v2869_v16 = vpop.f32.mrf.mxu1 }
 0x689   :  { %v2870_v56 = vadd.f32 %v2869_v16, %v2827_v35 }
 0x68b   :  { %v7344_v19 = vadd.f32 %v5123_v32, %v2870_v56 }
 0x68d   :  { %v7347_v22 = vmul.f32 0.70710677, %v7344_v19 }
 0x68f   :  { %v7350_v10 = vand.u32 2147483647, %v7347_v22 }
 0x690   :  { %v2872_v33 = vpop.f32.mrf.mxu1 }
 0x691   :  { %v2909_v27 = vmul.f32 0.3275911, %v7350_v10  ;;  %v2873_v23 = vadd.f32 %v2872_v33, %v2830_v8 }
 0x693   :  { %v2913_v40 = vadd.f32 1.0, %v2909_v27  ;;  %v7353_v62 = vadd.f32 %v5123_v32, %v2873_v23 }
 0x695   :  { %5249 = vrcp.f32 %v2913_v40  ;;  %v7356_v7 = vmul.f32 0.70710677, %v7353_v62  ;;  %v2928_v33 = vand.u32 2147483648, %v2913_v40  ;;  %vm2922_vm7 = vweird.f32 %v2913_v40 }
 0x696   :  { %v2926_v27 = vand.u32 2147483647, %v2913_v40 }
 0x697   :  { %v7359_v44 = vand.u32 2147483647, %v7356_v7 }
 0x698   :  { %vm2927_vm11 = vcmp.eq.f32.partialorder %v2926_v27, 8.507059e+37 }
 0x699   :  { %v2910_v34 = vmul.f32 0.3275911, %v7359_v44 }
 0x69b   :  { %v5250_v1 = vpop.eup %5249  ;;  %v2914_v41 = vadd.f32 1.0, %v2910_v34 }
 0x69c   :  { %v2918_v15 = vmul.f32 %v5250_v1, %v2913_v40  ;;  %vm2923_vm6 = vweird.f32 %v5250_v1 }
 0x69d   :  { %5251 = vrcp.f32 %v2914_v41  ;;  %vm2924_vm8 = vmor %vm2922_vm7, %vm2923_vm6  ;;  %vm2937_vm10 = vweird.f32 %v2914_v41 }
 0x69e   :  { %v2919_v36 = vsub.f32 1.0, %v2918_v15  ;;  %v2875_v24 = vpop.f32.mrf.mxu3  ;;  %v2943_v15 = vand.u32 2147483648, %v2914_v41 }
 0x69f   :  { %v2876_v60 = vadd.f32 %v2875_v24, %v2833_v43 }
 0x6a0   :  { %v2920_v59 = vmul.f32 %v5250_v1, %v2919_v36  ;;  %v2941_v36 = vand.u32 2147483647, %v2914_v41 }
 0x6a1   :  { %v7362_v52 = vadd.f32 %v5123_v32, %v2876_v60 }
 0x6a2   :  { %v2921_v16 = vadd.f32 %v5250_v1, %v2920_v59  ;;  %v2929_v59 = vor.u32 1.1754944e-38, %v2928_v33  ;;  %vm2942_vm6 = vcmp.eq.f32.partialorder %v2941_v36, 8.507059e+37 }
 0x6a3   :  { %v5252_v13 = vpop.eup %5251  ;;  %v7365_v47 = vmul.f32 0.70710677, %v7362_v52 }
 0x6a4   :  { %v2933_v38 = vmul.f32 %v5252_v13, %v2914_v41  ;;  %vm2938_vm9 = vweird.f32 %v5252_v13  ;;  %v2925_v24 = vsel %vm2924_vm8, %v5250_v1, %v2921_v16 }
 0x6a5   :  { %v7368_v6 = vand.u32 2147483647, %v7365_v47  ;;  %vm2939_vm5 = vmor %vm2937_vm10, %vm2938_vm9  ;;  %v7379_v40 = vsel %vm2927_vm11, %v2929_v59, %v2925_v24 }
 0x6a6   :  { %v2934_v5 = vsub.f32 1.0, %v2933_v38  ;;  %v2878_v35 = vpop.f32.mrf.mxu3 }
 0x6a7   :  { %v2911_v56 = vmul.f32 0.3275911, %v7368_v6  ;;  %v2879_v8 = vadd.f32 %v2878_v35, %v2836_v4  ;;  %v3015_v57 = vsub.f32 0.0, %v7368_v6 }
 0x6a8   :  { %v2935_v43 = vmul.f32 %v5252_v13, %v2934_v5 }
 0x6a9   :  { %v2915_v23 = vadd.f32 1.0, %v2911_v56  ;;  %v7371_v34 = vadd.f32 %v5123_v32, %v2879_v8  ;;  %v2944_v32 = vor.u32 1.1754944e-38, %v2943_v15  ;;  %v2977_v56 = vmul.f32 1.0614054, %v7379_v40 }
 0x6aa   :  { %v2936_v38 = vadd.f32 %v5252_v13, %v2935_v43 }
 0x6ab   :  { %5253 = vrcp.f32 %v2915_v23  ;;  %v7374_v60 = vmul.f32 0.70710677, %v7371_v34  ;;  %v2981_v45 = vadd.f32 -1.4531521, %v2977_v56  ;;  %v2958_v15 = vand.u32 2147483648, %v2915_v23 }
 0x6ac   :  { %v2940_v5 = vsel %vm2939_vm5, %v5252_v13, %v2936_v38  ;;  %v2956_v36 = vand.u32 2147483647, %v2915_v23  ;;  %vm2952_vm7 = vweird.f32 %v2915_v23 }
 0x6ad   :  { %v7377_v4 = vand.u32 2147483647, %v7374_v60  ;;  %v7382_v1 = vsel %vm2942_vm6, %v2944_v32, %v2940_v5  ;;  %v2985_v59 = vmul.f32 %v2981_v45, %v7379_v40  ;;  %v2959_v53 = vor.u32 1.1754944e-38, %v2958_v15 }
 0x6ae   :  { %v2978_v16 = vmul.f32 1.0614054, %v7382_v1  ;;  %vm2957_vm9 = vcmp.eq.f32.partialorder %v2956_v36, 8.507059e+37  ;;  %v3013_v15 = vsub.f32 0.0, %v7350_v10 }
 0x6af   :  { %v2912_v35 = vmul.f32 0.3275911, %v7377_v4  ;;  %v2989_v56 = vadd.f32 1.4214138, %v2985_v59 }
 0x6b0   :  { %v2982_v27 = vadd.f32 -1.4531521, %v2978_v16 }
 0x6b1   :  { %v5254_v8 = vpop.eup %5253  ;;  %v2916_v41 = vadd.f32 1.0, %v2912_v35 }
 0x6b2   :  { %v2948_v33 = vmul.f32 %v5254_v8, %v2915_v23  ;;  %v2986_v24 = vmul.f32 %v2982_v27, %v7382_v1  ;;  %vm2953_vm5 = vweird.f32 %v5254_v8  ;;  %v3014_v23 = vsub.f32 0.0, %v7359_v44 }
 0x6b3   :  { %5255 = vrcp.f32 %v2916_v41  ;;  %vm2954_vm8 = vmor %vm2952_vm7, %vm2953_vm5  ;;  %v2973_v27 = vand.u32 2147483648, %v2916_v41  ;;  %v2971_v31 = vand.u32 2147483647, %v2916_v41  ;;  %vm2967_vm11 = vweird.f32 %v2916_v41 }
 0x6b4   :  { %v2949_v43 = vsub.f32 1.0, %v2948_v33  ;;  %v2990_v35 = vadd.f32 1.4214138, %v2986_v24  ;;  %vm2899_vm7 = vcmp.ge.f32.partialorder %v7365_v47, 0.0 }
 0x6b5   :  { %vm2972_vm5 = vcmp.eq.f32.partialorder %v2971_v31, 8.507059e+37 }
 0x6b6   :  { %v2950_v13 = vmul.f32 %v5254_v8, %v2949_v43  ;;  %v2994_v45 = vmul.f32 %v2990_v35, %v7382_v1  ;;  %v3016_v35 = vsub.f32 0.0, %v7377_v4 }
 0x6b8   :  { %v2951_v32 = vadd.f32 %v5254_v8, %v2950_v13  ;;  %v2998_v59 = vadd.f32 -0.28449672, %v2994_v45 }
 0x6b9   :  { %v5256_v38 = vpop.eup %5255 }
 0x6ba   :  { %v2963_v5 = vmul.f32 %v5256_v38, %v2916_v41  ;;  %v2955_v26 = vsel %vm2954_vm8, %v5254_v8, %v2951_v32  ;;  %vm2968_vm10 = vweird.f32 %v5256_v38  ;;  %v2993_v8 = vmul.f32 %v2989_v56, %v7379_v40 }
 0x6bb   :  { %v2960_v33 = vsel %vm2957_vm9, %v2959_v53, %v2955_v26  ;;  %v3019_v26 = vmul.f32 %v3015_v57, %v7368_v6  ;;  %vm2969_vm6 = vmor %vm2967_vm11, %vm2968_vm10  ;;  %v2974_v53 = vor.u32 1.1754944e-38, %v2973_v27  ;;  %v3018_v32 = vmul.f32 %v3014_v23, %v7359_v44 }
 0x6bc   :  { %v2964_v16 = vsub.f32 1.0, %v2963_v5  ;;  %v2979_v43 = vmul.f32 1.0614054, %v2960_v33  ;;  %v2997_v41 = vadd.f32 -0.28449672, %v2993_v8  ;;  %v3017_v56 = vmul.f32 %v3013_v15, %v7350_v10 }
 0x6bd   :  { %v3002_v57 = vmul.f32 %v2998_v59, %v7382_v1  ;;  %v3023_v6 = vmul.f32 1.442695, %v3018_v32  ;;  %vm2898_vm8 = vcmp.ge.f32.partialorder %v7356_v7, 0.0  ;;  %vm2900_vm9 = vcmp.ge.f32.partialorder %v7374_v60, 0.0 }
 0x6be   :  { %v2965_v58 = vmul.f32 %v5256_v38, %v2964_v16  ;;  %v2983_v13 = vadd.f32 -1.4531521, %v2979_v43  ;;  %v3025_v43 = vmul.f32 1.442695, %v3019_v26  ;;  %v3001_v44 = vmul.f32 %v2997_v41, %v7379_v40 }
 0x6bf   :  { %v3021_v27 = vmul.f32 1.442695, %v3017_v56  ;;  %vm2897_vm10 = vcmp.ge.f32.partialorder %v7347_v22, 0.0  ;;  %v2902_v47 = vsel %vm2898_vm8, 1.0, %v8513_v46  ;;  %v2892_v7 = vmul.f32 0.5, %v7371_v34 }
 0x6c0   :  { %v2966_v17 = vadd.f32 %v5256_v38, %v2965_v58  ;;  %v2987_v24 = vmul.f32 %v2983_v13, %v2960_v33  ;;  %5257 = vpow2.f32 %v3025_v43  ;;  %v3006_v13 = vadd.f32 0.2548296, %v3002_v57 }
 0x6c1   :  { %5259 = vpow2.f32 %v3023_v6  ;;  %v3005_v26 = vadd.f32 0.2548296, %v3001_v44  ;;  %v2903_v6 = vsel %vm2899_vm7, 1.0, %v8513_v46  ;;  %vm8568_vm11 = vcmask 523264  }
 0x6c2   :  { %v2970_v36 = vsel %vm2969_vm6, %v5256_v38, %v2966_v17  ;;  %v2991_v16 = vadd.f32 1.4214138, %v2987_v24  ;;  %v3020_v17 = vmul.f32 %v3016_v35, %v7377_v4  ;;  %5261 = vpow2.f32 %v3021_v27  ;;  %vm8569_vm6 = vmmov %vm8568_vm11 }
 0x6c3   :  { %v2975_v5 = vsel %vm2972_vm5, %v2974_v53, %v2970_v36  ;;  %v3010_v36 = vmul.f32 %v3006_v13, %v7382_v1  ;;  %v3009_v59 = vmul.f32 %v3005_v26, %v7379_v40  ;;  %v2901_v27 = vsel %vm2897_vm10, 1.0, %v8513_v46  ;;  %vm8570_vm5 = vmmov %vm8569_vm6 }
 0x6c4   :  { %v2980_v58 = vmul.f32 1.0614054, %v2975_v5  ;;  %v2995_v11 = vmul.f32 %v2991_v16, %v2960_v33  ;;  %v3027_v8 = vmul.f32 1.442695, %v3020_v17  ;;  %v2891_v13 = vmul.f32 0.5, %v7362_v52  ;;  %v4990_v52 = vld [vmem:[%s8525_s25 + $0x8] sm:$0xff]  ;;  %vm8571_vm7 = vmmov %vm8570_vm5 }
 0x6c6   :  { %v2984_v20 = vadd.f32 -1.4531521, %v2980_v58  ;;  %v2999_v31 = vadd.f32 -0.28449672, %v2995_v11  ;;  %v5258_v4 = vpop.eup %5257  ;;  %5263 = vpow2.f32 %v3027_v8 }
 0x6c7   :  { %v5260_v32 = vpop.eup %5259 }
 0x6c8   :  { %v2988_v38 = vmul.f32 %v2984_v20, %v2975_v5  ;;  %v3003_v45 = vmul.f32 %v2999_v31, %v2960_v33  ;;  %v3030_v16 = vmul.f32 %v5260_v32, %v3010_v36  ;;  %v5262_v58 = vpop.eup %5261  ;;  %v7416_v36 = vld [vmem:[%s8528_s29] sm:$0xff] }
 0x6c9   :  { %v3029_v43 = vmul.f32 %v5262_v58, %v3009_v59 }
 0x6ca   :  { %v2992_v23 = vadd.f32 1.4214138, %v2988_v38  ;;  %v3007_v10 = vadd.f32 0.2548296, %v3003_v45  ;;  %v2904_v38 = vsel %vm2900_vm9, 1.0, %v8513_v46 }
 0x6cb   :  { %v3033_v31 = vsub.f32 1.0, %v3029_v43 }
 0x6cc   :  { %v2996_v15 = vmul.f32 %v2992_v23, %v2975_v5  ;;  %v3011_v53 = vmul.f32 %v3007_v10, %v2960_v33  ;;  %v5264_v57 = vpop.eup %5263  ;;  %v3034_v33 = vsub.f32 1.0, %v3030_v16  ;;  %v2890_v10 = vmul.f32 0.5, %v7353_v62  ;;  %v7421_v62 = vld [vmem:[%s8536_s6] sm:$0xff] }
 0x6cd   :  { %v3037_v23 = vmul.f32 %v3033_v31, %v2901_v27 }
 0x6ce   :  { %v3000_v24 = vadd.f32 -0.28449672, %v2996_v15  ;;  %v3031_v11 = vmul.f32 %v5258_v4, %v3011_v53  ;;  %v3038_v44 = vmul.f32 %v3034_v33, %v2902_v47  ;;  %v2889_v53 = vmul.f32 0.5, %v7344_v19  ;;  %v7432_v19 = vld [vmem:[%s8536_s6 + $0x8] sm:$0xff] }
 0x6cf   :  { %v3041_v26 = vadd.f32 1.0, %v3037_v23 }
 0x6d0   :  { %v3004_v20 = vmul.f32 %v3000_v24, %v2975_v5  ;;  %v3035_v56 = vsub.f32 1.0, %v3031_v11  ;;  %v3042_v8 = vadd.f32 1.0, %v3038_v44  ;;  %v7546_v11 = vpop.permute.xlu1 %3283 }
 0x6d1   :  { %v3045_v24 = vmul.f32 %v3041_v26, %v2889_v53 }
 0x6d2   :  { %v3008_v35 = vadd.f32 0.2548296, %v3004_v20  ;;  %v3039_v17 = vmul.f32 %v3035_v56, %v2903_v6  ;;  %v3046_v34 = vmul.f32 %v3042_v8, %v2890_v10  ;;  %v7544_v20 = vpop.permute.xlu0 %3285  ;;  %v8560_v56 = vld [vmem:[#allocation27_spill] sm:$0xff] }
 0x6d4   :  { %v3012_v41 = vmul.f32 %v3008_v35, %v2975_v5  ;;  %v3043_v45 = vadd.f32 1.0, %v3039_v17 }
 0x6d6   :  { %v3032_v1 = vmul.f32 %v5264_v57, %v3012_v41  ;;  %v3047_v15 = vmul.f32 %v3043_v45, %v2891_v13  ;;  %v8561_v57 = vld [vmem:[#allocation30_spill] sm:$0xff]  ;;  %v8563_v45 = vld [vmem:[#allocation29_spill] sm:$0xff] }
 0x6d8   :  { %v3036_v40 = vsub.f32 1.0, %v3032_v1 }
 0x6da   :  { %v3040_v5 = vmul.f32 %v3036_v40, %v2904_v38 }
 0x6dc   :  { %v3044_v60 = vadd.f32 1.0, %v3040_v5 }
 0x6de   :  { %v3048_v22 = vmul.f32 %v3044_v60, %v2892_v7 }
 0x6e0   :  { %3061 = vmatpush.msrb.mxu2 %v3048_v22  ;;  %3087 = vmatpush.msrb.mxu3 %v3048_v22 }
 0x6e2   :  { %3062 = vmatpush.msrb.mxu2 %v3047_v15  ;;  %3088 = vmatpush.msrb.mxu3 %v3047_v15 }
 0x6e4   :  { %3063 = vmatpush.msrb.mxu2 %v3046_v34  ;;  %3089 = vmatpush.msrb.mxu3 %v3046_v34 }
 0x6e6   :  { %3064 = vmatpush.msrb.mxu2 %v3045_v24  ;;  %3090 = vmatpush.msrb.mxu3 %v3045_v24 }
 0x6e7   :  { %4974 = vmatmul.msk.f32.vlgmr.msrb.gmra.mxu2 %vm2422_vm14, %v7416_v36  ;;  %4977 = vmatmul.msk.f32.vlgmr.msrb.gmra.mxu3 %vm2422_vm14, %v7421_v62 }
 0x6e8   :  { %3418 = vmatpush.msra.mxu2 %v4990_v52  ;;  %3452 = vmatpush.msra.mxu3 %v7227_v28  ;;  %v7443_v28 = vld [vmem:[%s8536_s6 + $0x10] sm:$0x3] }
 0x6ea   :  { %3453 = vmatpush.msra.mxu3 %v7230_v39 }
 0x6ec   :  { %3454 = vmatpush.msra.mxu3 %v7234_v2 }
 0x6ee   :  { %3455 = vmatpush.msra.mxu3 %v7247_v42 }
 0x6ef   :  { %4975 = vmatmul.msk.f32.gmra.mxu2 %vm2422_vm14, %v7049_v50  ;;  %4978 = vmatmul.msk.f32.gmra.mxu3 %vm2422_vm14, %v7432_v19 }
 0x6f0   :  { %3456 = vmatpush.msra.mxu3 %v7254_v63 }
 0x6f2   :  { %3457 = vmatpush.msra.mxu3 %v7302_v30 }
 0x6f4   :  { %3458 = vmatpush.msra.mxu3 %v7305_v18 }
 0x6f6   :  { %3459 = vmatpush.msra.mxu3 %v7312_v29  ;;  %v1572_v29 = vadd.f32 %v7060_v54, %v7125_v3 }
 0x6f7   :  { %4976 = vmatmul.msk.f32.gmra.mxu2 %vm2422_vm14, %v7056_v12  ;;  %4979 = vmatmul.msk.f32.gmra.mxu3 %vm2422_vm14, %v7443_v28 }
 0x6f8   :  { %v7536_v4 = vadd.f32 %v7100_v9, %v1572_v29  ;;  %v7556_v9 = vld [vmem:[%s8530_s3] sm:$0xf] }
 0x6f9   :  { %v7559_v3 = vperm.slane %v7556_v9, 2 }
 0x6fb   :  { %v1630_v43 = vadd.f32 %v8560_v56, %v7559_v3 }
 0x6ff   :  { %4991 = vmatmul.msk.f32.vlgmr.msra.gmra.mxu2 %vm2559_vm15, %v3045_v24 }
 0x707   :  { %4992 = vmatmul.msk.f32.gmra.mxu2 %vm2559_vm15, %v3046_v34 }
 0x70f   :  { %4993 = vmatmul.msk.f32.gmra.mxu2 %vm2559_vm15, %v3047_v15 }
 0x717   :  { %4994 = vmatmul.msk.f32.gmra.mxu2 %vm2559_vm15, %v3048_v22 }
 0x76a   :  { %v3066_v50 = vpop.f32.mrf.mxu2  ;;  %v7451_v39 = vpop.f32.mrf.mxu3 }
 0x76b   :  { %3227 = vrot.lane.b32.xlu0 %v7451_v39, %s5460_s7  ;;  %3218 = vrot.lane.b32.xlu1 %v7451_v39, %s5455_s0 }
 0x76c   :  { %3104 = vrot.lane.b32.xlu2 %v3066_v50, %s5459_s20 }
 0x772   :  { %v7463_v12 = vpop.f32.mrf.mxu2  ;;  %v7470_v2 = vpop.f32.mrf.mxu3 }
 0x773   :  { %3236 = vrot.lane.b32.xlu0 %v7451_v39, %s5462_s16  ;;  %3140 = vrot.lane.b32.xlu1 %v3066_v50, %s5460_s7 }
 0x774   :  { %3191 = vrot.lane.b32.xlu2 %v7451_v39, %s5459_s20 }
 0x77a   :  { %v7478_v42 = vpop.f32.mrf.mxu2  ;;  %v7491_v63 = vpop.f32.mrf.mxu3 }
 0x77b   :  { %3115 = vrot.lane.b32.xlu1 %v7463_v12, %s5451_s15  ;;  %3106 = vrot.lane.b32.xlu0 %v7463_v12, %s5459_s20 }
 0x77c   :  { %3113 = vrot.lane.b32.xlu2 %v3066_v50, %s5451_s15 }
 0x783   :  { %3247 = vrot.lane.b32.xlu1 %v7470_v2, %s5463_s18  ;;  %3202 = vrot.lane.b32.xlu0 %v7470_v2, %s5451_s15 }
 0x784   :  { %3200 = vrot.lane.b32.xlu2 %v7451_v39, %s5451_s15 }
 0x78b   :  { %3124 = vrot.lane.b32.xlu0 %v7463_v12, %s5461_s17  ;;  %3117 = vrot.lane.b32.xlu1 %v7478_v42, %s5451_s15 }
 0x78c   :  { %3122 = vrot.lane.b32.xlu2 %v3066_v50, %s5461_s17 }
 0x793   :  { %3211 = vrot.lane.b32.xlu0 %v7470_v2, %s5461_s17  ;;  %3126 = vrot.lane.b32.xlu1 %v7478_v42, %s5461_s17 }
 0x794   :  { %3209 = vrot.lane.b32.xlu2 %v7451_v39, %s5461_s17 }
 0x79b   :  { %3133 = vrot.lane.b32.xlu0 %v7463_v12, %s5455_s0  ;;  %3222 = vrot.lane.b32.xlu1 %v7491_v63, %s5455_s0 }
 0x79c   :  { %3131 = vrot.lane.b32.xlu2 %v3066_v50, %s5455_s0 }
 0x7a3   :  { %3220 = vrot.lane.b32.xlu0 %v7470_v2, %s5455_s0  ;;  %3144 = vrot.lane.b32.xlu1 %v7478_v42, %s5460_s7 }
 0x7a4   :  { %3149 = vrot.lane.b32.xlu2 %v3066_v50, %s5462_s16 }
 0x7ab   :  { %3142 = vrot.lane.b32.xlu0 %v7463_v12, %s5460_s7  ;;  %3231 = vrot.lane.b32.xlu1 %v7491_v63, %s5460_s7 }
 0x7ac   :  { %3193 = vrot.lane.b32.xlu2 %v7470_v2, %s5459_s20 }
 0x7b3   :  { %3229 = vrot.lane.b32.xlu0 %v7470_v2, %s5460_s7  ;;  %3153 = vrot.lane.b32.xlu1 %v7478_v42, %s5462_s16 }
 0x7b4   :  { %3238 = vrot.lane.b32.xlu2 %v7470_v2, %s5462_s16 }
 0x7bb   :  { %3151 = vrot.lane.b32.xlu0 %v7463_v12, %s5462_s16  ;;  %3240 = vrot.lane.b32.xlu1 %v7491_v63, %s5462_s16 }
 0x7bc   :  { %3160 = vrot.lane.b32.xlu2 %v7463_v12, %s5463_s18 }
 0x7c3   :  { %3195 = vrot.lane.b32.xlu0 %v7491_v63, %s5459_s20  ;;  %3162 = vrot.lane.b32.xlu1 %v7478_v42, %s5463_s18 }
 0x7c4   :  { %3108 = vrot.lane.b32.xlu2 %v7478_v42, %s5459_s20 }
 0x7c6   :  { %v3105_v30 = vpop.permute.xlu2 %3104 }
 0x7c7   :  { %v3167_v59 = vsel %vm2559_vm15, %v3066_v50, %v3105_v30 }
 0x7cb   :  { %3213 = vrot.lane.b32.xlu0 %v7491_v63, %s5461_s17  ;;  %3249 = vrot.lane.b32.xlu1 %v7491_v63, %s5463_s18 }
 0x7cc   :  { %3204 = vrot.lane.b32.xlu2 %v7491_v63, %s5451_s15 }
 0x7ce   :  { %v3192_v18 = vpop.permute.xlu2 %3191 }
 0x7cf   :  { %v3254_v58 = vsel %vm2559_vm15, %v7451_v39, %v3192_v18 }
 0x7d3   :  { %3245 = vrot.lane.b32.xlu0 %v7451_v39, %s5463_s18  ;;  %3281 = vrot.lane.b32.xlu1 %v7536_v4, %s5458_s24 }
 0x7d4   :  { %3135 = vrot.lane.b32.xlu2 %v7478_v42, %s5455_s0 }
 0x7d6   :  { %v3114_v32 = vpop.permute.xlu2 %3113 }
 0x7d7   :  { %v3170_v54 = vsel %vm2563_vm12, %v3167_v59, %v3114_v32 }
 0x7db   :  { %3375 = vrot.lane.b32.xlu0 %v7329_v25, %s5458_s24  ;;  %3377 = vrot.lane.b32.xlu1 %v7334_v48, %s5458_s24  ;;  %v7567_v48 = vadd.f32 %v8561_v57, %v1630_v43 }
 0x7dc   :  { %3158 = vrot.lane.b32.xlu2 %v3066_v50, %s5463_s18 }
 0x7dd   :  { %v3228_v35 = vpop.permute.xlu0 %3227  ;;  %v3219_v16 = vpop.permute.xlu1 %3218 }
 0x7de   :  { %v3201_v41 = vpop.permute.xlu2 %3200 }
 0x7df   :  { %v3257_v25 = vsel %vm2563_vm12, %v3254_v58, %v3201_v41 }
 0x7e3   :  { %3878 = vrot.lane.b32.xlu1 %v7567_v48, %s5458_s24 }
 0x7e4   :  { %3373 = vrot.lane.b32.xlu2 %v7324_v51, %s5458_s24  ;;  %v8562_v51 = vld [vmem:[#allocation28_spill] sm:$0xff] }
 0x7e5   :  { %v3237_v1 = vpop.permute.xlu0 %3236  ;;  %v3141_v33 = vpop.permute.xlu1 %3140  ;;  %v1627_v27 = vadd.f32 %v8562_v51, %v7559_v3 }
 0x7e6   :  { %v3123_v6 = vpop.permute.xlu2 %3122 }
 0x7e7   :  { %v3173_v40 = vsel %vm2567_vm13, %v3170_v54, %v3123_v6  ;;  %v7585_v23 = vadd.f32 %v8563_v45, %v1627_v27 }
 0x7ec   :  { %3379 = vrot.lane.b32.xlu2 %v7339_v49, %s5458_s24 }
 0x7ed   :  { %v3116_v17 = vpop.permute.xlu1 %3115  ;;  %v3107_v31 = vpop.permute.xlu0 %3106 }
 0x7ee   :  { %v3210_v38 = vpop.permute.xlu2 %3209  ;;  %v3168_v47 = vsel %vm2559_vm15, %v7463_v12, %v3107_v31 }
 0x7ef   :  { %v3260_v5 = vsel %vm2567_vm13, %v3257_v25, %v3210_v38  ;;  %v3171_v44 = vsel %vm2563_vm12, %v3168_v47, %v3116_v17 }
 0x7f0   :  { %v3263_v7 = vsel %vm2422_vm14, %v3260_v5, %v3219_v16 }
 0x7f1   :  { %v3266_v60 = vsel %vm2574_vm0, %v3263_v7, %v3228_v35 }
 0x7f2   :  { %v7588_v49 = vsel %vm2578_vm1, %v3266_v60, %v3237_v1 }
 0x7f4   :  { %3876 = vrot.lane.b32.xlu2 %v7585_v23, %s5458_s24 }
 0x7f5   :  { %v3248_v13 = vpop.permute.xlu1 %3247  ;;  %v3203_v22 = vpop.permute.xlu0 %3202 }
 0x7f6   :  { %v3132_v8 = vpop.permute.xlu2 %3131 }
 0x7f7   :  { %v3176_v10 = vsel %vm2422_vm14, %v3173_v40, %v3132_v8 }
 0x7f8   :  { %v3179_v15 = vsel %vm2574_vm0, %v3176_v10, %v3141_v33 }
 0x7fd   :  { %v3125_v26 = vpop.permute.xlu0 %3124  ;;  %v3118_v53 = vpop.permute.xlu1 %3117 }
 0x7fe   :  { %v3150_v34 = vpop.permute.xlu2 %3149  ;;  %v3174_v24 = vsel %vm2567_vm13, %v3171_v44, %v3125_v26  ;;  %v8564_v44 = vld [vmem:[#allocation35_spill] sm:$0xff] }
 0x805   :  { %v3212_v52 = vpop.permute.xlu0 %3211  ;;  %v3127_v50 = vpop.permute.xlu1 %3126 }
 0x806   :  { %v3194_v39 = vpop.permute.xlu2 %3193 }
 0x807   :  { %v3255_v16 = vsel %vm2559_vm15, %v7470_v2, %v3194_v39 }
 0x808   :  { %v3258_v58 = vsel %vm2563_vm12, %v3255_v16, %v3203_v22 }
 0x809   :  { %v3261_v56 = vsel %vm2567_vm13, %v3258_v58, %v3212_v52 }
 0x80d   :  { %v3134_v12 = vpop.permute.xlu0 %3133  ;;  %v3223_v30 = vpop.permute.xlu1 %3222 }
 0x80e   :  { %v3239_v18 = vpop.permute.xlu2 %3238  ;;  %v3177_v40 = vsel %vm2422_vm14, %v3174_v24, %v3134_v12 }
 0x815   :  { %v3221_v29 = vpop.permute.xlu0 %3220  ;;  %v3145_v59 = vpop.permute.xlu1 %3144 }
 0x816   :  { %v3161_v32 = vpop.permute.xlu2 %3160  ;;  %v3264_v43 = vsel %vm2422_vm14, %v3261_v56, %v3221_v29  ;;  %v8565_v56 = vld [vmem:[#allocation34_spill] sm:$0xff] }
 0x81d   :  { %v3143_v54 = vpop.permute.xlu0 %3142  ;;  %v3232_v35 = vpop.permute.xlu1 %3231 }
 0x81e   :  { %v3109_v41 = vpop.permute.xlu2 %3108  ;;  %v3180_v2 = vsel %vm2574_vm0, %v3177_v40, %v3143_v54 }
 0x81f   :  { %v3169_v45 = vsel %vm2559_vm15, %v7478_v42, %v3109_v41 }
 0x820   :  { %v3172_v8 = vsel %vm2563_vm12, %v3169_v45, %v3118_v53 }
 0x821   :  { %v3175_v52 = vsel %vm2567_vm13, %v3172_v8, %v3127_v50 }
 0x825   :  { %v3230_v25 = vpop.permute.xlu0 %3229  ;;  %v3154_v57 = vpop.permute.xlu1 %3153 }
 0x826   :  { %v3267_v1 = vsel %vm2574_vm0, %v3264_v43, %v3230_v25  ;;  %v3205_v17 = vpop.permute.xlu2 %3204 }
 0x827   :  { %v3270_v33 = vsel %vm2578_vm1, %v3267_v1, %v3239_v18 }
 0x828   :  { %v3273_v6 = vsel %vm2582_vm2, %v3270_v33, %v3248_v13 }
 0x829   :  { %v3300_v7 = vmul.f32 %v3273_v6, %v8564_v44  ;;  %v3291_v60 = vmul.f32 %v7546_v11, %v3273_v6 }
 0x82d   :  { %v3152_v31 = vpop.permute.xlu0 %3151  ;;  %v3241_v38 = vpop.permute.xlu1 %3240 }
 0x82e   :  { %v3183_v47 = vsel %vm2578_vm1, %v3180_v2, %v3152_v31  ;;  %v3136_v24 = vpop.permute.xlu2 %3135 }
 0x82f   :  { %v3186_v5 = vsel %vm2582_vm2, %v3183_v47, %v3161_v32  ;;  %v3178_v39 = vsel %vm2422_vm14, %v3175_v52, %v3136_v24  ;;  %v3420_v52 = vpop.f32.mrf.mxu2 }
 0x830   :  { %v3276_v51 = vmul.f32 %v3186_v5, %v8564_v44  ;;  %v3297_v27 = vmul.f32 %v7546_v11, %v3186_v5  ;;  %v3181_v18 = vsel %vm2574_vm0, %v3178_v39, %v3145_v59  ;;  %v5124_v39 = vld [vmem:[%s8559_s26 + $0x1] ss:$0 sm:$0xff] }
 0x831   :  { %v3184_v53 = vsel %vm2578_vm1, %v3181_v18, %v3154_v57 }
 0x832   :  { %v3303_v13 = vadd.f32 %v3300_v7, %v3297_v27  ;;  %v3294_v22 = vsub.f32 %v3276_v51, %v3291_v60 }
 0x835   :  { %v3196_v10 = vpop.permute.xlu0 %3195  ;;  %v3163_v26 = vpop.permute.xlu1 %3162 }
 0x836   :  { %v3256_v12 = vsel %vm2559_vm15, %v7491_v63, %v3196_v10  ;;  %v3187_v16 = vsel %vm2582_vm2, %v3184_v53, %v3163_v26  ;;  %v3159_v58 = vpop.permute.xlu2 %3158  ;;  %v3182_v63 = vsel %vm2578_vm1, %v3179_v15, %v3150_v34 }
 0x837   :  { %v3259_v29 = vsel %vm2563_vm12, %v3256_v12, %v3205_v17  ;;  %v3277_v43 = vmul.f32 %v3187_v16, %v8565_v56  ;;  %v3298_v25 = vmul.f32 %v7544_v20, %v3187_v16 }
 0x83d   :  { %v3214_v11 = vpop.permute.xlu0 %3213  ;;  %v3250_v42 = vpop.permute.xlu1 %3249 }
 0x83e   :  { %v3262_v32 = vsel %vm2567_vm13, %v3259_v29, %v3214_v11  ;;  %v3374_v5 = vpop.permute.xlu2 %3373  ;;  %v3423_v29 = vpop.f32.mrf.mxu2 }
 0x83f   :  { %v3265_v54 = vsel %vm2422_vm14, %v3262_v32, %v3223_v30  ;;  %v3185_v30 = vsel %vm2582_vm2, %v3182_v63, %v3159_v58 }
 0x840   :  { %v3268_v50 = vsel %vm2574_vm0, %v3265_v54, %v3232_v35  ;;  %v3275_v34 = vmul.f32 %v3185_v30, %v7536_v4 }
 0x841   :  { %v3271_v41 = vsel %vm2578_vm1, %v3268_v50, %v3241_v38 }
 0x842   :  { %v3274_v59 = vsel %vm2582_vm2, %v3271_v41, %v3250_v42 }
 0x843   :  { %v3292_v1 = vmul.f32 %v7544_v20, %v3274_v59  ;;  %v3301_v57 = vmul.f32 %v3274_v59, %v8565_v56 }
 0x845   :  { %v3295_v33 = vsub.f32 %v3277_v43, %v3292_v1  ;;  %v3304_v6 = vadd.f32 %v3301_v57, %v3298_v25  ;;  %v3246_v35 = vpop.permute.xlu0 %3245  ;;  %v3282_v40 = vpop.permute.xlu1 %3281 }
 0x846   :  { %v3272_v17 = vsel %vm2582_vm2, %v7588_v49, %v3246_v35  ;;  %v3296_v15 = vmul.f32 %v3282_v40, %v3185_v30  ;;  %v8567_v49 = vld [vmem:[#allocation37_spill] sm:$0xff]  ;;  %v3380_v26 = vpop.permute.xlu2 %3379  ;;  %v3426_v63 = vpop.f32.mrf.mxu2 }
 0x847   :  { %v3299_v2 = vmul.f32 %v3272_v17, %v7536_v4  ;;  %v3290_v31 = vmul.f32 %v3282_v40, %v3272_v17  ;;  %4980 = vmatpush.msk.msrb.mxu0 %vm2716_vm3, %v3304_v6  ;;  %4985 = vmatpush.msk.msrb.mxu1 %vm2716_vm3, %v3295_v33  ;;  %v8566_v4 = vld [vmem:[#allocation36_spill] sm:$0xff] }
 0x849   :  { %v3293_v20 = vsub.f32 %v3275_v34, %v3290_v31  ;;  %v3302_v38 = vadd.f32 %v3299_v2, %v3296_v15  ;;  %3322 = vmatpush.msrb.mxu0 %v3303_v13  ;;  %3354 = vmatpush.msrb.mxu1 %v3294_v22 }
 0x84b   :  { %3323 = vmatpush.msrb.mxu0 %v3302_v38  ;;  %3355 = vmatpush.msrb.mxu1 %v3293_v20 }
 0x84c   :  { %4981 = vmatmul.msk.f32.vlgmr.msrb.gmra.mxu0 %vm2703_vm4, %v7240_v14  ;;  %4986 = vmatmul.msk.f32.vlgmr.msrb.gmra.mxu1 %vm2703_vm4, %v7243_v61 }
 0x84d   :  { %v3378_v45 = vpop.permute.xlu1 %3377 }
 0x84e   :  { %v3429_v17 = vpop.f32.mrf.mxu2 }
 0x854   :  { %4982 = vmatmul.msk.f32.gmra.mxu0 %vm2703_vm4, %v7261_v0  ;;  %4987 = vmatmul.msk.f32.gmra.mxu1 %vm2703_vm4, %v7264_v37 }
 0x85c   :  { %4983 = vmatmul.msk.f32.gmra.mxu0 %vm2703_vm4, %v7274_v55  ;;  %4988 = vmatmul.msk.f32.gmra.mxu1 %vm2703_vm4, %v7277_v21  ;;  %v3376_v55 = vpop.permute.xlu0 %3375 }
 0x864   :  { %4984 = vmatmul.msk.f32.gmra.mxu0 %vm2703_vm4, %v8566_v4  ;;  %4989 = vmatmul.msk.f32.gmra.mxu1 %vm2703_vm4, %v8567_v49 }
 0x8c9   :  { %v3325_v14 = vpop.f32.mrf.mxu0  ;;  %v3357_v61 = vpop.f32.mrf.mxu1 }
 0x8ca   :  { %v3358_v47 = vadd.f32 %v3357_v61, %v3325_v14 }
 0x8cc   :  { %v3385_v0 = vmul.f32 %v3374_v5, %v3358_v47 }
 0x8ce   :  { %4995 = vmatmul.msk.f32.vlgmr.msra.gmra.mxu3 %vm8568_vm11, %v3385_v0 }
 0x8d1   :  { %v3328_v37 = vpop.f32.mrf.mxu0  ;;  %v3360_v44 = vpop.f32.mrf.mxu1 }
 0x8d2   :  { %v3361_v51 = vadd.f32 %v3360_v44, %v3328_v37 }
 0x8d4   :  { %v3386_v27 = vmul.f32 %v3376_v55, %v3361_v51 }
 0x8d6   :  { %4996 = vmatmul.msk.f32.gmra.mxu3 %vm8569_vm6, %v3386_v27 }
 0x8d9   :  { %v3331_v21 = vpop.f32.mrf.mxu0  ;;  %v3363_v7 = vpop.f32.mrf.mxu1 }
 0x8da   :  { %v3364_v60 = vadd.f32 %v3363_v7, %v3331_v21 }
 0x8dc   :  { %v3387_v13 = vmul.f32 %v3378_v45, %v3364_v60 }
 0x8de   :  { %4997 = vmatmul.msk.f32.gmra.mxu3 %vm8570_vm5, %v3387_v13 }
 0x8e1   :  { %v3334_v22 = vpop.f32.mrf.mxu0  ;;  %v3366_v8 = vpop.f32.mrf.mxu1 }
 0x8e2   :  { %v3367_v10 = vadd.f32 %v3366_v8, %v3334_v22 }
 0x8e4   :  { %v3388_v24 = vmul.f32 %v3380_v26, %v3367_v10 }
 0x8e6   :  { %4998 = vmatmul.msk.f32.gmra.mxu3 %vm8571_vm7, %v3388_v24 }
 0x951   :  { %v3461_v12 = vpop.f32.mrf.mxu3 }
 0x952   :  { %v3462_v18 = vadd.f32 %v3461_v12, %v3420_v52 }
 0x954   :  { %v7660_v11 = vadd.f32 %v5124_v39, %v3462_v18 }
 0x956   :  { %v7663_v42 = vmul.f32 0.70710677, %v7660_v11 }
 0x958   :  { %v7666_v32 = vand.u32 2147483647, %v7663_v42 }
 0x959   :  { %v3464_v53 = vpop.f32.mrf.mxu3 }
 0x95a   :  { %v3502_v54 = vmul.f32 0.3275911, %v7666_v32  ;;  %v3465_v16 = vadd.f32 %v3464_v53, %v3423_v29 }
 0x95c   :  { %v3506_v50 = vadd.f32 1.0, %v3502_v54  ;;  %v7669_v58 = vadd.f32 %v5124_v39, %v3465_v16 }
 0x95e   :  { %5265 = vrcp.f32 %v3506_v50  ;;  %v7672_v41 = vmul.f32 0.70710677, %v7669_v58  ;;  %v3521_v49 = vand.u32 2147483648, %v3506_v50  ;;  %v3519_v47 = vand.u32 2147483647, %v3506_v50 }
 0x95f   :  { %vm3515_vm9 = vweird.f32 %v3506_v50 }
 0x960   :  { %v7675_v59 = vand.u32 2147483647, %v7672_v41  ;;  %v3522_v44 = vor.u32 1.1754944e-38, %v3521_v49  ;;  %vm3520_vm11 = vcmp.eq.f32.partialorder %v3519_v47, 8.507059e+37 }
 0x961   :  { %v3467_v56 = vpop.f32.mrf.mxu3 }
 0x962   :  { %v3503_v43 = vmul.f32 0.3275911, %v7675_v59  ;;  %v3468_v25 = vadd.f32 %v3467_v56, %v3426_v63 }
 0x964   :  { %v5266_v1 = vpop.eup %5265  ;;  %v3507_v57 = vadd.f32 1.0, %v3503_v43  ;;  %v7678_v30 = vadd.f32 %v5124_v39, %v3468_v25 }
 0x965   :  { %v3511_v33 = vmul.f32 %v5266_v1, %v3506_v50  ;;  %vm3516_vm8 = vweird.f32 %v5266_v1 }
 0x966   :  { %5267 = vrcp.f32 %v3507_v57  ;;  %v7681_v6 = vmul.f32 0.70710677, %v7678_v30  ;;  %vm3517_vm10 = vmor %vm3515_vm9, %vm3516_vm8  ;;  %v3536_v21 = vand.u32 2147483648, %v3507_v57  ;;  %v3534_v60 = vand.u32 2147483647, %v3507_v57 }
 0x967   :  { %v3512_v35 = vsub.f32 1.0, %v3511_v33  ;;  %vm3530_vm5 = vweird.f32 %v3507_v57 }
 0x968   :  { %v7684_v40 = vand.u32 2147483647, %v7681_v6  ;;  %v3537_v26 = vor.u32 1.1754944e-38, %v3536_v21  ;;  %vm3535_vm8 = vcmp.eq.f32.partialorder %v3534_v60, 8.507059e+37 }
 0x969   :  { %v3470_v15 = vpop.f32.mrf.mxu3  ;;  %v3513_v31 = vmul.f32 %v5266_v1, %v3512_v35 }
 0x96a   :  { %v3504_v34 = vmul.f32 0.3275911, %v7684_v40  ;;  %v3471_v2 = vadd.f32 %v3470_v15, %v3429_v17 }
 0x96b   :  { %v3514_v61 = vadd.f32 %v5266_v1, %v3513_v31 }
 0x96c   :  { %v5268_v20 = vpop.eup %5267  ;;  %v3508_v38 = vadd.f32 1.0, %v3504_v34  ;;  %v7687_v4 = vadd.f32 %v5124_v39, %v3471_v2  ;;  %v3608_v34 = vsub.f32 0.0, %v7684_v40 }
 0x96d   :  { %v3526_v14 = vmul.f32 %v5268_v20, %v3507_v57  ;;  %v3518_v51 = vsel %vm3517_vm10, %v5266_v1, %v3514_v61  ;;  %vm3531_vm6 = vweird.f32 %v5268_v20 }
 0x96e   :  { %5269 = vrcp.f32 %v3508_v38  ;;  %v7690_v5 = vmul.f32 0.70710677, %v7687_v4  ;;  %v7696_v7 = vsel %vm3520_vm11, %v3522_v44, %v3518_v51  ;;  %vm3532_vm7 = vmor %vm3530_vm5, %vm3531_vm6  ;;  %v3551_v18 = vand.u32 2147483648, %v3508_v38 }
 0x96f   :  { %v3527_v0 = vsub.f32 1.0, %v3526_v14  ;;  %v3570_v45 = vmul.f32 1.0614054, %v7696_v7  ;;  %v3549_v54 = vand.u32 2147483647, %v3508_v38  ;;  %vm3545_vm10 = vweird.f32 %v3508_v38 }
 0x970   :  { %v7693_v37 = vand.u32 2147483647, %v7690_v5  ;;  %v3552_v25 = vor.u32 1.1754944e-38, %v3551_v18  ;;  %v3607_v14 = vsub.f32 0.0, %v7675_v59  ;;  %v3606_v44 = vsub.f32 0.0, %v7666_v32 }
 0x971   :  { %v3528_v27 = vmul.f32 %v5268_v20, %v3527_v0  ;;  %v3574_v39 = vadd.f32 -1.4531521, %v3570_v45  ;;  %vm3550_vm6 = vcmp.eq.f32.partialorder %v3549_v54, 8.507059e+37  ;;  %v3612_v51 = vmul.f32 %v3608_v34, %v7684_v40 }
 0x972   :  { %v3505_v55 = vmul.f32 0.3275911, %v7693_v37  ;;  %v3611_v45 = vmul.f32 %v3607_v14, %v7675_v59 }
 0x973   :  { %v3529_v8 = vadd.f32 %v5268_v20, %v3528_v27  ;;  %v3578_v50 = vmul.f32 %v3574_v39, %v7696_v7 }
 0x974   :  { %v5270_v13 = vpop.eup %5269  ;;  %v3509_v22 = vadd.f32 1.0, %v3505_v55 }
 0x975   :  { %v3541_v10 = vmul.f32 %v5270_v13, %v3508_v38  ;;  %v3533_v52 = vsel %vm3532_vm7, %v5268_v20, %v3529_v8  ;;  %vm3546_vm9 = vweird.f32 %v5270_v13  ;;  %v3582_v15 = vadd.f32 1.4214138, %v3578_v50 }
 0x976   :  { %5271 = vrcp.f32 %v3509_v22  ;;  %v7699_v12 = vsel %vm3535_vm8, %v3537_v26, %v3533_v52  ;;  %vm3547_vm11 = vmor %vm3545_vm10, %vm3546_vm9  ;;  %v3566_v2 = vand.u32 2147483648, %v3509_v22  ;;  %v3564_v49 = vand.u32 2147483647, %v3509_v22 }
 0x977   :  { %v3542_v24 = vsub.f32 1.0, %v3541_v10  ;;  %v3571_v29 = vmul.f32 1.0614054, %v7699_v12  ;;  %vm3560_vm7 = vweird.f32 %v3509_v22  ;;  %v3586_v0 = vmul.f32 %v3582_v15, %v7696_v7 }
 0x978   :  { %v3567_v55 = vor.u32 1.1754944e-38, %v3566_v2  ;;  %vm3565_vm9 = vcmp.eq.f32.partialorder %v3564_v49, 8.507059e+37  ;;  %v3609_v8 = vsub.f32 0.0, %v7693_v37  ;;  %v3618_v52 = vmul.f32 1.442695, %v3612_v51 }
 0x979   :  { %v3543_v53 = vmul.f32 %v5270_v13, %v3542_v24  ;;  %v3575_v16 = vadd.f32 -1.4531521, %v3571_v29  ;;  %v3610_v24 = vmul.f32 %v3606_v44, %v7666_v32  ;;  %v3616_v29 = vmul.f32 1.442695, %v3611_v45 }
 0x97a   :  { %5273 = vpow2.f32 %v3618_v52  ;;  %vm3492_vm10 = vcmp.ge.f32.partialorder %v7681_v6, 0.0 }
 0x97b   :  { %v3544_v56 = vadd.f32 %v5270_v13, %v3543_v53  ;;  %v3579_v1 = vmul.f32 %v3575_v16, %v7699_v12  ;;  %v3613_v53 = vmul.f32 %v3609_v8, %v7693_v37  ;;  %v3614_v50 = vmul.f32 1.442695, %v3610_v24 }
 0x97c   :  { %v5272_v63 = vpop.eup %5271  ;;  %5275 = vpow2.f32 %v3616_v29  ;;  %v3496_v51 = vsel %vm3492_vm10, 1.0, %v8513_v46  ;;  %v3483_v24 = vmul.f32 0.5, %v7669_v58  ;;  %v7740_v58 = vld [vmem:[%s8546_s14 + $0x30] sm:$0xff]  ;;  %v7744_v29 = vld [vmem:[%s8546_s14 + $0x28] sm:$0xff] }
 0x97d   :  { %v3556_v43 = vmul.f32 %v5272_v63, %v3509_v22  ;;  %v3548_v57 = vsel %vm3547_vm11, %v5270_v13, %v3544_v56  ;;  %v3583_v17 = vadd.f32 1.4214138, %v3579_v1  ;;  %vm3561_vm5 = vweird.f32 %v5272_v63 }
 0x97e   :  { %v3553_v35 = vsel %vm3550_vm6, %v3552_v25, %v3548_v57  ;;  %vm3562_vm8 = vmor %vm3560_vm7, %vm3561_vm5  ;;  %v3590_v22 = vadd.f32 -0.28449672, %v3586_v0  ;;  %v3620_v25 = vmul.f32 1.442695, %v3613_v53  ;;  %5277 = vpow2.f32 %v3614_v50  ;;  %v7759_v53 = vld [vmem:[%s8546_s14 + $0x18] sm:$0xff] }
 0x97f   :  { %v3557_v33 = vsub.f32 1.0, %v3556_v43  ;;  %v3572_v31 = vmul.f32 1.0614054, %v3553_v35  ;;  %v3587_v38 = vmul.f32 %v3583_v17, %v7699_v12  ;;  %vm3491_vm11 = vcmp.ge.f32.partialorder %v7672_v41, 0.0  ;;  %v7775_v50 = vld [vmem:[%s8528_s29 + $0x10] sm:$0x3] }
 0x980   :  { %v3594_v59 = vmul.f32 %v3590_v22, %v7696_v7  ;;  %v5274_v37 = vpop.eup %5273  ;;  %5279 = vpow2.f32 %v3620_v25  ;;  %vm3493_vm6 = vcmp.ge.f32.partialorder %v7690_v5, 0.0  ;;  %vm3490_vm5 = vcmp.ge.f32.partialorder %v7663_v42, 0.0 }
 0x981   :  { %v3558_v20 = vmul.f32 %v5272_v63, %v3557_v33  ;;  %v3576_v61 = vadd.f32 -1.4531521, %v3572_v31  ;;  %v3591_v60 = vadd.f32 -0.28449672, %v3587_v38  ;;  %v3495_v6 = vsel %vm3491_vm11, 1.0, %v8513_v46 }
 0x982   :  { %v3598_v57 = vadd.f32 0.2548296, %v3594_v59  ;;  %v3485_v41 = vmul.f32 0.5, %v7687_v4  ;;  %v7771_v59 = vld [vmem:[%s8546_s14] sm:$0xff]  ;;  %vm8581_vm7 = vcmask 523264  }
 0x983   :  { %v3559_v47 = vadd.f32 %v5272_v63, %v3558_v20  ;;  %v3580_v27 = vmul.f32 %v3576_v61, %v3553_v35  ;;  %v3595_v40 = vmul.f32 %v3591_v60, %v7699_v12  ;;  %v5276_v20 = vpop.eup %5275  ;;  %vm8587_vm10 = vmmov %vm8581_vm7 }
 0x984   :  { %v3602_v31 = vmul.f32 %v3598_v57, %v7696_v7  ;;  %v5278_v14 = vpop.eup %5277  ;;  %v8572_v57 = vld [vmem:[#allocation25_spill] sm:$0xff] }
 0x985   :  { %v3563_v21 = vsel %vm3562_vm8, %v5272_v63, %v3559_v47  ;;  %v3584_v10 = vadd.f32 1.4214138, %v3580_v27  ;;  %v3599_v43 = vadd.f32 0.2548296, %v3595_v40  ;;  %v5016_v40 = vld [vmem:[%s8525_s25 + $0x10] sm:$0xff]  ;;  %vm8583_vm8 = vmmov %vm8581_vm7 }
 0x986   :  { %v3568_v13 = vsel %vm3565_vm9, %v3567_v55, %v3563_v21  ;;  %v3622_v0 = vmul.f32 %v5278_v14, %v3602_v31  ;;  %v5280_v44 = vpop.eup %5279  ;;  %v3497_v21 = vsel %vm3493_vm6, 1.0, %v8513_v46  ;;  %v8575_v31 = vld [vmem:[#allocation33_spill] sm:$0xff]  ;;  %vm8585_vm9 = vmmov %vm8581_vm7 }
 0x987   :  { %v3573_v26 = vmul.f32 1.0614054, %v3568_v13  ;;  %v3588_v39 = vmul.f32 %v3584_v10, %v3553_v35  ;;  %v3603_v15 = vmul.f32 %v3599_v43, %v7699_v12 }
 0x988   :  { %v3626_v27 = vsub.f32 1.0, %v3622_v0 }
 0x989   :  { %v3577_v18 = vadd.f32 -1.4531521, %v3573_v26  ;;  %v3592_v54 = vadd.f32 -0.28449672, %v3588_v39  ;;  %v3623_v38 = vmul.f32 %v5276_v20, %v3603_v15  ;;  %v3484_v26 = vmul.f32 0.5, %v7678_v30 }
 0x98b   :  { %v3581_v16 = vmul.f32 %v3577_v18, %v3568_v13  ;;  %v3596_v63 = vmul.f32 %v3592_v54, %v3553_v35  ;;  %v3482_v18 = vmul.f32 0.5, %v7660_v11  ;;  %v7736_v11 = vld [vmem:[%s8546_s14 + $0x38] sm:$0xff]  ;;  %v7763_v54 = vld [vmem:[%s8546_s14 + $0x10] sm:$0xff] }
 0x98d   :  { %v3585_v56 = vadd.f32 1.4214138, %v3581_v16  ;;  %v3600_v32 = vadd.f32 0.2548296, %v3596_v63  ;;  %v7767_v16 = vld [vmem:[%s8546_s14 + $0x8] sm:$0xff] }
 0x98f   :  { %v3589_v1 = vmul.f32 %v3585_v56, %v3568_v13  ;;  %v3604_v33 = vmul.f32 %v3600_v32, %v3553_v35  ;;  %v3627_v35 = vsub.f32 1.0, %v3623_v38  ;;  %v7869_v32 = vpop.permute.xlu2 %3876  ;;  %v8576_v38 = vld [vmem:[#allocation39_spill] sm:$0xff] }
 0x991   :  { %v3593_v17 = vadd.f32 -0.28449672, %v3589_v1  ;;  %v3624_v2 = vmul.f32 %v5274_v37, %v3604_v33  ;;  %v3631_v45 = vmul.f32 %v3627_v35, %v3495_v6  ;;  %v1624_v33 = vadd.f32 %v8572_v57, %v7559_v3 }
 0x992   :  { %v7889_v37 = vperm.slane %v7556_v9, 3 }
 0x993   :  { %v3597_v34 = vmul.f32 %v3593_v17, %v3568_v13  ;;  %v3628_v47 = vsub.f32 1.0, %v3624_v2  ;;  %v3635_v22 = vadd.f32 1.0, %v3631_v45  ;;  %v8573_v17 = vld [vmem:[#allocation26_spill] sm:$0xff]  ;;  %v8574_v2 = vld [vmem:[#allocation32_spill] sm:$0xff] }
 0x994   :  { %v7880_v15 = vadd.f32 %v8573_v17, %v1624_v33  ;;  %v1679_v3 = vadd.f32 %v8574_v2, %v7889_v37  ;;  %v1682_v20 = vadd.f32 %v8575_v31, %v7889_v37 }
 0x995   :  { %v3601_v49 = vadd.f32 0.2548296, %v3597_v34  ;;  %v3632_v55 = vmul.f32 %v3628_v47, %v3496_v51  ;;  %v3639_v4 = vmul.f32 %v3635_v22, %v3483_v24  ;;  %v7891_v34 = vpop.permute.xlu1 %3878 }
 0x996   :  { %v7898_v14 = vadd.f32 %v8576_v38, %v1679_v3 }
 0x997   :  { %v3605_v61 = vmul.f32 %v3601_v49, %v3568_v13  ;;  %v3494_v13 = vsel %vm3490_vm5, 1.0, %v8513_v46  ;;  %v3636_v8 = vadd.f32 1.0, %v3632_v55 }
 0x998   :  { %v3630_v10 = vmul.f32 %v3626_v27, %v3494_v13 }
 0x999   :  { %v3625_v12 = vmul.f32 %v5280_v44, %v3605_v61  ;;  %v3640_v52 = vmul.f32 %v3636_v8, %v3484_v26  ;;  %v8577_v61 = vld [vmem:[#allocation40_spill] sm:$0xff] }
 0x99a   :  { %v3634_v39 = vadd.f32 1.0, %v3630_v10  ;;  %v7901_v47 = vadd.f32 %v8577_v61, %v1682_v20 }
 0x99b   :  { %v3629_v7 = vsub.f32 1.0, %v3625_v12 }
 0x99c   :  { %v3638_v30 = vmul.f32 %v3634_v39, %v3482_v18 }
 0x99d   :  { %v3633_v60 = vmul.f32 %v3629_v7, %v3497_v21 }
 0x99f   :  { %v3637_v5 = vadd.f32 1.0, %v3633_v60 }
 0x9a1   :  { %v3641_v42 = vmul.f32 %v3637_v5, %v3485_v41 }
 0x9a3   :  { %3654 = vmatpush.msra.mxu0 %v3641_v42  ;;  %3680 = vmatpush.msra.mxu1 %v3641_v42 }
 0x9a5   :  { %3655 = vmatpush.msra.mxu0 %v3640_v52  ;;  %3681 = vmatpush.msra.mxu1 %v3640_v52 }
 0x9a7   :  { %3656 = vmatpush.msra.mxu0 %v3639_v4  ;;  %3682 = vmatpush.msra.mxu1 %v3639_v4 }
 0x9a9   :  { %3657 = vmatpush.msra.mxu0 %v3638_v30  ;;  %3683 = vmatpush.msra.mxu1 %v3638_v30 }
 0x9aa   :  { %5000 = vmatmul.msk.f32.vlgmr.msra.gmra.mxu0 %vm2422_vm14, %v7416_v36  ;;  %5003 = vmatmul.msk.f32.vlgmr.msra.gmra.mxu1 %vm2422_vm14, %v7421_v62  ;;  %v7748_v36 = vld [vmem:[%s8546_s14 + $0x20] sm:$0xff]  ;;  %v7752_v62 = vld [vmem:[%s8528_s29 + $0x8] sm:$0xff] }
 0x9ab   :  { %3995 = vmatpush.msrb.mxu0 %v5016_v40  ;;  %4029 = vmatpush.msrb.mxu1 %v7736_v11 }
 0x9ad   :  { %4030 = vmatpush.msrb.mxu1 %v7740_v58 }
 0x9af   :  { %4031 = vmatpush.msrb.mxu1 %v7744_v29 }
 0x9b1   :  { %4032 = vmatpush.msrb.mxu1 %v7748_v36 }
 0x9b2   :  { %5001 = vmatmul.msk.f32.gmra.mxu0 %vm2422_vm14, %v7752_v62  ;;  %5004 = vmatmul.msk.f32.gmra.mxu1 %vm2422_vm14, %v7432_v19 }
 0x9b3   :  { %4033 = vmatpush.msrb.mxu1 %v7759_v53 }
 0x9b5   :  { %4034 = vmatpush.msrb.mxu1 %v7763_v54 }
 0x9b7   :  { %4035 = vmatpush.msrb.mxu1 %v7767_v16 }
 0x9b9   :  { %4036 = vmatpush.msrb.mxu1 %v7771_v59 }
 0x9ba   :  { %5002 = vmatmul.msk.f32.gmra.mxu0 %vm2422_vm14, %v7775_v50  ;;  %5005 = vmatmul.msk.f32.gmra.mxu1 %vm2422_vm14, %v7443_v28 }
 0x9c2   :  { %5017 = vmatmul.msk.f32.vlgmr.msrb.gmra.mxu0 %vm2559_vm15, %v3638_v30 }
 0x9ca   :  { %5018 = vmatmul.msk.f32.gmra.mxu0 %vm2559_vm15, %v3639_v4 }
 0x9d2   :  { %5019 = vmatmul.msk.f32.gmra.mxu0 %vm2559_vm15, %v3640_v52 }
 0x9da   :  { %5020 = vmatmul.msk.f32.gmra.mxu0 %vm2559_vm15, %v3641_v42 }
 0xa27   :  { %v7785_v19 = vpop.f32.mrf.mxu0  ;;  %v7787_v63 = vpop.f32.mrf.mxu1 }
 0xa28   :  { %3820 = vrot.lane.b32.xlu1 %v7787_v63, %s5460_s7  ;;  %3811 = vrot.lane.b32.xlu2 %v7787_v63, %s5455_s0 }
 0xa29   :  { %3697 = vrot.lane.b32.xlu0 %v7785_v19, %s5459_s20 }
 0xa2f   :  { %v7801_v28 = vpop.f32.mrf.mxu0  ;;  %v7809_v56 = vpop.f32.mrf.mxu1 }
 0xa30   :  { %3829 = vrot.lane.b32.xlu1 %v7787_v63, %s5462_s16  ;;  %3733 = vrot.lane.b32.xlu2 %v7785_v19, %s5460_s7 }
 0xa31   :  { %3784 = vrot.lane.b32.xlu0 %v7787_v63, %s5459_s20 }
 0xa37   :  { %v7817_v43 = vpop.f32.mrf.mxu0  ;;  %v7831_v25 = vpop.f32.mrf.mxu1 }
 0xa38   :  { %3708 = vrot.lane.b32.xlu2 %v7801_v28, %s5451_s15  ;;  %3699 = vrot.lane.b32.xlu1 %v7801_v28, %s5459_s20 }
 0xa39   :  { %3706 = vrot.lane.b32.xlu0 %v7785_v19, %s5451_s15 }
 0xa40   :  { %3840 = vrot.lane.b32.xlu2 %v7809_v56, %s5463_s18  ;;  %3795 = vrot.lane.b32.xlu1 %v7809_v56, %s5451_s15 }
 0xa41   :  { %3793 = vrot.lane.b32.xlu0 %v7787_v63, %s5451_s15 }
 0xa48   :  { %3717 = vrot.lane.b32.xlu1 %v7801_v28, %s5461_s17  ;;  %3710 = vrot.lane.b32.xlu2 %v7817_v43, %s5451_s15 }
 0xa49   :  { %3715 = vrot.lane.b32.xlu0 %v7785_v19, %s5461_s17 }
 0xa50   :  { %3804 = vrot.lane.b32.xlu1 %v7809_v56, %s5461_s17  ;;  %3719 = vrot.lane.b32.xlu2 %v7817_v43, %s5461_s17 }
 0xa51   :  { %3802 = vrot.lane.b32.xlu0 %v7787_v63, %s5461_s17 }
 0xa58   :  { %3726 = vrot.lane.b32.xlu1 %v7801_v28, %s5455_s0  ;;  %3815 = vrot.lane.b32.xlu2 %v7831_v25, %s5455_s0 }
 0xa59   :  { %3724 = vrot.lane.b32.xlu0 %v7785_v19, %s5455_s0 }
 0xa60   :  { %3813 = vrot.lane.b32.xlu1 %v7809_v56, %s5455_s0  ;;  %3737 = vrot.lane.b32.xlu2 %v7817_v43, %s5460_s7 }
 0xa61   :  { %3742 = vrot.lane.b32.xlu0 %v7785_v19, %s5462_s16 }
 0xa68   :  { %3735 = vrot.lane.b32.xlu1 %v7801_v28, %s5460_s7  ;;  %3824 = vrot.lane.b32.xlu2 %v7831_v25, %s5460_s7 }
 0xa69   :  { %3786 = vrot.lane.b32.xlu0 %v7809_v56, %s5459_s20 }
 0xa70   :  { %3822 = vrot.lane.b32.xlu1 %v7809_v56, %s5460_s7  ;;  %3746 = vrot.lane.b32.xlu2 %v7817_v43, %s5462_s16 }
 0xa71   :  { %3831 = vrot.lane.b32.xlu0 %v7809_v56, %s5462_s16 }
 0xa78   :  { %3744 = vrot.lane.b32.xlu1 %v7801_v28, %s5462_s16  ;;  %3833 = vrot.lane.b32.xlu2 %v7831_v25, %s5462_s16 }
 0xa79   :  { %3753 = vrot.lane.b32.xlu0 %v7801_v28, %s5463_s18 }
 0xa80   :  { %3788 = vrot.lane.b32.xlu1 %v7831_v25, %s5459_s20  ;;  %3755 = vrot.lane.b32.xlu2 %v7817_v43, %s5463_s18 }
 0xa81   :  { %3701 = vrot.lane.b32.xlu0 %v7817_v43, %s5459_s20 }
 0xa82   :  { %v3812_v1 = vpop.permute.xlu2 %3811 }
 0xa88   :  { %3806 = vrot.lane.b32.xlu1 %v7831_v25, %s5461_s17  ;;  %3842 = vrot.lane.b32.xlu2 %v7831_v25, %s5463_s18 }
 0xa89   :  { %3797 = vrot.lane.b32.xlu0 %v7831_v25, %s5451_s15 }
 0xa8a   :  { %v3734_v49 = vpop.permute.xlu2 %3733 }
 0xa90   :  { %3838 = vrot.lane.b32.xlu1 %v7787_v63, %s5463_s18  ;;  %3874 = vrot.lane.b32.xlu2 %v7880_v15, %s5458_s24 }
 0xa91   :  { %3728 = vrot.lane.b32.xlu0 %v7817_v43, %s5455_s0 }
 0xa92   :  { %v3709_v44 = vpop.permute.xlu2 %3708 }
 0xa98   :  { %4455 = vrot.lane.b32.xlu1 %v7901_v47, %s5458_s24  ;;  %4453 = vrot.lane.b32.xlu2 %v7898_v14, %s5458_s24 }
 0xa99   :  { %3751 = vrot.lane.b32.xlu0 %v7785_v19, %s5463_s18 }
 0xa9a   :  { %v3821_v9 = vpop.permute.xlu1 %3820  ;;  %v3841_v51 = vpop.permute.xlu2 %3840 }
 0xa9b   :  { %v3698_v0 = vpop.permute.xlu0 %3697 }
 0xa9c   :  { %v3760_v55 = vsel %vm2559_vm15, %v7785_v19, %v3698_v0 }
 0xaa2   :  { %v3830_v12 = vpop.permute.xlu1 %3829  ;;  %v3711_v45 = vpop.permute.xlu2 %3710 }
 0xaa3   :  { %v3785_v35 = vpop.permute.xlu0 %3784 }
 0xaa4   :  { %v3847_v41 = vsel %vm2559_vm15, %v7787_v63, %v3785_v35 }
 0xaaa   :  { %v3700_v7 = vpop.permute.xlu1 %3699  ;;  %v3720_v22 = vpop.permute.xlu2 %3719 }
 0xaab   :  { %v3707_v27 = vpop.permute.xlu0 %3706  ;;  %v3761_v21 = vsel %vm2559_vm15, %v7801_v28, %v3700_v7 }
 0xaac   :  { %v3763_v6 = vsel %vm2563_vm12, %v3760_v55, %v3707_v27  ;;  %v3764_v60 = vsel %vm2563_vm12, %v3761_v21, %v3709_v44 }
 0xab2   :  { %v3796_v13 = vpop.permute.xlu1 %3795  ;;  %v3816_v30 = vpop.permute.xlu2 %3815 }
 0xab3   :  { %v3794_v5 = vpop.permute.xlu0 %3793 }
 0xab4   :  { %v3850_v8 = vsel %vm2563_vm12, %v3847_v41, %v3794_v5 }
 0xaba   :  { %v3718_v10 = vpop.permute.xlu1 %3717  ;;  %v3738_v17 = vpop.permute.xlu2 %3737 }
 0xabb   :  { %v3716_v26 = vpop.permute.xlu0 %3715  ;;  %v3767_v42 = vsel %vm2567_vm13, %v3764_v60, %v3718_v10 }
 0xabc   :  { %v3766_v24 = vsel %vm2567_vm13, %v3763_v6, %v3716_v26 }
 0xac2   :  { %v3805_v52 = vpop.permute.xlu1 %3804  ;;  %v3825_v31 = vpop.permute.xlu2 %3824 }
 0xac3   :  { %v3803_v39 = vpop.permute.xlu0 %3802 }
 0xac4   :  { %v3853_v18 = vsel %vm2567_vm13, %v3850_v8, %v3803_v39 }
 0xac5   :  { %v3856_v4 = vsel %vm2422_vm14, %v3853_v18, %v3812_v1 }
 0xac6   :  { %v3859_v40 = vsel %vm2574_vm0, %v3856_v4, %v3821_v9 }
 0xac7   :  { %v3862_v19 = vsel %vm2578_vm1, %v3859_v40, %v3830_v12 }
 0xaca   :  { %v3727_v63 = vpop.permute.xlu1 %3726  ;;  %v3747_v35 = vpop.permute.xlu2 %3746 }
 0xacb   :  { %v3725_v28 = vpop.permute.xlu0 %3724  ;;  %v3770_v55 = vsel %vm2422_vm14, %v3767_v42, %v3727_v63 }
 0xacc   :  { %v3769_v57 = vsel %vm2422_vm14, %v3766_v24, %v3725_v28 }
 0xacd   :  { %v3772_v33 = vsel %vm2574_vm0, %v3769_v57, %v3734_v49 }
 0xad2   :  { %v3814_v2 = vpop.permute.xlu1 %3813  ;;  %v3834_v26 = vpop.permute.xlu2 %3833 }
 0xad3   :  { %v3743_v3 = vpop.permute.xlu0 %3742 }
 0xada   :  { %v3736_v20 = vpop.permute.xlu1 %3735 }
 0xadb   :  { %v3787_v38 = vpop.permute.xlu0 %3786  ;;  %v3773_v27 = vsel %vm2574_vm0, %v3770_v55, %v3736_v20 }
 0xadc   :  { %v3848_v1 = vsel %vm2559_vm15, %v7809_v56, %v3787_v38 }
 0xadd   :  { %v3851_v61 = vsel %vm2563_vm12, %v3848_v1, %v3796_v13 }
 0xade   :  { %v3854_v9 = vsel %vm2567_vm13, %v3851_v61, %v3805_v52 }
 0xadf   :  { %v3857_v12 = vsel %vm2422_vm14, %v3854_v9, %v3814_v2 }
 0xae2   :  { %v3823_v0 = vpop.permute.xlu1 %3822 }
 0xae3   :  { %v3832_v44 = vpop.permute.xlu0 %3831  ;;  %v3860_v49 = vsel %vm2574_vm0, %v3857_v12, %v3823_v0 }
 0xae4   :  { %v3863_v7 = vsel %vm2578_vm1, %v3860_v49, %v3832_v44 }
 0xae5   :  { %v3866_v21 = vsel %vm2582_vm2, %v3863_v7, %v3841_v51  ;;  %v3756_v51 = vpop.permute.xlu2 %3755 }
 0xae6   :  { %v3893_v8 = vmul.f32 %v3866_v21, %v7585_v23  ;;  %v3884_v10 = vmul.f32 %v7869_v32, %v3866_v21 }
 0xaea   :  { %v3745_v56 = vpop.permute.xlu1 %3744 }
 0xaeb   :  { %v3754_v6 = vpop.permute.xlu0 %3753  ;;  %v3776_v60 = vsel %vm2578_vm1, %v3773_v27, %v3745_v56  ;;  %v3775_v27 = vsel %vm2578_vm1, %v3772_v33, %v3743_v3 }
 0xaec   :  { %v3779_v13 = vsel %vm2582_vm2, %v3776_v60, %v3754_v6  ;;  %v7970_v6 = vld [vmem:[%s8547_s23] sm:$0xff] }
 0xaed   :  { %v3869_v41 = vmul.f32 %v3779_v13, %v7585_v23  ;;  %v3890_v5 = vmul.f32 %v7869_v32, %v3779_v13  ;;  %v3843_v20 = vpop.permute.xlu2 %3842  ;;  %v7975_v60 = vld [vmem:[%s8548_s22] sm:$0xff]  ;;  %v7985_v13 = vld [vmem:[%s8548_s22 + $0x8] sm:$0xff] }
 0xaef   :  { %v3896_v42 = vadd.f32 %v3893_v8, %v3890_v5  ;;  %v3887_v24 = vsub.f32 %v3869_v41, %v3884_v10  ;;  %v7990_v41 = vld [vmem:[%s8547_s23 + $0x10] sm:$0xff]  ;;  %v8000_v8 = vld [vmem:[%s8547_s23 + $0x18] sm:$0xff] }
 0xaf0   :  { %v7995_v5 = vld [vmem:[%s8548_s22 + $0x10] sm:$0xff]  ;;  %8578 = vst [vmem:[#allocation27_spill] sm:$0xff] %v8000_v8  ;;  %v8005_v10 = vld [vmem:[%s8548_s22 + $0x18] sm:$0xff] }
 0xaf1   :  { %8579 = vst [vmem:[#allocation30_spill] sm:$0xff] %v8005_v10 }
 0xaf2   :  { %v3789_v52 = vpop.permute.xlu1 %3788 }
 0xaf3   :  { %v3702_v39 = vpop.permute.xlu0 %3701  ;;  %v3849_v4 = vsel %vm2559_vm15, %v7831_v25, %v3789_v52 }
 0xaf4   :  { %v3762_v28 = vsel %vm2559_vm15, %v7817_v43, %v3702_v39  ;;  %v8580_v39 = vld [vmem:[#allocation41_spill] sm:$0xff] }
 0xaf5   :  { %v3765_v2 = vsel %vm2563_vm12, %v3762_v28, %v3711_v45  ;;  %v8582_v28 = vld [vmem:[#allocation42_spill] sm:$0xff] }
 0xaf6   :  { %v3768_v1 = vsel %vm2567_vm13, %v3765_v2, %v3720_v22 }
 0xafa   :  { %v3807_v18 = vpop.permute.xlu1 %3806 }
 0xafb   :  { %v3798_v40 = vpop.permute.xlu0 %3797 }
 0xafc   :  { %v3852_v63 = vsel %vm2563_vm12, %v3849_v4, %v3798_v40 }
 0xafd   :  { %v3855_v23 = vsel %vm2567_vm13, %v3852_v63, %v3807_v18 }
 0xafe   :  { %v3858_v32 = vsel %vm2422_vm14, %v3855_v23, %v3816_v30 }
 0xaff   :  { %v3861_v57 = vsel %vm2574_vm0, %v3858_v32, %v3825_v31 }
 0xb00   :  { %v3864_v38 = vsel %vm2578_vm1, %v3861_v57, %v3834_v26  ;;  %v5336_v26 = vld [vmem:[%s8552_s12] sm:$0x3] }
 0xb01   :  { %v3867_v9 = vsel %vm2582_vm2, %v3864_v38, %v3843_v20  ;;  %v8584_v38 = vld [vmem:[#allocation43_spill] sm:$0xff] }
 0xb02   :  { %v3839_v44 = vpop.permute.xlu1 %3838  ;;  %v3885_v31 = vmul.f32 %v7891_v34, %v3867_v9  ;;  %v3894_v45 = vmul.f32 %v3867_v9, %v7567_v48 }
 0xb03   :  { %v3729_v25 = vpop.permute.xlu0 %3728  ;;  %v3865_v49 = vsel %vm2582_vm2, %v3862_v19, %v3839_v44 }
 0xb04   :  { %v3771_v61 = vsel %vm2422_vm14, %v3768_v1, %v3729_v25 }
 0xb05   :  { %v3774_v43 = vsel %vm2574_vm0, %v3771_v61, %v3738_v17 }
 0xb06   :  { %v3777_v0 = vsel %vm2578_vm1, %v3774_v43, %v3747_v35  ;;  %v3875_v35 = vpop.permute.xlu2 %3874 }
 0xb07   :  { %v3780_v30 = vsel %vm2582_vm2, %v3777_v0, %v3756_v51  ;;  %v8586_v0 = vld [vmem:[#allocation44_spill] sm:$0xff] }
 0xb08   :  { %v3870_v12 = vmul.f32 %v3780_v30, %v7567_v48  ;;  %v3891_v22 = vmul.f32 %v7891_v34, %v3780_v30  ;;  %v3883_v48 = vmul.f32 %v3875_v35, %v3865_v49  ;;  %v3892_v34 = vmul.f32 %v3865_v49, %v7880_v15 }
 0xb0a   :  { %v3888_v7 = vsub.f32 %v3870_v12, %v3885_v31  ;;  %v3897_v55 = vadd.f32 %v3894_v45, %v3891_v22  ;;  %v3997_v45 = vpop.f32.mrf.mxu0  ;;  %v5125_v12 = vld [vmem:[%s8559_s26 + $0x2] ss:$0 sm:$0xff] }
 0xb0b   :  { %v3752_v17 = vpop.permute.xlu0 %3751 }
 0xb0c   :  { %v3778_v21 = vsel %vm2582_vm2, %v3775_v27, %v3752_v17  ;;  %5006 = vmatpush.msk.msrb.mxu2 %vm2716_vm3, %v3897_v55  ;;  %5011 = vmatpush.msk.msrb.mxu3 %vm2716_vm3, %v3888_v7 }
 0xb0d   :  { %v3868_v19 = vmul.f32 %v3778_v21, %v7880_v15  ;;  %v3889_v56 = vmul.f32 %v3875_v35, %v3778_v21  ;;  %v7980_v15 = vld [vmem:[%s8547_s23 + $0x8] sm:$0xff] }
 0xb0e   :  { %3915 = vmatpush.msrb.mxu2 %v3896_v42  ;;  %3947 = vmatpush.msrb.mxu3 %v3887_v24  ;;  %v2339_v42 = vperm.slane %v5336_v26, 1 }
 0xb0f   :  { %v3895_v33 = vadd.f32 %v3892_v34, %v3889_v56  ;;  %v3886_v3 = vsub.f32 %v3868_v19, %v3883_v48 }
 0xb10   :  { %v8011_v51 = vadd.f32 %v8580_v39, %v2339_v42  ;;  %v8016_v23 = vadd.f32 %v8582_v28, %v2339_v42  ;;  %v8021_v1 = vadd.f32 %v8584_v38, %v2339_v42  ;;  %v8026_v44 = vadd.f32 %v8586_v0, %v2339_v42 }
 0xb11   :  { %3916 = vmatpush.msrb.mxu2 %v3895_v33  ;;  %3948 = vmatpush.msrb.mxu3 %v3886_v3 }
 0xb12   :  { %5007 = vmatmul.msk.f32.vlgmr.msrb.gmra.mxu2 %vm2703_vm4, %v7970_v6  ;;  %5012 = vmatmul.msk.f32.vlgmr.msrb.gmra.mxu3 %vm2703_vm4, %v7975_v60  ;;  %v4000_v55 = vpop.f32.mrf.mxu0 }
 0xb1a   :  { %5008 = vmatmul.msk.f32.gmra.mxu2 %vm2703_vm4, %v7980_v15  ;;  %5013 = vmatmul.msk.f32.gmra.mxu3 %vm2703_vm4, %v7985_v13  ;;  %v4003_v33 = vpop.f32.mrf.mxu0 }
 0xb22   :  { %5009 = vmatmul.msk.f32.gmra.mxu2 %vm2703_vm4, %v7990_v41  ;;  %5014 = vmatmul.msk.f32.gmra.mxu3 %vm2703_vm4, %v7995_v5 }
 0xb2a   :  { %5010 = vmatmul.msk.f32.gmra.mxu2 %vm2703_vm4, %v8000_v8  ;;  %5015 = vmatmul.msk.f32.gmra.mxu3 %vm2703_vm4, %v8005_v10 }
 0xb95   :  { %v3918_v24 = vpop.f32.mrf.mxu2  ;;  %v3950_v52 = vpop.f32.mrf.mxu3 }
 0xb96   :  { %v3951_v18 = vadd.f32 %v3950_v52, %v3918_v24 }
 0xb98   :  { %v3962_v4 = vmul.f32 %v3951_v18, %v8011_v51 }
 0xb9a   :  { %5021 = vmatmul.msk.f32.vlgmr.msrb.gmra.mxu1 %vm8581_vm7, %v3962_v4 }
 0xb9d   :  { %v3921_v40 = vpop.f32.mrf.mxu2  ;;  %v3953_v63 = vpop.f32.mrf.mxu3 }
 0xb9e   :  { %v3954_v32 = vadd.f32 %v3953_v63, %v3921_v40 }
 0xba0   :  { %v3963_v57 = vmul.f32 %v3954_v32, %v8016_v23  ;;  %v4006_v32 = vpop.f32.mrf.mxu0 }
 0xba2   :  { %5022 = vmatmul.msk.f32.gmra.mxu1 %vm8583_vm8, %v3963_v57 }
 0xba5   :  { %v3924_v2 = vpop.f32.mrf.mxu2  ;;  %v3956_v20 = vpop.f32.mrf.mxu3 }
 0xba6   :  { %v3957_v25 = vadd.f32 %v3956_v20, %v3924_v2 }
 0xba8   :  { %v3964_v61 = vmul.f32 %v3957_v25, %v8021_v1 }
 0xbaa   :  { %5023 = vmatmul.msk.f32.gmra.mxu1 %vm8585_vm9, %v3964_v61 }
 0xbad   :  { %v3927_v9 = vpop.f32.mrf.mxu2  ;;  %v3959_v43 = vpop.f32.mrf.mxu3 }
 0xbae   :  { %v3960_v30 = vadd.f32 %v3959_v43, %v3927_v9 }
 0xbb0   :  { %v3965_v31 = vmul.f32 %v3960_v30, %v8026_v44 }
 0xbb2   :  { %5024 = vmatmul.msk.f32.gmra.mxu1 %vm8587_vm10, %v3965_v31 }
 0xc17   :  { %v4038_v22 = vpop.f32.mrf.mxu1 }
 0xc18   :  { %v4039_v49 = vadd.f32 %v4038_v22, %v3997_v45 }
 0xc1a   :  { %v8031_v7 = vadd.f32 %v5125_v12, %v4039_v49 }
 0xc1c   :  { %v8034_v27 = vmul.f32 0.70710677, %v8031_v7 }
 0xc1e   :  { %v8037_v17 = vand.u32 2147483647, %v8034_v27 }
 0xc1f   :  { %v4041_v35 = vpop.f32.mrf.mxu1 }
 0xc20   :  { %v4079_v21 = vmul.f32 0.3275911, %v8037_v17  ;;  %v4042_v48 = vadd.f32 %v4041_v35, %v4000_v55 }
 0xc22   :  { %v4083_v34 = vadd.f32 1.0, %v4079_v21  ;;  %v8040_v19 = vadd.f32 %v5125_v12, %v4042_v48 }
 0xc24   :  { %5281 = vrcp.f32 %v4083_v34  ;;  %v8043_v56 = vmul.f32 0.70710677, %v8040_v19  ;;  %v4098_v25 = vand.u32 2147483648, %v4083_v34  ;;  %vm4092_vm6 = vweird.f32 %v4083_v34 }
 0xc25   :  { %v4096_v9 = vand.u32 2147483647, %v4083_v34 }
 0xc26   :  { %v8046_v3 = vand.u32 2147483647, %v8043_v56  ;;  %v4099_v49 = vor.u32 1.1754944e-38, %v4098_v25 }
 0xc27   :  { %v4044_v26 = vpop.f32.mrf.mxu1  ;;  %vm4097_vm7 = vcmp.eq.f32.partialorder %v4096_v9, 8.507059e+37 }
 0xc28   :  { %v4080_v42 = vmul.f32 0.3275911, %v8046_v3  ;;  %v4045_v24 = vadd.f32 %v4044_v26, %v4003_v33 }
 0xc2a   :  { %v5282_v52 = vpop.eup %5281  ;;  %v4084_v39 = vadd.f32 1.0, %v4080_v42  ;;  %v8049_v18 = vadd.f32 %v5125_v12, %v4045_v24 }
 0xc2b   :  { %v4088_v4 = vmul.f32 %v5282_v52, %v4083_v34  ;;  %vm4093_vm11 = vweird.f32 %v5282_v52 }
 0xc2c   :  { %5283 = vrcp.f32 %v4084_v39  ;;  %v8052_v40 = vmul.f32 0.70710677, %v8049_v18  ;;  %vm4094_vm5 = vmor %vm4092_vm6, %vm4093_vm11  ;;  %v4113_v34 = vand.u32 2147483648, %v4084_v39  ;;  %v4111_v33 = vand.u32 2147483647, %v4084_v39 }
 0xc2d   :  { %v4089_v63 = vsub.f32 1.0, %v4088_v4  ;;  %vm4107_vm9 = vweird.f32 %v4084_v39 }
 0xc2e   :  { %v8055_v28 = vand.u32 2147483647, %v8052_v40  ;;  %vm4112_vm11 = vcmp.eq.f32.partialorder %v4111_v33, 8.507059e+37 }
 0xc2f   :  { %v4047_v57 = vpop.f32.mrf.mxu1  ;;  %v4090_v2 = vmul.f32 %v5282_v52, %v4089_v63 }
 0xc30   :  { %v4081_v20 = vmul.f32 0.3275911, %v8055_v28  ;;  %v4048_v38 = vadd.f32 %v4047_v57, %v4006_v32  ;;  %v4114_v32 = vor.u32 1.1754944e-38, %v4113_v34 }
 0xc31   :  { %v4091_v61 = vadd.f32 %v5282_v52, %v4090_v2 }
 0xc32   :  { %v5284_v43 = vpop.eup %5283  ;;  %v4085_v0 = vadd.f32 1.0, %v4081_v20  ;;  %v8058_v30 = vadd.f32 %v5125_v12, %v4048_v38 }
 0xc33   :  { %v4103_v31 = vmul.f32 %v5284_v43, %v4084_v39  ;;  %v4095_v45 = vsel %vm4094_vm5, %v5282_v52, %v4091_v61  ;;  %vm4108_vm8 = vweird.f32 %v5284_v43 }
 0xc34   :  { %5285 = vrcp.f32 %v4085_v0  ;;  %v8061_v22 = vmul.f32 0.70710677, %v8058_v30  ;;  %v8066_v21 = vsel %vm4097_vm7, %v4099_v49, %v4095_v45  ;;  %vm4109_vm10 = vmor %vm4107_vm9, %vm4108_vm8  ;;  %v4128_v38 = vand.u32 2147483648, %v4085_v0 }
 0xc35   :  { %v4104_v55 = vsub.f32 1.0, %v4103_v31  ;;  %v4147_v42 = vmul.f32 1.0614054, %v8066_v21  ;;  %v4126_v39 = vand.u32 2147483647, %v4085_v0  ;;  %vm4122_vm5 = vweird.f32 %v4085_v0 }
 0xc36   :  { %v8064_v35 = vand.u32 2147483647, %v8061_v22 }
 0xc37   :  { %v4105_v48 = vmul.f32 %v5284_v43, %v4104_v55  ;;  %v4151_v20 = vadd.f32 -1.4531521, %v4147_v42  ;;  %vm4127_vm8 = vcmp.eq.f32.partialorder %v4126_v39, 8.507059e+37 }
 0xc38   :  { %v4082_v12 = vmul.f32 0.3275911, %v8064_v35 }
 0xc39   :  { %v4106_v26 = vadd.f32 %v5284_v43, %v4105_v48  ;;  %v4155_v45 = vmul.f32 %v4151_v20, %v8066_v21 }
 0xc3a   :  { %v5286_v24 = vpop.eup %5285  ;;  %v4086_v52 = vadd.f32 1.0, %v4082_v12 }
 0xc3b   :  { %v4118_v4 = vmul.f32 %v5286_v24, %v4085_v0  ;;  %v4110_v63 = vsel %vm4109_vm10, %v5284_v43, %v4106_v26  ;;  %vm4123_vm6 = vweird.f32 %v5286_v24  ;;  %v4129_v43 = vor.u32 1.1754944e-38, %v4128_v38 }
 0xc3c   :  { %5287 = vrcp.f32 %v4086_v52  ;;  %v8070_v2 = vsel %vm4112_vm11, %v4114_v32, %v4110_v63  ;;  %vm4124_vm7 = vmor %vm4122_vm5, %vm4123_vm6  ;;  %v4185_v63 = vsub.f32 0.0, %v8055_v28  ;;  %v4141_v32 = vand.u32 2147483647, %v4086_v52 }
 0xc3d   :  { %v4119_v57 = vsub.f32 1.0, %v4118_v4  ;;  %v4148_v25 = vmul.f32 1.0614054, %v8070_v2  ;;  %v4159_v4 = vadd.f32 1.4214138, %v4155_v45  ;;  %v4184_v38 = vsub.f32 0.0, %v8046_v3 }
 0xc3e   :  { %vm4137_vm10 = vweird.f32 %v4086_v52  ;;  %vm4142_vm6 = vcmp.eq.f32.partialorder %v4141_v32, 8.507059e+37  ;;  %vm4069_vm5 = vcmp.ge.f32.partialorder %v8052_v40, 0.0 }
 0xc3f   :  { %v4120_v61 = vmul.f32 %v5286_v24, %v4119_v57  ;;  %v4152_v9 = vadd.f32 -1.4531521, %v4148_v25  ;;  %v4143_v57 = vand.u32 2147483648, %v4086_v52  ;;  %v4163_v39 = vmul.f32 %v4159_v4, %v8066_v21 }
 0xc41   :  { %v4121_v31 = vadd.f32 %v5286_v24, %v4120_v61  ;;  %v4156_v55 = vmul.f32 %v4152_v9, %v8070_v2  ;;  %v4183_v9 = vsub.f32 0.0, %v8037_v17  ;;  %v4144_v45 = vor.u32 1.1754944e-38, %v4143_v57 }
 0xc42   :  { %v5288_v49 = vpop.eup %5287 }
 0xc43   :  { %v4133_v48 = vmul.f32 %v5288_v49, %v4086_v52  ;;  %v4125_v34 = vsel %vm4124_vm7, %v5286_v24, %v4121_v31  ;;  %v4160_v33 = vadd.f32 1.4214138, %v4156_v55  ;;  %vm4138_vm9 = vweird.f32 %v5288_v49 }
 0xc44   :  { %v4130_v12 = vsel %vm4127_vm8, %v4129_v43, %v4125_v34  ;;  %v4189_v31 = vmul.f32 %v4185_v63, %v8055_v28  ;;  %vm4139_vm11 = vmor %vm4137_vm10, %vm4138_vm9  ;;  %v4188_v34 = vmul.f32 %v4184_v38, %v8046_v3  ;;  %v4187_v4 = vmul.f32 %v4183_v9, %v8037_v17 }
 0xc45   :  { %v4134_v26 = vsub.f32 1.0, %v4133_v48  ;;  %v4149_v42 = vmul.f32 1.0614054, %v4130_v12  ;;  %v4164_v25 = vmul.f32 %v4160_v33, %v8070_v2  ;;  %vm4068_vm7 = vcmp.ge.f32.partialorder %v8043_v56, 0.0 }
 0xc46   :  { %v4193_v63 = vmul.f32 1.442695, %v4188_v34  ;;  %vm4070_vm8 = vcmp.ge.f32.partialorder %v8061_v22, 0.0  ;;  %vm4067_vm9 = vcmp.ge.f32.partialorder %v8034_v27, 0.0  ;;  %v4072_v40 = vsel %vm4068_vm7, 1.0, %v8513_v46 }
 0xc47   :  { %v4135_v0 = vmul.f32 %v5288_v49, %v4134_v26  ;;  %v4153_v20 = vadd.f32 -1.4531521, %v4149_v42  ;;  %v4168_v48 = vadd.f32 -0.28449672, %v4164_v25  ;;  %v4186_v26 = vsub.f32 0.0, %v8064_v35 }
 0xc48   :  { %v4191_v25 = vmul.f32 1.442695, %v4187_v4  ;;  %v4062_v56 = vmul.f32 0.5, %v8058_v30 }
 0xc49   :  { %v4136_v61 = vadd.f32 %v5288_v49, %v4135_v0  ;;  %v4157_v24 = vmul.f32 %v4153_v20, %v4130_v12  ;;  %v4167_v0 = vadd.f32 -0.28449672, %v4163_v39  ;;  %v4195_v20 = vmul.f32 1.442695, %v4189_v31 }
 0xc4a   :  { %v4172_v28 = vmul.f32 %v4168_v48, %v8070_v2 }
 0xc4b   :  { %v4140_v43 = vsel %vm4139_vm11, %v5288_v49, %v4136_v61  ;;  %v4161_v55 = vadd.f32 1.4214138, %v4157_v24  ;;  %v4190_v49 = vmul.f32 %v4186_v26, %v8064_v35  ;;  %v4171_v3 = vmul.f32 %v4167_v0, %v8066_v21 }
 0xc4c   :  { %v4145_v33 = vsel %vm4142_vm6, %v4144_v45, %v4140_v43  ;;  %5289 = vpow2.f32 %v4195_v20  ;;  %v4176_v24 = vadd.f32 0.2548296, %v4172_v28  ;;  %v4073_v28 = vsel %vm4069_vm5, 1.0, %v8513_v46 }
 0xc4d   :  { %v4150_v42 = vmul.f32 1.0614054, %v4145_v33  ;;  %v4165_v52 = vmul.f32 %v4161_v55, %v4130_v12  ;;  %5291 = vpow2.f32 %v4193_v63  ;;  %v4197_v39 = vmul.f32 1.442695, %v4190_v49 }
 0xc4e   :  { %v4175_v31 = vadd.f32 0.2548296, %v4171_v3  ;;  %5293 = vpow2.f32 %v4191_v25  ;;  %v4180_v43 = vmul.f32 %v4176_v24, %v8070_v2  ;;  %v4071_v3 = vsel %vm4067_vm9, 1.0, %v8513_v46 }
 0xc4f   :  { %v4154_v10 = vadd.f32 -1.4531521, %v4150_v42  ;;  %v4169_v8 = vadd.f32 -0.28449672, %v4165_v52  ;;  %5295 = vpow2.f32 %v4197_v39  ;;  %v4060_v39 = vmul.f32 0.5, %v8040_v19  ;;  %v5338_v19 = vld [vmem:[%s8536_s6] sm:$0xff] }
 0xc50   :  { %v4179_v35 = vmul.f32 %v4175_v31, %v8066_v21  ;;  %v4059_v31 = vmul.f32 0.5, %v8031_v7  ;;  %v5339_v7 = vld [vmem:[%s8536_s6 + $0x8] sm:$0xff] }
 0xc51   :  { %v4158_v32 = vmul.f32 %v4154_v10, %v4145_v33  ;;  %v4173_v57 = vmul.f32 %v4169_v8, %v4130_v12 }
 0xc52   :  { %v5290_v55 = vpop.eup %5289 }
 0xc53   :  { %v4162_v38 = vadd.f32 1.4214138, %v4158_v32  ;;  %v4177_v61 = vadd.f32 0.2548296, %v4173_v57  ;;  %v5292_v48 = vpop.eup %5291  ;;  %v4074_v32 = vsel %vm4070_vm8, 1.0, %v8513_v46 }
 0xc54   :  { %v4200_v26 = vmul.f32 %v5292_v48, %v4180_v43  ;;  %v5294_v42 = vpop.eup %5293  ;;  %v5337_v43 = vld [vmem:[%s8528_s29] sm:$0xff] }
 0xc55   :  { %v4166_v17 = vmul.f32 %v4162_v38, %v4145_v33  ;;  %v4181_v9 = vmul.f32 %v4177_v61, %v4130_v12  ;;  %v4199_v12 = vmul.f32 %v5294_v42, %v4179_v35  ;;  %v5296_v4 = vpop.eup %5295  ;;  %v4061_v61 = vmul.f32 0.5, %v8049_v18  ;;  %v5042_v18 = vld [vmem:[%s8525_s25 + $0x18] sm:$0xff]  ;;  %v8220_v35 = vpop.permute.xlu1 %4455 }
 0xc56   :  { %v4204_v20 = vsub.f32 1.0, %v4200_v26 }
 0xc57   :  { %v4170_v45 = vadd.f32 -0.28449672, %v4166_v17  ;;  %v4201_v8 = vmul.f32 %v5290_v55, %v4181_v9  ;;  %v4203_v49 = vsub.f32 1.0, %v4199_v12 }
 0xc58   :  { %v4208_v57 = vmul.f32 %v4204_v20, %v4072_v40 }
 0xc59   :  { %v4174_v10 = vmul.f32 %v4170_v45, %v4145_v33  ;;  %v4205_v0 = vsub.f32 1.0, %v4201_v8  ;;  %v4207_v38 = vmul.f32 %v4203_v49, %v4071_v3 }
 0xc5a   :  { %v4212_v24 = vadd.f32 1.0, %v4208_v57 }
 0xc5b   :  { %v4178_v34 = vadd.f32 0.2548296, %v4174_v10  ;;  %v4209_v63 = vmul.f32 %v4205_v0, %v4073_v28  ;;  %v4211_v9 = vadd.f32 1.0, %v4207_v38  ;;  %v8589_v10 = vld [vmem:[#allocation38_spill] sm:$0xff] }
 0xc5c   :  { %v4216_v30 = vmul.f32 %v4212_v24, %v4060_v39 }
 0xc5d   :  { %v4182_v52 = vmul.f32 %v4178_v34, %v4145_v33  ;;  %v4213_v25 = vadd.f32 1.0, %v4209_v63  ;;  %v4215_v45 = vmul.f32 %v4211_v9, %v4059_v31 }
 0xc5f   :  { %v4202_v2 = vmul.f32 %v5296_v4, %v4182_v52  ;;  %v4217_v17 = vmul.f32 %v4213_v25, %v4061_v61 }
 0xc61   :  { %v4206_v21 = vsub.f32 1.0, %v4202_v2 }
 0xc63   :  { %v4210_v33 = vmul.f32 %v4206_v21, %v4074_v32 }
 0xc65   :  { %v4214_v22 = vadd.f32 1.0, %v4210_v33 }
 0xc67   :  { %v4218_v27 = vmul.f32 %v4214_v22, %v4062_v56 }
 0xc69   :  { %4231 = vmatpush.msra.mxu2 %v4218_v27  ;;  %4257 = vmatpush.msra.mxu3 %v4218_v27 }
 0xc6b   :  { %4232 = vmatpush.msra.mxu2 %v4217_v17  ;;  %4258 = vmatpush.msra.mxu3 %v4217_v17 }
 0xc6d   :  { %4233 = vmatpush.msra.mxu2 %v4216_v30  ;;  %4259 = vmatpush.msra.mxu3 %v4216_v30 }
 0xc6f   :  { %4234 = vmatpush.msra.mxu2 %v4215_v45  ;;  %4260 = vmatpush.msra.mxu3 %v4215_v45 }
 0xc70   :  { %5026 = vmatmul.msk.f32.vlgmr.msra.gmra.mxu2 %vm2422_vm14, %v5337_v43  ;;  %5029 = vmatmul.msk.f32.vlgmr.msra.gmra.mxu3 %vm2422_vm14, %v5338_v19 }
 0xc71   :  { %4588 = vmatpush.msrb.mxu2 %v5042_v18  ;;  %4622 = vmatpush.msrb.mxu3 %v7736_v11  ;;  %v5340_v11 = vld [vmem:[%s8536_s6 + $0x10] sm:$0x3] }
 0xc73   :  { %4623 = vmatpush.msrb.mxu3 %v7740_v58 }
 0xc75   :  { %4624 = vmatpush.msrb.mxu3 %v7744_v29 }
 0xc77   :  { %4625 = vmatpush.msrb.mxu3 %v7748_v36 }
 0xc78   :  { %5027 = vmatmul.msk.f32.gmra.mxu2 %vm2422_vm14, %v7752_v62  ;;  %5030 = vmatmul.msk.f32.gmra.mxu3 %vm2422_vm14, %v5339_v7 }
 0xc79   :  { %4626 = vmatpush.msrb.mxu3 %v7759_v53 }
 0xc7b   :  { %4627 = vmatpush.msrb.mxu3 %v7763_v54 }
 0xc7d   :  { %4628 = vmatpush.msrb.mxu3 %v7767_v16  ;;  %v8201_v16 = vpop.permute.xlu2 %4453 }
 0xc7f   :  { %4629 = vmatpush.msrb.mxu3 %v7771_v59 }
 0xc80   :  { %5028 = vmatmul.msk.f32.gmra.mxu2 %vm2422_vm14, %v7775_v50  ;;  %5031 = vmatmul.msk.f32.gmra.mxu3 %vm2422_vm14, %v5340_v11  ;;  %v8588_v50 = vld [vmem:[#allocation31_spill] sm:$0xff] }
 0xc81   :  { %v1676_v55 = vadd.f32 %v8588_v50, %v7889_v37 }
 0xc83   :  { %v8212_v8 = vadd.f32 %v8589_v10, %v1676_v55 }
 0xc88   :  { %5043 = vmatmul.msk.f32.vlgmr.msrb.gmra.mxu2 %vm2559_vm15, %v4215_v45 }
 0xc90   :  { %5044 = vmatmul.msk.f32.gmra.mxu2 %vm2559_vm15, %v4216_v30 }
 0xc98   :  { %5045 = vmatmul.msk.f32.gmra.mxu2 %vm2559_vm15, %v4217_v17 }
 0xca0   :  { %5046 = vmatmul.msk.f32.gmra.mxu2 %vm2559_vm15, %v4218_v27 }
 0xcf3   :  { %v8126_v58 = vpop.f32.mrf.mxu2  ;;  %v8128_v29 = vpop.f32.mrf.mxu3 }
 0xcf4   :  { %4397 = vrot.lane.b32.xlu1 %v8128_v29, %s5460_s7  ;;  %4388 = vrot.lane.b32.xlu2 %v8128_v29, %s5455_s0 }
 0xcf5   :  { %4274 = vrot.lane.b32.xlu0 %v8126_v58, %s5459_s20 }
 0xcfb   :  { %v4239_v36 = vpop.f32.mrf.mxu2  ;;  %v8146_v62 = vpop.f32.mrf.mxu3 }
 0xcfc   :  { %4406 = vrot.lane.b32.xlu1 %v8128_v29, %s5462_s16  ;;  %4310 = vrot.lane.b32.xlu2 %v8126_v58, %s5460_s7 }
 0xcfd   :  { %4361 = vrot.lane.b32.xlu0 %v8128_v29, %s5459_s20 }
 0xd03   :  { %v8154_v53 = vpop.f32.mrf.mxu2  ;;  %v8167_v54 = vpop.f32.mrf.mxu3 }
 0xd04   :  { %4285 = vrot.lane.b32.xlu2 %v4239_v36, %s5451_s15  ;;  %4276 = vrot.lane.b32.xlu1 %v4239_v36, %s5459_s20 }
 0xd05   :  { %4283 = vrot.lane.b32.xlu0 %v8126_v58, %s5451_s15 }
 0xd0c   :  { %4417 = vrot.lane.b32.xlu2 %v8146_v62, %s5463_s18  ;;  %4372 = vrot.lane.b32.xlu1 %v8146_v62, %s5451_s15 }
 0xd0d   :  { %4370 = vrot.lane.b32.xlu0 %v8128_v29, %s5451_s15 }
 0xd14   :  { %4294 = vrot.lane.b32.xlu1 %v4239_v36, %s5461_s17  ;;  %4287 = vrot.lane.b32.xlu2 %v8154_v53, %s5451_s15 }
 0xd15   :  { %4292 = vrot.lane.b32.xlu0 %v8126_v58, %s5461_s17 }
 0xd1c   :  { %4381 = vrot.lane.b32.xlu1 %v8146_v62, %s5461_s17  ;;  %4296 = vrot.lane.b32.xlu2 %v8154_v53, %s5461_s17 }
 0xd1d   :  { %4379 = vrot.lane.b32.xlu0 %v8128_v29, %s5461_s17 }
 0xd24   :  { %4303 = vrot.lane.b32.xlu1 %v4239_v36, %s5455_s0  ;;  %4392 = vrot.lane.b32.xlu2 %v8167_v54, %s5455_s0 }
 0xd25   :  { %4301 = vrot.lane.b32.xlu0 %v8126_v58, %s5455_s0 }
 0xd2c   :  { %4390 = vrot.lane.b32.xlu1 %v8146_v62, %s5455_s0  ;;  %4314 = vrot.lane.b32.xlu2 %v8154_v53, %s5460_s7 }
 0xd2d   :  { %4319 = vrot.lane.b32.xlu0 %v8126_v58, %s5462_s16 }
 0xd34   :  { %4312 = vrot.lane.b32.xlu1 %v4239_v36, %s5460_s7  ;;  %4401 = vrot.lane.b32.xlu2 %v8167_v54, %s5460_s7 }
 0xd35   :  { %4363 = vrot.lane.b32.xlu0 %v8146_v62, %s5459_s20 }
 0xd3c   :  { %4399 = vrot.lane.b32.xlu1 %v8146_v62, %s5460_s7  ;;  %4323 = vrot.lane.b32.xlu2 %v8154_v53, %s5462_s16 }
 0xd3d   :  { %4408 = vrot.lane.b32.xlu0 %v8146_v62, %s5462_s16 }
 0xd44   :  { %4321 = vrot.lane.b32.xlu1 %v4239_v36, %s5462_s16  ;;  %4410 = vrot.lane.b32.xlu2 %v8167_v54, %s5462_s16 }
 0xd45   :  { %4330 = vrot.lane.b32.xlu0 %v4239_v36, %s5463_s18 }
 0xd4c   :  { %4365 = vrot.lane.b32.xlu1 %v8167_v54, %s5459_s20  ;;  %4332 = vrot.lane.b32.xlu2 %v8154_v53, %s5463_s18 }
 0xd4d   :  { %4278 = vrot.lane.b32.xlu0 %v8154_v53, %s5459_s20 }
 0xd4e   :  { %v4389_v59 = vpop.permute.xlu2 %4388 }
 0xd54   :  { %4383 = vrot.lane.b32.xlu1 %v8167_v54, %s5461_s17  ;;  %4419 = vrot.lane.b32.xlu2 %v8167_v54, %s5463_s18 }
 0xd55   :  { %4374 = vrot.lane.b32.xlu0 %v8167_v54, %s5451_s15  ;;  %s8593_s15 = sld [smem:[#allocation24_spill]] }
 0xd56   :  { %v4311_v48 = vpop.permute.xlu2 %4310 }
 0xd5c   :  { %4415 = vrot.lane.b32.xlu1 %v8128_v29, %s5463_s18  ;;  %4451 = vrot.lane.b32.xlu2 %v8212_v8, %s5458_s24 }
 0xd5d   :  { %4305 = vrot.lane.b32.xlu0 %v8154_v53, %s5455_s0 }
 0xd5e   :  { %v4286_v26 = vpop.permute.xlu2 %4285 }
 0xd64   :  { %4545 = vrot.lane.b32.xlu1 %v8016_v23, %s5458_s24  ;;  %4547 = vrot.lane.b32.xlu2 %v8021_v1, %s5458_s24 }
 0xd65   :  { %4328 = vrot.lane.b32.xlu0 %v8126_v58, %s5463_s18 }
 0xd66   :  { %v4398_v37 = vpop.permute.xlu1 %4397  ;;  %v4418_v0 = vpop.permute.xlu2 %4417 }
 0xd67   :  { %v4275_v34 = vpop.permute.xlu0 %4274 }
 0xd68   :  { %v4337_v23 = vsel %vm2559_vm15, %v8126_v58, %v4275_v34 }
 0xd6d   :  { %4543 = vrot.lane.b32.xlu0 %v8011_v51, %s5458_s24 }
 0xd6e   :  { %v4407_v42 = vpop.permute.xlu1 %4406  ;;  %v4288_v28 = vpop.permute.xlu2 %4287 }
 0xd6f   :  { %v4362_v52 = vpop.permute.xlu0 %4361 }
 0xd70   :  { %v4424_v51 = vsel %vm2559_vm15, %v8128_v29, %v4362_v52 }
 0xd75   :  { %4549 = vrot.lane.b32.xlu0 %v8026_v44, %s5458_s24 }
 0xd76   :  { %v4277_v12 = vpop.permute.xlu1 %4276  ;;  %v4297_v33 = vpop.permute.xlu2 %4296 }
 0xd77   :  { %v4284_v1 = vpop.permute.xlu0 %4283  ;;  %v4338_v4 = vsel %vm2559_vm15, %v4239_v36, %v4277_v12 }
 0xd78   :  { %v4340_v2 = vsel %vm2563_vm12, %v4337_v23, %v4284_v1  ;;  %v4341_v20 = vsel %vm2563_vm12, %v4338_v4, %v4286_v26 }
 0xd7e   :  { %v4373_v21 = vpop.permute.xlu1 %4372  ;;  %v4393_v38 = vpop.permute.xlu2 %4392 }
 0xd7f   :  { %v4371_v63 = vpop.permute.xlu0 %4370 }
 0xd80   :  { %v4427_v49 = vsel %vm2563_vm12, %v4424_v51, %v4371_v63 }
 0xd86   :  { %v4295_v44 = vpop.permute.xlu1 %4294  ;;  %v4315_v31 = vpop.permute.xlu2 %4314 }
 0xd87   :  { %v4293_v32 = vpop.permute.xlu0 %4292  ;;  %v4344_v40 = vsel %vm2567_vm13, %v4341_v20, %v4295_v44 }
 0xd88   :  { %v4343_v57 = vsel %vm2567_vm13, %v4340_v2, %v4293_v32 }
 0xd8e   :  { %v4382_v3 = vpop.permute.xlu1 %4381  ;;  %v4402_v18 = vpop.permute.xlu2 %4401 }
 0xd8f   :  { %v4380_v56 = vpop.permute.xlu0 %4379 }
 0xd90   :  { %v4430_v22 = vsel %vm2567_vm13, %v4427_v49, %v4380_v56 }
 0xd91   :  { %v4433_v25 = vsel %vm2422_vm14, %v4430_v22, %v4389_v59 }
 0xd92   :  { %v4436_v61 = vsel %vm2574_vm0, %v4433_v25, %v4398_v37 }
 0xd93   :  { %v4439_v27 = vsel %vm2578_vm1, %v4436_v61, %v4407_v42 }
 0xd96   :  { %v4304_v24 = vpop.permute.xlu1 %4303  ;;  %v4324_v50 = vpop.permute.xlu2 %4323 }
 0xd97   :  { %v4302_v39 = vpop.permute.xlu0 %4301 }
 0xd98   :  { %v4346_v17 = vsel %vm2422_vm14, %v4343_v57, %v4302_v39 }
 0xd99   :  { %v4349_v9 = vsel %vm2574_vm0, %v4346_v17, %v4311_v48  ;;  %v4347_v48 = vsel %vm2422_vm14, %v4344_v40, %v4304_v24 }
 0xd9e   :  { %v4391_v30 = vpop.permute.xlu1 %4390  ;;  %v4411_v2 = vpop.permute.xlu2 %4410 }
 0xd9f   :  { %v4320_v45 = vpop.permute.xlu0 %4319 }
 0xda6   :  { %v4313_v43 = vpop.permute.xlu1 %4312 }
 0xda7   :  { %v4364_v19 = vpop.permute.xlu0 %4363  ;;  %v4350_v37 = vsel %vm2574_vm0, %v4347_v48, %v4313_v43 }
 0xda8   :  { %v4425_v7 = vsel %vm2559_vm15, %v8146_v62, %v4364_v19 }
 0xda9   :  { %v4428_v11 = vsel %vm2563_vm12, %v4425_v7, %v4373_v21 }
 0xdaa   :  { %v4431_v58 = vsel %vm2567_vm13, %v4428_v11, %v4382_v3 }
 0xdab   :  { %v4434_v59 = vsel %vm2422_vm14, %v4431_v58, %v4391_v30  ;;  %v4352_v58 = vsel %vm2578_vm1, %v4349_v9, %v4320_v45  ;;  %v8591_v9 = vld [vmem:[#allocation30_spill] sm:$0xff] }
 0xdae   :  { %v4400_v29 = vpop.permute.xlu1 %4399 }
 0xdaf   :  { %v4409_v36 = vpop.permute.xlu0 %4408  ;;  %v4437_v55 = vsel %vm2574_vm0, %v4434_v59, %v4400_v29 }
 0xdb0   :  { %v4440_v10 = vsel %vm2578_vm1, %v4437_v55, %v4409_v36 }
 0xdb1   :  { %v4443_v34 = vsel %vm2582_vm2, %v4440_v10, %v4418_v0  ;;  %v4333_v0 = vpop.permute.xlu2 %4332 }
 0xdb2   :  { %v4470_v1 = vmul.f32 %v4443_v34, %v7898_v14  ;;  %v4461_v4 = vmul.f32 %v8201_v16, %v4443_v34 }
 0xdb6   :  { %v4322_v62 = vpop.permute.xlu1 %4321 }
 0xdb7   :  { %v4331_v26 = vpop.permute.xlu0 %4330  ;;  %v4353_v42 = vsel %vm2578_vm1, %v4350_v37, %v4322_v62 }
 0xdb8   :  { %v4356_v52 = vsel %vm2582_vm2, %v4353_v42, %v4331_v26 }
 0xdb9   :  { %v4446_v12 = vmul.f32 %v4356_v52, %v7898_v14  ;;  %v4467_v23 = vmul.f32 %v8201_v16, %v4356_v52  ;;  %v4420_v22 = vpop.permute.xlu2 %4419 }
 0xdbb   :  { %v4473_v20 = vadd.f32 %v4470_v1, %v4467_v23  ;;  %v4464_v21 = vsub.f32 %v4446_v12, %v4461_v4 }
 0xdbe   :  { %v4366_v51 = vpop.permute.xlu1 %4365 }
 0xdbf   :  { %v4279_v63 = vpop.permute.xlu0 %4278  ;;  %v4426_v44 = vsel %vm2559_vm15, %v8167_v54, %v4366_v51  ;;  %v5126_v51 = vld [vmem:[%s8559_s26 + $0x3] ss:$0 sm:$0xff] }
 0xdc0   :  { %v4339_v57 = vsel %vm2559_vm15, %v8154_v53, %v4279_v63 }
 0xdc1   :  { %v4342_v56 = vsel %vm2563_vm12, %v4339_v57, %v4288_v28  ;;  %v4452_v29 = vpop.permute.xlu2 %4451 }
 0xdc2   :  { %v4345_v61 = vsel %vm2567_vm13, %v4342_v56, %v4297_v33 }
 0xdc6   :  { %v4384_v49 = vpop.permute.xlu1 %4383 }
 0xdc7   :  { %v4375_v32 = vpop.permute.xlu0 %4374 }
 0xdc8   :  { %v4429_v40 = vsel %vm2563_vm12, %v4426_v44, %v4375_v32 }
 0xdc9   :  { %v4432_v14 = vsel %vm2567_vm13, %v4429_v40, %v4384_v49  ;;  %v4548_v42 = vpop.permute.xlu2 %4547 }
 0xdca   :  { %v4435_v16 = vsel %vm2422_vm14, %v4432_v14, %v4393_v38 }
 0xdcb   :  { %v4438_v3 = vsel %vm2574_vm0, %v4435_v16, %v4402_v18 }
 0xdcc   :  { %v4441_v25 = vsel %vm2578_vm1, %v4438_v3, %v4411_v2 }
 0xdcd   :  { %v4444_v39 = vsel %vm2582_vm2, %v4441_v25, %v4420_v22 }
 0xdce   :  { %v4416_v30 = vpop.permute.xlu1 %4415  ;;  %v4462_v18 = vmul.f32 %v8220_v35, %v4444_v39  ;;  %v4471_v28 = vmul.f32 %v4444_v39, %v7901_v47 }
 0xdcf   :  { %v4306_v54 = vpop.permute.xlu0 %4305  ;;  %v4442_v19 = vsel %vm2582_vm2, %v4439_v27, %v4416_v30 }
 0xdd0   :  { %v4348_v24 = vsel %vm2422_vm14, %v4345_v61, %v4306_v54  ;;  %v4460_v59 = vmul.f32 %v4452_v29, %v4442_v19  ;;  %vm8592_vm14 = vcmask 523264  }
 0xdd1   :  { %v4351_v53 = vsel %vm2574_vm0, %v4348_v24, %v4315_v31  ;;  %vm8594_vm12 = vmmov %vm8592_vm14  ;;  %v5127_v24 = vld [vmem:[%s5617_s21] ss:$0 sm:$0xff] }
 0xdd2   :  { %v4354_v17 = vsel %vm2578_vm1, %v4351_v53, %v4324_v50  ;;  %v4469_v50 = vmul.f32 %v4442_v19, %v8212_v8  ;;  %vm8595_vm13 = vmmov %vm8594_vm12 }
 0xdd3   :  { %v4357_v38 = vsel %vm2582_vm2, %v4354_v17, %v4333_v0  ;;  %vm8596_vm0 = vmmov %vm8594_vm12 }
 0xdd4   :  { %v4447_v43 = vmul.f32 %v4357_v38, %v7901_v47  ;;  %v4468_v33 = vmul.f32 %v8220_v35, %v4357_v38 }
 0xdd6   :  { %v4465_v7 = vsub.f32 %v4447_v43, %v4462_v18  ;;  %v4474_v11 = vadd.f32 %v4471_v28, %v4468_v33 }
 0xdd7   :  { %v4329_v31 = vpop.permute.xlu0 %4328 }
 0xdd8   :  { %v4355_v36 = vsel %vm2582_vm2, %v4352_v58, %v4329_v31  ;;  %5032 = vmatpush.msk.msra.mxu0 %vm2716_vm3, %v4474_v11  ;;  %5037 = vmatpush.msk.msra.mxu1 %vm2716_vm3, %v4465_v7 }
 0xdd9   :  { %v4445_v47 = vmul.f32 %v4355_v36, %v8212_v8  ;;  %v4466_v35 = vmul.f32 %v4452_v29, %v4355_v36  ;;  %v8590_v8 = vld [vmem:[#allocation27_spill] sm:$0xff] }
 0xdda   :  { %4492 = vmatpush.msra.mxu0 %v4473_v20  ;;  %4524 = vmatpush.msra.mxu1 %v4464_v21  ;;  %v4652_v20 = vld [vmem:[%s8593_s15] sm:$0xff]  ;;  %v4590_v21 = vpop.f32.mrf.mxu2 }
 0xddb   :  { %v4472_v27 = vadd.f32 %v4469_v50, %v4466_v35  ;;  %v4463_v55 = vsub.f32 %v4445_v47, %v4460_v59 }
 0xddd   :  { %4493 = vmatpush.msra.mxu0 %v4472_v27  ;;  %4525 = vmatpush.msra.mxu1 %v4463_v55 }
 0xdde   :  { %5033 = vmatmul.msk.f32.vlgmr.msra.gmra.mxu0 %vm2703_vm4, %v7970_v6  ;;  %5038 = vmatmul.msk.f32.vlgmr.msra.gmra.mxu1 %vm2703_vm4, %v7975_v60 }
 0xddf   :  { %v4544_v10 = vpop.permute.xlu0 %4543  ;;  %4684 = vmatpush.msrb.mxu0 %v4652_v20  ;;  %v4868_v20 = vld [vmem:[%s5622_s8 + $0x50] sm:$0xff] }
 0xde2   :  { %v4593_v44 = vpop.f32.mrf.mxu2 }
 0xde6   :  { %5034 = vmatmul.msk.f32.gmra.mxu0 %vm2703_vm4, %v7980_v15  ;;  %5039 = vmatmul.msk.f32.gmra.mxu1 %vm2703_vm4, %v7985_v13 }
 0xde7   :  { %v4550_v4 = vpop.permute.xlu0 %4549 }
 0xdea   :  { %v4596_v14 = vpop.f32.mrf.mxu2 }
 0xdee   :  { %5035 = vmatmul.msk.f32.gmra.mxu0 %vm2703_vm4, %v7990_v41  ;;  %5040 = vmatmul.msk.f32.gmra.mxu1 %vm2703_vm4, %v7995_v5  ;;  %v4546_v41 = vpop.permute.xlu1 %4545 }
 0xdf2   :  { %v4599_v22 = vpop.f32.mrf.mxu2 }
 0xdf6   :  { %5036 = vmatmul.msk.f32.gmra.mxu0 %vm2703_vm4, %v8590_v8  ;;  %5041 = vmatmul.msk.f32.gmra.mxu1 %vm2703_vm4, %v8591_v9  ;;  %v4873_v8 = vld [vmem:[%s5622_s8 + $0x78] sm:$0xff]  ;;  %v4872_v9 = vld [vmem:[%s5622_s8 + $0x70] sm:$0xff] }
 0xdf7   :  { %4878 = vmatpush.msrb.mxu1 %v4873_v8 }
 0xdf9   :  { %4879 = vmatpush.msrb.mxu1 %v4872_v9  ;;  %v4862_v9 = vld [vmem:[%s5622_s8 + $0x20] sm:$0xff] }
 0xe5b   :  { %v4495_v6 = vpop.f32.mrf.mxu0  ;;  %v4527_v60 = vpop.f32.mrf.mxu1 }
 0xe5c   :  { %v4528_v45 = vadd.f32 %v4527_v60, %v4495_v6 }
 0xe5e   :  { %v4555_v15 = vmul.f32 %v4544_v10, %v4528_v45  ;;  %v4871_v10 = vld [vmem:[%s5622_s8 + $0x68] sm:$0xff] }
 0xe5f   :  { %4880 = vmatpush.msrb.mxu1 %v4871_v10 }
 0xe60   :  { %5047 = vmatmul.msk.f32.vlgmr.msrb.gmra.mxu3 %vm8592_vm14, %v4555_v15 }
 0xe63   :  { %v4498_v13 = vpop.f32.mrf.mxu0  ;;  %v4530_v48 = vpop.f32.mrf.mxu1 }
 0xe64   :  { %v4531_v37 = vadd.f32 %v4530_v48, %v4498_v13 }
 0xe66   :  { %v4556_v34 = vmul.f32 %v4546_v41, %v4531_v37 }
 0xe68   :  { %5048 = vmatmul.msk.f32.gmra.mxu3 %vm8594_vm12, %v4556_v34 }
 0xe6b   :  { %v4501_v5 = vpop.f32.mrf.mxu0  ;;  %v4533_v62 = vpop.f32.mrf.mxu1 }
 0xe6c   :  { %v4534_v26 = vadd.f32 %v4533_v62, %v4501_v5  ;;  %v4870_v5 = vld [vmem:[%s5622_s8 + $0x60] sm:$0xff] }
 0xe6d   :  { %4881 = vmatpush.msrb.mxu1 %v4870_v5 }
 0xe6e   :  { %v4557_v52 = vmul.f32 %v4548_v42, %v4534_v26 }
 0xe70   :  { %5049 = vmatmul.msk.f32.gmra.mxu3 %vm8595_vm13, %v4557_v52  ;;  %v4869_v52 = vld [vmem:[%s5622_s8 + $0x58] sm:$0xff] }
 0xe71   :  { %4882 = vmatpush.msrb.mxu1 %v4869_v52 }
 0xe73   :  { %v4504_v12 = vpop.f32.mrf.mxu0  ;;  %v4536_v23 = vpop.f32.mrf.mxu1  ;;  %4883 = vmatpush.msrb.mxu1 %v4868_v20 }
 0xe74   :  { %v4537_v1 = vadd.f32 %v4536_v23, %v4504_v12 }
 0xe76   :  { %v4558_v2 = vmul.f32 %v4550_v4, %v4537_v1 }
 0xe78   :  { %5050 = vmatmul.msk.f32.gmra.mxu3 %vm8596_vm0, %v4558_v2 }
 0xee3   :  { %v4631_v63 = vpop.f32.mrf.mxu3 }
 0xee4   :  { %v4632_v0 = vadd.f32 %v4631_v63, %v4590_v21 }
 0xee6   :  { %v4648_v49 = vadd.f32 %v5126_v51, %v4632_v0 }
 0xee8   :  { %5052 = vmatmul.msk.f32.vlgmr.msrb.gmra.mxu0 %vm2559_vm15, %v4648_v49  ;;  %v4867_v49 = vld [vmem:[%s5622_s8 + $0x48] sm:$0xff] }
 0xee9   :  { %4884 = vmatpush.msrb.mxu1 %v4867_v49 }
 0xeeb   :  { %v4634_v32 = vpop.f32.mrf.mxu3 }
 0xeec   :  { %v4635_v40 = vadd.f32 %v4634_v32, %v4593_v44 }
 0xeee   :  { %v4649_v57 = vadd.f32 %v5126_v51, %v4635_v40 }
 0xef0   :  { %5053 = vmatmul.msk.f32.gmra.mxu0 %vm2559_vm15, %v4649_v57 }
 0xef3   :  { %v4637_v16 = vpop.f32.mrf.mxu3 }
 0xef4   :  { %v4638_v3 = vadd.f32 %v4637_v16, %v4596_v14  ;;  %v4866_v16 = vld [vmem:[%s5622_s8 + $0x40] sm:$0xff] }
 0xef5   :  { %4885 = vmatpush.msrb.mxu1 %v4866_v16 }
 0xef6   :  { %v4650_v56 = vadd.f32 %v5126_v51, %v4638_v3 }
 0xef8   :  { %5054 = vmatmul.msk.f32.gmra.mxu0 %vm2559_vm15, %v4650_v56 }
 0xefb   :  { %v4640_v25 = vpop.f32.mrf.mxu3 }
 0xefc   :  { %v4641_v61 = vadd.f32 %v4640_v25, %v4599_v22 }
 0xefe   :  { %v4651_v54 = vadd.f32 %v5126_v51, %v4641_v61 }
 0xf00   :  { %5055 = vmatmul.msk.f32.gmra.mxu0 %vm2559_vm15, %v4651_v54 }
 0xf65   :  { %v4686_v39 = vpop.f32.mrf.mxu0 }
 0xf66   :  { %v8318_v53 = vadd.f32 %v5127_v24, %v4686_v39 }
 0xf68   :  { %v8321_v17 = vmul.f32 0.70710677, %v8318_v53 }
 0xf6a   :  { %v4714_v30 = vand.u32 2147483647, %v8321_v17  ;;  %vm4706_vm14 = vcmp.ge.f32.partialorder %v8321_v17, 0.0 }
 0xf6c   :  { %v4718_v38 = vmul.f32 0.3275911, %v4714_v30  ;;  %v4822_v34 = vsub.f32 0.0, %v4714_v30 }
 0xf6d   :  { %v4689_v18 = vpop.f32.mrf.mxu0 }
 0xf6e   :  { %v4722_v28 = vadd.f32 1.0, %v4718_v38  ;;  %v8324_v43 = vadd.f32 %v5127_v24, %v4689_v18  ;;  %v4826_v4 = vmul.f32 %v4822_v34, %v4714_v30 }
 0xf70   :  { %5297 = vrcp.f32 %v4722_v28  ;;  %v8327_v33 = vmul.f32 0.70710677, %v8324_v43  ;;  %v4737_v47 = vand.u32 2147483648, %v4722_v28  ;;  %v4735_v55 = vand.u32 2147483647, %v4722_v28 }
 0xf71   :  { %vm4731_vm1 = vweird.f32 %v4722_v28  ;;  %v4830_v56 = vmul.f32 1.442695, %v4826_v4 }
 0xf72   :  { %v8330_v19 = vand.u32 2147483647, %v8327_v33  ;;  %v4738_v15 = vor.u32 1.1754944e-38, %v4737_v47  ;;  %vm4736_vm3 = vcmp.eq.f32.partialorder %v4735_v55, 8.507059e+37 }
 0xf74   :  { %v4719_v7 = vmul.f32 0.3275911, %v8330_v19  ;;  %v4823_v30 = vsub.f32 0.0, %v8330_v19 }
 0xf75   :  { %v4692_v11 = vpop.f32.mrf.mxu0 }
 0xf76   :  { %v5298_v58 = vpop.eup %5297  ;;  %v8333_v31 = vadd.f32 %v5127_v24, %v4692_v11  ;;  %v4723_v36 = vadd.f32 1.0, %v4719_v7  ;;  %v4864_v11 = vld [vmem:[%s5622_s8 + $0x30] sm:$0xff] }
 0xf77   :  { %v4727_v29 = vmul.f32 %v5298_v58, %v4722_v28  ;;  %vm4732_vm15 = vweird.f32 %v5298_v58 }
 0xf78   :  { %v8336_v59 = vmul.f32 0.70710677, %v8333_v31  ;;  %5299 = vrcp.f32 %v4723_v36  ;;  %vm4733_vm2 = vmor %vm4731_vm1, %vm4732_vm15  ;;  %v4752_v2 = vand.u32 2147483648, %v4723_v36  ;;  %v4750_v63 = vand.u32 2147483647, %v4723_v36 }
 0xf79   :  { %v4728_v50 = vsub.f32 1.0, %v4727_v29  ;;  %vm4746_vm10 = vweird.f32 %v4723_v36  ;;  %vm4707_vm1 = vcmp.ge.f32.partialorder %v8327_v33, 0.0 }
 0xf7a   :  { %v8339_v35 = vand.u32 2147483647, %v8336_v59  ;;  %v4753_v3 = vor.u32 1.1754944e-38, %v4752_v2  ;;  %vm4751_vm6 = vcmp.eq.f32.partialorder %v4750_v63, 8.507059e+37 }
 0xf7b   :  { %v4729_v27 = vmul.f32 %v5298_v58, %v4728_v50 }
 0xf7c   :  { %v4720_v6 = vmul.f32 0.3275911, %v8339_v35  ;;  %v4824_v10 = vsub.f32 0.0, %v8339_v35 }
 0xf7d   :  { %v4730_v60 = vadd.f32 %v5298_v58, %v4729_v27  ;;  %v4695_v45 = vpop.f32.mrf.mxu0  ;;  %v4827_v27 = vmul.f32 %v4823_v30, %v8330_v19 }
 0xf7e   :  { %v8345_v13 = vadd.f32 1.0, %v4720_v6  ;;  %v8347_v48 = vadd.f32 %v5127_v24, %v4695_v45  ;;  %v5300_v37 = vpop.eup %5299  ;;  %v4865_v24 = vld [vmem:[%s5622_s8 + $0x38] sm:$0xff] }
 0xf7f   :  { %v4734_v41 = vsel %vm4733_vm2, %v5298_v58, %v4730_v60  ;;  %v4742_v26 = vmul.f32 %v5300_v37, %v4723_v36  ;;  %vm4747_vm4 = vweird.f32 %v5300_v37  ;;  %4886 = vmatpush.msrb.mxu1 %v4865_v24  ;;  %v4863_v36 = vld [vmem:[%s5622_s8 + $0x28] sm:$0xff]  ;;  %vm4708_vm2 = vcmp.ge.f32.partialorder %v8336_v59, 0.0 }
 0xf80   :  { %v8350_v62 = vsel %vm4736_vm3, %v4738_v15, %v4734_v41  ;;  %5301 = vrcp.f32 %v8345_v13  ;;  %v8356_v23 = vmul.f32 0.70710677, %v8347_v48  ;;  %vm4748_vm11 = vmor %vm4746_vm10, %vm4747_vm4  ;;  %v4767_v38 = vand.u32 2147483648, %v8345_v13 }
 0xf81   :  { %v4786_v42 = vmul.f32 1.0614054, %v8350_v62  ;;  %v4743_v12 = vsub.f32 1.0, %v4742_v26  ;;  %v4765_v18 = vand.u32 2147483647, %v8345_v13  ;;  %vm4761_vm7 = vweird.f32 %v8345_v13  ;;  %4887 = vmatpush.msrb.mxu1 %v4864_v11 }
 0xf82   :  { %v8360_v51 = vand.u32 2147483647, %v8356_v23  ;;  %v4768_v55 = vor.u32 1.1754944e-38, %v4767_v38  ;;  %v4832_v26 = vmul.f32 1.442695, %v4827_v27  ;;  %vm4709_vm3 = vcmp.ge.f32.partialorder %v8356_v23, 0.0 }
 0xf83   :  { %v4790_v1 = vadd.f32 -1.4531521, %v4786_v42  ;;  %v4744_v21 = vmul.f32 %v5300_v37, %v4743_v12  ;;  %vm4766_vm9 = vcmp.eq.f32.partialorder %v4765_v18, 8.507059e+37  ;;  %4888 = vmatpush.msrb.mxu1 %v4863_v36  ;;  %v4860_v12 = vld [vmem:[%s5622_s8 + $0x10] sm:$0xff]  ;;  %vm4907_vm4 = vcmask 7168  }
 0xf84   :  { %v4721_v32 = vmul.f32 0.3275911, %v8360_v51  ;;  %v4825_v24 = vsub.f32 0.0, %v8360_v51 }
 0xf85   :  { %v4794_v0 = vmul.f32 %v4790_v1, %v8350_v62  ;;  %v4745_v40 = vadd.f32 %v5300_v37, %v4744_v21  ;;  %4889 = vmatpush.msrb.mxu1 %v4862_v9 }
 0xf86   :  { %v5302_v44 = vpop.eup %5301  ;;  %v8367_v22 = vadd.f32 1.0, %v4721_v32  ;;  %v4710_v32 = vsel %vm4706_vm14, 1.0, %v8513_v46  ;;  %v4829_v36 = vmul.f32 %v4825_v24, %v8360_v51 }
 0xf87   :  { %v4798_v57 = vadd.f32 1.4214138, %v4794_v0  ;;  %v4757_v14 = vmul.f32 %v5302_v44, %v8345_v13  ;;  %v4749_v25 = vsel %vm4748_vm11, %v5300_v37, %v4745_v40  ;;  %vm4762_vm5 = vweird.f32 %v5302_v44  ;;  %v4861_v37 = vld [vmem:[%s5622_s8 + $0x18] sm:$0xff]  ;;  %v4859_v0 = vld [vmem:[%s5622_s8 + $0x8] sm:$0xff]  ;;  %v4858_v40 = vld [vmem:[%s5622_s8] sm:$0xff] }
 0xf88   :  { %v8371_v39 = vsel %vm4751_vm6, %v4753_v3, %v4749_v25  ;;  %5303 = vrcp.f32 %v8367_v22  ;;  %vm4763_vm8 = vmor %vm4761_vm7, %vm4762_vm5  ;;  %v4782_v2 = vand.u32 2147483648, %v8367_v22  ;;  %4890 = vmatpush.msrb.mxu1 %v4861_v37  ;;  %v4780_v20 = vand.u32 2147483647, %v8367_v22 }
 0xf89   :  { %v4802_v61 = vmul.f32 %v4798_v57, %v8350_v62  ;;  %v4758_v54 = vsub.f32 1.0, %v4757_v14  ;;  %v4787_v58 = vmul.f32 1.0614054, %v8371_v39  ;;  %5305 = vpow2.f32 %v4830_v56 }
 0xf8a   :  { %5307 = vpow2.f32 %v4832_v26  ;;  %vm4776_vm13 = vweird.f32 %v8367_v22  ;;  %4891 = vmatpush.msrb.mxu1 %v4860_v12  ;;  %v4698_v3 = vmul.f32 0.5, %v8318_v53  ;;  %vm4781_vm15 = vcmp.eq.f32.partialorder %v4780_v20, 8.507059e+37 }
 0xf8b   :  { %v4806_v28 = vadd.f32 -0.28449672, %v4802_v61  ;;  %v4759_v7 = vmul.f32 %v5302_v44, %v4758_v54  ;;  %v4791_v50 = vadd.f32 -1.4531521, %v4787_v58  ;;  %v4783_v25 = vor.u32 1.1754944e-38, %v4782_v2 }
 0xf8c   :  { %4892 = vmatpush.msrb.mxu1 %v4859_v0  ;;  %v4836_v33 = vmul.f32 1.442695, %v4829_v36  ;;  %v4701_v2 = vmul.f32 0.5, %v8347_v48 }
 0xf8d   :  { %v4810_v29 = vmul.f32 %v4806_v28, %v8350_v62  ;;  %v4760_v47 = vadd.f32 %v5302_v44, %v4759_v7  ;;  %v4795_v6 = vmul.f32 %v4791_v50, %v8371_v39 }
 0xf8e   :  { %v5304_v45 = vpop.eup %5303  ;;  %4893 = vmatpush.msrb.mxu1 %v4858_v40 }
 0xf8f   :  { %v4814_v8 = vadd.f32 0.2548296, %v4810_v29  ;;  %v4764_v60 = vsel %vm4763_vm8, %v5302_v44, %v4760_v47  ;;  %v4772_v19 = vmul.f32 %v5304_v45, %v8367_v22  ;;  %v4799_v41 = vadd.f32 1.4214138, %v4795_v6  ;;  %v5306_v5 = vpop.eup %5305 }
 0xf90   :  { %v8386_v15 = vsel %vm4766_vm9, %v4768_v55, %v4764_v60  ;;  %vm4777_vm12 = vweird.f32 %v5304_v45  ;;  %v5308_v7 = vpop.eup %5307  ;;  %v4711_v55 = vsel %vm4707_vm1, 1.0, %v8513_v46  ;;  %v4699_v60 = vmul.f32 0.5, %v8324_v43 }
 0xf91   :  { %v4818_v13 = vmul.f32 %v4814_v8, %v8350_v62  ;;  %v4788_v34 = vmul.f32 1.0614054, %v8386_v15  ;;  %v4773_v52 = vsub.f32 1.0, %v4772_v19  ;;  %v4803_v1 = vmul.f32 %v4799_v41, %v8371_v39  ;;  %vm4778_vm0 = vmor %vm4776_vm13, %vm4777_vm12 }
 0xf92   :  { %v4828_v62 = vmul.f32 %v4824_v10, %v8339_v35  ;;  %v4712_v41 = vsel %vm4708_vm2, 1.0, %v8513_v46 }
 0xf93   :  { %v4838_v42 = vmul.f32 %v5306_v5, %v4818_v13  ;;  %v4792_v4 = vadd.f32 -1.4531521, %v4788_v34  ;;  %v4774_v63 = vmul.f32 %v5304_v45, %v4773_v52  ;;  %v4807_v49 = vadd.f32 -0.28449672, %v4803_v1 }
 0xf94   :  { %v4834_v56 = vmul.f32 1.442695, %v4828_v62 }
 0xf95   :  { %v4842_v21 = vsub.f32 1.0, %v4838_v42  ;;  %v4796_v44 = vmul.f32 %v4792_v4, %v8386_v15  ;;  %v4811_v57 = vmul.f32 %v4807_v49, %v8371_v39  ;;  %v4775_v16 = vadd.f32 %v5304_v45, %v4774_v63 }
 0xf96   :  { %5309 = vpow2.f32 %v4834_v56  ;;  %v4713_v4 = vsel %vm4709_vm3, 1.0, %v8513_v46 }
 0xf97   :  { %v4846_v35 = vmul.f32 %v4842_v21, %v4710_v32  ;;  %v4800_v14 = vadd.f32 1.4214138, %v4796_v44  ;;  %v4815_v61 = vadd.f32 0.2548296, %v4811_v57  ;;  %v4779_v22 = vsel %vm4778_vm0, %v5304_v45, %v4775_v16  ;;  %v5128_v21 = vld [vmem:[#allocation2] ss:$0 sm:$0xff] }
 0xf98   :  { %v4784_v30 = vsel %vm4781_vm15, %v4783_v25, %v4779_v22  ;;  %5311 = vpow2.f32 %v4836_v33 }
 0xf99   :  { %v4850_v17 = vadd.f32 1.0, %v4846_v35  ;;  %v4804_v54 = vmul.f32 %v4800_v14, %v8386_v15  ;;  %v4819_v18 = vmul.f32 %v4815_v61, %v8371_v39  ;;  %v4789_v53 = vmul.f32 1.0614054, %v4784_v30 }
 0xf9b   :  { %v4854_v38 = vmul.f32 %v4850_v17, %v4698_v3  ;;  %v4808_v28 = vadd.f32 -0.28449672, %v4804_v54  ;;  %v4839_v11 = vmul.f32 %v5308_v7, %v4819_v18  ;;  %v4793_v29 = vadd.f32 -1.4531521, %v4789_v53 }
 0xf9c   :  { %v5310_v6 = vpop.eup %5309 }
 0xf9d   :  { %4894 = vmatmul.f32.vlgmr.msrb.gmra.mxu1 %v4854_v38  ;;  %v4812_v58 = vmul.f32 %v4808_v28, %v8386_v15  ;;  %v4843_v50 = vsub.f32 1.0, %v4839_v11  ;;  %v4797_v27 = vmul.f32 %v4793_v29, %v4784_v30 }
 0xf9e   :  { %v5312_v59 = vpop.eup %5311 }
 0xf9f   :  { %v4816_v47 = vadd.f32 0.2548296, %v4812_v58  ;;  %v4847_v8 = vmul.f32 %v4843_v50, %v4711_v55  ;;  %v4801_v9 = vadd.f32 1.4214138, %v4797_v27 }
 0xfa1   :  { %v4820_v39 = vmul.f32 %v4816_v47, %v8386_v15  ;;  %v4851_v45 = vadd.f32 1.0, %v4847_v8  ;;  %v4805_v13 = vmul.f32 %v4801_v9, %v4784_v30  ;;  %v4700_v15 = vmul.f32 0.5, %v8333_v31 }
 0xfa3   :  { %v4840_v10 = vmul.f32 %v5310_v6, %v4820_v39  ;;  %v4855_v19 = vmul.f32 %v4851_v45, %v4699_v60  ;;  %v4809_v37 = vadd.f32 -0.28449672, %v4805_v13 }
 0xfa5   :  { %v4844_v51 = vsub.f32 1.0, %v4840_v10  ;;  %4897 = vmatmul.f32.gmra.mxu1 %v4855_v19  ;;  %v4813_v5 = vmul.f32 %v4809_v37, %v4784_v30 }
 0xfa7   :  { %v4848_v34 = vmul.f32 %v4844_v51, %v4712_v41  ;;  %v4817_v42 = vadd.f32 0.2548296, %v4813_v5 }
 0xfa9   :  { %v4852_v26 = vadd.f32 1.0, %v4848_v34  ;;  %v4821_v52 = vmul.f32 %v4817_v42, %v4784_v30 }
 0xfab   :  { %v4856_v43 = vmul.f32 %v4852_v26, %v4700_v15  ;;  %v4841_v12 = vmul.f32 %v5312_v59, %v4821_v52 }
 0xfad   :  { %4900 = vmatmul.f32.gmra.mxu1 %v4856_v43  ;;  %v4845_v1 = vsub.f32 1.0, %v4841_v12 }
 0xfaf   :  { %v4849_v62 = vmul.f32 %v4845_v1, %v4713_v4 }
 0xfb1   :  { %v4853_v20 = vadd.f32 1.0, %v4849_v62 }
 0xfb3   :  { %v4857_v31 = vmul.f32 %v4853_v20, %v4701_v2 }
 0xfb5   :  { %4903 = vmatmul.f32.gmra.mxu1 %v4857_v31 }
0x101a   :  { %v4895_v63 = vpop.f32.mrf.mxu1 }
0x101b   :  { %v4896_v0 = vadd.f32 %v5128_v21, %v4895_v63 }
0x101d   :  { %4908 = vst.msk [vmem:[%s5630_s4] sm:$0xff] %vm4907_vm4, %v4896_v0 }
0x1022   :  { %v4898_v23 = vpop.f32.mrf.mxu1 }
0x1023   :  { %v4899_v49 = vadd.f32 %v5128_v21, %v4898_v23 }
0x1025   :  { %4909 = vst.msk [vmem:[%s5630_s4 + $0x8] sm:$0xff] %vm4907_vm4, %v4899_v49 }
0x102a   :  { %v4901_v44 = vpop.f32.mrf.mxu1 }
0x102b   :  { %v4902_v32 = vadd.f32 %v5128_v21, %v4901_v44 }
0x102d   :  { %4910 = vst.msk [vmem:[%s5630_s4 + $0x10] sm:$0xff] %vm4907_vm4, %v4902_v32 }
0x1032   :  { %v4904_v46 = vpop.f32.mrf.mxu1 }
0x1033   :  { %v4905_v35 = vadd.f32 %v5128_v21, %v4904_v46 }
0x1035   :  { %4911 = vst.msk [vmem:[%s5630_s4 + $0x18] sm:$0xff] %vm4907_vm4, %v4905_v35 }
0x1036   :  { %4916 = vsyncpa [#allocation4], 1 }
0x1037   :  { %4917 = vsyncpa [#allocation6], 1 }

</bundles_post_ra>
